<compile_context>
chip_gen: v7x
topology: tpu7x:2x2x1
jax: 0.10.0
libtpu: 0.0.40
codegen_flags: <defaults>
</compile_context>

<pallas_src>
import functools

import jax
import jax.numpy as jnp
from jax.experimental import pallas as pl
from jax.experimental.pallas import tpu as pltpu

EPS = 1e-5  # PyTorch BatchNorm2d default eps


def _mish(x):
    # mish(x) = x * tanh(softplus(x)); numerically-stable softplus
    sp = jnp.maximum(x, 0.0) + jnp.log1p(jnp.exp(-jnp.abs(x)))
    return x * jnp.tanh(sp)


def st_kernel(x_ref, wqkv_ref, wproj_ref, bproj_ref, bn0_ref, bn1_ref, o_ref,
              *, head_num, t, res):
    # x_ref block: (1, C, T*V) -- lane-dense slab for one sample (all t sequences).
    C = x_ref.shape[1]
    TV = x_ref.shape[2]
    V = TV // t
    D = C // head_num
    scale = float(D) ** -0.5

    # ---- load channels-first tile, go channels-last in VMEM (in-kernel XLU transpose) ----
    x_cf = x_ref[0]                                   # (C, TV) f32
    x_cl = jnp.transpose(x_cf)                        # (TV, C) f32

    # ---- bn0 (inference); scale/shift precomputed on host ----
    bn0 = bn0_ref[...]                                # (2, C): [scale, shift]
    xb = x_cl * bn0[0:1, :] + bn0[1:2, :]             # (TV, C) f32

    # ---- fused qkv projection: one MXU GEMM with M = T*V rows ----
    qkv = jnp.dot(xb.astype(jnp.bfloat16), wqkv_ref[...],
                  preferred_element_type=jnp.float32)  # (TV, 3C) f32
    qkv3 = qkv.reshape(t, V, 3 * C)                    # (T, V, 3C)

    # ---- multi-head self-attention, batched over the T sequences per head ----
    ctx_heads = []
    for h in range(head_num):                          # static, unrolled
        qh = qkv3[..., h * D:(h + 1) * D].astype(jnp.bfloat16)                # (T,V,D)
        kh = qkv3[..., C + h * D:C + (h + 1) * D].astype(jnp.bfloat16)        # (T,V,D)
        vh = qkv3[..., 2 * C + h * D:2 * C + (h + 1) * D].astype(jnp.bfloat16)
        s = jnp.einsum('tqd,tkd->tqk', qh, kh,
                       preferred_element_type=jnp.float32) * scale            # (T,V,V)
        s = s - jnp.max(s, axis=-1, keepdims=True)
        p = jnp.exp(s)
        p = p * pl.reciprocal(jnp.sum(p, axis=-1, keepdims=True), approx=True)
        ctx_heads.append(
            jnp.einsum('tqk,tkd->tqd', p.astype(jnp.bfloat16), vh,
                       preferred_element_type=jnp.float32))                   # (T,V,D)
    ctx = jnp.concatenate(ctx_heads, axis=-1).reshape(TV, C)                  # (TV, C)

    # ---- output projection (+bias), residual, mish, bn1 ----
    attn = jnp.dot(ctx.astype(jnp.bfloat16), wproj_ref[...],
                   preferred_element_type=jnp.float32) + bproj_ref[...]       # (TV, C)
    y = attn + xb if res else attn
    y = _mish(y)
    bn1 = bn1_ref[...]
    y = y * bn1[0:1, :] + bn1[1:2, :]

    # ---- store lane-dense (C, T*V) slab: unmasked vst, no wrapper transpose ----
    o_ref[0] = jnp.transpose(y)


def st_forward(x_nctv, params, *, head_num=8, res=True):
    """x_nctv: [n, c, t, v] float32 -> [n, c, t, v] float32."""
    n, c, t, v = x_nctv.shape
    assert c % head_num == 0, "channels must be divisible by head_num"
    tv = t * v

    # [n, c, t, v] -> [n, c, t*v]: free reshape (no transpose / extra HBM round trip).
    x_flat = x_nctv.reshape(n, c, tv).astype(jnp.float32)

    # Fold BatchNorm (inference, running stats) into per-channel scale/shift on host.
    g0, b0, m0, v0 = params["bn0"]
    g1, b1, m1, v1 = params["bn1"]
    s0 = g0 * jax.lax.rsqrt(v0 + EPS)
    s1 = g1 * jax.lax.rsqrt(v1 + EPS)
    bn0_ss = jnp.stack([s0, b0 - m0 * s0]).astype(jnp.float32)   # (2, c)
    bn1_ss = jnp.stack([s1, b1 - m1 * s1]).astype(jnp.float32)   # (2, c)

    wqkv = params["wqkv"].astype(jnp.bfloat16)    # (c, 3c)  x @ W layout
    wproj = params["wproj"].astype(jnp.bfloat16)  # (c, c)
    bproj = params["bproj"].astype(jnp.float32)   # (1, c)

    kernel = functools.partial(st_kernel, head_num=head_num, t=t, res=res)

    out_flat = pl.pallas_call(
        kernel,
        out_shape=jax.ShapeDtypeStruct((n, c, tv), jnp.float32),
        grid_spec=pltpu.PrefetchScalarGridSpec(
            num_scalar_prefetch=0,
            grid=(n,),                      # >=2 parallel steps keeps both v7x TCs busy
            in_specs=[
                pl.BlockSpec((1, c, tv), lambda i: (i, 0, 0)),   # activations (lane-dense)
                pl.BlockSpec((c, 3 * c), lambda i: (0, 0)),      # Wqkv (resident)
                pl.BlockSpec((c, c), lambda i: (0, 0)),          # Wproj (resident)
                pl.BlockSpec((1, c), lambda i: (0, 0)),          # proj bias
                pl.BlockSpec((2, c), lambda i: (0, 0)),          # bn0 scale/shift
                pl.BlockSpec((2, c), lambda i: (0, 0)),          # bn1 scale/shift
            ],
            out_specs=pl.BlockSpec((1, c, tv), lambda i: (i, 0, 0)),
        ),
        compiler_params=pltpu.CompilerParams(
            dimension_semantics=("parallel",)),
    )(x_flat, wqkv, wproj, bproj, bn0_ss, bn1_ss)

    return out_flat.reshape(n, c, t, v)


def st_reference(x_nctv, params, *, head_num=8, res=True):
    """Pure-JAX reference mirroring the kernel's mixed precision (bf16 matmul inputs,
    f32 accumulation) so the numerical check is tight; math matches the PyTorch
    module in eval mode."""
    n, c, t, v = x_nctv.shape
    D = c // head_num
    scale = float(D) ** -0.5
    g0, b0, m0, v0 = params["bn0"]
    g1, b1, m1, v1 = params["bn1"]
    s0 = g0 * jax.lax.rsqrt(v0 + EPS)
    s1 = g1 * jax.lax.rsqrt(v1 + EPS)

    x = x_nctv * s0[None, :, None, None] + (b0 - m0 * s0)[None, :, None, None]
    xs = jnp.transpose(x, (0, 2, 3, 1)).reshape(n * t, v, c)      # (B, V, C)

    wqkv = params["wqkv"].astype(jnp.bfloat16)
    wproj = params["wproj"].astype(jnp.bfloat16)
    qkv = jnp.dot(xs.astype(jnp.bfloat16), wqkv, preferred_element_type=jnp.float32)
    q, k, vv = jnp.split(qkv, 3, axis=-1)

    def heads(z):
        return z.reshape(n * t, v, head_num, D).transpose(0, 2, 1, 3).astype(jnp.bfloat16)

    q, k, vv = heads(q), heads(k), heads(vv)
    s = jnp.einsum('bhqd,bhkd->bhqk', q, k, preferred_element_type=jnp.float32) * scale
    p = jax.nn.softmax(s, axis=-1)
    ctx = jnp.einsum('bhqk,bhkd->bhqd', p.astype(jnp.bfloat16), vv,
                     preferred_element_type=jnp.float32)
    ctx = ctx.transpose(0, 2, 1, 3).reshape(n * t, v, c)
    proj = jnp.dot(ctx.astype(jnp.bfloat16), wproj,
                   preferred_element_type=jnp.float32) + params["bproj"][0]
    y = proj + xs if res else proj
    y = _mish(y)
    y = y * s1[None, None, :] + (b1 - m1 * s1)[None, None, :]
    return jnp.transpose(y.reshape(n, t, v, c), (0, 3, 1, 2))


def make_params(key, c):
    ks = jax.random.split(key, 8)
    wqkv = jax.random.normal(ks[0], (c, 3 * c), jnp.float32) * (c ** -0.5)
    wproj = jax.random.normal(ks[1], (c, c), jnp.float32) * (c ** -0.5)
    bproj = (jax.random.normal(ks[2], (1, c), jnp.float32) * 0.1)
    bn0 = jnp.stack([
        1.0 + 0.1 * jax.random.normal(ks[3], (c,), jnp.float32),    # gamma
        0.1 * jax.random.normal(ks[4], (c,), jnp.float32),          # beta
        0.1 * jax.random.normal(ks[5], (c,), jnp.float32),          # running_mean
        0.5 + jnp.abs(jax.random.normal(ks[6], (c,), jnp.float32)), # running_var > 0
    ])
    bn1 = jnp.stack([
        1.0 + 0.1 * jax.random.normal(ks[7], (c,), jnp.float32),
        0.05 * jnp.ones((c,), jnp.float32),
        0.05 * jnp.ones((c,), jnp.float32),
        1.0 + 0.5 * jnp.ones((c,), jnp.float32),
    ])
    return {"wqkv": wqkv, "wproj": wproj, "bproj": bproj, "bn0": bn0, "bn1": bn1}


if __name__ == "__main__":
    # x [n, c, t, v]; channels divisible by head_num; t*v = 128 (lane-dense slab).
    n, c, t, v = 2, 32, 8, 16
    head_num = 8

    key = jax.random.PRNGKey(0)
    kx, kp = jax.random.split(key)
    x = jax.random.normal(kx, (n, c, t, v), jnp.float32)
    params = make_params(kp, c)

    out = st_forward(x, params, head_num=head_num, res=True)
    out = jax.block_until_ready(out)

    ref = st_reference(x, params, head_num=head_num, res=True)
    assert out.shape == (n, c, t, v), out.shape
    max_err = float(jnp.max(jnp.abs(out - ref)))
    assert jnp.allclose(out, ref, atol=2e-2, rtol=2e-2), max_err

    print("KERNEL_OK")
</pallas_src>

<mosaic_0001>
module attributes {stable_mosaic.version = 11 : i64} {
  func.func @st_kernel(%arg0: i32, %arg1: memref<1x32x128xf32, #tpu.memory_space<vmem>>, %arg2: memref<32x96xbf16, #tpu.memory_space<vmem>>, %arg3: memref<32x32xbf16, #tpu.memory_space<vmem>>, %arg4: memref<1x32xf32, #tpu.memory_space<vmem>>, %arg5: memref<2x32xf32, #tpu.memory_space<vmem>>, %arg6: memref<2x32xf32, #tpu.memory_space<vmem>>, %arg7: memref<1x32x128xf32, #tpu.memory_space<vmem>>) attributes {dimension_semantics = [#tpu.dimension_semantics<parallel>], iteration_bounds = array<i64: 2>, scalar_prefetch = 0 : i64, scratch_operands = 0 : i64, tpu.core_type = #tpu.core_type<tc>, window_params = [{transform_indices = @transform_0, window_bounds = array<i64: 1, 32, 128>}, {pipeline_mode = #tpu.pipeline_mode<synchronous>, transform_indices = @transform_1, window_bounds = array<i64: 32, 96>}, {pipeline_mode = #tpu.pipeline_mode<synchronous>, transform_indices = @transform_2, window_bounds = array<i64: 32, 32>}, {pipeline_mode = #tpu.pipeline_mode<synchronous>, transform_indices = @transform_3, window_bounds = array<i64: 1, 32>}, {pipeline_mode = #tpu.pipeline_mode<synchronous>, transform_indices = @transform_4, window_bounds = array<i64: 2, 32>}, {pipeline_mode = #tpu.pipeline_mode<synchronous>, transform_indices = @transform_5, window_bounds = array<i64: 2, 32>}, {transform_indices = @transform_6, window_bounds = array<i64: 1, 32, 128>}]} {
    %c0 = arith.constant 0 : index
    %c0_0 = arith.constant 0 : index
    %c0_1 = arith.constant 0 : index
    %0 = vector.load %arg1[%c0, %c0_0, %c0_1] : memref<1x32x128xf32, #tpu.memory_space<vmem>>, vector<1x32x128xf32>
    %1 = vector.shape_cast %0 : vector<1x32x128xf32> to vector<32x128xf32>
    %2 = tpu.transpose %1, [1, 0] : vector<32x128xf32> -> vector<128x32xf32>
    %c0_2 = arith.constant 0 : index
    %c0_3 = arith.constant 0 : index
    %3 = vector.load %arg5[%c0_2, %c0_3] : memref<2x32xf32, #tpu.memory_space<vmem>>, vector<2x32xf32>
    %4 = vector.extract_strided_slice %3 {offsets = [0, 0], sizes = [1, 32], strides = [1, 1]} : vector<2x32xf32> to vector<1x32xf32>
    %5 = vector.broadcast %4 : vector<1x32xf32> to vector<128x32xf32>
    %6 = arith.mulf %2, %5 : vector<128x32xf32>
    %7 = vector.extract_strided_slice %3 {offsets = [1, 0], sizes = [1, 32], strides = [1, 1]} : vector<2x32xf32> to vector<1x32xf32>
    %8 = vector.broadcast %7 : vector<1x32xf32> to vector<128x32xf32>
    %9 = arith.addf %6, %8 : vector<128x32xf32>
    %10 = arith.truncf %9 : vector<128x32xf32> to vector<128x32xbf16>
    %c0_4 = arith.constant 0 : index
    %c0_5 = arith.constant 0 : index
    %11 = vector.load %arg2[%c0_4, %c0_5] : memref<32x96xbf16, #tpu.memory_space<vmem>>, vector<32x96xbf16>
    %cst = arith.constant dense<0.000000e+00> : vector<128x96xf32>
    %12 = tpu.matmul %10, %11, %cst {dimension_numbers = #tpu.dot_dimension_numbers<[1], [0], [0], [1], [0, 0, 1, 1], [], []>} : vector<128x32xbf16>, vector<32x96xbf16>, vector<128x96xf32> -> vector<128x96xf32>
    %13 = vector.shape_cast %12 : vector<128x96xf32> to vector<8x16x96xf32>
    %14 = vector.extract_strided_slice %13 {offsets = [0, 0, 0], sizes = [8, 16, 4], strides = [1, 1, 1]} : vector<8x16x96xf32> to vector<8x16x4xf32>
    %15 = arith.truncf %14 : vector<8x16x4xf32> to vector<8x16x4xbf16>
    %16 = vector.extract_strided_slice %13 {offsets = [0, 0, 32], sizes = [8, 16, 4], strides = [1, 1, 1]} : vector<8x16x96xf32> to vector<8x16x4xf32>
    %17 = arith.truncf %16 : vector<8x16x4xf32> to vector<8x16x4xbf16>
    %18 = vector.extract_strided_slice %13 {offsets = [0, 0, 64], sizes = [8, 16, 4], strides = [1, 1, 1]} : vector<8x16x96xf32> to vector<8x16x4xf32>
    %19 = arith.truncf %18 : vector<8x16x4xf32> to vector<8x16x4xbf16>
    "tpu.trace_start"() <{level = 10 : i32, message = "tqd,tkd->tqk"}> : () -> ()
    %cst_6 = arith.constant dense<0.000000e+00> : vector<8x16x16xf32>
    %20 = tpu.matmul %15, %17, %cst_6 {dimension_numbers = #tpu.dot_dimension_numbers<[2], [2], [1], [1], [0, 0, 0, 1, 1, 1], [0], [0]>} : vector<8x16x4xbf16>, vector<8x16x4xbf16>, vector<8x16x16xf32> -> vector<8x16x16xf32>
    "tpu.trace_stop"() : () -> ()
    %cst_7 = arith.constant 5.000000e-01 : f32
    %21 = vector.broadcast %cst_7 : f32 to vector<8x16x16xf32>
    %22 = arith.mulf %20, %21 : vector<8x16x16xf32>
    %cst_8 = arith.constant dense<0xFF800000> : vector<8x16xf32>
    %23 = vector.multi_reduction <maximumf>, %22, %cst_8 [2] : vector<8x16x16xf32> to vector<8x16xf32>
    %24 = vector.shape_cast %23 : vector<8x16xf32> to vector<8x16x1xf32>
    %25 = vector.broadcast %24 : vector<8x16x1xf32> to vector<8x16x16xf32>
    %26 = arith.subf %22, %25 : vector<8x16x16xf32>
    %27 = math.exp %26 : vector<8x16x16xf32>
    %cst_9 = arith.constant dense<0.000000e+00> : vector<8x16xf32>
    %28 = vector.multi_reduction <add>, %27, %cst_9 [2] : vector<8x16x16xf32> to vector<8x16xf32>
    %29 = vector.shape_cast %28 : vector<8x16xf32> to vector<8x16x1xf32>
    %30 = tpu.reciprocal %29 {approx = true} : vector<8x16x1xf32> -> vector<8x16x1xf32>
    %31 = vector.broadcast %30 : vector<8x16x1xf32> to vector<8x16x16xf32>
    %32 = arith.mulf %27, %31 : vector<8x16x16xf32>
    %33 = arith.truncf %32 : vector<8x16x16xf32> to vector<8x16x16xbf16>
    "tpu.trace_start"() <{level = 10 : i32, message = "tqk,tkd->tqd"}> : () -> ()
    %cst_10 = arith.constant dense<0.000000e+00> : vector<8x16x4xf32>
    %34 = tpu.matmul %33, %19, %cst_10 {dimension_numbers = #tpu.dot_dimension_numbers<[2], [1], [1], [2], [0, 0, 0, 1, 1, 2], [0], [0]>} : vector<8x16x16xbf16>, vector<8x16x4xbf16>, vector<8x16x4xf32> -> vector<8x16x4xf32>
    "tpu.trace_stop"() : () -> ()
    %35 = vector.extract_strided_slice %13 {offsets = [0, 0, 4], sizes = [8, 16, 4], strides = [1, 1, 1]} : vector<8x16x96xf32> to vector<8x16x4xf32>
    %36 = arith.truncf %35 : vector<8x16x4xf32> to vector<8x16x4xbf16>
    %37 = vector.extract_strided_slice %13 {offsets = [0, 0, 36], sizes = [8, 16, 4], strides = [1, 1, 1]} : vector<8x16x96xf32> to vector<8x16x4xf32>
    %38 = arith.truncf %37 : vector<8x16x4xf32> to vector<8x16x4xbf16>
    %39 = vector.extract_strided_slice %13 {offsets = [0, 0, 68], sizes = [8, 16, 4], strides = [1, 1, 1]} : vector<8x16x96xf32> to vector<8x16x4xf32>
    %40 = arith.truncf %39 : vector<8x16x4xf32> to vector<8x16x4xbf16>
    "tpu.trace_start"() <{level = 10 : i32, message = "tqd,tkd->tqk"}> : () -> ()
    %cst_11 = arith.constant dense<0.000000e+00> : vector<8x16x16xf32>
    %41 = tpu.matmul %36, %38, %cst_11 {dimension_numbers = #tpu.dot_dimension_numbers<[2], [2], [1], [1], [0, 0, 0, 1, 1, 1], [0], [0]>} : vector<8x16x4xbf16>, vector<8x16x4xbf16>, vector<8x16x16xf32> -> vector<8x16x16xf32>
    "tpu.trace_stop"() : () -> ()
    %cst_12 = arith.constant 5.000000e-01 : f32
    %42 = vector.broadcast %cst_12 : f32 to vector<8x16x16xf32>
    %43 = arith.mulf %41, %42 : vector<8x16x16xf32>
    %cst_13 = arith.constant dense<0xFF800000> : vector<8x16xf32>
    %44 = vector.multi_reduction <maximumf>, %43, %cst_13 [2] : vector<8x16x16xf32> to vector<8x16xf32>
    %45 = vector.shape_cast %44 : vector<8x16xf32> to vector<8x16x1xf32>
    %46 = vector.broadcast %45 : vector<8x16x1xf32> to vector<8x16x16xf32>
    %47 = arith.subf %43, %46 : vector<8x16x16xf32>
    %48 = math.exp %47 : vector<8x16x16xf32>
    %cst_14 = arith.constant dense<0.000000e+00> : vector<8x16xf32>
    %49 = vector.multi_reduction <add>, %48, %cst_14 [2] : vector<8x16x16xf32> to vector<8x16xf32>
    %50 = vector.shape_cast %49 : vector<8x16xf32> to vector<8x16x1xf32>
    %51 = tpu.reciprocal %50 {approx = true} : vector<8x16x1xf32> -> vector<8x16x1xf32>
    %52 = vector.broadcast %51 : vector<8x16x1xf32> to vector<8x16x16xf32>
    %53 = arith.mulf %48, %52 : vector<8x16x16xf32>
    %54 = arith.truncf %53 : vector<8x16x16xf32> to vector<8x16x16xbf16>
    "tpu.trace_start"() <{level = 10 : i32, message = "tqk,tkd->tqd"}> : () -> ()
    %cst_15 = arith.constant dense<0.000000e+00> : vector<8x16x4xf32>
    %55 = tpu.matmul %54, %40, %cst_15 {dimension_numbers = #tpu.dot_dimension_numbers<[2], [1], [1], [2], [0, 0, 0, 1, 1, 2], [0], [0]>} : vector<8x16x16xbf16>, vector<8x16x4xbf16>, vector<8x16x4xf32> -> vector<8x16x4xf32>
    "tpu.trace_stop"() : () -> ()
    %56 = vector.extract_strided_slice %13 {offsets = [0, 0, 8], sizes = [8, 16, 4], strides = [1, 1, 1]} : vector<8x16x96xf32> to vector<8x16x4xf32>
    %57 = arith.truncf %56 : vector<8x16x4xf32> to vector<8x16x4xbf16>
    %58 = vector.extract_strided_slice %13 {offsets = [0, 0, 40], sizes = [8, 16, 4], strides = [1, 1, 1]} : vector<8x16x96xf32> to vector<8x16x4xf32>
    %59 = arith.truncf %58 : vector<8x16x4xf32> to vector<8x16x4xbf16>
    %60 = vector.extract_strided_slice %13 {offsets = [0, 0, 72], sizes = [8, 16, 4], strides = [1, 1, 1]} : vector<8x16x96xf32> to vector<8x16x4xf32>
    %61 = arith.truncf %60 : vector<8x16x4xf32> to vector<8x16x4xbf16>
    "tpu.trace_start"() <{level = 10 : i32, message = "tqd,tkd->tqk"}> : () -> ()
    %cst_16 = arith.constant dense<0.000000e+00> : vector<8x16x16xf32>
    %62 = tpu.matmul %57, %59, %cst_16 {dimension_numbers = #tpu.dot_dimension_numbers<[2], [2], [1], [1], [0, 0, 0, 1, 1, 1], [0], [0]>} : vector<8x16x4xbf16>, vector<8x16x4xbf16>, vector<8x16x16xf32> -> vector<8x16x16xf32>
    "tpu.trace_stop"() : () -> ()
    %cst_17 = arith.constant 5.000000e-01 : f32
    %63 = vector.broadcast %cst_17 : f32 to vector<8x16x16xf32>
    %64 = arith.mulf %62, %63 : vector<8x16x16xf32>
    %cst_18 = arith.constant dense<0xFF800000> : vector<8x16xf32>
    %65 = vector.multi_reduction <maximumf>, %64, %cst_18 [2] : vector<8x16x16xf32> to vector<8x16xf32>
    %66 = vector.shape_cast %65 : vector<8x16xf32> to vector<8x16x1xf32>
    %67 = vector.broadcast %66 : vector<8x16x1xf32> to vector<8x16x16xf32>
    %68 = arith.subf %64, %67 : vector<8x16x16xf32>
    %69 = math.exp %68 : vector<8x16x16xf32>
    %cst_19 = arith.constant dense<0.000000e+00> : vector<8x16xf32>
    %70 = vector.multi_reduction <add>, %69, %cst_19 [2] : vector<8x16x16xf32> to vector<8x16xf32>
    %71 = vector.shape_cast %70 : vector<8x16xf32> to vector<8x16x1xf32>
    %72 = tpu.reciprocal %71 {approx = true} : vector<8x16x1xf32> -> vector<8x16x1xf32>
    %73 = vector.broadcast %72 : vector<8x16x1xf32> to vector<8x16x16xf32>
    %74 = arith.mulf %69, %73 : vector<8x16x16xf32>
    %75 = arith.truncf %74 : vector<8x16x16xf32> to vector<8x16x16xbf16>
    "tpu.trace_start"() <{level = 10 : i32, message = "tqk,tkd->tqd"}> : () -> ()
    %cst_20 = arith.constant dense<0.000000e+00> : vector<8x16x4xf32>
    %76 = tpu.matmul %75, %61, %cst_20 {dimension_numbers = #tpu.dot_dimension_numbers<[2], [1], [1], [2], [0, 0, 0, 1, 1, 2], [0], [0]>} : vector<8x16x16xbf16>, vector<8x16x4xbf16>, vector<8x16x4xf32> -> vector<8x16x4xf32>
    "tpu.trace_stop"() : () -> ()
    %77 = vector.extract_strided_slice %13 {offsets = [0, 0, 12], sizes = [8, 16, 4], strides = [1, 1, 1]} : vector<8x16x96xf32> to vector<8x16x4xf32>
    %78 = arith.truncf %77 : vector<8x16x4xf32> to vector<8x16x4xbf16>
    %79 = vector.extract_strided_slice %13 {offsets = [0, 0, 44], sizes = [8, 16, 4], strides = [1, 1, 1]} : vector<8x16x96xf32> to vector<8x16x4xf32>
    %80 = arith.truncf %79 : vector<8x16x4xf32> to vector<8x16x4xbf16>
    %81 = vector.extract_strided_slice %13 {offsets = [0, 0, 76], sizes = [8, 16, 4], strides = [1, 1, 1]} : vector<8x16x96xf32> to vector<8x16x4xf32>
    %82 = arith.truncf %81 : vector<8x16x4xf32> to vector<8x16x4xbf16>
    "tpu.trace_start"() <{level = 10 : i32, message = "tqd,tkd->tqk"}> : () -> ()
    %cst_21 = arith.constant dense<0.000000e+00> : vector<8x16x16xf32>
    %83 = tpu.matmul %78, %80, %cst_21 {dimension_numbers = #tpu.dot_dimension_numbers<[2], [2], [1], [1], [0, 0, 0, 1, 1, 1], [0], [0]>} : vector<8x16x4xbf16>, vector<8x16x4xbf16>, vector<8x16x16xf32> -> vector<8x16x16xf32>
    "tpu.trace_stop"() : () -> ()
    %cst_22 = arith.constant 5.000000e-01 : f32
    %84 = vector.broadcast %cst_22 : f32 to vector<8x16x16xf32>
    %85 = arith.mulf %83, %84 : vector<8x16x16xf32>
    %cst_23 = arith.constant dense<0xFF800000> : vector<8x16xf32>
    %86 = vector.multi_reduction <maximumf>, %85, %cst_23 [2] : vector<8x16x16xf32> to vector<8x16xf32>
    %87 = vector.shape_cast %86 : vector<8x16xf32> to vector<8x16x1xf32>
    %88 = vector.broadcast %87 : vector<8x16x1xf32> to vector<8x16x16xf32>
    %89 = arith.subf %85, %88 : vector<8x16x16xf32>
    %90 = math.exp %89 : vector<8x16x16xf32>
    %cst_24 = arith.constant dense<0.000000e+00> : vector<8x16xf32>
    %91 = vector.multi_reduction <add>, %90, %cst_24 [2] : vector<8x16x16xf32> to vector<8x16xf32>
    %92 = vector.shape_cast %91 : vector<8x16xf32> to vector<8x16x1xf32>
    %93 = tpu.reciprocal %92 {approx = true} : vector<8x16x1xf32> -> vector<8x16x1xf32>
    %94 = vector.broadcast %93 : vector<8x16x1xf32> to vector<8x16x16xf32>
    %95 = arith.mulf %90, %94 : vector<8x16x16xf32>
    %96 = arith.truncf %95 : vector<8x16x16xf32> to vector<8x16x16xbf16>
    "tpu.trace_start"() <{level = 10 : i32, message = "tqk,tkd->tqd"}> : () -> ()
    %cst_25 = arith.constant dense<0.000000e+00> : vector<8x16x4xf32>
    %97 = tpu.matmul %96, %82, %cst_25 {dimension_numbers = #tpu.dot_dimension_numbers<[2], [1], [1], [2], [0, 0, 0, 1, 1, 2], [0], [0]>} : vector<8x16x16xbf16>, vector<8x16x4xbf16>, vector<8x16x4xf32> -> vector<8x16x4xf32>
    "tpu.trace_stop"() : () -> ()
    %98 = vector.extract_strided_slice %13 {offsets = [0, 0, 16], sizes = [8, 16, 4], strides = [1, 1, 1]} : vector<8x16x96xf32> to vector<8x16x4xf32>
    %99 = arith.truncf %98 : vector<8x16x4xf32> to vector<8x16x4xbf16>
    %100 = vector.extract_strided_slice %13 {offsets = [0, 0, 48], sizes = [8, 16, 4], strides = [1, 1, 1]} : vector<8x16x96xf32> to vector<8x16x4xf32>
    %101 = arith.truncf %100 : vector<8x16x4xf32> to vector<8x16x4xbf16>
    %102 = vector.extract_strided_slice %13 {offsets = [0, 0, 80], sizes = [8, 16, 4], strides = [1, 1, 1]} : vector<8x16x96xf32> to vector<8x16x4xf32>
    %103 = arith.truncf %102 : vector<8x16x4xf32> to vector<8x16x4xbf16>
    "tpu.trace_start"() <{level = 10 : i32, message = "tqd,tkd->tqk"}> : () -> ()
    %cst_26 = arith.constant dense<0.000000e+00> : vector<8x16x16xf32>
    %104 = tpu.matmul %99, %101, %cst_26 {dimension_numbers = #tpu.dot_dimension_numbers<[2], [2], [1], [1], [0, 0, 0, 1, 1, 1], [0], [0]>} : vector<8x16x4xbf16>, vector<8x16x4xbf16>, vector<8x16x16xf32> -> vector<8x16x16xf32>
    "tpu.trace_stop"() : () -> ()
    %cst_27 = arith.constant 5.000000e-01 : f32
    %105 = vector.broadcast %cst_27 : f32 to vector<8x16x16xf32>
    %106 = arith.mulf %104, %105 : vector<8x16x16xf32>
    %cst_28 = arith.constant dense<0xFF800000> : vector<8x16xf32>
    %107 = vector.multi_reduction <maximumf>, %106, %cst_28 [2] : vector<8x16x16xf32> to vector<8x16xf32>
    %108 = vector.shape_cast %107 : vector<8x16xf32> to vector<8x16x1xf32>
    %109 = vector.broadcast %108 : vector<8x16x1xf32> to vector<8x16x16xf32>
    %110 = arith.subf %106, %109 : vector<8x16x16xf32>
    %111 = math.exp %110 : vector<8x16x16xf32>
    %cst_29 = arith.constant dense<0.000000e+00> : vector<8x16xf32>
    %112 = vector.multi_reduction <add>, %111, %cst_29 [2] : vector<8x16x16xf32> to vector<8x16xf32>
    %113 = vector.shape_cast %112 : vector<8x16xf32> to vector<8x16x1xf32>
    %114 = tpu.reciprocal %113 {approx = true} : vector<8x16x1xf32> -> vector<8x16x1xf32>
    %115 = vector.broadcast %114 : vector<8x16x1xf32> to vector<8x16x16xf32>
    %116 = arith.mulf %111, %115 : vector<8x16x16xf32>
    %117 = arith.truncf %116 : vector<8x16x16xf32> to vector<8x16x16xbf16>
    "tpu.trace_start"() <{level = 10 : i32, message = "tqk,tkd->tqd"}> : () -> ()
    %cst_30 = arith.constant dense<0.000000e+00> : vector<8x16x4xf32>
    %118 = tpu.matmul %117, %103, %cst_30 {dimension_numbers = #tpu.dot_dimension_numbers<[2], [1], [1], [2], [0, 0, 0, 1, 1, 2], [0], [0]>} : vector<8x16x16xbf16>, vector<8x16x4xbf16>, vector<8x16x4xf32> -> vector<8x16x4xf32>
    "tpu.trace_stop"() : () -> ()
    %119 = vector.extract_strided_slice %13 {offsets = [0, 0, 20], sizes = [8, 16, 4], strides = [1, 1, 1]} : vector<8x16x96xf32> to vector<8x16x4xf32>
    %120 = arith.truncf %119 : vector<8x16x4xf32> to vector<8x16x4xbf16>
    %121 = vector.extract_strided_slice %13 {offsets = [0, 0, 52], sizes = [8, 16, 4], strides = [1, 1, 1]} : vector<8x16x96xf32> to vector<8x16x4xf32>
    %122 = arith.truncf %121 : vector<8x16x4xf32> to vector<8x16x4xbf16>
    %123 = vector.extract_strided_slice %13 {offsets = [0, 0, 84], sizes = [8, 16, 4], strides = [1, 1, 1]} : vector<8x16x96xf32> to vector<8x16x4xf32>
    %124 = arith.truncf %123 : vector<8x16x4xf32> to vector<8x16x4xbf16>
    "tpu.trace_start"() <{level = 10 : i32, message = "tqd,tkd->tqk"}> : () -> ()
    %cst_31 = arith.constant dense<0.000000e+00> : vector<8x16x16xf32>
    %125 = tpu.matmul %120, %122, %cst_31 {dimension_numbers = #tpu.dot_dimension_numbers<[2], [2], [1], [1], [0, 0, 0, 1, 1, 1], [0], [0]>} : vector<8x16x4xbf16>, vector<8x16x4xbf16>, vector<8x16x16xf32> -> vector<8x16x16xf32>
    "tpu.trace_stop"() : () -> ()
    %cst_32 = arith.constant 5.000000e-01 : f32
    %126 = vector.broadcast %cst_32 : f32 to vector<8x16x16xf32>
    %127 = arith.mulf %125, %126 : vector<8x16x16xf32>
    %cst_33 = arith.constant dense<0xFF800000> : vector<8x16xf32>
    %128 = vector.multi_reduction <maximumf>, %127, %cst_33 [2] : vector<8x16x16xf32> to vector<8x16xf32>
    %129 = vector.shape_cast %128 : vector<8x16xf32> to vector<8x16x1xf32>
    %130 = vector.broadcast %129 : vector<8x16x1xf32> to vector<8x16x16xf32>
    %131 = arith.subf %127, %130 : vector<8x16x16xf32>
    %132 = math.exp %131 : vector<8x16x16xf32>
    %cst_34 = arith.constant dense<0.000000e+00> : vector<8x16xf32>
    %133 = vector.multi_reduction <add>, %132, %cst_34 [2] : vector<8x16x16xf32> to vector<8x16xf32>
    %134 = vector.shape_cast %133 : vector<8x16xf32> to vector<8x16x1xf32>
    %135 = tpu.reciprocal %134 {approx = true} : vector<8x16x1xf32> -> vector<8x16x1xf32>
    %136 = vector.broadcast %135 : vector<8x16x1xf32> to vector<8x16x16xf32>
    %137 = arith.mulf %132, %136 : vector<8x16x16xf32>
    %138 = arith.truncf %137 : vector<8x16x16xf32> to vector<8x16x16xbf16>
    "tpu.trace_start"() <{level = 10 : i32, message = "tqk,tkd->tqd"}> : () -> ()
    %cst_35 = arith.constant dense<0.000000e+00> : vector<8x16x4xf32>
    %139 = tpu.matmul %138, %124, %cst_35 {dimension_numbers = #tpu.dot_dimension_numbers<[2], [1], [1], [2], [0, 0, 0, 1, 1, 2], [0], [0]>} : vector<8x16x16xbf16>, vector<8x16x4xbf16>, vector<8x16x4xf32> -> vector<8x16x4xf32>
    "tpu.trace_stop"() : () -> ()
    %140 = vector.extract_strided_slice %13 {offsets = [0, 0, 24], sizes = [8, 16, 4], strides = [1, 1, 1]} : vector<8x16x96xf32> to vector<8x16x4xf32>
    %141 = arith.truncf %140 : vector<8x16x4xf32> to vector<8x16x4xbf16>
    %142 = vector.extract_strided_slice %13 {offsets = [0, 0, 56], sizes = [8, 16, 4], strides = [1, 1, 1]} : vector<8x16x96xf32> to vector<8x16x4xf32>
    %143 = arith.truncf %142 : vector<8x16x4xf32> to vector<8x16x4xbf16>
    %144 = vector.extract_strided_slice %13 {offsets = [0, 0, 88], sizes = [8, 16, 4], strides = [1, 1, 1]} : vector<8x16x96xf32> to vector<8x16x4xf32>
    %145 = arith.truncf %144 : vector<8x16x4xf32> to vector<8x16x4xbf16>
    "tpu.trace_start"() <{level = 10 : i32, message = "tqd,tkd->tqk"}> : () -> ()
    %cst_36 = arith.constant dense<0.000000e+00> : vector<8x16x16xf32>
    %146 = tpu.matmul %141, %143, %cst_36 {dimension_numbers = #tpu.dot_dimension_numbers<[2], [2], [1], [1], [0, 0, 0, 1, 1, 1], [0], [0]>} : vector<8x16x4xbf16>, vector<8x16x4xbf16>, vector<8x16x16xf32> -> vector<8x16x16xf32>
    "tpu.trace_stop"() : () -> ()
    %cst_37 = arith.constant 5.000000e-01 : f32
    %147 = vector.broadcast %cst_37 : f32 to vector<8x16x16xf32>
    %148 = arith.mulf %146, %147 : vector<8x16x16xf32>
    %cst_38 = arith.constant dense<0xFF800000> : vector<8x16xf32>
    %149 = vector.multi_reduction <maximumf>, %148, %cst_38 [2] : vector<8x16x16xf32> to vector<8x16xf32>
    %150 = vector.shape_cast %149 : vector<8x16xf32> to vector<8x16x1xf32>
    %151 = vector.broadcast %150 : vector<8x16x1xf32> to vector<8x16x16xf32>
    %152 = arith.subf %148, %151 : vector<8x16x16xf32>
    %153 = math.exp %152 : vector<8x16x16xf32>
    %cst_39 = arith.constant dense<0.000000e+00> : vector<8x16xf32>
    %154 = vector.multi_reduction <add>, %153, %cst_39 [2] : vector<8x16x16xf32> to vector<8x16xf32>
    %155 = vector.shape_cast %154 : vector<8x16xf32> to vector<8x16x1xf32>
    %156 = tpu.reciprocal %155 {approx = true} : vector<8x16x1xf32> -> vector<8x16x1xf32>
    %157 = vector.broadcast %156 : vector<8x16x1xf32> to vector<8x16x16xf32>
    %158 = arith.mulf %153, %157 : vector<8x16x16xf32>
    %159 = arith.truncf %158 : vector<8x16x16xf32> to vector<8x16x16xbf16>
    "tpu.trace_start"() <{level = 10 : i32, message = "tqk,tkd->tqd"}> : () -> ()
    %cst_40 = arith.constant dense<0.000000e+00> : vector<8x16x4xf32>
    %160 = tpu.matmul %159, %145, %cst_40 {dimension_numbers = #tpu.dot_dimension_numbers<[2], [1], [1], [2], [0, 0, 0, 1, 1, 2], [0], [0]>} : vector<8x16x16xbf16>, vector<8x16x4xbf16>, vector<8x16x4xf32> -> vector<8x16x4xf32>
    "tpu.trace_stop"() : () -> ()
    %161 = vector.extract_strided_slice %13 {offsets = [0, 0, 28], sizes = [8, 16, 4], strides = [1, 1, 1]} : vector<8x16x96xf32> to vector<8x16x4xf32>
    %162 = arith.truncf %161 : vector<8x16x4xf32> to vector<8x16x4xbf16>
    %163 = vector.extract_strided_slice %13 {offsets = [0, 0, 60], sizes = [8, 16, 4], strides = [1, 1, 1]} : vector<8x16x96xf32> to vector<8x16x4xf32>
    %164 = arith.truncf %163 : vector<8x16x4xf32> to vector<8x16x4xbf16>
    %165 = vector.extract_strided_slice %13 {offsets = [0, 0, 92], sizes = [8, 16, 4], strides = [1, 1, 1]} : vector<8x16x96xf32> to vector<8x16x4xf32>
    %166 = arith.truncf %165 : vector<8x16x4xf32> to vector<8x16x4xbf16>
    "tpu.trace_start"() <{level = 10 : i32, message = "tqd,tkd->tqk"}> : () -> ()
    %cst_41 = arith.constant dense<0.000000e+00> : vector<8x16x16xf32>
    %167 = tpu.matmul %162, %164, %cst_41 {dimension_numbers = #tpu.dot_dimension_numbers<[2], [2], [1], [1], [0, 0, 0, 1, 1, 1], [0], [0]>} : vector<8x16x4xbf16>, vector<8x16x4xbf16>, vector<8x16x16xf32> -> vector<8x16x16xf32>
    "tpu.trace_stop"() : () -> ()
    %cst_42 = arith.constant 5.000000e-01 : f32
    %168 = vector.broadcast %cst_42 : f32 to vector<8x16x16xf32>
    %169 = arith.mulf %167, %168 : vector<8x16x16xf32>
    %cst_43 = arith.constant dense<0xFF800000> : vector<8x16xf32>
    %170 = vector.multi_reduction <maximumf>, %169, %cst_43 [2] : vector<8x16x16xf32> to vector<8x16xf32>
    %171 = vector.shape_cast %170 : vector<8x16xf32> to vector<8x16x1xf32>
    %172 = vector.broadcast %171 : vector<8x16x1xf32> to vector<8x16x16xf32>
    %173 = arith.subf %169, %172 : vector<8x16x16xf32>
    %174 = math.exp %173 : vector<8x16x16xf32>
    %cst_44 = arith.constant dense<0.000000e+00> : vector<8x16xf32>
    %175 = vector.multi_reduction <add>, %174, %cst_44 [2] : vector<8x16x16xf32> to vector<8x16xf32>
    %176 = vector.shape_cast %175 : vector<8x16xf32> to vector<8x16x1xf32>
    %177 = tpu.reciprocal %176 {approx = true} : vector<8x16x1xf32> -> vector<8x16x1xf32>
    %178 = vector.broadcast %177 : vector<8x16x1xf32> to vector<8x16x16xf32>
    %179 = arith.mulf %174, %178 : vector<8x16x16xf32>
    %180 = arith.truncf %179 : vector<8x16x16xf32> to vector<8x16x16xbf16>
    "tpu.trace_start"() <{level = 10 : i32, message = "tqk,tkd->tqd"}> : () -> ()
    %cst_45 = arith.constant dense<0.000000e+00> : vector<8x16x4xf32>
    %181 = tpu.matmul %180, %166, %cst_45 {dimension_numbers = #tpu.dot_dimension_numbers<[2], [1], [1], [2], [0, 0, 0, 1, 1, 2], [0], [0]>} : vector<8x16x16xbf16>, vector<8x16x4xbf16>, vector<8x16x4xf32> -> vector<8x16x4xf32>
    "tpu.trace_stop"() : () -> ()
    %182 = tpu.concatenate %34, %55, %76, %97, %118, %139, %160, %181 in 2 : vector<8x16x4xf32>, vector<8x16x4xf32>, vector<8x16x4xf32>, vector<8x16x4xf32>, vector<8x16x4xf32>, vector<8x16x4xf32>, vector<8x16x4xf32>, vector<8x16x4xf32> -> vector<8x16x32xf32>
    %183 = vector.shape_cast %182 : vector<8x16x32xf32> to vector<128x32xf32>
    %184 = arith.truncf %183 : vector<128x32xf32> to vector<128x32xbf16>
    %c0_46 = arith.constant 0 : index
    %c0_47 = arith.constant 0 : index
    %185 = vector.load %arg3[%c0_46, %c0_47] : memref<32x32xbf16, #tpu.memory_space<vmem>>, vector<32x32xbf16>
    %cst_48 = arith.constant dense<0.000000e+00> : vector<128x32xf32>
    %186 = tpu.matmul %184, %185, %cst_48 {dimension_numbers = #tpu.dot_dimension_numbers<[1], [0], [0], [1], [0, 0, 1, 1], [], []>} : vector<128x32xbf16>, vector<32x32xbf16>, vector<128x32xf32> -> vector<128x32xf32>
    %c0_49 = arith.constant 0 : index
    %c0_50 = arith.constant 0 : index
    %187 = vector.load %arg4[%c0_49, %c0_50] : memref<1x32xf32, #tpu.memory_space<vmem>>, vector<1x32xf32>
    %188 = vector.broadcast %187 : vector<1x32xf32> to vector<128x32xf32>
    %189 = arith.addf %186, %188 : vector<128x32xf32>
    %190 = arith.addf %189, %9 : vector<128x32xf32>
    %cst_51 = arith.constant 0.000000e+00 : f32
    %191 = vector.broadcast %cst_51 : f32 to vector<128x32xf32>
    %192 = arith.maximumf %190, %191 : vector<128x32xf32>
    %193 = math.absf %190 : vector<128x32xf32>
    %cst_52 = arith.constant 0.000000e+00 : f32
    %194 = vector.broadcast %cst_52 : f32 to vector<128x32xf32>
    %195 = arith.subf %194, %193 : vector<128x32xf32>
    %196 = math.exp %195 : vector<128x32xf32>
    %197 = math.log1p %196 : vector<128x32xf32>
    %198 = arith.addf %192, %197 : vector<128x32xf32>
    %199 = math.tanh %198 : vector<128x32xf32>
    %200 = arith.mulf %190, %199 : vector<128x32xf32>
    %c0_53 = arith.constant 0 : index
    %c0_54 = arith.constant 0 : index
    %201 = vector.load %arg6[%c0_53, %c0_54] : memref<2x32xf32, #tpu.memory_space<vmem>>, vector<2x32xf32>
    %202 = vector.extract_strided_slice %201 {offsets = [0, 0], sizes = [1, 32], strides = [1, 1]} : vector<2x32xf32> to vector<1x32xf32>
    %203 = vector.broadcast %202 : vector<1x32xf32> to vector<128x32xf32>
    %204 = arith.mulf %200, %203 : vector<128x32xf32>
    %205 = vector.extract_strided_slice %201 {offsets = [1, 0], sizes = [1, 32], strides = [1, 1]} : vector<2x32xf32> to vector<1x32xf32>
    %206 = vector.broadcast %205 : vector<1x32xf32> to vector<128x32xf32>
    %207 = arith.addf %204, %206 : vector<128x32xf32>
    %208 = tpu.transpose %207, [1, 0] : vector<128x32xf32> -> vector<32x128xf32>
    %c0_55 = arith.constant 0 : index
    %c0_56 = arith.constant 0 : index
    %c0_57 = arith.constant 0 : index
    %209 = vector.load %arg7[%c0_55, %c0_56, %c0_57] : memref<1x32x128xf32, #tpu.memory_space<vmem>>, vector<1x32x128xf32>
    %210 = vector.shape_cast %209 : vector<1x32x128xf32> to vector<32x128xf32>
    %211 = vector.shape_cast %208 : vector<32x128xf32> to vector<1x32x128xf32>
    tpu.vector_store %arg7[%c0_55, %c0_56, %c0_57], %211 {strides = array<i32>} : memref<1x32x128xf32, #tpu.memory_space<vmem>>, vector<1x32x128xf32>,
    return
  }
  func.func @transform_0(%arg0: i32) -> (i32, i32, i32) {
    %c0_i32 = arith.constant 0 : i32
    %c0_i32_0 = arith.constant 0 : i32
    %c0_i32_1 = arith.constant 0 : i32
    return %arg0, %c0_i32, %c0_i32_0 : i32, i32, i32
  }
  func.func @transform_1(%arg0: i32) -> (i32, i32) {
    %c0_i32 = arith.constant 0 : i32
    %c0_i32_0 = arith.constant 0 : i32
    %c0_i32_1 = arith.constant 0 : i32
    return %c0_i32, %c0_i32_0 : i32, i32
  }
  func.func @transform_2(%arg0: i32) -> (i32, i32) {
    %c0_i32 = arith.constant 0 : i32
    %c0_i32_0 = arith.constant 0 : i32
    %c0_i32_1 = arith.constant 0 : i32
    return %c0_i32, %c0_i32_0 : i32, i32
  }
  func.func @transform_3(%arg0: i32) -> (i32, i32) {
    %c0_i32 = arith.constant 0 : i32
    %c0_i32_0 = arith.constant 0 : i32
    %c0_i32_1 = arith.constant 0 : i32
    return %c0_i32, %c0_i32_0 : i32, i32
  }
  func.func @transform_4(%arg0: i32) -> (i32, i32) {
    %c0_i32 = arith.constant 0 : i32
    %c0_i32_0 = arith.constant 0 : i32
    %c0_i32_1 = arith.constant 0 : i32
    return %c0_i32, %c0_i32_0 : i32, i32
  }
  func.func @transform_5(%arg0: i32) -> (i32, i32) {
    %c0_i32 = arith.constant 0 : i32
    %c0_i32_0 = arith.constant 0 : i32
    %c0_i32_1 = arith.constant 0 : i32
    return %c0_i32, %c0_i32_0 : i32, i32
  }
  func.func @transform_6(%arg0: i32) -> (i32, i32, i32) {
    %c0_i32 = arith.constant 0 : i32
    %c0_i32_0 = arith.constant 0 : i32
    %c0_i32_1 = arith.constant 0 : i32
    return %arg0, %c0_i32, %c0_i32_0 : i32, i32, i32
  }
}

</mosaic_0001>

<bundles_post_ra>
// kernel: tpu_custom_call.1
= control target key start
LH: loop header
LB: loop body
LE: loop exit
PB: predicated region body
PF: predicated region fallthrough
CT: control target
= control target key end

     0   :  { %11 = vsyncpa [#allocation3], 0  ;;  %s15770_s0 = inlined_call_operand.hbm [shape: f32[2,32,128], index: 0, kind: input, shape index: {}]   ;;  %s15771_s1 = inlined_call_operand.hbm [shape: bf16[32,96], index: 1, kind: input, shape index: {}]   ;;  %s15772_s2 = inlined_call_operand.hbm [shape: bf16[32,32], index: 2, kind: input, shape index: {}]   ;;  %s15773_s3 = inlined_call_operand.vmem [shape: f32[1,32], index: 3, kind: input, shape index: {}]   ;;  %s15774_s4 = inlined_call_operand.vmem [shape: f32[2,32], index: 4, kind: input, shape index: {}]   ;;  %s15775_s5 = inlined_call_operand.vmem [shape: f32[2,32], index: 5, kind: input, shape index: {}]   ;;  %s15776_s6 = inlined_call_operand.hbm [shape: f32[2,32,128], index: 6, kind: output, shape index: {}]  }
   0x1   :  { %13 = vsyncpa [#allocation3 + $0x1], 0 }
   0x2   :  { %14 = vsyncpa [#allocation6], 0 }
   0x3   :  { %15 = vsyncpa [#allocation4], 0 }
   0x4   :  { %17 = vsyncpa [#allocation4 + $0x1], 0  ;;  %s12072_s21 = smov 0   ;;  %s12074_s22 = smov 0  }
   0x5   :  { %s12076_s23 = smov 0   ;;  %s12078_s24 = smov 0  }
   0x6 LB: > { %s12093_s25 = sadd.s32 4294967295, %s11994_s24   ;;  %s9585_s26 = sadd.s32 4294967294, %s11994_s24   ;;  %s11994_s24 = sphi %s12078_s24, %s16145_s24   ;;  %s11990_s23 = sphi %s12076_s23, %s16144_s23   ;;  %s11986_s22 = sphi %s12074_s22, %s16143_s22   ;;  %s11982_s21 = sphi %s12072_s21, %s16142_s21  }
   0x7   : > { %p43_p0 = scmp.ne.s32.totalorder %s11986_s22, %s11982_s21  ;;  %p15777_p1 = scmp.eq.s32.totalorder %s12093_s25, 0 }
   0x8   : > { %p178_p3 = scmp.eq.s32.totalorder %s9585_s26, 1  ;;  %p9586_p5 = scmp.ge.s32.totalorder %s11994_s24, 1 }
   0x9   : > { %p12102_p4 = por %p15777_p1, %p43_p0  ;;  %p185_p7 = scmp.lt.s32.totalorder %s11994_s24, 3 }
   0xa   : > { %p12107_p6 = por %p178_p3, %p43_p0  ;;  %s11996_s30 = smov [#allocation5]  }
   0xb   : > { %s15868_s27 = scalar_select %p12102_p4, 1, 0 }
   0xc   : > { %s15869_s28 = scalar_select %p12107_p6, 1, 0 }
   0xd   : > { %p12112_p8 = pnand %p9586_p5, %p185_p7  ;;  %s197_s7 = sshll.u32 %s11996_s30, 4  ;;  %s12116_s7 = int_to_ptr.vmem [resolvable:$true] %s197_s7 }
   0xe   : > { %s11997_s9 = smov [#allocation7]   ;;  %s11838_s13 = scalar_lea.hbm %s15771_s1, 256 }
   0xf   : > { %p10854_p9 = pneg %p12112_p8  ;;  %s210_s10 = sshll.u32 %s11997_s9, 4  ;;  %s12127_s10 = int_to_ptr.vmem [resolvable:$true] %s210_s10 }
  0x10   : > { %p11839_p12 = scmp.ne.s32.totalorder %s15771_s1, %s11838_s13  ;;  %p11845_p5 = scmp.lt.u32.totalorder %s11838_s13, %s15771_s1 }
  0x11   : > { %p12123_p11 = pnand %p10854_p9, %p15777_p1 }
  0x13   : > { %p11840_p13 = pneg %p12123_p11 }
  0x15   : > { %p11841_p0 = pnand %p11840_p13, %p11839_p12 }
  0x17   : > { %p11842_p3 = pneg %p11841_p0 }
  0x19   : > { %p11847_p7 = pnand %p11845_p5, %p11842_p3 }
  0x1b   : > { %11850 = shalt.err (!%p11847_p7)
}
  0x1c   : > { %s11851_s18 = scalar_lea.vmem %s12116_s7, 256  ;;  %p11859_p2 = scmp.lt.s32.totalorder %s12116_s7, %s12116_s7 }
  0x1d   : > { %p11852_p9 = scmp.ne.s32.totalorder %s12116_s7, %s11851_s18  ;;  %p11860_p12 = scmp.lt.s32.totalorder %s11851_s18, %s11851_s18 }
  0x1f   : > { %p11854_p10 = pnand %p11852_p9, %p11840_p13  ;;  %p11861_p0 = por %p11860_p12, %p11859_p2 }
  0x21   : > { %p11855_p1 = pneg %p11854_p10 }
  0x23   : > { %p11862_p6 = pnand %p11861_p0, %p11855_p1 }
  0x25   : > { %11865 = shalt.err (!%p11862_p6)
}
  0x26   : > { %s11998_s19 = smov 64   ;;  %s11999_s20 = smov 4  }
  0x27   : > { %10857 = dma.hbm_to_vmem [thread:$0]  (!%p12123_p11), %s15771_s1, 256, %s12116_s7, [#allocation6], %s11998_s19, %s11998_s19, %s11999_s20  }
  0x28   : > { %s11866_s12 = scalar_lea.hbm %s15772_s2, 256 }
  0x29   : > { %p11867_p2 = scmp.ne.s32.totalorder %s15772_s2, %s11866_s12  ;;  %p11873_p10 = scmp.lt.u32.totalorder %s11866_s12, %s15772_s2 }
  0x2b   : > { %p11869_p1 = pnand %p11867_p2, %p11840_p13 }
  0x2d   : > { %p11870_p6 = pneg %p11869_p1 }
  0x2f   : > { %p11875_p3 = pnand %p11873_p10, %p11870_p6 }
  0x31   : > { %11878 = shalt.err (!%p11875_p3)
}
  0x32   : > { %s11879_s7 = scalar_lea.vmem %s12127_s10, 256  ;;  %p11887_p12 = scmp.lt.s32.totalorder %s12127_s10, %s12127_s10 }
  0x33   : > { %p11880_p5 = scmp.ne.s32.totalorder %s12127_s10, %s11879_s7  ;;  %p11888_p0 = scmp.lt.s32.totalorder %s11879_s7, %s11879_s7 }
  0x35   : > { %p11882_p7 = pnand %p11880_p5, %p11840_p13  ;;  %p11889_p2 = por %p11888_p0, %p11887_p12 }
  0x37   : > { %p11883_p9 = pneg %p11882_p7 }
  0x39   : > { %p11890_p1 = pnand %p11889_p2, %p11883_p9 }
  0x3b   : > { %11893 = shalt.err (!%p11890_p1)
}
  0x3c   : > { %10860 = dma.hbm_to_vmem [thread:$0]  (!%p12123_p11), %s15772_s2, 256, %s12127_s10, [#allocation6], %s11998_s19, %s11998_s19, %s11999_s20  }
  0x3d   : > { %s12182_s26 = sadd.s32 1, %s11994_s24   ;;  %s30_s8 = sadd.s32 1, %s11990_s23 }
  0x3e   : > { %s27_s30 = ssub.s32 %s11994_s24, %s12182_s26  ;;  %p37_p13 = scmp.ne.s32.totalorder %s11990_s23, %s11986_s22 }
  0x3f   : > { %p28_p6 = scmp.eq.s32.totalorder %s27_s30, 0  ;;  %p38_p10 = scmp.eq.s32.totalorder %s11994_s24, 0 }
  0x40   : > { %p15872_p3 = scmp.eq.s32.totalorder %s12093_s25, 1  ;;  %p10871_p7 = scmp.lt.s32.totalorder %s11994_s24, 2 }
  0x41   : > { %s12198_s11 = scalar_select %p28_p6, %s11990_s23, %s30_s8  }
  0x42   : > { %p12192_p5 = por %p15872_p3, %p37_p13  ;;  %p39_p9 = por %p38_p10, %p37_p13 }
  0x43   : > { %s233_s12 = sand.u32 1, %s11990_s23   ;;  %s9752_s10 = sshll.u32 %s11994_s24, 9 }
  0x44   : > { %s15873_s9 = scalar_select %p12192_p5, 1, 0 }
  0x45   : > { %s9590_s13 = sshll.u32 %s233_s12, 5  ;;  %s12205_s14 = scalar_lea.hbm %s15770_s0, %s9752_s10 }
  0x46   : > { %s237_s15 = scalar_lea.vmem [#allocation2], %s9590_s13  ;;  %p12209_p11 = pnand %p10871_p7, %p39_p9 }
  0x47   : > { %s244_s16 = sshll.u32 %s237_s15, 4  ;;  %s12213_s17 = scalar_lea.sflag [#allocation3], %s233_s12  ;;  %s12207_s16 = int_to_ptr.vmem [resolvable:$true] %s244_s16 }
  0x48   : > { %s11894_s18 = scalar_lea.hbm %s12205_s14, 512  ;;  %p11896_p0 = pneg %p12209_p11 }
  0x49   : > { %p11895_p12 = scmp.ne.s32.totalorder %s12205_s14, %s11894_s18  ;;  %s11899_s13 = scalar_lea.hbm %s15770_s0, 1024 }
  0x4a   : > { %p11900_p13 = scmp.lt.u32.totalorder %s12205_s14, %s15770_s0  ;;  %p11901_p6 = scmp.lt.u32.totalorder %s11899_s13, %s11894_s18 }
  0x4b   : > { %p11897_p2 = pnand %p11896_p0, %p11895_p12  ;;  %p11903_p3 = scmp.lt.u32.totalorder %s11894_s18, %s12205_s14 }
  0x4c   : > { %p11902_p10 = por %p11901_p6, %p11900_p13 }
  0x4d   : > { %p11898_p1 = pneg %p11897_p2 }
  0x4e   : > { %p11904_p7 = por %p11903_p3, %p11902_p10 }
  0x50   : > { %p11905_p9 = pnand %p11904_p7, %p11898_p1 }
  0x52   : > { %11908 = shalt.err (!%p11905_p9)
}
  0x53   : > { %s11909_s12 = scalar_lea.vmem %s12207_s16, 512  ;;  %s12000_s20 = smov [#allocation2]  }
  0x54   : > { %p11910_p12 = scmp.ne.s32.totalorder %s12207_s16, %s11909_s12  ;;  %s11914_s15 = sshll.u32 %s12000_s20, 4  ;;  %s11915_s15 = int_to_ptr.vmem [resolvable:$false] %s11914_s15 }
  0x55   : > { %s11916_s8 = scalar_lea.vmem %s11915_s15, 1024  ;;  %p11917_p4 = scmp.lt.s32.totalorder %s12207_s16, %s11915_s15 }
  0x56   : > { %p11912_p2 = pnand %p11910_p12, %p11896_p0  ;;  %p11918_p13 = scmp.lt.s32.totalorder %s11916_s8, %s11909_s12 }
  0x58   : > { %p11913_p5 = pneg %p11912_p2  ;;  %p11919_p6 = por %p11918_p13, %p11917_p4 }
  0x5a   : > { %p11920_p10 = pnand %p11919_p6, %p11913_p5 }
  0x5c   : > { %11923 = shalt.err (!%p11920_p10)
}
  0x5d   : > { %s12001_s18 = smov 128   ;;  %s12002_s30 = smov 8  }
  0x5e   : > { %10864 = dma.hbm_to_vmem [thread:$0]  (!%p12209_p11), %s12205_s14, 512, %s12207_s16, %s12213_s17, %s12001_s18, %s12001_s18, %s12002_s30  }
  0x5f   : > { %256 = sbr.rel (%p12112_p8) target bundleno = 6337 (0x18c1), region = 44 }
  0x66   : > { %s12244_s13 = sand.u32 1, %s11986_s22   ;;  %p15875_p4 = scmp.ne.s32.totalorder %s15868_s27, 0 }
  0x67   : > { %s9594_s10 = sshll.u32 %s12244_s13, 5  ;;  %s259_s19 = scalar_lea.sflag [#allocation3], %s12244_s13 }
  0x68   : > { %s262_s12 = scalar_lea.vmem [#allocation2], %s9594_s10 }
  0x69   : > { %11969 = dma.done.wait (%p15875_p4), %s259_s19, 512  }
  0x6a   : > { %11971 = vsyncadd (%p15875_p4), %s259_s19, 4294966784  ;;  %p15876_p5 = scmp.eq.s32.totalorder %s12093_s25, 0 }
  0x6c   : > { %11973 = dma.done.wait (%p15876_p5), [#allocation6], 512   ;;  %p15877_p8 = pmov %p15876_p5 }
  0x6d   : > { %v300_v0 = vld [vmem:[%s262_s12] sm:$0xff]  ;;  %v301_v1 = vld [vmem:[%s262_s12 + $0x8] sm:$0xff]  ;;  %v302_v2 = vld [vmem:[%s262_s12 + $0x10] sm:$0xff]  ;;  %v337_v6 = vlaneseq  ;;  %vm401_vm0 = vcmask 261120   ;;  %vm12004_vm1 = vmmov 0   ;;  %s12005_s14 = smov 96  }
  0x6e   : > { %11975 = vsyncadd (%p15877_p8), [#allocation6], 4294966784  ;;  %304 = vxpose.xlu0.b32.start [1/4] (short) %v300_v0, 128  ;;  %v303_v3 = vld [vmem:[%s262_s12 + $0x18] sm:$0xff]  ;;  %v11226_v4 = vld [vmem:[#allocation5] sm:$0xff]   ;;  %vm534_vm2 = vcmask 31744   ;;  %vm948_vm3 = vcmask 130048  }
  0x6f   : > { %10030 = vmatprep.subr.bf16.mxu0 %v11226_v4  ;;  %10838 = vmatprep.subr.bf16.mxu1 %v11226_v4  ;;  %v11227_v5 = vld [vmem:[#allocation5 + $0x8] sm:$0xff]   ;;  %v12258_v7 = vshrl.u32 %v337_v6, 7  ;;  %v336_v9 = vld [vmem:[%s15774_s4] sm:$0x3]  ;;  %s12006_s16 = smov 64   ;;  %s12007_s7 = smov 92  }
  0x70   : > { %10031 = vmatpush3.bf16.msra.mxu0 %v11226_v4  ;;  %10840 = vmatpush3.bf16.msra.mxu1 %v11226_v4  ;;  %s12008_s17 = smov 124   ;;  %s12009_s20 = smov 60   ;;  %vm8861_vm4 = vcmask 64512   ;;  %vm8878_vm5 = vcmask 97280   ;;  %vm8911_vm6 = vcmask 162816   ;;  %vm8928_vm7 = vcmask 195584  }
  0x71   : > { %10032 = vmatprep.subr.bf16.mxu0 %v11227_v5  ;;  %10839 = vmatprep.subr.bf16.mxu1 %v11227_v5  ;;  %15878 = vst [vmem:[#allocation12_spill] sm:$0xff] %v12258_v7  ;;  %v15781_v8 = vsub.s32 0, %v12258_v7  ;;  %v15780_v11 = vsub.s32 1, %v12258_v7  ;;  %s12010_s15 = smov 88   ;;  %s12011_s8 = smov 120   ;;  %vm8945_vm8 = vcmask 228352  }
  0x72   : > { %305 = vxpose.xlu0.b32.cont [2/4] (short) %v301_v1, 128  ;;  %s12012_s18 = smov 56   ;;  %s12013_s30 = smov 84  }
  0x73   : > { %v12266_v10 = vrot.slane %v336_v9, %v15781_v8  ;;  %v360_v14 = vrot.slane %v336_v9, %v15780_v11  ;;  %s12014_s19 = smov 116   ;;  %s12015_s12 = smov 52  }
  0x74   : > { %10033 = vmatpush3.bf16.msra.mxu0 %v11227_v5  ;;  %10841 = vmatpush3.bf16.msra.mxu1 %v11227_v5  ;;  %v15782_v5 = vmov 0.0   ;;  %s12016_s27 = smov 80   ;;  %s12017_s29 = smov 112  }
  0x75   : > { %10050 = vmatprep.subr.bf16.mxu1 %v15782_v5  ;;  %10074 = vmatprep.subr.bf16.mxu0 %v15782_v5  ;;  %p16139_p0 = scmp.ne.s32.totalorder %s15873_s9, 0 }
  0x76   : > { %306 = vxpose.xlu0.b32.cont [3/4] (short) %v302_v2, 128 }
  0x7a   : > { %307 = vxpose.xlu0.b32.end [4/4] (short) %v303_v3, 128 }
  0xee   : > { %v320_v12 = vpop.trf.xlu0 }
  0xef   : > { %v341_v13 = vmul.f32 %v12266_v10, %v320_v12 }
  0xf1   : > { %v12273_v17 = vadd.f32 %v360_v14, %v341_v13 }
  0xf2   : > { %v321_v15 = vpop.trf.xlu0 }
  0xf3   : > { %v342_v16 = vmul.f32 %v12266_v10, %v321_v15  ;;  %15879 = vst [vmem:[#allocation13_spill] sm:$0xff] %v12273_v17 }
  0xf5   : > { %v12275_v18 = vadd.f32 %v360_v14, %v342_v16 }
  0xf6   : > { %v322_v19 = vpop.trf.xlu0 }
  0xf7   : > { %15880 = vst [vmem:[#allocation14_spill] sm:$0xff] %v12275_v18  ;;  %v377_v20 = vpack.c.bf16 %v12275_v18, %v12273_v17  ;;  %v343_v21 = vmul.f32 %v12266_v10, %v322_v19 }
  0xf9   : > { %10034 = vmatprep.mubr.msk.bf16.mxu0 %vm401_vm0, %v377_v20  ;;  %v12282_v24 = vadd.f32 %v360_v14, %v343_v21 }
  0xfa   : > { %v323_v22 = vpop.trf.xlu0 }
  0xfb   : > { %v344_v23 = vmul.f32 %v12266_v10, %v323_v22  ;;  %15881 = vst [vmem:[#allocation15_spill] sm:$0xff] %v12282_v24 }
  0xfd   : > { %v12284_v25 = vadd.f32 %v360_v14, %v344_v23 }
  0xfe   : > { %v324_v26 = vpop.trf.xlu0 }
  0xff   : > { %15882 = vst [vmem:[#allocation16_spill] sm:$0xff] %v12284_v25  ;;  %v378_v27 = vpack.c.bf16 %v12284_v25, %v12282_v24  ;;  %v345_v28 = vmul.f32 %v12266_v10, %v324_v26 }
 0x101   : > { %10035 = vmatmul.mubr.msk.bf16.vlgmr.msra.gmra.mrb[0].mxu0 %vm401_vm0, %v378_v27  ;;  %v12291_v31 = vadd.f32 %v360_v14, %v345_v28 }
 0x102   : > { %v325_v29 = vpop.trf.xlu0 }
 0x103   : > { %v346_v30 = vmul.f32 %v12266_v10, %v325_v29  ;;  %15883 = vst [vmem:[#allocation17_spill] sm:$0xff] %v12291_v31 }
 0x105   : > { %v12293_v32 = vadd.f32 %v360_v14, %v346_v30 }
 0x106   : > { %v326_v33 = vpop.trf.xlu0 }
 0x107   : > { %15884 = vst [vmem:[#allocation18_spill] sm:$0xff] %v12293_v32  ;;  %v379_v34 = vpack.c.bf16 %v12293_v32, %v12291_v31  ;;  %v347_v35 = vmul.f32 %v12266_v10, %v326_v33 }
 0x109   : > { %10038 = vmatprep.mubr.msk.bf16.mxu0 %vm401_vm0, %v379_v34  ;;  %v12300_v38 = vadd.f32 %v360_v14, %v347_v35 }
 0x10a   : > { %v327_v36 = vpop.trf.xlu0 }
 0x10b   : > { %v348_v37 = vmul.f32 %v12266_v10, %v327_v36  ;;  %15885 = vst [vmem:[#allocation19_spill] sm:$0xff] %v12300_v38 }
 0x10d   : > { %v12302_v39 = vadd.f32 %v360_v14, %v348_v37 }
 0x10e   : > { %v328_v40 = vpop.trf.xlu0 }
 0x10f   : > { %15886 = vst [vmem:[#allocation20_spill] sm:$0xff] %v12302_v39  ;;  %v380_v41 = vpack.c.bf16 %v12302_v39, %v12300_v38  ;;  %v349_v42 = vmul.f32 %v12266_v10, %v328_v40 }
 0x111   : > { %10039 = vmatmul.mubr.msk.bf16.gmra.mrb[4].mxu0 %vm401_vm0, %v380_v41  ;;  %v12309_v45 = vadd.f32 %v360_v14, %v349_v42 }
 0x112   : > { %v329_v43 = vpop.trf.xlu0  ;;  %10076 = vmatprep.mubr.msk.bf16.mxu0 %vm12004_vm1, %v15782_v5 }
 0x113   : > { %v350_v44 = vmul.f32 %v12266_v10, %v329_v43  ;;  %15887 = vst [vmem:[#allocation21_spill] sm:$0xff] %v12309_v45 }
 0x115   : > { %v12311_v46 = vadd.f32 %v360_v14, %v350_v44 }
 0x116   : > { %v330_v47 = vpop.trf.xlu0 }
 0x117   : > { %15888 = vst [vmem:[#allocation22_spill] sm:$0xff] %v12311_v46  ;;  %v381_v48 = vpack.c.bf16 %v12311_v46, %v12309_v45  ;;  %v351_v49 = vmul.f32 %v12266_v10, %v330_v47 }
 0x119   : > { %10042 = vmatprep.mubr.msk.bf16.mxu1 %vm401_vm0, %v381_v48  ;;  %v12318_v52 = vadd.f32 %v360_v14, %v351_v49 }
 0x11a   : > { %v331_v50 = vpop.trf.xlu0 }
 0x11b   : > { %v352_v51 = vmul.f32 %v12266_v10, %v331_v50  ;;  %15889 = vst [vmem:[#allocation23_spill] sm:$0xff] %v12318_v52 }
 0x11d   : > { %v12320_v53 = vadd.f32 %v360_v14, %v352_v51 }
 0x11e   : > { %v332_v54 = vpop.trf.xlu0 }
 0x11f   : > { %15890 = vst [vmem:[#allocation24_spill] sm:$0xff] %v12320_v53  ;;  %v382_v55 = vpack.c.bf16 %v12320_v53, %v12318_v52  ;;  %v353_v56 = vmul.f32 %v12266_v10, %v332_v54 }
 0x121   : > { %10043 = vmatmul.mubr.msk.bf16.vlgmr.msra.gmra.mrb[0].mxu1 %vm401_vm0, %v382_v55  ;;  %v12327_v59 = vadd.f32 %v360_v14, %v353_v56 }
 0x122   : > { %v333_v57 = vpop.trf.xlu0 }
 0x123   : > { %v354_v58 = vmul.f32 %v12266_v10, %v333_v57  ;;  %15891 = vst [vmem:[#allocation25_spill] sm:$0xff] %v12327_v59 }
 0x125   : > { %v12329_v60 = vadd.f32 %v360_v14, %v354_v58 }
 0x126   : > { %v334_v61 = vpop.trf.xlu0 }
 0x127   : > { %15892 = vst [vmem:[#allocation26_spill] sm:$0xff] %v12329_v60  ;;  %v383_v62 = vpack.c.bf16 %v12329_v60, %v12327_v59  ;;  %v355_v63 = vmul.f32 %v12266_v10, %v334_v61 }
 0x129   : > { %10046 = vmatprep.mubr.msk.bf16.mxu1 %vm401_vm0, %v383_v62  ;;  %v12336_v2 = vadd.f32 %v360_v14, %v355_v63 }
 0x12a   : > { %v335_v0 = vpop.trf.xlu0 }
 0x12b   : > { %v356_v1 = vmul.f32 %v12266_v10, %v335_v0  ;;  %15893 = vst [vmem:[#allocation27_spill] sm:$0xff] %v12336_v2 }
 0x12d   : > { %v12338_v3 = vadd.f32 %v360_v14, %v356_v1 }
 0x12f   : > { %15894 = vst [vmem:[#allocation28_spill] sm:$0xff] %v12338_v3  ;;  %v384_v4 = vpack.c.bf16 %v12338_v3, %v12336_v2 }
 0x131   : > { %10047 = vmatmul.mubr.msk.bf16.gmra.mrb[4].mxu1 %vm401_vm0, %v384_v4 }
 0x132   : > { %10052 = vmatprep.mubr.msk.bf16.mxu1 %vm12004_vm1, %v15782_v5 }
 0x1d4   : > { %v10036_v6 = vpop.f32.mrb[0].mxu0 }
 0x1d5   : > { %v460_v9 = vpop.f32.mrb[1].mxu0 }
 0x1d6   : > { %v10037_v10 = vpop.f32.mrb[2].mxu0 }
 0x1d7   : > { %v12349_v12 = vpack.c.bf16 %v10037_v10, %v10036_v6  ;;  %v463_v13 = vpop.f32.mrb[3].mxu0 }
 0x1d8   : > { %v12351_v14 = vpack.c.bf16 %v463_v13, %v460_v9 }
 0x1da   : > { %532 = vrot.lane.b32.xlu1 %v12351_v14, %s12005_s14 }
 0x1de   : > { %583 = vrot.lane.b32.xlu1 %v12349_v12, %s12005_s14 }
 0x1e4   : > { %v10040_v15 = vpop.f32.mrb[4].mxu0 }
 0x1e5   : > { %v476_v16 = vpop.f32.mrb[5].mxu0 }
 0x1e6   : > { %v10041_v19 = vpop.f32.mrb[6].mxu0 }
 0x1e7   : > { %v12355_v20 = vpack.c.bf16 %v10041_v19, %v10040_v15  ;;  %v479_v21 = vpop.f32.mrb[7].mxu0 }
 0x1e8   : > { %v12357_v22 = vpack.c.bf16 %v479_v21, %v476_v16 }
 0x1ea   : > { %633 = vrot.lane.b32.xlu1 %v12357_v22, %s12005_s14 }
 0x1ee   : > { %683 = vrot.lane.b32.xlu1 %v12355_v20, %s12005_s14 }
 0x1f4   : > { %v10044_v23 = vpop.f32.mrb[0].mxu1 }
 0x1f5   : > { %v492_v26 = vpop.f32.mrb[1].mxu1 }
 0x1f6   : > { %v10045_v27 = vpop.f32.mrb[2].mxu1 }
 0x1f7   : > { %v12361_v28 = vpack.c.bf16 %v10045_v27, %v10044_v23  ;;  %v495_v29 = vpop.f32.mrb[3].mxu1 }
 0x1f8   : > { %v12363_v30 = vpack.c.bf16 %v495_v29, %v492_v26 }
 0x1f9   : > { %783 = vrot.lane.b32.xlu1 %v12361_v28, %s12005_s14 }
 0x1fa   : > { %733 = vrot.lane.b32.xlu0 %v12363_v30, %s12005_s14 }
 0x204   : > { %v10048_v33 = vpop.f32.mrb[4].mxu1 }
 0x205   : > { %v508_v34 = vpop.f32.mrb[5].mxu1 }
 0x206   : > { %v10049_v35 = vpop.f32.mrb[6].mxu1 }
 0x207   : > { %v12367_v36 = vpack.c.bf16 %v10049_v35, %v10048_v33  ;;  %v511_v37 = vpop.f32.mrb[7].mxu1 }
 0x208   : > { %v12369_v40 = vpack.c.bf16 %v511_v37, %v508_v34 }
 0x209   : > { %15895 = vst [vmem:[#allocation29_spill] sm:$0xff] %v12367_v36 }
 0x20a   : > { %833 = vrot.lane.b32.xlu1 %v12369_v40, %s12005_s14 }
 0x20e   : > { %883 = vrot.lane.b32.xlu1 %v12367_v36, %s12005_s14  ;;  %s12018_s14 = smov 48  }
 0x24c   : > { %v533_v41 = vpop.permute.xlu1 %532 }
 0x24d   : > { %v539_v42 = vsel %vm534_vm2, %v533_v41, 0 }
 0x24e   : > { %10051 = vmatpush3.bf16.xpose.msra.mxu1 %v539_v42 }
 0x24f   : > { %10056 = vmatprep.subr.bf16.mxu1 %v15782_v5 }
 0x250   : > { %v584_v43 = vpop.permute.xlu1 %583 }
 0x251   : > { %v589_v44 = vsel %vm534_vm2, %v584_v43, 0 }
 0x255   : > { %10053 = vmatmul.mubr.msk.bf16.vlgmr.msra.gmra.mrb[8].mxu1 %vm534_vm2, %v12351_v14 }
 0x256   : > { %10057 = vmatpush3.bf16.xpose.msra.mxu1 %v589_v44  ;;  %10058 = vmatprep.mubr.msk.bf16.mxu1 %vm12004_vm1, %v15782_v5 }
 0x257   : > { %10062 = vmatprep.subr.bf16.mxu1 %v15782_v5 }
 0x25c   : > { %v634_v47 = vpop.permute.xlu1 %633 }
 0x25d   : > { %v639_v48 = vsel %vm534_vm2, %v634_v47, 0  ;;  %10059 = vmatmul.mubr.msk.bf16.vlgmr.msra.gmra.mrb[12].mxu1 %vm534_vm2, %v12349_v12 }
 0x25e   : > { %10063 = vmatpush3.bf16.xpose.msra.mxu1 %v639_v48  ;;  %10064 = vmatprep.mubr.msk.bf16.mxu1 %vm12004_vm1, %v15782_v5 }
 0x25f   : > { %10068 = vmatprep.subr.bf16.mxu1 %v15782_v5 }
 0x260   : > { %v684_v49 = vpop.permute.xlu1 %683 }
 0x261   : > { %v689_v50 = vsel %vm534_vm2, %v684_v49, 0 }
 0x265   : > { %10065 = vmatmul.mubr.msk.bf16.vlgmr.msra.gmra.mrb[16].mxu1 %vm534_vm2, %v12357_v22 }
 0x266   : > { %10069 = vmatpush3.bf16.xpose.msra.mxu1 %v689_v50  ;;  %10070 = vmatprep.mubr.msk.bf16.mxu1 %vm12004_vm1, %v15782_v5 }
 0x267   : > { %10080 = vmatprep.subr.bf16.mxu1 %v15782_v5 }
 0x26b   : > { %v784_v51 = vpop.permute.xlu1 %783 }
 0x26c   : > { %v789_v54 = vsel %vm534_vm2, %v784_v51, 0  ;;  %v734_v55 = vpop.permute.xlu0 %733 }
 0x26d   : > { %v739_v56 = vsel %vm534_vm2, %v734_v55, 0  ;;  %10071 = vmatmul.mubr.msk.bf16.vlgmr.msra.gmra.mrb[20].mxu1 %vm534_vm2, %v12355_v20 }
 0x26e   : > { %10075 = vmatpush3.bf16.xpose.msra.mxu0 %v739_v56  ;;  %10081 = vmatpush3.bf16.xpose.msra.mxu1 %v789_v54 }
 0x26f   : > { %10082 = vmatprep.mubr.msk.bf16.mxu1 %vm12004_vm1, %v15782_v5  ;;  %10086 = vmatprep.subr.bf16.mxu0 %v15782_v5 }
 0x270   : > { %10092 = vmatprep.subr.bf16.mxu1 %v15782_v5 }
 0x275   : > { %10077 = vmatmul.mubr.msk.bf16.vlgmr.msra.gmra.mrb[8].mxu0 %vm534_vm2, %v12363_v30  ;;  %10083 = vmatmul.mubr.msk.bf16.vlgmr.msra.gmra.mrb[24].mxu1 %vm534_vm2, %v12361_v28 }
 0x276   : > { %10088 = vmatprep.mubr.msk.bf16.mxu0 %vm12004_vm1, %v15782_v5  ;;  %10094 = vmatprep.mubr.msk.bf16.mxu1 %vm12004_vm1, %v15782_v5 }
 0x27c   : > { %v834_v57 = vpop.permute.xlu1 %833 }
 0x27d   : > { %v839_v58 = vsel %vm534_vm2, %v834_v57, 0 }
 0x27e   : > { %10087 = vmatpush3.bf16.xpose.msra.mxu0 %v839_v58 }
 0x27f   : > { %10098 = vmatprep.subr.bf16.mxu0 %v15782_v5 }
 0x280   : > { %v884_v61 = vpop.permute.xlu1 %883 }
 0x281   : > { %v889_v62 = vsel %vm534_vm2, %v884_v61, 0 }
 0x282   : > { %10093 = vmatpush3.bf16.xpose.msra.mxu1 %v889_v62 }
 0x283   : > { %10104 = vmatprep.subr.bf16.mxu1 %v15782_v5 }
 0x285   : > { %10089 = vmatmul.mubr.msk.bf16.vlgmr.msra.gmra.mrb[12].mxu0 %vm534_vm2, %v12369_v40 }
 0x286   : > { %10100 = vmatprep.mubr.msk.bf16.mxu0 %vm12004_vm1, %v15782_v5 }
 0x289   : > { %10095 = vmatmul.mubr.msk.bf16.vlgmr.msra.gmra.mrb[28].mxu1 %vm534_vm2, %v12367_v36 }
 0x28a   : > { %10106 = vmatprep.mubr.msk.bf16.mxu1 %vm12004_vm1, %v15782_v5 }
 0x328   : > { %v575_v63 = vpop.f32.mrb[8].mxu1 }
 0x329   : > { %v10054_v0 = vpop.f32.mrb[9].mxu1  ;;  %v12421_v1 = vmul.f32 0.5, %v575_v63 }
 0x32a   : > { %v578_v4 = vpop.f32.mrb[10].mxu1 }
 0x32b   : > { %v10055_v6 = vpop.f32.mrb[11].mxu1  ;;  %v949_v9 = vsel %vm948_vm3, %v12421_v1, -inf  ;;  %v12425_v10 = vmul.f32 0.5, %v578_v4 }
 0x32c   : > { %950 = vmax.xlane.f32.xlu1 %v949_v9 }
 0x32d   : > { %v952_v13 = vsel %vm948_vm3, %v12425_v10, -inf }
 0x330   : > { %v625_v15 = vpop.f32.mrb[12].mxu1  ;;  %953 = vmax.xlane.f32.xlu1 %v952_v13 }
 0x331   : > { %v10060_v16 = vpop.f32.mrb[13].mxu1  ;;  %v12429_v19 = vmul.f32 0.5, %v625_v15 }
 0x332   : > { %v628_v21 = vpop.f32.mrb[14].mxu1 }
 0x333   : > { %v10061_v23 = vpop.f32.mrb[15].mxu1  ;;  %v955_v26 = vsel %vm948_vm3, %v12429_v19, -inf  ;;  %v12433_v27 = vmul.f32 0.5, %v628_v21 }
 0x334   : > { %956 = vmax.xlane.f32.xlu1 %v955_v26 }
 0x335   : > { %v958_v29 = vsel %vm948_vm3, %v12433_v27, -inf }
 0x338   : > { %v675_v33 = vpop.f32.mrb[16].mxu1  ;;  %959 = vmax.xlane.f32.xlu1 %v958_v29 }
 0x339   : > { %v12437_v34 = vmul.f32 0.5, %v675_v33  ;;  %v10066_v35 = vpop.f32.mrb[17].mxu1 }
 0x33a   : > { %v678_v37 = vpop.f32.mrb[18].mxu1 }
 0x33b   : > { %v12439_v41 = vmul.f32 0.5, %v678_v37  ;;  %v10067_v42 = vpop.f32.mrb[19].mxu1  ;;  %v961_v43 = vsel %vm948_vm3, %v12437_v34, -inf }
 0x33c   : > { %962 = vmax.xlane.f32.xlu1 %v961_v43 }
 0x33d   : > { %v964_v44 = vsel %vm948_vm3, %v12439_v41, -inf }
 0x340   : > { %v725_v47 = vpop.f32.mrb[20].mxu1  ;;  %965 = vmax.xlane.f32.xlu1 %v964_v44 }
 0x341   : > { %v12445_v48 = vmul.f32 0.5, %v725_v47  ;;  %v10072_v49 = vpop.f32.mrb[21].mxu1 }
 0x342   : > { %v728_v50 = vpop.f32.mrb[22].mxu1 }
 0x343   : > { %v12447_v51 = vmul.f32 0.5, %v728_v50  ;;  %v10073_v54 = vpop.f32.mrb[23].mxu1  ;;  %v967_v55 = vsel %vm948_vm3, %v12445_v48, -inf }
 0x344   : > { %968 = vmax.xlane.f32.xlu1 %v967_v55 }
 0x345   : > { %v970_v56 = vsel %vm948_vm3, %v12447_v51, -inf }
 0x348   : > { %v825_v57 = vpop.f32.mrb[24].mxu1  ;;  %971 = vmax.xlane.f32.xlu1 %v970_v56  ;;  %v775_v58 = vpop.f32.mrb[8].mxu0 }
 0x349   : > { %v10078_v61 = vpop.f32.mrb[9].mxu0  ;;  %v10084_v62 = vpop.f32.mrb[25].mxu1  ;;  %v12453_v63 = vmul.f32 0.5, %v775_v58  ;;  %v12455_v6 = vmul.f32 0.5, %v825_v57 }
 0x34a   : > { %v778_v0 = vpop.f32.mrb[10].mxu0  ;;  %v828_v4 = vpop.f32.mrb[26].mxu1 }
 0x34b   : > { %v10079_v9 = vpop.f32.mrb[11].mxu0  ;;  %v10085_v13 = vpop.f32.mrb[27].mxu1  ;;  %v973_v15 = vsel %vm948_vm3, %v12453_v63, -inf  ;;  %v979_v16 = vsel %vm948_vm3, %v12455_v6, -inf  ;;  %v12461_v21 = vmul.f32 0.5, %v778_v0  ;;  %v12463_v23 = vmul.f32 0.5, %v828_v4 }
 0x34c   : > { %974 = vmax.xlane.f32.xlu1 %v973_v15 }
 0x34d   : > { %v976_v26 = vsel %vm948_vm3, %v12461_v21, -inf  ;;  %v982_v29 = vsel %vm948_vm3, %v12463_v23, -inf }
 0x350   : > { %980 = vmax.xlane.f32.xlu1 %v979_v16 }
 0x354   : > { %977 = vmax.xlane.f32.xlu1 %v976_v26 }
 0x358   : > { %983 = vmax.xlane.f32.xlu1 %v982_v29  ;;  %v875_v33 = vpop.f32.mrb[12].mxu0 }
 0x359   : > { %v10090_v35 = vpop.f32.mrb[13].mxu0  ;;  %v12469_v37 = vmul.f32 0.5, %v875_v33 }
 0x35a   : > { %v878_v42 = vpop.f32.mrb[14].mxu0 }
 0x35b   : > { %v10091_v43 = vpop.f32.mrb[15].mxu0  ;;  %v985_v44 = vsel %vm948_vm3, %v12469_v37, -inf  ;;  %v12489_v61 = vmul.f32 0.5, %v878_v42 }
 0x35c   : > { %v925_v47 = vpop.f32.mrb[28].mxu1  ;;  %986 = vmax.xlane.f32.xlu0 %v985_v44 }
 0x35d   : > { %v12473_v49 = vmul.f32 0.5, %v925_v47  ;;  %v10096_v50 = vpop.f32.mrb[29].mxu1  ;;  %v988_v62 = vsel %vm948_vm3, %v12489_v61, -inf }
 0x35e   : > { %v928_v54 = vpop.f32.mrb[30].mxu1 }
 0x35f   : > { %v10097_v55 = vpop.f32.mrb[31].mxu1  ;;  %v991_v56 = vsel %vm948_vm3, %v12473_v49, -inf  ;;  %v12485_v57 = vmul.f32 0.5, %v928_v54 }
 0x360   : > { %992 = vmax.xlane.f32.xlu1 %v991_v56 }
 0x361   : > { %v994_v58 = vsel %vm948_vm3, %v12485_v57, -inf }
 0x371   : > { %1180 = vrot.lane.b32.xlu1 %v12349_v12, %s12006_s16 }
 0x372   : > { %1133 = vrot.lane.b32.xlu0 %v12351_v14, %s12006_s16 }
 0x375   : > { %1227 = vrot.lane.b32.xlu1 %v12357_v22, %s12006_s16 }
 0x376   : > { %1321 = vrot.lane.b32.xlu0 %v12363_v30, %s12006_s16 }
 0x379   : > { %1274 = vrot.lane.b32.xlu1 %v12355_v20, %s12006_s16 }
 0x37a   : > { %1415 = vrot.lane.b32.xlu0 %v12369_v40, %s12006_s16 }
 0x37d   : > { %1368 = vrot.lane.b32.xlu1 %v12361_v28, %s12006_s16 }
 0x381   : > { %1462 = vrot.lane.b32.xlu1 %v12367_v36, %s12006_s16  ;;  %s12019_s16 = smov 76  }
 0x3a5   : > { %995 = vmax.xlane.f32.xlu1 %v994_v58 }
 0x3a9   : > { %989 = vmax.xlane.f32.xlu1 %v988_v62 }
 0x3b9   : > { %v951_v0 = vpop.xlane.xlu1 %950 }
 0x3ba   : > { %v997_v4 = vsub.f32 %v12421_v1, %v951_v0 }
 0x3bc   : > { %v1013_v9 = vmul.f32 1.442695, %v997_v4 }
 0x3bd   : > { %v954_v13 = vpop.xlane.xlu1 %953 }
 0x3be   : > { %11230 = vpow2.f32 %v1013_v9  ;;  %v998_v15 = vsub.f32 %v12425_v10, %v954_v13 }
 0x3c0   : > { %v1015_v16 = vmul.f32 1.442695, %v998_v15 }
 0x3c1   : > { %v957_v26 = vpop.xlane.xlu1 %956 }
 0x3c2   : > { %11232 = vpow2.f32 %v1015_v16  ;;  %v999_v29 = vsub.f32 %v12429_v19, %v957_v26 }
 0x3c4   : > { %v1017_v33 = vmul.f32 1.442695, %v999_v29 }
 0x3c5   : > { %v960_v35 = vpop.xlane.xlu1 %959 }
 0x3c6   : > { %11234 = vpow2.f32 %v1017_v33  ;;  %v1000_v42 = vsub.f32 %v12433_v27, %v960_v35 }
 0x3c8   : > { %v12497_v43 = vpop.eup %11230  ;;  %v1019_v44 = vmul.f32 1.442695, %v1000_v42 }
 0x3c9   : > { %v963_v47 = vpop.xlane.xlu1 %962  ;;  %v1045_v1 = vsel %vm948_vm3, %v12497_v43, 0.0 }
 0x3ca   : > { %11236 = vpow2.f32 %v1019_v44  ;;  %v1001_v10 = vsub.f32 %v12437_v34, %v963_v47  ;;  %1046 = vadd.xlane.f32.xlu1 %v1045_v1 }
 0x3cc   : > { %v12502_v50 = vpop.eup %11232  ;;  %v1021_v54 = vmul.f32 1.442695, %v1001_v10 }
 0x3cd   : > { %v966_v19 = vpop.xlane.xlu1 %965  ;;  %v1048_v55 = vsel %vm948_vm3, %v12502_v50, 0.0 }
 0x3ce   : > { %11238 = vpow2.f32 %v1021_v54  ;;  %v1002_v27 = vsub.f32 %v12439_v41, %v966_v19  ;;  %1049 = vadd.xlane.f32.xlu1 %v1048_v55 }
 0x3d0   : > { %v12507_v56 = vpop.eup %11234  ;;  %v1023_v58 = vmul.f32 1.442695, %v1002_v27 }
 0x3d1   : > { %v969_v62 = vpop.xlane.xlu1 %968  ;;  %v1051_v0 = vsel %vm948_vm3, %v12507_v56, 0.0 }
 0x3d2   : > { %11240 = vpow2.f32 %v1023_v58  ;;  %v1003_v34 = vsub.f32 %v12445_v48, %v969_v62  ;;  %1052 = vadd.xlane.f32.xlu1 %v1051_v0 }
 0x3d4   : > { %v12512_v4 = vpop.eup %11236  ;;  %v1025_v9 = vmul.f32 1.442695, %v1003_v34 }
 0x3d5   : > { %v972_v13 = vpop.xlane.xlu1 %971  ;;  %v1054_v15 = vsel %vm948_vm3, %v12512_v4, 0.0 }
 0x3d6   : > { %11242 = vpow2.f32 %v1025_v9  ;;  %v1004_v41 = vsub.f32 %v12447_v51, %v972_v13  ;;  %1055 = vadd.xlane.f32.xlu1 %v1054_v15 }
 0x3d8   : > { %v12517_v16 = vpop.eup %11238  ;;  %v1027_v26 = vmul.f32 1.442695, %v1004_v41 }
 0x3d9   : > { %v975_v29 = vpop.xlane.xlu1 %974  ;;  %v1057_v33 = vsel %vm948_vm3, %v12517_v16, 0.0 }
 0x3da   : > { %11244 = vpow2.f32 %v1027_v26  ;;  %v1005_v48 = vsub.f32 %v12453_v63, %v975_v29  ;;  %1058 = vadd.xlane.f32.xlu0 %v1057_v33 }
 0x3dc   : > { %v12522_v35 = vpop.eup %11240  ;;  %v1029_v42 = vmul.f32 1.442695, %v1005_v48 }
 0x3dd   : > { %v981_v44 = vpop.xlane.xlu1 %980  ;;  %v1060_v47 = vsel %vm948_vm3, %v12522_v35, 0.0 }
 0x3de   : > { %11246 = vpow2.f32 %v1029_v42  ;;  %v1007_v51 = vsub.f32 %v12455_v6, %v981_v44  ;;  %1061 = vadd.xlane.f32.xlu1 %v1060_v47 }
 0x3e0   : > { %v12527_v1 = vpop.eup %11242  ;;  %v1033_v10 = vmul.f32 1.442695, %v1007_v51 }
 0x3e1   : > { %v978_v54 = vpop.xlane.xlu1 %977  ;;  %v1063_v19 = vsel %vm948_vm3, %v12527_v1, 0.0 }
 0x3e2   : > { %11248 = vpow2.f32 %v1033_v10  ;;  %v1006_v63 = vsub.f32 %v12461_v21, %v978_v54  ;;  %1064 = vadd.xlane.f32.xlu0 %v1063_v19 }
 0x3e4   : > { %v12532_v55 = vpop.eup %11244  ;;  %v1031_v27 = vmul.f32 1.442695, %v1006_v63 }
 0x3e5   : > { %v984_v58 = vpop.xlane.xlu1 %983  ;;  %v1066_v62 = vsel %vm948_vm3, %v12532_v55, 0.0 }
 0x3e6   : > { %11250 = vpow2.f32 %v1031_v27  ;;  %v1008_v6 = vsub.f32 %v12463_v23, %v984_v58  ;;  %1067 = vadd.xlane.f32.xlu1 %v1066_v62 }
 0x3e8   : > { %v12537_v0 = vpop.eup %11246  ;;  %v1035_v34 = vmul.f32 1.442695, %v1008_v6 }
 0x3e9   : > { %v987_v9 = vpop.xlane.xlu0 %986  ;;  %v1069_v13 = vsel %vm948_vm3, %v12537_v0, 0.0 }
 0x3ea   : > { %11252 = vpow2.f32 %v1035_v34  ;;  %1070 = vadd.xlane.f32.xlu0 %v1069_v13  ;;  %v1009_v15 = vsub.f32 %v12469_v37, %v987_v9 }
 0x3ec   : > { %v12541_v21 = vpop.eup %11248  ;;  %v1037_v48 = vmul.f32 1.442695, %v1009_v15 }
 0x3ed   : > { %v993_v41 = vpop.xlane.xlu1 %992  ;;  %v1134_v26 = vpop.permute.xlu0 %1133  ;;  %v1075_v29 = vsel %vm948_vm3, %v12541_v21, 0.0 }
 0x3ee   : > { %v1011_v23 = vsub.f32 %v12473_v49, %v993_v41  ;;  %1076 = vadd.xlane.f32.xlu0 %v1075_v29  ;;  %10099 = vmatpush3.bf16.msra.mxu0 %v1134_v26 }
 0x3ef   : > { %10110 = vmatprep.subr.bf16.mxu0 %v15782_v5 }
 0x3f0   : > { %v12548_v33 = vpop.eup %11250  ;;  %v1041_v42 = vmul.f32 1.442695, %v1011_v23 }
 0x3f1   : > { %v1181_v44 = vpop.permute.xlu1 %1180  ;;  %v1072_v47 = vsel %vm948_vm3, %v12548_v33, 0.0 }
 0x3f2   : > { %11254 = vpow2.f32 %v1041_v42  ;;  %10105 = vmatpush3.bf16.msra.mxu1 %v1181_v44  ;;  %1073 = vadd.xlane.f32.xlu1 %v1072_v47  ;;  %v1322_v42 = vpop.permute.xlu0 %1321 }
 0x3f3   : > { %10116 = vmatprep.subr.bf16.mxu1 %v15782_v5  ;;  %11256 = vpow2.f32 %v1037_v48 }
 0x3f4   : > { %v12553_v37 = vpop.eup %11252 }
 0x3f5   : > { %v1078_v49 = vsel %vm948_vm3, %v12553_v37, 0.0  ;;  %v1228_v63 = vpop.permute.xlu1 %1227 }
 0x3f6   : > { %1079 = vadd.xlane.f32.xlu1 %v1078_v49  ;;  %v12603_v47 = vpop.permute.xlu0 %1415 }
 0x3f9   : > { %v1275_v27 = vpop.permute.xlu1 %1274 }
 0x3fc   : > { %v12557_v51 = vpop.eup %11254 }
 0x3fd   : > { %v1087_v10 = vsel %vm948_vm3, %v12557_v51, 0.0  ;;  %v12561_v54 = vpop.eup %11256  ;;  %v12575_v58 = vpop.permute.xlu1 %1368 }
 0x3fe   : > { %1088 = vadd.xlane.f32.xlu0 %v1087_v10  ;;  %v1081_v19 = vsel %vm948_vm3, %v12561_v54, 0.0 }
 0x401   : > { %v12581_v62 = vpop.permute.xlu1 %1462 }
 0x402   : > { %1082 = vadd.xlane.f32.xlu0 %v1081_v19 }
 0x407   : > { %1562 = vrot.lane.b32.xlu1 %v12349_v12, %s12007_s7 }
 0x418   : > { %1511 = vrot.lane.b32.xlu0 %v12351_v14, %s12007_s7 }
 0x41c   : > { %1509 = vrot.lane.b32.xlu0 %v12351_v14, %s12008_s17 }
 0x420   : > { %1560 = vrot.lane.b32.xlu0 %v12349_v12, %s12008_s17 }
 0x424   : > { %1611 = vrot.lane.b32.xlu0 %v12357_v22, %s12008_s17 }
 0x428   : > { %1662 = vrot.lane.b32.xlu0 %v12355_v20, %s12008_s17 }
 0x42c   : > { %1713 = vrot.lane.b32.xlu0 %v12363_v30, %s12008_s17 }
 0x430   : > { %1764 = vrot.lane.b32.xlu0 %v12361_v28, %s12008_s17 }
 0x432   : > { %v996_v6 = vpop.xlane.xlu1 %995 }
 0x433   : > { %v1012_v34 = vsub.f32 %v12485_v57, %v996_v6 }
 0x434   : > { %1815 = vrot.lane.b32.xlu0 %v12369_v40, %s12008_s17 }
 0x435   : > { %v1043_v9 = vmul.f32 1.442695, %v1012_v34 }
 0x436   : > { %v990_v13 = vpop.xlane.xlu1 %989 }
 0x437   : > { %11258 = vpow2.f32 %v1043_v9  ;;  %v1010_v15 = vsub.f32 %v12489_v61, %v990_v13 }
 0x439   : > { %v1039_v41 = vmul.f32 1.442695, %v1010_v15 }
 0x43b   : > { %11260 = vpow2.f32 %v1039_v41 }
 0x441   : > { %v12589_v26 = vpop.eup %11258 }
 0x442   : > { %v1090_v29 = vsel %vm948_vm3, %v12589_v26, 0.0 }
 0x443   : > { %1091 = vadd.xlane.f32.xlu1 %v1090_v29 }
 0x445   : > { %v12593_v23 = vpop.eup %11260 }
 0x446   : > { %v1084_v57 = vsel %vm948_vm3, %v12593_v23, 0.0 }
 0x447   : > { %1085 = vadd.xlane.f32.xlu1 %v1084_v57 }
 0x457   : > { %v1047_v48 = vpop.xlane.xlu1 %1046 }
 0x458   : > { %1613 = vrot.lane.b32.xlu1 %v12357_v22, %s12007_s7  ;;  %11262 = vrcp.f32 %v1047_v48 }
 0x45b   : > { %v1050_v61 = vpop.xlane.xlu1 %1049 }
 0x45c   : > { %11264 = vrcp.f32 %v1050_v61  ;;  %1664 = vrot.lane.b32.xlu1 %v12355_v20, %s12007_s7 }
 0x45f   : > { %v1053_v44 = vpop.xlane.xlu1 %1052 }
 0x460   : > { %1715 = vrot.lane.b32.xlu1 %v12363_v30, %s12007_s7  ;;  %11266 = vrcp.f32 %v1053_v44 }
 0x462   : > { %v11263_v10 = vpop.eup %11262 }
 0x463   : > { %v1056_v49 = vpop.xlane.xlu1 %1055  ;;  %v1109_v6 = vmul.f32 %v11263_v10, %v12497_v43 }
 0x464   : > { %11268 = vrcp.f32 %v1056_v49  ;;  %1766 = vrot.lane.b32.xlu1 %v12361_v28, %s12007_s7 }
 0x466   : > { %v11265_v19 = vpop.eup %11264 }
 0x467   : > { %v1110_v34 = vmul.f32 %v11265_v19, %v12502_v50  ;;  %v1059_v9 = vpop.xlane.xlu0 %1058 }
 0x468   : > { %1817 = vrot.lane.b32.xlu1 %v12369_v40, %s12007_s7  ;;  %11270 = vrcp.f32 %v1059_v9 }
 0x469   : > { %v1125_v13 = vpack.c.bf16 %v1110_v34, %v1109_v6 }
 0x46a   : > { %v11267_v41 = vpop.eup %11266 }
 0x46b   : > { %10101 = vmatmul.mubr.msk.bf16.vlgmr.msra.gmra.mrb[16].mxu0 %vm948_vm3, %v1125_v13  ;;  %v1062_v15 = vpop.xlane.xlu1 %1061  ;;  %v1111_v50 = vmul.f32 %v11267_v41, %v12507_v56 }
 0x46c   : > { %10111 = vmatpush3.bf16.msra.mxu0 %v1228_v63  ;;  %11272 = vrcp.f32 %v1062_v15  ;;  %1868 = vrot.lane.b32.xlu1 %v12367_v36, %s12007_s7  ;;  %s12020_s7 = smov 108  }
 0x46d   : > { %10112 = vmatprep.mubr.msk.bf16.mxu0 %vm12004_vm1, %v15782_v5  ;;  %10122 = vmatprep.subr.bf16.mxu0 %v15782_v5 }
 0x46e   : > { %v11269_v43 = vpop.eup %11268 }
 0x46f   : > { %v1112_v29 = vmul.f32 %v11269_v43, %v12512_v4  ;;  %v1065_v57 = vpop.xlane.xlu0 %1064 }
 0x470   : > { %1866 = vrot.lane.b32.xlu1 %v12367_v36, %s12008_s17  ;;  %11274 = vrcp.f32 %v1065_v57  ;;  %s12021_s17 = smov 44  }
 0x471   : > { %v1126_v48 = vpack.c.bf16 %v1112_v29, %v1111_v50 }
 0x472   : > { %v11271_v61 = vpop.eup %11270 }
 0x473   : > { %10107 = vmatmul.mubr.msk.bf16.vlgmr.msra.gmra.mrb[32].mxu1 %vm948_vm3, %v1126_v48  ;;  %v1068_v63 = vpop.xlane.xlu1 %1067  ;;  %v1113_v4 = vmul.f32 %v11271_v61, %v12517_v16 }
 0x474   : > { %10117 = vmatpush3.bf16.msra.mxu1 %v1275_v27  ;;  %11276 = vrcp.f32 %v1068_v63  ;;  %10118 = vmatprep.mubr.msk.bf16.mxu1 %vm12004_vm1, %v15782_v5 }
 0x475   : > { %10128 = vmatprep.subr.bf16.mxu1 %v15782_v5 }
 0x476   : > { %v11273_v56 = vpop.eup %11272 }
 0x477   : > { %v1114_v44 = vmul.f32 %v11273_v56, %v12522_v35  ;;  %v1071_v49 = vpop.xlane.xlu0 %1070 }
 0x478   : > { %11278 = vrcp.f32 %v1071_v49 }
 0x479   : > { %v1127_v10 = vpack.c.bf16 %v1114_v44, %v1113_v4 }
 0x47a   : > { %v11275_v19 = vpop.eup %11274 }
 0x47b   : > { %10113 = vmatmul.mubr.msk.bf16.vlgmr.msra.gmra.mrb[20].mxu0 %vm948_vm3, %v1127_v10  ;;  %v1115_v6 = vmul.f32 %v11275_v19, %v12527_v1  ;;  %v1077_v16 = vpop.xlane.xlu0 %1076 }
 0x47c   : > { %10123 = vmatpush3.bf16.msra.mxu0 %v1322_v42  ;;  %10124 = vmatprep.mubr.msk.bf16.mxu0 %vm12004_vm1, %v15782_v5 }
 0x47d   : > { %10134 = vmatprep.subr.bf16.mxu0 %v15782_v5 }
 0x47e   : > { %v11277_v27 = vpop.eup %11276 }
 0x47f   : > { %v1116_v34 = vmul.f32 %v11277_v27, %v12532_v55  ;;  %v1074_v9 = vpop.xlane.xlu1 %1073 }
 0x480   : > { %11280 = vrcp.f32 %v1074_v9 }
 0x481   : > { %v1128_v35 = vpack.c.bf16 %v1116_v34, %v1115_v6  ;;  %11282 = vrcp.f32 %v1077_v16 }
 0x482   : > { %v11279_v42 = vpop.eup %11278 }
 0x483   : > { %10119 = vmatmul.mubr.msk.bf16.vlgmr.msra.gmra.mrb[36].mxu1 %vm948_vm3, %v1128_v35  ;;  %v1080_v13 = vpop.xlane.xlu1 %1079  ;;  %v1117_v55 = vmul.f32 %v11279_v42, %v12537_v0 }
 0x484   : > { %10129 = vmatpush3.bf16.msra.mxu1 %v12575_v58  ;;  %11284 = vrcp.f32 %v1080_v13  ;;  %10130 = vmatprep.mubr.msk.bf16.mxu1 %vm12004_vm1, %v15782_v5 }
 0x485   : > { %10140 = vmatprep.subr.bf16.mxu1 %v15782_v5 }
 0x48a   : > { %v11281_v1 = vpop.eup %11280 }
 0x48b   : > { %v1118_v15 = vmul.f32 %v11281_v1, %v12548_v33  ;;  %v11283_v41 = vpop.eup %11282  ;;  %v1089_v0 = vpop.xlane.xlu0 %1088 }
 0x48c   : > { %v1119_v29 = vmul.f32 %v11283_v41, %v12541_v21  ;;  %v1563_v21 = vpop.permute.xlu1 %1562  ;;  %11286 = vrcp.f32 %v1089_v0 }
 0x48d   : > { %v1129_v43 = vpack.c.bf16 %v1118_v15, %v1117_v55  ;;  %v1568_v34 = vsel %vm534_vm2, %v1563_v21, 0 }
 0x48e   : > { %v11285_v50 = vpop.eup %11284 }
 0x48f   : > { %v1120_v57 = vmul.f32 %v11285_v50, %v12553_v37  ;;  %10125 = vmatmul.mubr.msk.bf16.vlgmr.msra.gmra.mrb[24].mxu0 %vm948_vm3, %v1129_v43  ;;  %v1083_v33 = vpop.xlane.xlu0 %1082 }
 0x490   : > { %10135 = vmatpush3.bf16.msra.mxu0 %v12603_v47  ;;  %10136 = vmatprep.mubr.msk.bf16.mxu0 %vm12004_vm1, %v15782_v5 }
 0x491   : > { %v1130_v58 = vpack.c.bf16 %v1120_v57, %v1119_v29  ;;  %10146 = vmatprep.subr.bf16.mxu0 %v15782_v5 }
 0x493   : > { %10131 = vmatmul.mubr.msk.bf16.vlgmr.msra.gmra.mrb[40].mxu1 %vm948_vm3, %v1130_v58  ;;  %v1512_v47 = vpop.permute.xlu0 %1511 }
 0x494   : > { %10141 = vmatpush3.bf16.msra.mxu1 %v12581_v62  ;;  %10142 = vmatprep.mubr.msk.bf16.mxu1 %vm12004_vm1, %v15782_v5  ;;  %v1517_v35 = vsel %vm534_vm2, %v1512_v47, 0 }
 0x495   : > { %10152 = vmatprep.subr.bf16.mxu1 %v15782_v5 }
 0x496   : > { %v11287_v61 = vpop.eup %11286 }
 0x497   : > { %v1510_v56 = vpop.permute.xlu0 %1509  ;;  %v1123_v62 = vmul.f32 %v11287_v61, %v12557_v51 }
 0x49b   : > { %v1561_v6 = vpop.permute.xlu0 %1560 }
 0x49f   : > { %v1612_v13 = vpop.permute.xlu0 %1611 }
 0x4a3   : > { %v1663_v42 = vpop.permute.xlu0 %1662 }
 0x4a7   : > { %v1714_v41 = vpop.permute.xlu0 %1713 }
 0x4ab   : > { %v1765_v29 = vpop.permute.xlu0 %1764 }
 0x4af   : > { %v1816_v21 = vpop.permute.xlu0 %1815 }
 0x4d0   : > { %v1092_v37 = vpop.xlane.xlu1 %1091 }
 0x4d1   : > { %11288 = vrcp.f32 %v1092_v37 }
 0x4d2   : > { %11290 = vrcp.f32 %v1083_v33 }
 0x4d4   : > { %v1086_v48 = vpop.xlane.xlu1 %1085 }
 0x4d5   : > { %11292 = vrcp.f32 %v1086_v48 }
 0x4d8   : > { %v1614_v63 = vpop.permute.xlu1 %1613 }
 0x4d9   : > { %v1619_v1 = vsel %vm534_vm2, %v1614_v63, 0 }
 0x4db   : > { %v11289_v4 = vpop.eup %11288 }
 0x4dc   : > { %v1124_v44 = vmul.f32 %v11289_v4, %v12589_v26  ;;  %v11291_v49 = vpop.eup %11290  ;;  %v1665_v10 = vpop.permute.xlu1 %1664 }
 0x4dd   : > { %v1121_v16 = vmul.f32 %v11291_v49, %v12561_v54  ;;  %v1670_v54 = vsel %vm534_vm2, %v1665_v10, 0 }
 0x4de   : > { %v1132_v19 = vpack.c.bf16 %v1124_v44, %v1123_v62 }
 0x4df   : > { %v11293_v27 = vpop.eup %11292 }
 0x4e0   : > { %v1122_v9 = vmul.f32 %v11293_v27, %v12593_v23  ;;  %10143 = vmatmul.mubr.msk.bf16.vlgmr.msra.gmra.mrb[44].mxu1 %vm948_vm3, %v1132_v19  ;;  %v1716_v26 = vpop.permute.xlu1 %1715 }
 0x4e1   : > { %10153 = vmatpush3.bf16.xpose.msra.mxu1 %v1568_v34  ;;  %10154 = vmatprep.mubr.msk.bf16.mxu1 %vm12004_vm1, %v15782_v5  ;;  %v1721_v43 = vsel %vm534_vm2, %v1716_v26, 0 }
 0x4e2   : > { %v1131_v51 = vpack.c.bf16 %v1122_v9, %v1121_v16  ;;  %10164 = vmatprep.subr.bf16.mxu1 %v15782_v5 }
 0x4e4   : > { %10137 = vmatmul.mubr.msk.bf16.vlgmr.msra.gmra.mrb[28].mxu0 %vm948_vm3, %v1131_v51  ;;  %v1767_v23 = vpop.permute.xlu1 %1766 }
 0x4e5   : > { %10147 = vmatpush3.bf16.xpose.msra.mxu0 %v1517_v35  ;;  %10148 = vmatprep.mubr.msk.bf16.mxu0 %vm12004_vm1, %v15782_v5  ;;  %v1772_v15 = vsel %vm534_vm2, %v1767_v23, 0 }
 0x4e6   : > { %10158 = vmatprep.subr.bf16.mxu0 %v15782_v5 }
 0x4e8   : > { %10155 = vmatmul.mubr.msk.bf16.vlgmr.msra.gmra.mrb[48].mxu1 %vm534_vm2, %v1561_v6  ;;  %v1818_v55 = vpop.permute.xlu1 %1817 }
 0x4e9   : > { %10165 = vmatpush3.bf16.xpose.msra.mxu1 %v1670_v54  ;;  %10166 = vmatprep.mubr.msk.bf16.mxu1 %vm12004_vm1, %v15782_v5  ;;  %v1823_v58 = vsel %vm534_vm2, %v1818_v55, 0 }
 0x4ea   : > { %10176 = vmatprep.subr.bf16.mxu1 %v15782_v5 }
 0x4ec   : > { %10149 = vmatmul.mubr.msk.bf16.vlgmr.msra.gmra.mrb[32].mxu0 %vm534_vm2, %v1510_v56  ;;  %v1869_v50 = vpop.permute.xlu1 %1868 }
 0x4ed   : > { %10159 = vmatpush3.bf16.xpose.msra.mxu0 %v1619_v1  ;;  %10160 = vmatprep.mubr.msk.bf16.mxu0 %vm12004_vm1, %v15782_v5  ;;  %v1874_v57 = vsel %vm534_vm2, %v1869_v50, 0 }
 0x4ee   : > { %10170 = vmatprep.subr.bf16.mxu0 %v15782_v5 }
 0x4f0   : > { %10167 = vmatmul.mubr.msk.bf16.vlgmr.msra.gmra.mrb[52].mxu1 %vm534_vm2, %v1663_v42  ;;  %v1867_v0 = vpop.permute.xlu1 %1866 }
 0x4f1   : > { %10177 = vmatpush3.bf16.xpose.msra.mxu1 %v1772_v15  ;;  %10178 = vmatprep.mubr.msk.bf16.mxu1 %vm12004_vm1, %v15782_v5 }
 0x4f2   : > { %10188 = vmatprep.subr.bf16.mxu1 %v15782_v5 }
 0x4f4   : > { %10161 = vmatmul.mubr.msk.bf16.vlgmr.msra.gmra.mrb[36].mxu0 %vm534_vm2, %v1612_v13 }
 0x4f5   : > { %10171 = vmatpush3.bf16.xpose.msra.mxu0 %v1721_v43  ;;  %10172 = vmatprep.mubr.msk.bf16.mxu0 %vm12004_vm1, %v15782_v5 }
 0x4f6   : > { %10182 = vmatprep.subr.bf16.mxu0 %v15782_v5 }
 0x4f8   : > { %10179 = vmatmul.mubr.msk.bf16.vlgmr.msra.gmra.mrb[56].mxu1 %vm534_vm2, %v1765_v29 }
 0x4f9   : > { %10189 = vmatpush3.bf16.xpose.msra.mxu1 %v1874_v57  ;;  %10190 = vmatprep.mubr.msk.bf16.mxu1 %vm12004_vm1, %v15782_v5 }
 0x4fa   : > { %10200 = vmatprep.subr.bf16.mxu1 %v15782_v5 }
 0x4fc   : > { %10173 = vmatmul.mubr.msk.bf16.vlgmr.msra.gmra.mrb[40].mxu0 %vm534_vm2, %v1714_v41 }
 0x4fd   : > { %10183 = vmatpush3.bf16.xpose.msra.mxu0 %v1823_v58  ;;  %10184 = vmatprep.mubr.msk.bf16.mxu0 %vm12004_vm1, %v15782_v5 }
 0x4fe   : > { %10194 = vmatprep.subr.bf16.mxu0 %v15782_v5 }
 0x500   : > { %10191 = vmatmul.mubr.msk.bf16.vlgmr.msra.gmra.mrb[60].mxu1 %vm534_vm2, %v1867_v0 }
 0x501   : > { %10202 = vmatprep.mubr.msk.bf16.mxu1 %vm12004_vm1, %v15782_v5 }
 0x504   : > { %10185 = vmatmul.mubr.msk.bf16.vlgmr.msra.gmra.mrb[44].mxu0 %vm534_vm2, %v1816_v21 }
 0x505   : > { %10196 = vmatprep.mubr.msk.bf16.mxu0 %vm12004_vm1, %v15782_v5 }
 0x53e   : > { %v12702_v33 = vpop.f32.mrb[16].mxu0 }
 0x53f   : > { %15896 = vst [vmem:[#allocation30_spill] sm:$0xff] %v12702_v33  ;;  %v10102_v37 = vpop.f32.mrb[17].mxu0 }
 0x540   : > { %v12704_v47 = vpop.f32.mrb[18].mxu0 }
 0x541   : > { %15897 = vst [vmem:[#allocation31_spill] sm:$0xff] %v12704_v47  ;;  %v10103_v48 = vpop.f32.mrb[19].mxu0 }
 0x546   : > { %v12706_v63 = vpop.f32.mrb[32].mxu1 }
 0x547   : > { %15898 = vst [vmem:[#allocation32_spill] sm:$0xff] %v12706_v63  ;;  %v10108_v61 = vpop.f32.mrb[33].mxu1 }
 0x548   : > { %v12708_v56 = vpop.f32.mrb[34].mxu1 }
 0x549   : > { %15899 = vst [vmem:[#allocation33_spill] sm:$0xff] %v12708_v56  ;;  %v10109_v4 = vpop.f32.mrb[35].mxu1 }
 0x54e   : > { %v12710_v62 = vpop.f32.mrb[20].mxu0 }
 0x54f   : > { %15900 = vst [vmem:[#allocation34_spill] sm:$0xff] %v12710_v62  ;;  %v10114_v44 = vpop.f32.mrb[21].mxu0 }
 0x550   : > { %v12712_v49 = vpop.f32.mrb[22].mxu0 }
 0x551   : > { %15901 = vst [vmem:[#allocation35_spill] sm:$0xff] %v12712_v49  ;;  %v10115_v10 = vpop.f32.mrb[23].mxu0 }
 0x556   : > { %v12714_v19 = vpop.f32.mrb[36].mxu1 }
 0x557   : > { %15902 = vst [vmem:[#allocation36_spill] sm:$0xff] %v12714_v19  ;;  %v10120_v27 = vpop.f32.mrb[37].mxu1 }
 0x558   : > { %v12716_v6 = vpop.f32.mrb[38].mxu1 }
 0x559   : > { %15903 = vst [vmem:[#allocation37_spill] sm:$0xff] %v12716_v6  ;;  %v10121_v34 = vpop.f32.mrb[39].mxu1 }
 0x562   : > { %v12718_v16 = vpop.f32.mrb[24].mxu0 }
 0x563   : > { %15904 = vst [vmem:[#allocation38_spill] sm:$0xff] %v12718_v16  ;;  %v10126_v9 = vpop.f32.mrb[25].mxu0 }
 0x564   : > { %v12720_v51 = vpop.f32.mrb[26].mxu0 }
 0x565   : > { %15905 = vst [vmem:[#allocation39_spill] sm:$0xff] %v12720_v51  ;;  %v10127_v26 = vpop.f32.mrb[27].mxu0 }
 0x566   : > { %v12722_v35 = vpop.f32.mrb[40].mxu1 }
 0x567   : > { %15906 = vst [vmem:[#allocation40_spill] sm:$0xff] %v12722_v35  ;;  %v10132_v13 = vpop.f32.mrb[41].mxu1 }
 0x568   : > { %v12724_v54 = vpop.f32.mrb[42].mxu1 }
 0x569   : > { %15907 = vst [vmem:[#allocation41_spill] sm:$0xff] %v12724_v54  ;;  %v10133_v23 = vpop.f32.mrb[43].mxu1 }
 0x5b3   : > { %v12726_v42 = vpop.f32.mrb[44].mxu1 }
 0x5b4   : > { %15908 = vst [vmem:[#allocation42_spill] sm:$0xff] %v12726_v42  ;;  %v10144_v1 = vpop.f32.mrb[45].mxu1 }
 0x5b5   : > { %v12728_v55 = vpop.f32.mrb[46].mxu1 }
 0x5b6   : > { %15909 = vst [vmem:[#allocation43_spill] sm:$0xff] %v12728_v55  ;;  %v10145_v15 = vpop.f32.mrb[47].mxu1 }
 0x5b7   : > { %v12730_v41 = vpop.f32.mrb[28].mxu0 }
 0x5b8   : > { %15910 = vst [vmem:[#allocation44_spill] sm:$0xff] %v12730_v41  ;;  %v10138_v43 = vpop.f32.mrb[29].mxu0 }
 0x5b9   : > { %v12732_v50 = vpop.f32.mrb[30].mxu0 }
 0x5ba   : > { %15911 = vst [vmem:[#allocation45_spill] sm:$0xff] %v12732_v50  ;;  %v10139_v29 = vpop.f32.mrb[31].mxu0 }
 0x5bb   : > { %v1604_v57 = vpop.f32.mrb[48].mxu1 }
 0x5bc   : > { %v12734_v58 = vmul.f32 0.5, %v1604_v57  ;;  %v10156_v0 = vpop.f32.mrb[49].mxu1 }
 0x5bd   : > { %v1607_v21 = vpop.f32.mrb[50].mxu1 }
 0x5be   : > { %v10157_v37 = vpop.f32.mrb[51].mxu1  ;;  %v1939_v48 = vsel %vm948_vm3, %v12734_v58, -inf  ;;  %v12740_v27 = vmul.f32 0.5, %v1607_v21 }
 0x5bf   : > { %1940 = vmax.xlane.f32.xlu0 %v1939_v48  ;;  %v1553_v61 = vpop.f32.mrb[32].mxu0 }
 0x5c0   : > { %v12738_v4 = vmul.f32 0.5, %v1553_v61  ;;  %v10150_v44 = vpop.f32.mrb[33].mxu0  ;;  %v1942_v0 = vsel %vm948_vm3, %v12740_v27, -inf }
 0x5c1   : > { %v1556_v10 = vpop.f32.mrb[34].mxu0 }
 0x5c2   : > { %v12742_v34 = vmul.f32 0.5, %v1556_v10  ;;  %v10151_v9 = vpop.f32.mrb[35].mxu0  ;;  %v1933_v26 = vsel %vm948_vm3, %v12738_v4, -inf }
 0x5c3   : > { %v1706_v13 = vpop.f32.mrb[52].mxu1  ;;  %1934 = vmax.xlane.f32.xlu0 %v1933_v26 }
 0x5c4   : > { %v10168_v23 = vpop.f32.mrb[53].mxu1  ;;  %v1936_v1 = vsel %vm948_vm3, %v12742_v34, -inf  ;;  %v12748_v43 = vmul.f32 0.5, %v1706_v13 }
 0x5c5   : > { %v1709_v15 = vpop.f32.mrb[54].mxu1  ;;  %1937 = vmax.xlane.f32.xlu1 %v1936_v1 }
 0x5c6   : > { %v12750_v29 = vmul.f32 0.5, %v1709_v15  ;;  %v10169_v57 = vpop.f32.mrb[55].mxu1  ;;  %v1951_v26 = vsel %vm948_vm3, %v12748_v43, -inf }
 0x5c7   : > { %1943 = vmax.xlane.f32.xlu0 %v1942_v0  ;;  %v1655_v21 = vpop.f32.mrb[36].mxu0 }
 0x5c8   : > { %v10162_v37 = vpop.f32.mrb[37].mxu0  ;;  %v1954_v48 = vsel %vm948_vm3, %v12750_v29, -inf  ;;  %v12756_v44 = vmul.f32 0.5, %v1655_v21 }
 0x5c9   : > { %1955 = vmax.xlane.f32.xlu1 %v1954_v48  ;;  %v1658_v61 = vpop.f32.mrb[38].mxu0 }
 0x5ca   : > { %v12758_v10 = vmul.f32 0.5, %v1658_v61  ;;  %v10163_v9 = vpop.f32.mrb[39].mxu0  ;;  %v1945_v37 = vsel %vm948_vm3, %v12756_v44, -inf }
 0x5cb   : > { %v1808_v13 = vpop.f32.mrb[56].mxu1  ;;  %1952 = vmax.xlane.f32.xlu0 %v1951_v26 }
 0x5cc   : > { %v10180_v23 = vpop.f32.mrb[57].mxu1  ;;  %v1948_v1 = vsel %vm948_vm3, %v12758_v10, -inf  ;;  %v12764_v57 = vmul.f32 0.5, %v1808_v13 }
 0x5cd   : > { %v1811_v15 = vpop.f32.mrb[58].mxu1  ;;  %1949 = vmax.xlane.f32.xlu1 %v1948_v1 }
 0x5ce   : > { %v12766_v0 = vmul.f32 0.5, %v1811_v15  ;;  %v10181_v21 = vpop.f32.mrb[59].mxu1  ;;  %v1963_v1 = vsel %vm948_vm3, %v12764_v57, -inf }
 0x5cf   : > { %1946 = vmax.xlane.f32.xlu0 %v1945_v37  ;;  %v1757_v48 = vpop.f32.mrb[40].mxu0 }
 0x5d0   : > { %v10174_v61 = vpop.f32.mrb[41].mxu0  ;;  %v1966_v9 = vsel %vm948_vm3, %v12766_v0, -inf  ;;  %v12772_v23 = vmul.f32 0.5, %v1757_v48 }
 0x5d1   : > { %1967 = vmax.xlane.f32.xlu1 %v1966_v9  ;;  %v1760_v26 = vpop.f32.mrb[42].mxu0 }
 0x5d2   : > { %v12774_v11 = vmul.f32 0.5, %v1760_v26  ;;  %v10175_v13 = vpop.f32.mrb[43].mxu0  ;;  %v1957_v48 = vsel %vm948_vm3, %v12772_v23, -inf }
 0x5d3   : > { %v1910_v15 = vpop.f32.mrb[60].mxu1  ;;  %1964 = vmax.xlane.f32.xlu0 %v1963_v1 }
 0x5d4   : > { %v10192_v21 = vpop.f32.mrb[61].mxu1  ;;  %v1960_v37 = vsel %vm948_vm3, %v12774_v11, -inf  ;;  %v12780_v8 = vmul.f32 0.5, %v1910_v15 }
 0x5d5   : > { %v1913_v61 = vpop.f32.mrb[62].mxu1  ;;  %1961 = vmax.xlane.f32.xlu1 %v1960_v37 }
 0x5d6   : > { %v10193_v9 = vpop.f32.mrb[63].mxu1  ;;  %v1975_v1 = vsel %vm948_vm3, %v12780_v8, -inf }
 0x5d7   : > { %1958 = vmax.xlane.f32.xlu0 %v1957_v48  ;;  %v1859_v26 = vpop.f32.mrb[44].mxu0 }
 0x5d8   : > { %v10186_v13 = vpop.f32.mrb[45].mxu0  ;;  %v12784_v60 = vmul.f32 0.5, %v1859_v26 }
 0x5d9   : > { %v1862_v5 = vpop.f32.mrb[46].mxu0 }
 0x5da   : > { %v10187_v3 = vpop.f32.mrb[47].mxu0  ;;  %v1969_v21 = vsel %vm948_vm3, %v12784_v60, -inf  ;;  %v12799_v15 = vmul.f32 0.5, %v1862_v5 }
 0x5db   : > { %1976 = vmax.xlane.f32.xlu0 %v1975_v1  ;;  %v12797_v3 = vmul.f32 0.5, %v1913_v61 }
 0x5dc   : > { %v1972_v9 = vsel %vm948_vm3, %v12799_v15, -inf }
 0x5dd   : > { %v1978_v37 = vsel %vm948_vm3, %v12797_v3, -inf }
 0x5df   : > { %1970 = vmax.xlane.f32.xlu0 %v1969_v21 }
 0x5e6   : > { %2164 = vrot.lane.b32.xlu1 %v12349_v12, %s12009_s20 }
 0x5ea   : > { %2211 = vrot.lane.b32.xlu1 %v12357_v22, %s12009_s20 }
 0x5ee   : > { %2258 = vrot.lane.b32.xlu1 %v12355_v20, %s12009_s20 }
 0x5f2   : > { %2352 = vrot.lane.b32.xlu1 %v12361_v28, %s12009_s20 }
 0x5f5   : > { %2117 = vrot.lane.b32.xlu0 %v12351_v14, %s12009_s20 }
 0x5f9   : > { %2305 = vrot.lane.b32.xlu0 %v12363_v30, %s12009_s20 }
 0x5fd   : > { %2399 = vrot.lane.b32.xlu0 %v12369_v40, %s12009_s20 }
 0x616   : > { %1979 = vmax.xlane.f32.xlu1 %v1978_v37 }
 0x61a   : > { %1973 = vmax.xlane.f32.xlu1 %v1972_v9 }
 0x62b   : > { %2446 = vrot.lane.b32.xlu1 %v12367_v36, %s12009_s20  ;;  %s12022_s20 = smov 72  }
 0x64c   : > { %v1941_v48 = vpop.xlane.xlu0 %1940 }
 0x64d   : > { %v1983_v26 = vsub.f32 %v12734_v58, %v1941_v48 }
 0x64f   : > { %v2001_v13 = vmul.f32 1.442695, %v1983_v26 }
 0x650   : > { %v1935_v1 = vpop.xlane.xlu0 %1934 }
 0x651   : > { %11294 = vpow2.f32 %v2001_v13  ;;  %v1981_v61 = vsub.f32 %v12738_v4, %v1935_v1 }
 0x652   : > { %v1938_v5 = vpop.xlane.xlu1 %1937 }
 0x653   : > { %v1997_v21 = vmul.f32 1.442695, %v1981_v61  ;;  %v1982_v59 = vsub.f32 %v12742_v34, %v1938_v5 }
 0x654   : > { %v1944_v2 = vpop.xlane.xlu0 %1943 }
 0x655   : > { %11296 = vpow2.f32 %v1997_v21  ;;  %v1984_v37 = vsub.f32 %v12740_v27, %v1944_v2  ;;  %v1999_v9 = vmul.f32 1.442695, %v1982_v59 }
 0x656   : > { %v1956_v7 = vpop.xlane.xlu1 %1955 }
 0x657   : > { %v2003_v46 = vmul.f32 1.442695, %v1984_v37  ;;  %v1988_v53 = vsub.f32 %v12750_v29, %v1956_v7 }
 0x658   : > { %v1953_v45 = vpop.xlane.xlu0 %1952 }
 0x659   : > { %11298 = vpow2.f32 %v2003_v46  ;;  %v1987_v58 = vsub.f32 %v12748_v43, %v1953_v45  ;;  %v2011_v4 = vmul.f32 1.442695, %v1988_v53 }
 0x65a   : > { %v1950_v48 = vpop.xlane.xlu1 %1949  ;;  %11300 = vpow2.f32 %v1999_v9 }
 0x65b   : > { %v12812_v26 = vpop.eup %11294  ;;  %v2009_v13 = vmul.f32 1.442695, %v1987_v58  ;;  %v1986_v34 = vsub.f32 %v12758_v10, %v1950_v48 }
 0x65c   : > { %v1947_v1 = vpop.xlane.xlu0 %1946  ;;  %v2035_v2 = vsel %vm948_vm3, %v12812_v26, 0.0 }
 0x65d   : > { %11302 = vpow2.f32 %v2009_v13  ;;  %v1985_v59 = vsub.f32 %v12756_v44, %v1947_v1  ;;  %2036 = vadd.xlane.f32.xlu0 %v2035_v2  ;;  %v2007_v27 = vmul.f32 1.442695, %v1986_v34 }
 0x65e   : > { %v1968_v7 = vpop.xlane.xlu1 %1967  ;;  %11304 = vpow2.f32 %v2011_v4 }
 0x65f   : > { %v12818_v46 = vpop.eup %11296  ;;  %v2005_v45 = vmul.f32 1.442695, %v1985_v59  ;;  %v1992_v43 = vsub.f32 %v12766_v0, %v1968_v7  ;;  %v15912_v59 = vmov 0.0  }
 0x660   : > { %v1965_v53 = vpop.xlane.xlu0 %1964  ;;  %v2029_v29 = vsel %vm948_vm3, %v12818_v46, 0.0 }
 0x661   : > { %11306 = vpow2.f32 %v2005_v45  ;;  %v1991_v10 = vsub.f32 %v12764_v57, %v1965_v53  ;;  %2030 = vadd.xlane.f32.xlu0 %v2029_v29  ;;  %v2019_v21 = vmul.f32 1.442695, %v1992_v43 }
 0x662   : > { %v1962_v61 = vpop.xlane.xlu1 %1961  ;;  %11308 = vpow2.f32 %v2007_v27 }
 0x663   : > { %v12824_v5 = vpop.eup %11298  ;;  %v2017_v44 = vmul.f32 1.442695, %v1991_v10  ;;  %v1990_v37 = vsub.f32 %v12774_v11, %v1962_v61 }
 0x664   : > { %v1959_v9 = vpop.xlane.xlu0 %1958  ;;  %v2038_v0 = vsel %vm948_vm3, %v12824_v5, 0.0  ;;  %v12829_v58 = vpop.eup %11300 }
 0x665   : > { %11310 = vpow2.f32 %v2017_v44  ;;  %v1989_v48 = vsub.f32 %v12772_v23, %v1959_v9  ;;  %2039 = vadd.xlane.f32.xlu1 %v2038_v0  ;;  %v2015_v34 = vmul.f32 1.442695, %v1990_v37  ;;  %v2032_v2 = vsel %vm948_vm3, %v12829_v58, 0.0 }
 0x666   : > { %v2165_v57 = vpop.permute.xlu1 %2164  ;;  %11312 = vpow2.f32 %v2019_v21 }
 0x667   : > { %v12832_v4 = vpop.eup %11302  ;;  %v2013_v13 = vmul.f32 1.442695, %v1989_v48  ;;  %10201 = vmatpush3.bf16.msra.mxu1 %v2165_v57 }
 0x668   : > { %v1977_v1 = vpop.xlane.xlu0 %1976  ;;  %v2047_v11 = vsel %vm948_vm3, %v12832_v4, 0.0  ;;  %10212 = vmatprep.subr.bf16.mxu1 %v15912_v59  ;;  %v12839_v7 = vpop.eup %11304 }
 0x669   : > { %11314 = vpow2.f32 %v2013_v13  ;;  %v1995_v23 = vsub.f32 %v12780_v8, %v1977_v1  ;;  %2048 = vadd.xlane.f32.xlu0 %v2047_v11  ;;  %2033 = vadd.xlane.f32.xlu1 %v2032_v2  ;;  %v2050_v29 = vsel %vm948_vm3, %v12839_v7, 0.0 }
 0x66a   : > { %11316 = vpow2.f32 %v2015_v34 }
 0x66b   : > { %v12842_v45 = vpop.eup %11306  ;;  %v2025_v27 = vmul.f32 1.442695, %v1995_v23 }
 0x66c   : > { %v1971_v43 = vpop.xlane.xlu0 %1970  ;;  %v2041_v53 = vsel %vm948_vm3, %v12842_v45, 0.0  ;;  %v12849_v61 = vpop.eup %11308 }
 0x66d   : > { %11318 = vpow2.f32 %v2025_v27  ;;  %v1993_v10 = vsub.f32 %v12784_v60, %v1971_v43  ;;  %2042 = vadd.xlane.f32.xlu0 %v2041_v53  ;;  %2051 = vadd.xlane.f32.xlu1 %v2050_v29  ;;  %v2044_v9 = vsel %vm948_vm3, %v12849_v61, 0.0  ;;  %v12880_v27 = vpop.permute.xlu1 %2211 }
 0x66f   : > { %v12851_v8 = vpop.eup %11310  ;;  %v2021_v44 = vmul.f32 1.442695, %v1993_v10 }
 0x670   : > { %v2118_v21 = vpop.permute.xlu0 %2117  ;;  %v2059_v37 = vsel %vm948_vm3, %v12851_v8, 0.0  ;;  %v12857_v0 = vpop.eup %11312 }
 0x671   : > { %11320 = vpow2.f32 %v2021_v44  ;;  %2060 = vadd.xlane.f32.xlu0 %v2059_v37  ;;  %10195 = vmatpush3.bf16.msra.mxu0 %v2118_v21  ;;  %v2062_v57 = vsel %vm948_vm3, %v12857_v0, 0.0  ;;  %v2259_v43 = vpop.permute.xlu1 %2258 }
 0x672   : > { %2045 = vadd.xlane.f32.xlu1 %v2044_v9  ;;  %10206 = vmatprep.subr.bf16.mxu0 %v15912_v59 }
 0x673   : > { %v12860_v60 = vpop.eup %11314 }
 0x674   : > { %v2053_v48 = vsel %vm948_vm3, %v12860_v60, 0.0  ;;  %v12866_v13 = vpop.eup %11316 }
 0x675   : > { %2054 = vadd.xlane.f32.xlu0 %v2053_v48  ;;  %v2056_v11 = vsel %vm948_vm3, %v12866_v13, 0.0  ;;  %v12888_v53 = vpop.permute.xlu1 %2352 }
 0x676   : > { %2063 = vadd.xlane.f32.xlu1 %v2062_v57 }
 0x677   : > { %v12868_v34 = vpop.eup %11318 }
 0x678   : > { %v2071_v1 = vsel %vm948_vm3, %v12868_v34, 0.0 }
 0x679   : > { %2072 = vadd.xlane.f32.xlu0 %v2071_v1 }
 0x67a   : > { %2057 = vadd.xlane.f32.xlu1 %v2056_v11 }
 0x67b   : > { %v12874_v2 = vpop.eup %11320 }
 0x67c   : > { %v2065_v23 = vsel %vm948_vm3, %v12874_v2, 0.0 }
 0x67d   : > { %2066 = vadd.xlane.f32.xlu0 %v2065_v23 }
 0x68b   : > { %2546 = vrot.lane.b32.xlu1 %v12349_v12, %s12010_s15 }
 0x693   : > { %2495 = vrot.lane.b32.xlu0 %v12351_v14, %s12010_s15 }
 0x697   : > { %2493 = vrot.lane.b32.xlu0 %v12351_v14, %s12011_s8 }
 0x69b   : > { %2544 = vrot.lane.b32.xlu0 %v12349_v12, %s12011_s8 }
 0x69f   : > { %2595 = vrot.lane.b32.xlu0 %v12357_v22, %s12011_s8 }
 0x6a3   : > { %v1980_v29 = vpop.xlane.xlu1 %1979  ;;  %2646 = vrot.lane.b32.xlu0 %v12355_v20, %s12011_s8 }
 0x6a4   : > { %v1996_v10 = vsub.f32 %v12797_v3, %v1980_v29 }
 0x6a6   : > { %v2027_v44 = vmul.f32 1.442695, %v1996_v10 }
 0x6a7   : > { %2697 = vrot.lane.b32.xlu0 %v12363_v30, %s12011_s8  ;;  %v1974_v21 = vpop.xlane.xlu1 %1973 }
 0x6a8   : > { %11322 = vpow2.f32 %v2027_v44  ;;  %v1994_v37 = vsub.f32 %v12799_v15, %v1974_v21  ;;  %v12924_v15 = vpop.permute.xlu0 %2305 }
 0x6aa   : > { %v2023_v9 = vmul.f32 1.442695, %v1994_v37 }
 0x6ab   : > { %2748 = vrot.lane.b32.xlu0 %v12361_v28, %s12011_s8  ;;  %v12928_v29 = vpop.permute.xlu1 %2446 }
 0x6ac   : > { %11324 = vpow2.f32 %v2023_v9  ;;  %v12926_v11 = vpop.permute.xlu0 %2399 }
 0x6af   : > { %2799 = vrot.lane.b32.xlu0 %v12369_v40, %s12011_s8 }
 0x6b2   : > { %v12902_v48 = vpop.eup %11322 }
 0x6b3   : > { %v2074_v3 = vsel %vm948_vm3, %v12902_v48, 0.0 }
 0x6b4   : > { %2075 = vadd.xlane.f32.xlu1 %v2074_v3 }
 0x6b6   : > { %v12906_v57 = vpop.eup %11324 }
 0x6b7   : > { %v2068_v1 = vsel %vm948_vm3, %v12906_v57, 0.0 }
 0x6b8   : > { %2069 = vadd.xlane.f32.xlu1 %v2068_v1 }
 0x6c9   : > { %2597 = vrot.lane.b32.xlu1 %v12357_v22, %s12010_s15 }
 0x6cd   : > { %2648 = vrot.lane.b32.xlu1 %v12355_v20, %s12010_s15 }
 0x6d1   : > { %2699 = vrot.lane.b32.xlu1 %v12363_v30, %s12010_s15 }
 0x6d5   : > { %2750 = vrot.lane.b32.xlu1 %v12361_v28, %s12010_s15 }
 0x6d9   : > { %2801 = vrot.lane.b32.xlu1 %v12369_v40, %s12010_s15 }
 0x6dd   : > { %2852 = vrot.lane.b32.xlu1 %v12367_v36, %s12010_s15  ;;  %s12023_s15 = smov 104  }
 0x6e1   : > { %2850 = vrot.lane.b32.xlu1 %v12367_v36, %s12011_s8  ;;  %s12024_s8 = smov 40  }
 0x6ea   : > { %v2037_v23 = vpop.xlane.xlu0 %2036 }
 0x6eb   : > { %11326 = vrcp.f32 %v2037_v23 }
 0x6ee   : > { %v2031_v10 = vpop.xlane.xlu0 %2030 }
 0x6f2   : > { %v2040_v44 = vpop.xlane.xlu1 %2039 }
 0x6f3   : > { %11328 = vrcp.f32 %v2040_v44 }
 0x6f4   : > { %11330 = vrcp.f32 %v2031_v10 }
 0x6f5   : > { %v11327_v1 = vpop.eup %11326 }
 0x6f6   : > { %v2049_v21 = vpop.xlane.xlu0 %2048  ;;  %v2034_v37 = vpop.xlane.xlu1 %2033  ;;  %v2095_v32 = vmul.f32 %v11327_v1, %v12812_v26 }
 0x6f7   : > { %11332 = vrcp.f32 %v2034_v37 }
 0x6f8   : > { %11334 = vrcp.f32 %v2049_v21 }
 0x6fa   : > { %v2043_v9 = vpop.xlane.xlu0 %2042  ;;  %v2052_v3 = vpop.xlane.xlu1 %2051 }
 0x6fb   : > { %11336 = vrcp.f32 %v2052_v3 }
 0x6fc   : > { %11338 = vrcp.f32 %v2043_v9 }
 0x6fd   : > { %v11329_v52 = vpop.eup %11328 }
 0x6fe   : > { %v2096_v39 = vmul.f32 %v11329_v52, %v12824_v5  ;;  %v2061_v31 = vpop.xlane.xlu0 %2060  ;;  %v11331_v38 = vpop.eup %11330 }
 0x6ff   : > { %v2046_v23 = vpop.xlane.xlu1 %2045  ;;  %v2093_v21 = vmul.f32 %v11331_v38, %v12818_v46 }
 0x700   : > { %11340 = vrcp.f32 %v2046_v23  ;;  %v2110_v44 = vpack.c.bf16 %v2096_v39, %v2095_v32 }
 0x701   : > { %v11333_v10 = vpop.eup %11332  ;;  %11342 = vrcp.f32 %v2061_v31 }
 0x702   : > { %10203 = vmatmul.mubr.msk.bf16.vlgmr.msra.gmra.mrb[64].mxu1 %vm948_vm3, %v2110_v44  ;;  %v2094_v37 = vmul.f32 %v11333_v10, %v12829_v58  ;;  %v2055_v3 = vpop.xlane.xlu0 %2054  ;;  %v11335_v52 = vpop.eup %11334 }
 0x703   : > { %10213 = vmatpush3.bf16.msra.mxu1 %v2259_v43  ;;  %v2064_v18 = vpop.xlane.xlu1 %2063  ;;  %10214 = vmatprep.mubr.msk.bf16.mxu1 %vm12004_vm1, %v15912_v59  ;;  %v2099_v31 = vmul.f32 %v11335_v52, %v12832_v4 }
 0x704   : > { %11344 = vrcp.f32 %v2064_v18  ;;  %10224 = vmatprep.subr.bf16.mxu1 %v15912_v59  ;;  %v2109_v26 = vpack.c.bf16 %v2094_v37, %v2093_v21 }
 0x705   : > { %v11337_v32 = vpop.eup %11336  ;;  %11346 = vrcp.f32 %v2055_v3 }
 0x706   : > { %v2100_v39 = vmul.f32 %v11337_v32, %v12839_v7  ;;  %10197 = vmatmul.mubr.msk.bf16.vlgmr.msra.gmra.mrb[48].mxu0 %vm948_vm3, %v2109_v26  ;;  %v11339_v46 = vpop.eup %11338 }
 0x707   : > { %v2058_v38 = vpop.xlane.xlu1 %2057  ;;  %10207 = vmatpush3.bf16.msra.mxu0 %v12880_v27  ;;  %10208 = vmatprep.mubr.msk.bf16.mxu0 %vm12004_vm1, %v15912_v59  ;;  %v2097_v58 = vmul.f32 %v11339_v46, %v12842_v45 }
 0x708   : > { %11348 = vrcp.f32 %v2058_v38  ;;  %v2112_v18 = vpack.c.bf16 %v2100_v39, %v2099_v31  ;;  %10218 = vmatprep.subr.bf16.mxu0 %v15912_v59 }
 0x70a   : > { %v11341_v5 = vpop.eup %11340  ;;  %10215 = vmatmul.mubr.msk.bf16.vlgmr.msra.gmra.mrb[68].mxu1 %vm948_vm3, %v2112_v18 }
 0x70b   : > { %v2098_v4 = vmul.f32 %v11341_v5, %v12849_v61  ;;  %v11343_v7 = vpop.eup %11342  ;;  %10225 = vmatpush3.bf16.msra.mxu1 %v12888_v53  ;;  %10226 = vmatprep.mubr.msk.bf16.mxu1 %vm12004_vm1, %v15912_v59 }
 0x70c   : > { %10236 = vmatprep.subr.bf16.mxu1 %v15912_v59  ;;  %v2103_v9 = vmul.f32 %v11343_v7, %v12851_v8 }
 0x70d   : > { %v2111_v27 = vpack.c.bf16 %v2098_v4, %v2097_v58 }
 0x70e   : > { %v11345_v43 = vpop.eup %11344 }
 0x70f   : > { %v2104_v1 = vmul.f32 %v11345_v43, %v12857_v0  ;;  %10209 = vmatmul.mubr.msk.bf16.vlgmr.msra.gmra.mrb[52].mxu0 %vm948_vm3, %v2111_v27  ;;  %v11347_v45 = vpop.eup %11346  ;;  %v2073_v0 = vpop.xlane.xlu0 %2072 }
 0x710   : > { %10219 = vmatpush3.bf16.msra.mxu0 %v12924_v15  ;;  %10220 = vmatprep.mubr.msk.bf16.mxu0 %vm12004_vm1, %v15912_v59  ;;  %v2101_v23 = vmul.f32 %v11347_v45, %v12860_v60  ;;  %v2547_v60 = vpop.permute.xlu1 %2546  ;;  %11350 = vrcp.f32 %v2073_v0 }
 0x711   : > { %v2114_v61 = vpack.c.bf16 %v2104_v1, %v2103_v9  ;;  %10230 = vmatprep.subr.bf16.mxu0 %v15912_v59  ;;  %v2552_v5 = vsel %vm534_vm2, %v2547_v60, 0 }
 0x712   : > { %v11349_v53 = vpop.eup %11348 }
 0x713   : > { %v2102_v44 = vmul.f32 %v11349_v53, %v12866_v13  ;;  %10227 = vmatmul.mubr.msk.bf16.vlgmr.msra.gmra.mrb[72].mxu1 %vm948_vm3, %v2114_v61  ;;  %v2067_v13 = vpop.xlane.xlu0 %2066 }
 0x714   : > { %10237 = vmatpush3.bf16.msra.mxu1 %v12928_v29  ;;  %10238 = vmatprep.mubr.msk.bf16.mxu1 %vm12004_vm1, %v15912_v59 }
 0x715   : > { %v2113_v8 = vpack.c.bf16 %v2102_v44, %v2101_v23  ;;  %10248 = vmatprep.subr.bf16.mxu1 %v15912_v59 }
 0x717   : > { %10221 = vmatmul.mubr.msk.bf16.vlgmr.msra.gmra.mrb[56].mxu0 %vm948_vm3, %v2113_v8  ;;  %v2496_v29 = vpop.permute.xlu0 %2495 }
 0x718   : > { %10231 = vmatpush3.bf16.msra.mxu0 %v12926_v11  ;;  %10232 = vmatprep.mubr.msk.bf16.mxu0 %vm12004_vm1, %v15912_v59  ;;  %v2501_v4 = vsel %vm534_vm2, %v2496_v29, 0 }
 0x719   : > { %10242 = vmatprep.subr.bf16.mxu0 %v15912_v59 }
 0x71a   : > { %v11351_v37 = vpop.eup %11350 }
 0x71b   : > { %v2494_v3 = vpop.permute.xlu0 %2493  ;;  %v2107_v11 = vmul.f32 %v11351_v37, %v12868_v34 }
 0x71f   : > { %v2545_v46 = vpop.permute.xlu0 %2544 }
 0x723   : > { %v2596_v7 = vpop.permute.xlu0 %2595 }
 0x727   : > { %v2647_v27 = vpop.permute.xlu0 %2646 }
 0x72b   : > { %v2698_v45 = vpop.permute.xlu0 %2697 }
 0x72f   : > { %v2749_v23 = vpop.permute.xlu0 %2748 }
 0x733   : > { %v2800_v60 = vpop.permute.xlu0 %2799 }
 0x741   : > { %v2076_v15 = vpop.xlane.xlu1 %2075 }
 0x742   : > { %11352 = vrcp.f32 %v2076_v15 }
 0x743   : > { %11354 = vrcp.f32 %v2067_v13 }
 0x745   : > { %v2070_v10 = vpop.xlane.xlu1 %2069 }
 0x746   : > { %11356 = vrcp.f32 %v2070_v10 }
 0x749   : > { %v2598_v21 = vpop.permute.xlu1 %2597 }
 0x74a   : > { %v2603_v43 = vsel %vm534_vm2, %v2598_v21, 0 }
 0x74c   : > { %v11353_v52 = vpop.eup %11352 }
 0x74d   : > { %v2108_v26 = vmul.f32 %v11353_v52, %v12902_v48  ;;  %v11355_v32 = vpop.eup %11354  ;;  %v2649_v31 = vpop.permute.xlu1 %2648 }
 0x74e   : > { %v2105_v18 = vmul.f32 %v11355_v32, %v12874_v2  ;;  %v2654_v2 = vsel %vm534_vm2, %v2649_v31, 0 }
 0x74f   : > { %v2116_v39 = vpack.c.bf16 %v2108_v26, %v2107_v11 }
 0x750   : > { %v11357_v38 = vpop.eup %11356 }
 0x751   : > { %v2106_v58 = vmul.f32 %v11357_v38, %v12906_v57  ;;  %10239 = vmatmul.mubr.msk.bf16.vlgmr.msra.gmra.mrb[76].mxu1 %vm948_vm3, %v2116_v39  ;;  %v2700_v48 = vpop.permute.xlu1 %2699 }
 0x752   : > { %10249 = vmatpush3.bf16.xpose.msra.mxu1 %v2552_v5  ;;  %10250 = vmatprep.mubr.msk.bf16.mxu1 %vm12004_vm1, %v15912_v59  ;;  %v2705_v61 = vsel %vm534_vm2, %v2700_v48, 0 }
 0x753   : > { %v2115_v34 = vpack.c.bf16 %v2106_v58, %v2105_v18  ;;  %10260 = vmatprep.subr.bf16.mxu1 %v15912_v59 }
 0x755   : > { %10233 = vmatmul.mubr.msk.bf16.vlgmr.msra.gmra.mrb[60].mxu0 %vm948_vm3, %v2115_v34  ;;  %v2751_v57 = vpop.permute.xlu1 %2750 }
 0x756   : > { %10243 = vmatpush3.bf16.xpose.msra.mxu0 %v2501_v4  ;;  %10244 = vmatprep.mubr.msk.bf16.mxu0 %vm12004_vm1, %v15912_v59  ;;  %v2756_v1 = vsel %vm534_vm2, %v2751_v57, 0 }
 0x757   : > { %10254 = vmatprep.subr.bf16.mxu0 %v15912_v59 }
 0x759   : > { %10251 = vmatmul.mubr.msk.bf16.vlgmr.msra.gmra.mrb[80].mxu1 %vm534_vm2, %v2545_v46  ;;  %v2802_v9 = vpop.permute.xlu1 %2801 }
 0x75a   : > { %10261 = vmatpush3.bf16.xpose.msra.mxu1 %v2654_v2  ;;  %10262 = vmatprep.mubr.msk.bf16.mxu1 %vm12004_vm1, %v15912_v59  ;;  %v2807_v8 = vsel %vm534_vm2, %v2802_v9, 0 }
 0x75b   : > { %10272 = vmatprep.subr.bf16.mxu1 %v15912_v59 }
 0x75d   : > { %10245 = vmatmul.mubr.msk.bf16.vlgmr.msra.gmra.mrb[64].mxu0 %vm534_vm2, %v2494_v3  ;;  %v2853_v53 = vpop.permute.xlu1 %2852 }
 0x75e   : > { %10255 = vmatpush3.bf16.xpose.msra.mxu0 %v2603_v43  ;;  %10256 = vmatprep.mubr.msk.bf16.mxu0 %vm12004_vm1, %v15912_v59  ;;  %v2858_v44 = vsel %vm534_vm2, %v2853_v53, 0 }
 0x75f   : > { %10266 = vmatprep.subr.bf16.mxu0 %v15912_v59 }
 0x761   : > { %10263 = vmatmul.mubr.msk.bf16.vlgmr.msra.gmra.mrb[84].mxu1 %vm534_vm2, %v2647_v27  ;;  %v2851_v0 = vpop.permute.xlu1 %2850 }
 0x762   : > { %10273 = vmatpush3.bf16.xpose.msra.mxu1 %v2756_v1  ;;  %10274 = vmatprep.mubr.msk.bf16.mxu1 %vm12004_vm1, %v15912_v59 }
 0x763   : > { %10284 = vmatprep.subr.bf16.mxu1 %v15912_v59 }
 0x765   : > { %10257 = vmatmul.mubr.msk.bf16.vlgmr.msra.gmra.mrb[68].mxu0 %vm534_vm2, %v2596_v7 }
 0x766   : > { %10267 = vmatpush3.bf16.xpose.msra.mxu0 %v2705_v61  ;;  %10268 = vmatprep.mubr.msk.bf16.mxu0 %vm12004_vm1, %v15912_v59 }
 0x767   : > { %10278 = vmatprep.subr.bf16.mxu0 %v15912_v59 }
 0x769   : > { %10275 = vmatmul.mubr.msk.bf16.vlgmr.msra.gmra.mrb[88].mxu1 %vm534_vm2, %v2749_v23 }
 0x76a   : > { %10285 = vmatpush3.bf16.xpose.msra.mxu1 %v2858_v44  ;;  %10286 = vmatprep.mubr.msk.bf16.mxu1 %vm12004_vm1, %v15912_v59 }
 0x76b   : > { %10296 = vmatprep.subr.bf16.mxu1 %v15912_v59 }
 0x76d   : > { %10269 = vmatmul.mubr.msk.bf16.vlgmr.msra.gmra.mrb[72].mxu0 %vm534_vm2, %v2698_v45 }
 0x76e   : > { %10279 = vmatpush3.bf16.xpose.msra.mxu0 %v2807_v8  ;;  %10280 = vmatprep.mubr.msk.bf16.mxu0 %vm12004_vm1, %v15912_v59 }
 0x76f   : > { %10290 = vmatprep.subr.bf16.mxu0 %v15912_v59 }
 0x771   : > { %10287 = vmatmul.mubr.msk.bf16.vlgmr.msra.gmra.mrb[92].mxu1 %vm534_vm2, %v2851_v0 }
 0x772   : > { %10298 = vmatprep.mubr.msk.bf16.mxu1 %vm12004_vm1, %v15912_v59 }
 0x775   : > { %10281 = vmatmul.mubr.msk.bf16.vlgmr.msra.gmra.mrb[76].mxu0 %vm534_vm2, %v2800_v60 }
 0x776   : > { %10292 = vmatprep.mubr.msk.bf16.mxu0 %vm12004_vm1, %v15912_v59 }
 0x7d5   : > { %v13021_v13 = vpop.f32.mrb[64].mxu1 }
 0x7d6   : > { %15913 = vst [vmem:[#allocation46_spill] sm:$0xff] %v13021_v13  ;;  %v10204_v15 = vpop.f32.mrb[65].mxu1 }
 0x7d7   : > { %v13023_v29 = vpop.f32.mrb[66].mxu1 }
 0x7d8   : > { %15914 = vst [vmem:[#allocation47_spill] sm:$0xff] %v13023_v29  ;;  %v10205_v21 = vpop.f32.mrb[67].mxu1 }
 0x7d9   : > { %v13027_v37 = vpop.f32.mrb[48].mxu0 }
 0x7da   : > { %v10198_v3 = vpop.f32.mrb[49].mxu0 }
 0x7db   : > { %v13029_v52 = vpop.f32.mrb[50].mxu0 }
 0x7dc   : > { %v10199_v26 = vpop.f32.mrb[51].mxu0 }
 0x7dd   : > { %v13033_v32 = vpop.f32.mrb[68].mxu1 }
 0x7de   : > { %15915 = vst [vmem:[#allocation48_spill] sm:$0xff] %v13033_v32  ;;  %v10216_v31 = vpop.f32.mrb[69].mxu1 }
 0x7df   : > { %v13035_v39 = vpop.f32.mrb[70].mxu1 }
 0x7e0   : > { %15916 = vst [vmem:[#allocation49_spill] sm:$0xff] %v13035_v39  ;;  %v10217_v46 = vpop.f32.mrb[71].mxu1 }
 0x7e2   : > { %v13039_v18 = vpop.f32.mrb[52].mxu0 }
 0x7e3   : > { %v10210_v5 = vpop.f32.mrb[53].mxu0 }
 0x7e4   : > { %v13041_v58 = vpop.f32.mrb[54].mxu0 }
 0x7e5   : > { %v10211_v48 = vpop.f32.mrb[55].mxu0 }
 0x7e6   : > { %v13045_v4 = vpop.f32.mrb[72].mxu1 }
 0x7e7   : > { %15917 = vst [vmem:[#allocation50_spill] sm:$0xff] %v13045_v4  ;;  %v10228_v7 = vpop.f32.mrb[73].mxu1 }
 0x7e8   : > { %v13047_v2 = vpop.f32.mrb[74].mxu1 }
 0x7e9   : > { %15918 = vst [vmem:[#allocation51_spill] sm:$0xff] %v13047_v2  ;;  %v10229_v27 = vpop.f32.mrb[75].mxu1 }
 0x7ea   : > { %v13051_v43 = vpop.f32.mrb[56].mxu0 }
 0x7eb   : > { %15919 = vst [vmem:[#allocation52_spill] sm:$0xff] %v13051_v43  ;;  %v10222_v9 = vpop.f32.mrb[57].mxu0 }
 0x7ec   : > { %v13053_v1 = vpop.f32.mrb[58].mxu0 }
 0x7ed   : > { %15920 = vst [vmem:[#allocation53_spill] sm:$0xff] %v13053_v1  ;;  %v10223_v61 = vpop.f32.mrb[59].mxu0 }
 0x824   : > { %v13057_v53 = vpop.f32.mrb[76].mxu1 }
 0x825   : > { %15921 = vst [vmem:[#allocation54_spill] sm:$0xff] %v13057_v53  ;;  %v10240_v23 = vpop.f32.mrb[77].mxu1 }
 0x826   : > { %v13059_v44 = vpop.f32.mrb[78].mxu1 }
 0x827   : > { %15922 = vst [vmem:[#allocation55_spill] sm:$0xff] %v13059_v44  ;;  %v10241_v0 = vpop.f32.mrb[79].mxu1 }
 0x828   : > { %v13063_v60 = vpop.f32.mrb[60].mxu0 }
 0x829   : > { %15923 = vst [vmem:[#allocation56_spill] sm:$0xff] %v13063_v60  ;;  %v10234_v15 = vpop.f32.mrb[61].mxu0 }
 0x82a   : > { %v13065_v21 = vpop.f32.mrb[62].mxu0 }
 0x82b   : > { %15924 = vst [vmem:[#allocation57_spill] sm:$0xff] %v13065_v21  ;;  %v10235_v26 = vpop.f32.mrb[63].mxu0 }
 0x82c   : > { %v2588_v31 = vpop.f32.mrb[80].mxu1 }
 0x82d   : > { %v13069_v46 = vmul.f32 0.5, %v2588_v31  ;;  %v10252_v5 = vpop.f32.mrb[81].mxu1 }
 0x82e   : > { %v2591_v48 = vpop.f32.mrb[82].mxu1 }
 0x82f   : > { %v10253_v7 = vpop.f32.mrb[83].mxu1  ;;  %v2923_v27 = vsel %vm948_vm3, %v13069_v46, -inf  ;;  %v13075_v15 = vmul.f32 0.5, %v2591_v48 }
 0x830   : > { %2924 = vmax.xlane.f32.xlu0 %v2923_v27  ;;  %v2537_v9 = vpop.f32.mrb[64].mxu0 }
 0x831   : > { %v13073_v61 = vmul.f32 0.5, %v2537_v9  ;;  %v10246_v23 = vpop.f32.mrb[65].mxu0 }
 0x832   : > { %v2540_v0 = vpop.f32.mrb[66].mxu0 }
 0x833   : > { %v13077_v8 = vmul.f32 0.5, %v2540_v0  ;;  %v10247_v26 = vpop.f32.mrb[67].mxu0  ;;  %v2917_v31 = vsel %vm948_vm3, %v13073_v61, -inf  ;;  %v2926_v0 = vsel %vm948_vm3, %v13075_v15, -inf }
 0x834   : > { %v2690_v5 = vpop.f32.mrb[84].mxu1  ;;  %2918 = vmax.xlane.f32.xlu0 %v2917_v31 }
 0x835   : > { %v10264_v7 = vpop.f32.mrb[85].mxu1  ;;  %v2920_v57 = vsel %vm948_vm3, %v13077_v8, -inf  ;;  %v13083_v9 = vmul.f32 0.5, %v2690_v5 }
 0x836   : > { %v2693_v27 = vpop.f32.mrb[86].mxu1  ;;  %2921 = vmax.xlane.f32.xlu1 %v2920_v57 }
 0x837   : > { %v13085_v23 = vmul.f32 0.5, %v2693_v27  ;;  %v10265_v48 = vpop.f32.mrb[87].mxu1  ;;  %v2935_v5 = vsel %vm948_vm3, %v13083_v9, -inf }
 0x838   : > { %2927 = vmax.xlane.f32.xlu0 %v2926_v0  ;;  %v2639_v26 = vpop.f32.mrb[68].mxu0 }
 0x839   : > { %v10258_v38 = vpop.f32.mrb[69].mxu0  ;;  %v2938_v31 = vsel %vm948_vm3, %v13085_v23, -inf  ;;  %v13091_v3 = vmul.f32 0.5, %v2639_v26 }
 0x83a   : > { %2939 = vmax.xlane.f32.xlu1 %v2938_v31  ;;  %v2642_v7 = vpop.f32.mrb[70].mxu0 }
 0x83b   : > { %v13093_v10 = vmul.f32 0.5, %v2642_v7  ;;  %v10259_v57 = vpop.f32.mrb[71].mxu0  ;;  %v2929_v7 = vsel %vm948_vm3, %v13091_v3, -inf }
 0x83c   : > { %v2792_v27 = vpop.f32.mrb[88].mxu1  ;;  %2936 = vmax.xlane.f32.xlu0 %v2935_v5 }
 0x83d   : > { %v10276_v48 = vpop.f32.mrb[89].mxu1  ;;  %v2932_v0 = vsel %vm948_vm3, %v13093_v10, -inf  ;;  %v13099_v45 = vmul.f32 0.5, %v2792_v27 }
 0x83e   : > { %v2795_v38 = vpop.f32.mrb[90].mxu1  ;;  %2933 = vmax.xlane.f32.xlu1 %v2932_v0 }
 0x83f   : > { %v13101_v31 = vmul.f32 0.5, %v2795_v38  ;;  %v10277_v26 = vpop.f32.mrb[91].mxu1  ;;  %v2947_v0 = vsel %vm948_vm3, %v13099_v45, -inf }
 0x840   : > { %2930 = vmax.xlane.f32.xlu0 %v2929_v7  ;;  %v2741_v57 = vpop.f32.mrb[72].mxu0 }
 0x841   : > { %v10270_v34 = vpop.f32.mrb[73].mxu0  ;;  %v2950_v5 = vsel %vm948_vm3, %v13101_v31, -inf  ;;  %v13107_v11 = vmul.f32 0.5, %v2741_v57 }
 0x842   : > { %2951 = vmax.xlane.f32.xlu1 %v2950_v5  ;;  %v2744_v48 = vpop.f32.mrb[74].mxu0 }
 0x843   : > { %v13109_v25 = vmul.f32 0.5, %v2744_v48  ;;  %v10271_v27 = vpop.f32.mrb[75].mxu0  ;;  %v2941_v57 = vsel %vm948_vm3, %v13107_v11, -inf }
 0x844   : > { %v2894_v38 = vpop.f32.mrb[92].mxu1  ;;  %2948 = vmax.xlane.f32.xlu0 %v2947_v0 }
 0x845   : > { %v10288_v26 = vpop.f32.mrb[93].mxu1  ;;  %v2944_v7 = vsel %vm948_vm3, %v13109_v25, -inf  ;;  %v13115_v17 = vmul.f32 0.5, %v2894_v38 }
 0x846   : > { %v2897_v34 = vpop.f32.mrb[94].mxu1  ;;  %2945 = vmax.xlane.f32.xlu1 %v2944_v7 }
 0x847   : > { %v10289_v5 = vpop.f32.mrb[95].mxu1  ;;  %v2959_v0 = vsel %vm948_vm3, %v13115_v17, -inf }
 0x848   : > { %2942 = vmax.xlane.f32.xlu0 %v2941_v57  ;;  %v2843_v48 = vpop.f32.mrb[76].mxu0 }
 0x849   : > { %v10282_v27 = vpop.f32.mrb[77].mxu0  ;;  %v13119_v35 = vmul.f32 0.5, %v2843_v48 }
 0x84a   : > { %v2846_v24 = vpop.f32.mrb[78].mxu0 }
 0x84b   : > { %v10283_v54 = vpop.f32.mrb[79].mxu0  ;;  %v2953_v26 = vsel %vm948_vm3, %v13119_v35, -inf  ;;  %v13134_v38 = vmul.f32 0.5, %v2846_v24 }
 0x84c   : > { %2960 = vmax.xlane.f32.xlu0 %v2959_v0  ;;  %v13132_v54 = vmul.f32 0.5, %v2897_v34 }
 0x84d   : > { %v2956_v5 = vsel %vm948_vm3, %v13134_v38, -inf }
 0x84e   : > { %v2962_v7 = vsel %vm948_vm3, %v13132_v54, -inf }
 0x850   : > { %2954 = vmax.xlane.f32.xlu0 %v2953_v26 }
 0x857   : > { %3148 = vrot.lane.b32.xlu1 %v12349_v12, %s12012_s18 }
 0x85b   : > { %3195 = vrot.lane.b32.xlu1 %v12357_v22, %s12012_s18 }
 0x85f   : > { %3242 = vrot.lane.b32.xlu1 %v12355_v20, %s12012_s18 }
 0x863   : > { %3336 = vrot.lane.b32.xlu1 %v12361_v28, %s12012_s18 }
 0x866   : > { %3101 = vrot.lane.b32.xlu0 %v12351_v14, %s12012_s18 }
 0x86a   : > { %3289 = vrot.lane.b32.xlu0 %v12363_v30, %s12012_s18 }
 0x86e   : > { %3383 = vrot.lane.b32.xlu0 %v12369_v40, %s12012_s18 }
 0x887   : > { %2963 = vmax.xlane.f32.xlu1 %v2962_v7 }
 0x88b   : > { %2957 = vmax.xlane.f32.xlu1 %v2956_v5 }
 0x89c   : > { %3430 = vrot.lane.b32.xlu1 %v12367_v36, %s12012_s18  ;;  %s12025_s18 = smov 68  }
 0x8bd   : > { %v2925_v57 = vpop.xlane.xlu0 %2924 }
 0x8be   : > { %v2967_v48 = vsub.f32 %v13069_v46, %v2925_v57 }
 0x8c0   : > { %v2985_v27 = vmul.f32 1.442695, %v2967_v48 }
 0x8c1   : > { %v2919_v0 = vpop.xlane.xlu0 %2918 }
 0x8c2   : > { %11358 = vpow2.f32 %v2985_v27  ;;  %v2965_v34 = vsub.f32 %v13073_v61, %v2919_v0 }
 0x8c3   : > { %v2922_v24 = vpop.xlane.xlu1 %2921 }
 0x8c4   : > { %v2981_v26 = vmul.f32 1.442695, %v2965_v34  ;;  %v2966_v19 = vsub.f32 %v13077_v8, %v2922_v24 }
 0x8c5   : > { %v2928_v6 = vpop.xlane.xlu0 %2927 }
 0x8c6   : > { %11360 = vpow2.f32 %v2981_v26  ;;  %v2968_v7 = vsub.f32 %v13075_v15, %v2928_v6  ;;  %v2983_v5 = vmul.f32 1.442695, %v2966_v19 }
 0x8c7   : > { %v2940_v51 = vpop.xlane.xlu1 %2939 }
 0x8c8   : > { %v2987_v16 = vmul.f32 1.442695, %v2968_v7  ;;  %v2972_v49 = vsub.f32 %v13085_v23, %v2940_v51 }
 0x8c9   : > { %v2937_v62 = vpop.xlane.xlu0 %2936 }
 0x8ca   : > { %11362 = vpow2.f32 %v2987_v16  ;;  %v2971_v46 = vsub.f32 %v13083_v9, %v2937_v62  ;;  %v2995_v61 = vmul.f32 1.442695, %v2972_v49 }
 0x8cb   : > { %v2934_v57 = vpop.xlane.xlu1 %2933  ;;  %11364 = vpow2.f32 %v2983_v5 }
 0x8cc   : > { %v13147_v48 = vpop.eup %11358  ;;  %v2993_v27 = vmul.f32 1.442695, %v2971_v46  ;;  %v2970_v8 = vsub.f32 %v13093_v10, %v2934_v57 }
 0x8cd   : > { %v2931_v0 = vpop.xlane.xlu0 %2930  ;;  %v3019_v6 = vsel %vm948_vm3, %v13147_v48, 0.0 }
 0x8ce   : > { %11366 = vpow2.f32 %v2993_v27  ;;  %v2969_v19 = vsub.f32 %v13091_v3, %v2931_v0  ;;  %3020 = vadd.xlane.f32.xlu0 %v3019_v6  ;;  %v2991_v15 = vmul.f32 1.442695, %v2970_v8 }
 0x8cf   : > { %v2952_v51 = vpop.xlane.xlu1 %2951  ;;  %11368 = vpow2.f32 %v2995_v61 }
 0x8d0   : > { %v13153_v16 = vpop.eup %11360  ;;  %v2989_v62 = vmul.f32 1.442695, %v2969_v19  ;;  %v2976_v9 = vsub.f32 %v13101_v31, %v2952_v51 }
 0x8d1   : > { %v2949_v49 = vpop.xlane.xlu0 %2948  ;;  %v3013_v10 = vsel %vm948_vm3, %v13153_v16, 0.0 }
 0x8d2   : > { %11370 = vpow2.f32 %v2989_v62  ;;  %v2975_v23 = vsub.f32 %v13099_v45, %v2949_v49  ;;  %3014 = vadd.xlane.f32.xlu0 %v3013_v10  ;;  %v3003_v26 = vmul.f32 1.442695, %v2976_v9 }
 0x8d3   : > { %v2946_v34 = vpop.xlane.xlu1 %2945  ;;  %11372 = vpow2.f32 %v2991_v15 }
 0x8d4   : > { %v13159_v24 = vpop.eup %11362  ;;  %v3001_v3 = vmul.f32 1.442695, %v2975_v23  ;;  %v2974_v7 = vsub.f32 %v13109_v25, %v2946_v34 }
 0x8d5   : > { %v2943_v5 = vpop.xlane.xlu0 %2942  ;;  %v3022_v31 = vsel %vm948_vm3, %v13159_v24, 0.0  ;;  %v13164_v46 = vpop.eup %11364 }
 0x8d6   : > { %11374 = vpow2.f32 %v3001_v3  ;;  %v2973_v57 = vsub.f32 %v13107_v11, %v2943_v5  ;;  %3023 = vadd.xlane.f32.xlu1 %v3022_v31  ;;  %v2999_v8 = vmul.f32 1.442695, %v2974_v7  ;;  %v3016_v6 = vsel %vm948_vm3, %v13164_v46, 0.0 }
 0x8d7   : > { %v3149_v45 = vpop.permute.xlu1 %3148  ;;  %11376 = vpow2.f32 %v3003_v26 }
 0x8d8   : > { %v13167_v61 = vpop.eup %11366  ;;  %v2997_v27 = vmul.f32 1.442695, %v2973_v57  ;;  %10297 = vmatpush3.bf16.msra.mxu1 %v3149_v45 }
 0x8d9   : > { %v2961_v0 = vpop.xlane.xlu0 %2960  ;;  %v3031_v25 = vsel %vm948_vm3, %v13167_v61, 0.0  ;;  %10308 = vmatprep.subr.bf16.mxu1 %v15912_v59  ;;  %v13174_v19 = vpop.eup %11368 }
 0x8da   : > { %11378 = vpow2.f32 %v2997_v27  ;;  %v2979_v11 = vsub.f32 %v13115_v17, %v2961_v0  ;;  %3032 = vadd.xlane.f32.xlu0 %v3031_v25  ;;  %3017 = vadd.xlane.f32.xlu1 %v3016_v6  ;;  %v3034_v49 = vsel %vm948_vm3, %v13174_v19, 0.0 }
 0x8db   : > { %11380 = vpow2.f32 %v2999_v8 }
 0x8dc   : > { %v13177_v51 = vpop.eup %11370  ;;  %v3009_v62 = vmul.f32 1.442695, %v2979_v11  ;;  %v13215_v11 = vpop.permute.xlu1 %3195 }
 0x8dd   : > { %v2955_v15 = vpop.xlane.xlu0 %2954  ;;  %v3025_v9 = vsel %vm948_vm3, %v13177_v51, 0.0  ;;  %v13184_v23 = vpop.eup %11372 }
 0x8de   : > { %11382 = vpow2.f32 %v3009_v62  ;;  %v2977_v10 = vsub.f32 %v13119_v35, %v2955_v15  ;;  %3026 = vadd.xlane.f32.xlu0 %v3025_v9  ;;  %3035 = vadd.xlane.f32.xlu1 %v3034_v49  ;;  %v3028_v7 = vsel %vm948_vm3, %v13184_v23, 0.0 }
 0x8e0   : > { %v13186_v17 = vpop.eup %11374  ;;  %v3005_v34 = vmul.f32 1.442695, %v2977_v10  ;;  %v3243_v62 = vpop.permute.xlu1 %3242 }
 0x8e1   : > { %v3102_v3 = vpop.permute.xlu0 %3101  ;;  %v3043_v26 = vsel %vm948_vm3, %v13186_v17, 0.0  ;;  %v13192_v5 = vpop.eup %11376 }
 0x8e2   : > { %11384 = vpow2.f32 %v3005_v34  ;;  %3044 = vadd.xlane.f32.xlu0 %v3043_v26  ;;  %10291 = vmatpush3.bf16.msra.mxu0 %v3102_v3  ;;  %v3046_v57 = vsel %vm948_vm3, %v13192_v5, 0.0 }
 0x8e3   : > { %3029 = vadd.xlane.f32.xlu1 %v3028_v7  ;;  %10302 = vmatprep.subr.bf16.mxu0 %v15912_v59 }
 0x8e4   : > { %v13195_v35 = vpop.eup %11378  ;;  %v13223_v15 = vpop.permute.xlu1 %3336 }
 0x8e5   : > { %v3037_v31 = vsel %vm948_vm3, %v13195_v35, 0.0  ;;  %v13201_v45 = vpop.eup %11380 }
 0x8e6   : > { %3038 = vadd.xlane.f32.xlu0 %v3037_v31  ;;  %v3040_v0 = vsel %vm948_vm3, %v13201_v45, 0.0 }
 0x8e7   : > { %3047 = vadd.xlane.f32.xlu1 %v3046_v57 }
 0x8e8   : > { %v13203_v27 = vpop.eup %11382 }
 0x8e9   : > { %v3055_v8 = vsel %vm948_vm3, %v13203_v27, 0.0 }
 0x8ea   : > { %3056 = vadd.xlane.f32.xlu0 %v3055_v8 }
 0x8eb   : > { %3041 = vadd.xlane.f32.xlu1 %v3040_v0 }
 0x8ec   : > { %v13209_v25 = vpop.eup %11384 }
 0x8ed   : > { %v3049_v6 = vsel %vm948_vm3, %v13209_v25, 0.0 }
 0x8ee   : > { %3050 = vadd.xlane.f32.xlu0 %v3049_v6 }
 0x8fc   : > { %3530 = vrot.lane.b32.xlu1 %v12349_v12, %s12013_s30 }
 0x904   : > { %3479 = vrot.lane.b32.xlu0 %v12351_v14, %s12013_s30 }
 0x908   : > { %3477 = vrot.lane.b32.xlu0 %v12351_v14, %s12014_s19 }
 0x90c   : > { %3528 = vrot.lane.b32.xlu0 %v12349_v12, %s12014_s19 }
 0x910   : > { %3579 = vrot.lane.b32.xlu0 %v12357_v22, %s12014_s19 }
 0x914   : > { %v2964_v9 = vpop.xlane.xlu1 %2963  ;;  %3630 = vrot.lane.b32.xlu0 %v12355_v20, %s12014_s19 }
 0x915   : > { %v2980_v49 = vsub.f32 %v13132_v54, %v2964_v9 }
 0x917   : > { %v3011_v10 = vmul.f32 1.442695, %v2980_v49 }
 0x918   : > { %3681 = vrot.lane.b32.xlu0 %v12363_v30, %s12014_s19  ;;  %v2958_v34 = vpop.xlane.xlu1 %2957 }
 0x919   : > { %11386 = vpow2.f32 %v3011_v10  ;;  %v2978_v3 = vsub.f32 %v13134_v38, %v2958_v34  ;;  %v13259_v38 = vpop.permute.xlu0 %3289 }
 0x91b   : > { %v3007_v26 = vmul.f32 1.442695, %v2978_v3 }
 0x91c   : > { %3732 = vrot.lane.b32.xlu0 %v12361_v28, %s12014_s19  ;;  %v13263_v6 = vpop.permute.xlu1 %3430 }
 0x91d   : > { %11388 = vpow2.f32 %v3007_v26  ;;  %v13261_v8 = vpop.permute.xlu0 %3383 }
 0x920   : > { %3783 = vrot.lane.b32.xlu0 %v12369_v40, %s12014_s19 }
 0x923   : > { %v13237_v7 = vpop.eup %11386 }
 0x924   : > { %v3058_v54 = vsel %vm948_vm3, %v13237_v7, 0.0 }
 0x925   : > { %3059 = vadd.xlane.f32.xlu1 %v3058_v54 }
 0x927   : > { %v13241_v31 = vpop.eup %11388 }
 0x928   : > { %v3052_v57 = vsel %vm948_vm3, %v13241_v31, 0.0 }
 0x929   : > { %3053 = vadd.xlane.f32.xlu1 %v3052_v57 }
 0x93a   : > { %3581 = vrot.lane.b32.xlu1 %v12357_v22, %s12013_s30 }
 0x93e   : > { %3632 = vrot.lane.b32.xlu1 %v12355_v20, %s12013_s30 }
 0x942   : > { %3683 = vrot.lane.b32.xlu1 %v12363_v30, %s12013_s30 }
 0x946   : > { %3734 = vrot.lane.b32.xlu1 %v12361_v28, %s12013_s30 }
 0x94a   : > { %3785 = vrot.lane.b32.xlu1 %v12369_v40, %s12013_s30 }
 0x94e   : > { %3836 = vrot.lane.b32.xlu1 %v12367_v36, %s12013_s30  ;;  %s12026_s30 = smov 100  }
 0x952   : > { %3834 = vrot.lane.b32.xlu1 %v12367_v36, %s12014_s19  ;;  %s12027_s19 = smov 36  }
 0x95b   : > { %v3021_v0 = vpop.xlane.xlu0 %3020 }
 0x95c   : > { %11390 = vrcp.f32 %v3021_v0 }
 0x95f   : > { %v3015_v9 = vpop.xlane.xlu0 %3014 }
 0x963   : > { %v3024_v49 = vpop.xlane.xlu1 %3023 }
 0x964   : > { %11392 = vrcp.f32 %v3024_v49 }
 0x965   : > { %11394 = vrcp.f32 %v3015_v9 }
 0x966   : > { %v11391_v54 = vpop.eup %11390 }
 0x967   : > { %v3033_v10 = vpop.xlane.xlu0 %3032  ;;  %v3018_v34 = vpop.xlane.xlu1 %3017  ;;  %v3079_v42 = vmul.f32 %v11391_v54, %v13147_v48 }
 0x968   : > { %11396 = vrcp.f32 %v3018_v34 }
 0x969   : > { %11398 = vrcp.f32 %v3033_v10 }
 0x96b   : > { %v3027_v3 = vpop.xlane.xlu0 %3026  ;;  %v3036_v26 = vpop.xlane.xlu1 %3035 }
 0x96c   : > { %11400 = vrcp.f32 %v3036_v26 }
 0x96d   : > { %11402 = vrcp.f32 %v3027_v3 }
 0x96e   : > { %v11393_v57 = vpop.eup %11392 }
 0x96f   : > { %v3080_v55 = vmul.f32 %v11393_v57, %v13159_v24  ;;  %v3045_v41 = vpop.xlane.xlu0 %3044  ;;  %v11395_v50 = vpop.eup %11394 }
 0x970   : > { %v3030_v0 = vpop.xlane.xlu1 %3029  ;;  %v3077_v10 = vmul.f32 %v11395_v50, %v13153_v16 }
 0x971   : > { %11404 = vrcp.f32 %v3030_v0  ;;  %v3094_v49 = vpack.c.bf16 %v3080_v55, %v3079_v42 }
 0x972   : > { %v11397_v9 = vpop.eup %11396  ;;  %11406 = vrcp.f32 %v3045_v41 }
 0x973   : > { %10299 = vmatmul.mubr.msk.bf16.vlgmr.msra.gmra.mrb[96].mxu1 %vm948_vm3, %v3094_v49  ;;  %v3078_v34 = vmul.f32 %v11397_v9, %v13164_v46  ;;  %v3039_v26 = vpop.xlane.xlu0 %3038  ;;  %v11399_v48 = vpop.eup %11398 }
 0x974   : > { %10309 = vmatpush3.bf16.msra.mxu1 %v3243_v62  ;;  %v3048_v63 = vpop.xlane.xlu1 %3047  ;;  %10310 = vmatprep.mubr.msk.bf16.mxu1 %vm12004_vm1, %v15912_v59  ;;  %v3083_v55 = vmul.f32 %v11399_v48, %v13167_v61 }
 0x975   : > { %11408 = vrcp.f32 %v3048_v63  ;;  %10320 = vmatprep.subr.bf16.mxu1 %v15912_v59  ;;  %v3093_v24 = vpack.c.bf16 %v3078_v34, %v3077_v10 }
 0x976   : > { %v11401_v42 = vpop.eup %11400  ;;  %11410 = vrcp.f32 %v3039_v26 }
 0x977   : > { %v3084_v41 = vmul.f32 %v11401_v42, %v13174_v19  ;;  %10293 = vmatmul.mubr.msk.bf16.vlgmr.msra.gmra.mrb[80].mxu0 %vm948_vm3, %v3093_v24  ;;  %v11403_v16 = vpop.eup %11402 }
 0x978   : > { %v3042_v50 = vpop.xlane.xlu1 %3041  ;;  %10303 = vmatpush3.bf16.msra.mxu0 %v13215_v11  ;;  %10304 = vmatprep.mubr.msk.bf16.mxu0 %vm12004_vm1, %v15912_v59  ;;  %v3081_v62 = vmul.f32 %v11403_v16, %v13177_v51 }
 0x979   : > { %11412 = vrcp.f32 %v3042_v50  ;;  %v3096_v63 = vpack.c.bf16 %v3084_v41, %v3083_v55  ;;  %10314 = vmatprep.subr.bf16.mxu0 %v15912_v59 }
 0x97b   : > { %v11405_v46 = vpop.eup %11404  ;;  %10311 = vmatmul.mubr.msk.bf16.vlgmr.msra.gmra.mrb[100].mxu1 %vm948_vm3, %v3096_v63 }
 0x97c   : > { %v3082_v61 = vmul.f32 %v11405_v46, %v13184_v23  ;;  %v11407_v19 = vpop.eup %11406  ;;  %10321 = vmatpush3.bf16.msra.mxu1 %v13223_v15  ;;  %10322 = vmatprep.mubr.msk.bf16.mxu1 %vm12004_vm1, %v15912_v59 }
 0x97d   : > { %10332 = vmatprep.subr.bf16.mxu1 %v15912_v59  ;;  %v3087_v54 = vmul.f32 %v11407_v19, %v13186_v17 }
 0x97e   : > { %v3095_v11 = vpack.c.bf16 %v3082_v61, %v3081_v62 }
 0x97f   : > { %v11409_v3 = vpop.eup %11408 }
 0x980   : > { %v3088_v57 = vmul.f32 %v11409_v3, %v13192_v5  ;;  %10305 = vmatmul.mubr.msk.bf16.vlgmr.msra.gmra.mrb[84].mxu0 %vm948_vm3, %v3095_v11  ;;  %v11411_v51 = vpop.eup %11410  ;;  %v3057_v5 = vpop.xlane.xlu0 %3056 }
 0x981   : > { %10315 = vmatpush3.bf16.msra.mxu0 %v13259_v38  ;;  %10316 = vmatprep.mubr.msk.bf16.mxu0 %vm12004_vm1, %v15912_v59  ;;  %v3085_v0 = vmul.f32 %v11411_v51, %v13195_v35  ;;  %v3531_v35 = vpop.permute.xlu1 %3530  ;;  %11414 = vrcp.f32 %v3057_v5 }
 0x982   : > { %v3098_v23 = vpack.c.bf16 %v3088_v57, %v3087_v54  ;;  %10326 = vmatprep.subr.bf16.mxu0 %v15912_v59  ;;  %v3536_v46 = vsel %vm534_vm2, %v3531_v35, 0 }
 0x983   : > { %v11413_v15 = vpop.eup %11412 }
 0x984   : > { %v3086_v49 = vmul.f32 %v11413_v15, %v13201_v45  ;;  %10323 = vmatmul.mubr.msk.bf16.vlgmr.msra.gmra.mrb[104].mxu1 %vm948_vm3, %v3098_v23  ;;  %v3051_v45 = vpop.xlane.xlu0 %3050 }
 0x985   : > { %10333 = vmatpush3.bf16.msra.mxu1 %v13263_v6  ;;  %10334 = vmatprep.mubr.msk.bf16.mxu1 %vm12004_vm1, %v15912_v59 }
 0x986   : > { %v3097_v17 = vpack.c.bf16 %v3086_v49, %v3085_v0  ;;  %10344 = vmatprep.subr.bf16.mxu1 %v15912_v59 }
 0x988   : > { %10317 = vmatmul.mubr.msk.bf16.vlgmr.msra.gmra.mrb[88].mxu0 %vm948_vm3, %v3097_v17  ;;  %v3480_v6 = vpop.permute.xlu0 %3479 }
 0x989   : > { %10327 = vmatpush3.bf16.msra.mxu0 %v13261_v8  ;;  %10328 = vmatprep.mubr.msk.bf16.mxu0 %vm12004_vm1, %v15912_v59  ;;  %v3485_v61 = vsel %vm534_vm2, %v3480_v6, 0 }
 0x98a   : > { %10338 = vmatprep.subr.bf16.mxu0 %v15912_v59 }
 0x98b   : > { %v11415_v34 = vpop.eup %11414 }
 0x98c   : > { %v3478_v26 = vpop.permute.xlu0 %3477  ;;  %v3091_v8 = vmul.f32 %v11415_v34, %v13203_v27 }
 0x990   : > { %v3529_v16 = vpop.permute.xlu0 %3528 }
 0x994   : > { %v3580_v19 = vpop.permute.xlu0 %3579 }
 0x998   : > { %v3631_v11 = vpop.permute.xlu0 %3630 }
 0x99c   : > { %v3682_v51 = vpop.permute.xlu0 %3681 }
 0x9a0   : > { %v3733_v0 = vpop.permute.xlu0 %3732 }
 0x9a4   : > { %v3784_v35 = vpop.permute.xlu0 %3783 }
 0x9b2   : > { %v3060_v38 = vpop.xlane.xlu1 %3059 }
 0x9b3   : > { %11416 = vrcp.f32 %v3060_v38 }
 0x9b4   : > { %11418 = vrcp.f32 %v3051_v45 }
 0x9b6   : > { %v3054_v9 = vpop.xlane.xlu1 %3053 }
 0x9b7   : > { %11420 = vrcp.f32 %v3054_v9 }
 0x9ba   : > { %v3582_v10 = vpop.permute.xlu1 %3581 }
 0x9bb   : > { %v3587_v3 = vsel %vm534_vm2, %v3582_v10, 0 }
 0x9bd   : > { %v11417_v48 = vpop.eup %11416 }
 0x9be   : > { %v3092_v24 = vmul.f32 %v11417_v48, %v13237_v7  ;;  %v11419_v42 = vpop.eup %11418  ;;  %v3633_v55 = vpop.permute.xlu1 %3632 }
 0x9bf   : > { %v3089_v63 = vmul.f32 %v11419_v42, %v13209_v25  ;;  %v3638_v25 = vsel %vm534_vm2, %v3633_v55, 0 }
 0x9c0   : > { %v3100_v41 = vpack.c.bf16 %v3092_v24, %v3091_v8 }
 0x9c1   : > { %v11421_v50 = vpop.eup %11420 }
 0x9c2   : > { %v3090_v62 = vmul.f32 %v11421_v50, %v13241_v31  ;;  %10335 = vmatmul.mubr.msk.bf16.vlgmr.msra.gmra.mrb[108].mxu1 %vm948_vm3, %v3100_v41  ;;  %v3684_v7 = vpop.permute.xlu1 %3683 }
 0x9c3   : > { %10345 = vmatpush3.bf16.xpose.msra.mxu1 %v3536_v46  ;;  %10346 = vmatprep.mubr.msk.bf16.mxu1 %vm12004_vm1, %v15912_v59  ;;  %v3689_v23 = vsel %vm534_vm2, %v3684_v7, 0 }
 0x9c4   : > { %v3099_v27 = vpack.c.bf16 %v3090_v62, %v3089_v63  ;;  %10356 = vmatprep.subr.bf16.mxu1 %v15912_v59 }
 0x9c6   : > { %10329 = vmatmul.mubr.msk.bf16.vlgmr.msra.gmra.mrb[92].mxu0 %vm948_vm3, %v3099_v27  ;;  %v3735_v31 = vpop.permute.xlu1 %3734 }
 0x9c7   : > { %10339 = vmatpush3.bf16.xpose.msra.mxu0 %v3485_v61  ;;  %10340 = vmatprep.mubr.msk.bf16.mxu0 %vm12004_vm1, %v15912_v59  ;;  %v3740_v57 = vsel %vm534_vm2, %v3735_v31, 0 }
 0x9c8   : > { %10350 = vmatprep.subr.bf16.mxu0 %v15912_v59 }
 0x9ca   : > { %10347 = vmatmul.mubr.msk.bf16.vlgmr.msra.gmra.mrb[112].mxu1 %vm534_vm2, %v3529_v16  ;;  %v3786_v54 = vpop.permute.xlu1 %3785 }
 0x9cb   : > { %10357 = vmatpush3.bf16.xpose.msra.mxu1 %v3638_v25  ;;  %10358 = vmatprep.mubr.msk.bf16.mxu1 %vm12004_vm1, %v15912_v59  ;;  %v3791_v17 = vsel %vm534_vm2, %v3786_v54, 0 }
 0x9cc   : > { %10368 = vmatprep.subr.bf16.mxu1 %v15912_v59 }
 0x9ce   : > { %10341 = vmatmul.mubr.msk.bf16.vlgmr.msra.gmra.mrb[96].mxu0 %vm534_vm2, %v3478_v26  ;;  %v3837_v15 = vpop.permute.xlu1 %3836 }
 0x9cf   : > { %10351 = vmatpush3.bf16.xpose.msra.mxu0 %v3587_v3  ;;  %10352 = vmatprep.mubr.msk.bf16.mxu0 %vm12004_vm1, %v15912_v59  ;;  %v3842_v49 = vsel %vm534_vm2, %v3837_v15, 0 }
 0x9d0   : > { %10362 = vmatprep.subr.bf16.mxu0 %v15912_v59 }
 0x9d2   : > { %10359 = vmatmul.mubr.msk.bf16.vlgmr.msra.gmra.mrb[116].mxu1 %vm534_vm2, %v3631_v11  ;;  %v3835_v5 = vpop.permute.xlu1 %3834 }
 0x9d3   : > { %10369 = vmatpush3.bf16.xpose.msra.mxu1 %v3740_v57  ;;  %10370 = vmatprep.mubr.msk.bf16.mxu1 %vm12004_vm1, %v15912_v59 }
 0x9d4   : > { %10380 = vmatprep.subr.bf16.mxu1 %v15912_v59 }
 0x9d6   : > { %10353 = vmatmul.mubr.msk.bf16.vlgmr.msra.gmra.mrb[100].mxu0 %vm534_vm2, %v3580_v19 }
 0x9d7   : > { %10363 = vmatpush3.bf16.xpose.msra.mxu0 %v3689_v23  ;;  %10364 = vmatprep.mubr.msk.bf16.mxu0 %vm12004_vm1, %v15912_v59 }
 0x9d8   : > { %10374 = vmatprep.subr.bf16.mxu0 %v15912_v59 }
 0x9da   : > { %10371 = vmatmul.mubr.msk.bf16.vlgmr.msra.gmra.mrb[120].mxu1 %vm534_vm2, %v3733_v0 }
 0x9db   : > { %10381 = vmatpush3.bf16.xpose.msra.mxu1 %v3842_v49  ;;  %10382 = vmatprep.mubr.msk.bf16.mxu1 %vm12004_vm1, %v15912_v59 }
 0x9dc   : > { %10392 = vmatprep.subr.bf16.mxu1 %v15912_v59 }
 0x9de   : > { %10365 = vmatmul.mubr.msk.bf16.vlgmr.msra.gmra.mrb[104].mxu0 %vm534_vm2, %v3682_v51 }
 0x9df   : > { %10375 = vmatpush3.bf16.xpose.msra.mxu0 %v3791_v17  ;;  %10376 = vmatprep.mubr.msk.bf16.mxu0 %vm12004_vm1, %v15912_v59 }
 0x9e0   : > { %10386 = vmatprep.subr.bf16.mxu0 %v15912_v59 }
 0x9e2   : > { %10383 = vmatmul.mubr.msk.bf16.vlgmr.msra.gmra.mrb[124].mxu1 %vm534_vm2, %v3835_v5 }
 0x9e3   : > { %10394 = vmatprep.mubr.msk.bf16.mxu1 %vm12004_vm1, %v15912_v59 }
 0x9e6   : > { %10377 = vmatmul.mubr.msk.bf16.vlgmr.msra.gmra.mrb[108].mxu0 %vm534_vm2, %v3784_v35 }
 0x9e7   : > { %10388 = vmatprep.mubr.msk.bf16.mxu0 %vm12004_vm1, %v15912_v59 }
 0xa46   : > { %v13356_v45 = vpop.f32.mrb[96].mxu1 }
 0xa47   : > { %15925 = vst [vmem:[#allocation58_spill] sm:$0xff] %v13356_v45  ;;  %v10300_v38 = vpop.f32.mrb[97].mxu1 }
 0xa48   : > { %v13358_v6 = vpop.f32.mrb[98].mxu1 }
 0xa49   : > { %15926 = vst [vmem:[#allocation59_spill] sm:$0xff] %v13358_v6  ;;  %v10301_v10 = vpop.f32.mrb[99].mxu1 }
 0xa4a   : > { %v13362_v34 = vpop.f32.mrb[80].mxu0 }
 0xa4b   : > { %v10294_v26 = vpop.f32.mrb[81].mxu0 }
 0xa4c   : > { %v13364_v48 = vpop.f32.mrb[82].mxu0 }
 0xa4d   : > { %v10295_v24 = vpop.f32.mrb[83].mxu0 }
 0xa4e   : > { %v13368_v42 = vpop.f32.mrb[100].mxu1 }
 0xa4f   : > { %15927 = vst [vmem:[#allocation60_spill] sm:$0xff] %v13368_v42  ;;  %v10312_v55 = vpop.f32.mrb[101].mxu1 }
 0xa50   : > { %v13370_v41 = vpop.f32.mrb[102].mxu1 }
 0xa51   : > { %15928 = vst [vmem:[#allocation61_spill] sm:$0xff] %v13370_v41  ;;  %v10313_v16 = vpop.f32.mrb[103].mxu1 }
 0xa53   : > { %v13374_v63 = vpop.f32.mrb[84].mxu0 }
 0xa54   : > { %v10306_v46 = vpop.f32.mrb[85].mxu0 }
 0xa55   : > { %v13376_v62 = vpop.f32.mrb[86].mxu0 }
 0xa56   : > { %v10307_v7 = vpop.f32.mrb[87].mxu0 }
 0xa57   : > { %v13380_v61 = vpop.f32.mrb[104].mxu1 }
 0xa58   : > { %15929 = vst [vmem:[#allocation62_spill] sm:$0xff] %v13380_v61  ;;  %v10324_v19 = vpop.f32.mrb[105].mxu1 }
 0xa59   : > { %v13382_v25 = vpop.f32.mrb[106].mxu1 }
 0xa5a   : > { %15930 = vst [vmem:[#allocation63_spill] sm:$0xff] %v13382_v25  ;;  %v10325_v11 = vpop.f32.mrb[107].mxu1 }
 0xa5b   : > { %v13386_v3 = vpop.f32.mrb[88].mxu0 }
 0xa5c   : > { %15931 = vst [vmem:[#allocation64_spill] sm:$0xff] %v13386_v3  ;;  %v10318_v54 = vpop.f32.mrb[89].mxu0 }
 0xa5d   : > { %v13388_v57 = vpop.f32.mrb[90].mxu0 }
 0xa5e   : > { %15932 = vst [vmem:[#allocation65_spill] sm:$0xff] %v13388_v57  ;;  %v10319_v23 = vpop.f32.mrb[91].mxu0 }
 0xa95   : > { %v13392_v15 = vpop.f32.mrb[108].mxu1 }
 0xa96   : > { %15933 = vst [vmem:[#allocation66_spill] sm:$0xff] %v13392_v15  ;;  %v10336_v0 = vpop.f32.mrb[109].mxu1 }
 0xa97   : > { %v13394_v49 = vpop.f32.mrb[110].mxu1 }
 0xa98   : > { %15934 = vst [vmem:[#allocation67_spill] sm:$0xff] %v13394_v49  ;;  %v10337_v5 = vpop.f32.mrb[111].mxu1 }
 0xa99   : > { %v13398_v35 = vpop.f32.mrb[92].mxu0 }
 0xa9a   : > { %15935 = vst [vmem:[#allocation68_spill] sm:$0xff] %v13398_v35  ;;  %v10330_v38 = vpop.f32.mrb[93].mxu0 }
 0xa9b   : > { %v13400_v10 = vpop.f32.mrb[94].mxu0 }
 0xa9c   : > { %15936 = vst [vmem:[#allocation69_spill] sm:$0xff] %v13400_v10  ;;  %v10331_v24 = vpop.f32.mrb[95].mxu0 }
 0xa9d   : > { %v3572_v55 = vpop.f32.mrb[112].mxu1 }
 0xa9e   : > { %v13404_v16 = vmul.f32 0.5, %v3572_v55  ;;  %v10348_v46 = vpop.f32.mrb[113].mxu1 }
 0xa9f   : > { %v3575_v7 = vpop.f32.mrb[114].mxu1 }
 0xaa0   : > { %v10349_v19 = vpop.f32.mrb[115].mxu1  ;;  %v3907_v11 = vsel %vm948_vm3, %v13404_v16, -inf  ;;  %v13410_v38 = vmul.f32 0.5, %v3575_v7 }
 0xaa1   : > { %3908 = vmax.xlane.f32.xlu0 %v3907_v11  ;;  %v3521_v54 = vpop.f32.mrb[96].mxu0 }
 0xaa2   : > { %v13408_v23 = vmul.f32 0.5, %v3521_v54  ;;  %v10342_v0 = vpop.f32.mrb[97].mxu0 }
 0xaa3   : > { %v3524_v5 = vpop.f32.mrb[98].mxu0 }
 0xaa4   : > { %v13412_v17 = vmul.f32 0.5, %v3524_v5  ;;  %v10343_v24 = vpop.f32.mrb[99].mxu0  ;;  %v3901_v55 = vsel %vm948_vm3, %v13408_v23, -inf  ;;  %v3910_v5 = vsel %vm948_vm3, %v13410_v38, -inf }
 0xaa5   : > { %v3674_v46 = vpop.f32.mrb[116].mxu1  ;;  %3902 = vmax.xlane.f32.xlu0 %v3901_v55 }
 0xaa6   : > { %v10360_v19 = vpop.f32.mrb[117].mxu1  ;;  %v3904_v31 = vsel %vm948_vm3, %v13412_v17, -inf  ;;  %v13418_v54 = vmul.f32 0.5, %v3674_v46 }
 0xaa7   : > { %v3677_v11 = vpop.f32.mrb[118].mxu1  ;;  %3905 = vmax.xlane.f32.xlu1 %v3904_v31 }
 0xaa8   : > { %v13420_v0 = vmul.f32 0.5, %v3677_v11  ;;  %v10361_v7 = vpop.f32.mrb[119].mxu1  ;;  %v3919_v46 = vsel %vm948_vm3, %v13418_v54, -inf }
 0xaa9   : > { %3911 = vmax.xlane.f32.xlu0 %v3910_v5  ;;  %v3623_v24 = vpop.f32.mrb[100].mxu0 }
 0xaaa   : > { %v10354_v50 = vpop.f32.mrb[101].mxu0  ;;  %v3922_v55 = vsel %vm948_vm3, %v13420_v0, -inf  ;;  %v13426_v26 = vmul.f32 0.5, %v3623_v24 }
 0xaab   : > { %3923 = vmax.xlane.f32.xlu1 %v3922_v55  ;;  %v3626_v19 = vpop.f32.mrb[102].mxu0 }
 0xaac   : > { %v13428_v9 = vmul.f32 0.5, %v3626_v19  ;;  %v10355_v31 = vpop.f32.mrb[103].mxu0  ;;  %v3913_v19 = vsel %vm948_vm3, %v13426_v26, -inf }
 0xaad   : > { %v3776_v11 = vpop.f32.mrb[120].mxu1  ;;  %3920 = vmax.xlane.f32.xlu0 %v3919_v46 }
 0xaae   : > { %v10372_v7 = vpop.f32.mrb[121].mxu1  ;;  %v3916_v5 = vsel %vm948_vm3, %v13428_v9, -inf  ;;  %v13434_v51 = vmul.f32 0.5, %v3776_v11 }
 0xaaf   : > { %v3779_v50 = vpop.f32.mrb[122].mxu1  ;;  %3917 = vmax.xlane.f32.xlu1 %v3916_v5 }
 0xab0   : > { %v13436_v55 = vmul.f32 0.5, %v3779_v50  ;;  %v10373_v24 = vpop.f32.mrb[123].mxu1  ;;  %v3931_v5 = vsel %vm948_vm3, %v13434_v51, -inf }
 0xab1   : > { %3914 = vmax.xlane.f32.xlu0 %v3913_v19  ;;  %v3725_v31 = vpop.f32.mrb[104].mxu0 }
 0xab2   : > { %v10366_v27 = vpop.f32.mrb[105].mxu0  ;;  %v3934_v46 = vsel %vm948_vm3, %v13436_v55, -inf  ;;  %v13442_v8 = vmul.f32 0.5, %v3725_v31 }
 0xab3   : > { %3935 = vmax.xlane.f32.xlu1 %v3934_v46  ;;  %v3728_v7 = vpop.f32.mrb[106].mxu0 }
 0xab4   : > { %v13444_v56 = vmul.f32 0.5, %v3728_v7  ;;  %v10367_v11 = vpop.f32.mrb[107].mxu0  ;;  %v3925_v31 = vsel %vm948_vm3, %v13442_v8, -inf }
 0xab5   : > { %v3878_v50 = vpop.f32.mrb[124].mxu1  ;;  %3932 = vmax.xlane.f32.xlu0 %v3931_v5 }
 0xab6   : > { %v10384_v24 = vpop.f32.mrb[125].mxu1  ;;  %v3928_v19 = vsel %vm948_vm3, %v13444_v56, -inf  ;;  %v13450_v15 = vmul.f32 0.5, %v3878_v50 }
 0xab7   : > { %v3881_v27 = vpop.f32.mrb[126].mxu1  ;;  %3929 = vmax.xlane.f32.xlu1 %v3928_v19 }
 0xab8   : > { %v10385_v46 = vpop.f32.mrb[127].mxu1  ;;  %v3943_v5 = vsel %vm948_vm3, %v13450_v15, -inf }
 0xab9   : > { %3926 = vmax.xlane.f32.xlu0 %v3925_v31  ;;  %v3827_v7 = vpop.f32.mrb[108].mxu0 }
 0xaba   : > { %v10378_v11 = vpop.f32.mrb[109].mxu0  ;;  %v13454_v33 = vmul.f32 0.5, %v3827_v7 }
 0xabb   : > { %v3830_v49 = vpop.f32.mrb[110].mxu0 }
 0xabc   : > { %v10379_v47 = vpop.f32.mrb[111].mxu0  ;;  %v3937_v24 = vsel %vm948_vm3, %v13454_v33, -inf  ;;  %v13469_v50 = vmul.f32 0.5, %v3830_v49 }
 0xabd   : > { %3944 = vmax.xlane.f32.xlu0 %v3943_v5  ;;  %v13467_v47 = vmul.f32 0.5, %v3881_v27 }
 0xabe   : > { %v3940_v46 = vsel %vm948_vm3, %v13469_v50, -inf }
 0xabf   : > { %v3946_v19 = vsel %vm948_vm3, %v13467_v47, -inf }
 0xac1   : > { %3938 = vmax.xlane.f32.xlu0 %v3937_v24 }
 0xac8   : > { %4132 = vrot.lane.b32.xlu1 %v12349_v12, %s12015_s12 }
 0xacc   : > { %4179 = vrot.lane.b32.xlu1 %v12357_v22, %s12015_s12 }
 0xad0   : > { %4226 = vrot.lane.b32.xlu1 %v12355_v20, %s12015_s12 }
 0xad4   : > { %4320 = vrot.lane.b32.xlu1 %v12361_v28, %s12015_s12 }
 0xad7   : > { %4085 = vrot.lane.b32.xlu0 %v12351_v14, %s12015_s12 }
 0xadb   : > { %4273 = vrot.lane.b32.xlu0 %v12363_v30, %s12015_s12 }
 0xadf   : > { %4367 = vrot.lane.b32.xlu0 %v12369_v40, %s12015_s12 }
 0xaf8   : > { %3947 = vmax.xlane.f32.xlu1 %v3946_v19 }
 0xafc   : > { %3941 = vmax.xlane.f32.xlu1 %v3940_v46 }
 0xb0d   : > { %4414 = vrot.lane.b32.xlu1 %v12367_v36, %s12015_s12  ;;  %s12028_s12 = smov 4  }
 0xb2e   : > { %v3909_v31 = vpop.xlane.xlu0 %3908 }
 0xb2f   : > { %v3951_v7 = vsub.f32 %v13404_v16, %v3909_v31 }
 0xb31   : > { %v3969_v11 = vmul.f32 1.442695, %v3951_v7 }
 0xb32   : > { %v3903_v5 = vpop.xlane.xlu0 %3902 }
 0xb33   : > { %11422 = vpow2.f32 %v3969_v11  ;;  %v3949_v27 = vsub.f32 %v13408_v23, %v3903_v5 }
 0xb34   : > { %v3906_v49 = vpop.xlane.xlu1 %3905 }
 0xb35   : > { %v3965_v24 = vmul.f32 1.442695, %v3949_v27  ;;  %v3950_v53 = vsub.f32 %v13412_v17, %v3906_v49 }
 0xb36   : > { %v3912_v44 = vpop.xlane.xlu0 %3911 }
 0xb37   : > { %11424 = vpow2.f32 %v3965_v24  ;;  %v3952_v19 = vsub.f32 %v13410_v38, %v3912_v44  ;;  %v3967_v46 = vmul.f32 1.442695, %v3950_v53 }
 0xb38   : > { %v3924_v61 = vpop.xlane.xlu1 %3923 }
 0xb39   : > { %v3971_v25 = vmul.f32 1.442695, %v3952_v19  ;;  %v3956_v4 = vsub.f32 %v13420_v0, %v3924_v61 }
 0xb3a   : > { %v3921_v2 = vpop.xlane.xlu0 %3920 }
 0xb3b   : > { %11426 = vpow2.f32 %v3971_v25  ;;  %v3955_v16 = vsub.f32 %v13418_v54, %v3921_v2  ;;  %v3979_v23 = vmul.f32 1.442695, %v3956_v4 }
 0xb3c   : > { %v3918_v31 = vpop.xlane.xlu1 %3917  ;;  %11428 = vpow2.f32 %v3967_v46 }
 0xb3d   : > { %v13482_v7 = vpop.eup %11422  ;;  %v3977_v11 = vmul.f32 1.442695, %v3955_v16  ;;  %v3954_v17 = vsub.f32 %v13428_v9, %v3918_v31 }
 0xb3e   : > { %v3915_v5 = vpop.xlane.xlu0 %3914  ;;  %v4003_v44 = vsel %vm948_vm3, %v13482_v7, 0.0 }
 0xb3f   : > { %11430 = vpow2.f32 %v3977_v11  ;;  %v3953_v53 = vsub.f32 %v13426_v26, %v3915_v5  ;;  %4004 = vadd.xlane.f32.xlu0 %v4003_v44  ;;  %v3975_v38 = vmul.f32 1.442695, %v3954_v17 }
 0xb40   : > { %v3936_v61 = vpop.xlane.xlu1 %3935  ;;  %11432 = vpow2.f32 %v3979_v23 }
 0xb41   : > { %v13488_v25 = vpop.eup %11424  ;;  %v3973_v2 = vmul.f32 1.442695, %v3953_v53  ;;  %v3960_v54 = vsub.f32 %v13436_v55, %v3936_v61 }
 0xb42   : > { %v3933_v4 = vpop.xlane.xlu0 %3932  ;;  %v3997_v9 = vsel %vm948_vm3, %v13488_v25, 0.0 }
 0xb43   : > { %11434 = vpow2.f32 %v3973_v2  ;;  %v3959_v0 = vsub.f32 %v13434_v51, %v3933_v4  ;;  %3998 = vadd.xlane.f32.xlu0 %v3997_v9  ;;  %v3987_v24 = vmul.f32 1.442695, %v3960_v54 }
 0xb44   : > { %v3930_v27 = vpop.xlane.xlu1 %3929  ;;  %11436 = vpow2.f32 %v3975_v38 }
 0xb45   : > { %v13494_v49 = vpop.eup %11426  ;;  %v3985_v26 = vmul.f32 1.442695, %v3959_v0  ;;  %v3958_v19 = vsub.f32 %v13444_v56, %v3930_v27 }
 0xb46   : > { %v3927_v46 = vpop.xlane.xlu0 %3926  ;;  %v4006_v55 = vsel %vm948_vm3, %v13494_v49, 0.0  ;;  %v13499_v16 = vpop.eup %11428 }
 0xb47   : > { %11438 = vpow2.f32 %v3985_v26  ;;  %v3957_v31 = vsub.f32 %v13442_v8, %v3927_v46  ;;  %4007 = vadd.xlane.f32.xlu1 %v4006_v55  ;;  %v3983_v17 = vmul.f32 1.442695, %v3958_v19  ;;  %v4000_v44 = vsel %vm948_vm3, %v13499_v16, 0.0 }
 0xb48   : > { %v4133_v51 = vpop.permute.xlu1 %4132  ;;  %11440 = vpow2.f32 %v3987_v24 }
 0xb49   : > { %v13502_v23 = vpop.eup %11430  ;;  %v3981_v11 = vmul.f32 1.442695, %v3957_v31  ;;  %10393 = vmatpush3.bf16.msra.mxu1 %v4133_v51 }
 0xb4a   : > { %v3945_v5 = vpop.xlane.xlu0 %3944  ;;  %v4015_v56 = vsel %vm948_vm3, %v13502_v23, 0.0  ;;  %10404 = vmatprep.subr.bf16.mxu1 %v15912_v59  ;;  %v13509_v53 = vpop.eup %11432 }
 0xb4b   : > { %11442 = vpow2.f32 %v3981_v11  ;;  %v3963_v8 = vsub.f32 %v13450_v15, %v3945_v5  ;;  %4016 = vadd.xlane.f32.xlu0 %v4015_v56  ;;  %4001 = vadd.xlane.f32.xlu1 %v4000_v44  ;;  %v4018_v4 = vsel %vm948_vm3, %v13509_v53, 0.0 }
 0xb4c   : > { %11444 = vpow2.f32 %v3983_v17 }
 0xb4d   : > { %v13512_v61 = vpop.eup %11434  ;;  %v3993_v2 = vmul.f32 1.442695, %v3963_v8  ;;  %v13550_v8 = vpop.permute.xlu1 %4179 }
 0xb4e   : > { %v3939_v38 = vpop.xlane.xlu0 %3938  ;;  %v4009_v54 = vsel %vm948_vm3, %v13512_v61, 0.0  ;;  %v13519_v0 = vpop.eup %11436 }
 0xb4f   : > { %11446 = vpow2.f32 %v3993_v2  ;;  %v3961_v9 = vsub.f32 %v13454_v33, %v3939_v38  ;;  %4010 = vadd.xlane.f32.xlu0 %v4009_v54  ;;  %4019 = vadd.xlane.f32.xlu1 %v4018_v4  ;;  %v4012_v19 = vsel %vm948_vm3, %v13519_v0, 0.0 }
 0xb51   : > { %v13521_v15 = vpop.eup %11438  ;;  %v3989_v27 = vmul.f32 1.442695, %v3961_v9  ;;  %v4227_v2 = vpop.permute.xlu1 %4226 }
 0xb52   : > { %v4086_v26 = vpop.permute.xlu0 %4085  ;;  %v4027_v24 = vsel %vm948_vm3, %v13521_v15, 0.0  ;;  %v13527_v46 = vpop.eup %11440 }
 0xb53   : > { %11448 = vpow2.f32 %v3989_v27  ;;  %4028 = vadd.xlane.f32.xlu0 %v4027_v24  ;;  %10387 = vmatpush3.bf16.msra.mxu0 %v4086_v26  ;;  %v4030_v31 = vsel %vm948_vm3, %v13527_v46, 0.0 }
 0xb54   : > { %4013 = vadd.xlane.f32.xlu1 %v4012_v19  ;;  %10398 = vmatprep.subr.bf16.mxu0 %v15912_v59 }
 0xb55   : > { %v13530_v33 = vpop.eup %11442  ;;  %v13558_v38 = vpop.permute.xlu1 %4320 }
 0xb56   : > { %v4021_v55 = vsel %vm948_vm3, %v13530_v33, 0.0  ;;  %v13536_v51 = vpop.eup %11444 }
 0xb57   : > { %4022 = vadd.xlane.f32.xlu0 %v4021_v55  ;;  %v4024_v5 = vsel %vm948_vm3, %v13536_v51, 0.0 }
 0xb58   : > { %4031 = vadd.xlane.f32.xlu1 %v4030_v31 }
 0xb59   : > { %v13538_v11 = vpop.eup %11446 }
 0xb5a   : > { %v4039_v17 = vsel %vm948_vm3, %v13538_v11, 0.0 }
 0xb5b   : > { %4040 = vadd.xlane.f32.xlu0 %v4039_v17 }
 0xb5c   : > { %4025 = vadd.xlane.f32.xlu1 %v4024_v5 }
 0xb5d   : > { %v13544_v56 = vpop.eup %11448 }
 0xb5e   : > { %v4033_v44 = vsel %vm948_vm3, %v13544_v56, 0.0 }
 0xb5f   : > { %4034 = vadd.xlane.f32.xlu0 %v4033_v44 }
 0xb6d   : > { %4514 = vrot.lane.b32.xlu1 %v12349_v12, %s12016_s27 }
 0xb75   : > { %4463 = vrot.lane.b32.xlu0 %v12351_v14, %s12016_s27 }
 0xb79   : > { %4461 = vrot.lane.b32.xlu0 %v12351_v14, %s12017_s29 }
 0xb7d   : > { %4512 = vrot.lane.b32.xlu0 %v12349_v12, %s12017_s29 }
 0xb81   : > { %4563 = vrot.lane.b32.xlu0 %v12357_v22, %s12017_s29 }
 0xb85   : > { %v3948_v54 = vpop.xlane.xlu1 %3947  ;;  %4614 = vrot.lane.b32.xlu0 %v12355_v20, %s12017_s29 }
 0xb86   : > { %v3964_v4 = vsub.f32 %v13467_v47, %v3948_v54 }
 0xb88   : > { %v3995_v9 = vmul.f32 1.442695, %v3964_v4 }
 0xb89   : > { %4665 = vrot.lane.b32.xlu0 %v12363_v30, %s12017_s29  ;;  %v3942_v27 = vpop.xlane.xlu1 %3941 }
 0xb8a   : > { %11450 = vpow2.f32 %v3995_v9  ;;  %v3962_v26 = vsub.f32 %v13469_v50, %v3942_v27  ;;  %v13594_v50 = vpop.permute.xlu0 %4273 }
 0xb8c   : > { %v3991_v24 = vmul.f32 1.442695, %v3962_v26 }
 0xb8d   : > { %4716 = vrot.lane.b32.xlu0 %v12361_v28, %s12017_s29  ;;  %v13598_v44 = vpop.permute.xlu1 %4414 }
 0xb8e   : > { %11452 = vpow2.f32 %v3991_v24  ;;  %v13596_v17 = vpop.permute.xlu0 %4367 }
 0xb91   : > { %4767 = vrot.lane.b32.xlu0 %v12369_v40, %s12017_s29 }
 0xb94   : > { %v13572_v19 = vpop.eup %11450 }
 0xb95   : > { %v4042_v47 = vsel %vm948_vm3, %v13572_v19, 0.0 }
 0xb96   : > { %4043 = vadd.xlane.f32.xlu1 %v4042_v47 }
 0xb98   : > { %v13576_v55 = vpop.eup %11452 }
 0xb99   : > { %v4036_v31 = vsel %vm948_vm3, %v13576_v55, 0.0 }
 0xb9a   : > { %4037 = vadd.xlane.f32.xlu1 %v4036_v31 }
 0xbab   : > { %4565 = vrot.lane.b32.xlu1 %v12357_v22, %s12016_s27 }
 0xbaf   : > { %4616 = vrot.lane.b32.xlu1 %v12355_v20, %s12016_s27 }
 0xbb3   : > { %4667 = vrot.lane.b32.xlu1 %v12363_v30, %s12016_s27 }
 0xbb7   : > { %4718 = vrot.lane.b32.xlu1 %v12361_v28, %s12016_s27 }
 0xbbb   : > { %4769 = vrot.lane.b32.xlu1 %v12369_v40, %s12016_s27 }
 0xbbf   : > { %4820 = vrot.lane.b32.xlu1 %v12367_v36, %s12016_s27  ;;  %s12029_s27 = smov 8  }
 0xbc3   : > { %4818 = vrot.lane.b32.xlu1 %v12367_v36, %s12017_s29  ;;  %s12030_s29 = smov 12  }
 0xbcc   : > { %v4005_v5 = vpop.xlane.xlu0 %4004 }
 0xbcd   : > { %11454 = vrcp.f32 %v4005_v5 }
 0xbd0   : > { %v3999_v54 = vpop.xlane.xlu0 %3998 }
 0xbd4   : > { %v4008_v4 = vpop.xlane.xlu1 %4007 }
 0xbd5   : > { %11456 = vrcp.f32 %v4008_v4 }
 0xbd6   : > { %11458 = vrcp.f32 %v3999_v54 }
 0xbd7   : > { %v11455_v47 = vpop.eup %11454 }
 0xbd8   : > { %v4017_v9 = vpop.xlane.xlu0 %4016  ;;  %v4002_v27 = vpop.xlane.xlu1 %4001  ;;  %v4063_v42 = vmul.f32 %v11455_v47, %v13482_v7 }
 0xbd9   : > { %11460 = vrcp.f32 %v4002_v27 }
 0xbda   : > { %11462 = vrcp.f32 %v4017_v9 }
 0xbdc   : > { %v4011_v26 = vpop.xlane.xlu0 %4010  ;;  %v4020_v24 = vpop.xlane.xlu1 %4019 }
 0xbdd   : > { %11464 = vrcp.f32 %v4020_v24 }
 0xbde   : > { %11466 = vrcp.f32 %v4011_v26 }
 0xbdf   : > { %v11457_v31 = vpop.eup %11456 }
 0xbe0   : > { %v4064_v41 = vmul.f32 %v11457_v31, %v13494_v49  ;;  %v4029_v35 = vpop.xlane.xlu0 %4028  ;;  %v11459_v10 = vpop.eup %11458 }
 0xbe1   : > { %v4014_v5 = vpop.xlane.xlu1 %4013  ;;  %v4061_v9 = vmul.f32 %v11459_v10, %v13488_v25 }
 0xbe2   : > { %11468 = vrcp.f32 %v4014_v5  ;;  %v4078_v4 = vpack.c.bf16 %v4064_v41, %v4063_v42 }
 0xbe3   : > { %v11461_v54 = vpop.eup %11460  ;;  %11470 = vrcp.f32 %v4029_v35 }
 0xbe4   : > { %10395 = vmatmul.mubr.msk.bf16.vlgmr.msra.gmra.mrb[128].mxu1 %vm948_vm3, %v4078_v4  ;;  %v4062_v27 = vmul.f32 %v11461_v54, %v13499_v16  ;;  %v4023_v24 = vpop.xlane.xlu0 %4022  ;;  %v11463_v7 = vpop.eup %11462 }
 0xbe5   : > { %10405 = vmatpush3.bf16.msra.mxu1 %v4227_v2  ;;  %v4032_v32 = vpop.xlane.xlu1 %4031  ;;  %10406 = vmatprep.mubr.msk.bf16.mxu1 %vm12004_vm1, %v15912_v59  ;;  %v4067_v41 = vmul.f32 %v11463_v7, %v13502_v23 }
 0xbe6   : > { %11472 = vrcp.f32 %v4032_v32  ;;  %10416 = vmatprep.subr.bf16.mxu1 %v15912_v59  ;;  %v4077_v49 = vpack.c.bf16 %v4062_v27, %v4061_v9 }
 0xbe7   : > { %v11465_v42 = vpop.eup %11464  ;;  %11474 = vrcp.f32 %v4023_v24 }
 0xbe8   : > { %v4068_v35 = vmul.f32 %v11465_v42, %v13509_v53  ;;  %10389 = vmatmul.mubr.msk.bf16.vlgmr.msra.gmra.mrb[112].mxu0 %vm948_vm3, %v4077_v49  ;;  %v11467_v25 = vpop.eup %11466 }
 0xbe9   : > { %v4026_v10 = vpop.xlane.xlu1 %4025  ;;  %10399 = vmatpush3.bf16.msra.mxu0 %v13550_v8  ;;  %10400 = vmatprep.mubr.msk.bf16.mxu0 %vm12004_vm1, %v15912_v59  ;;  %v4065_v2 = vmul.f32 %v11467_v25, %v13512_v61 }
 0xbea   : > { %11476 = vrcp.f32 %v4026_v10  ;;  %v4080_v32 = vpack.c.bf16 %v4068_v35, %v4067_v41  ;;  %10410 = vmatprep.subr.bf16.mxu0 %v15912_v59 }
 0xbec   : > { %v11469_v16 = vpop.eup %11468  ;;  %10407 = vmatmul.mubr.msk.bf16.vlgmr.msra.gmra.mrb[132].mxu1 %vm948_vm3, %v4080_v32 }
 0xbed   : > { %v4066_v23 = vmul.f32 %v11469_v16, %v13519_v0  ;;  %v11471_v53 = vpop.eup %11470  ;;  %10417 = vmatpush3.bf16.msra.mxu1 %v13558_v38  ;;  %10418 = vmatprep.mubr.msk.bf16.mxu1 %vm12004_vm1, %v15912_v59 }
 0xbee   : > { %10428 = vmatprep.subr.bf16.mxu1 %v15912_v59  ;;  %v4071_v47 = vmul.f32 %v11471_v53, %v13521_v15 }
 0xbef   : > { %v4079_v8 = vpack.c.bf16 %v4066_v23, %v4065_v2 }
 0xbf0   : > { %v11473_v26 = vpop.eup %11472 }
 0xbf1   : > { %v4072_v31 = vmul.f32 %v11473_v26, %v13527_v46  ;;  %10401 = vmatmul.mubr.msk.bf16.vlgmr.msra.gmra.mrb[116].mxu0 %vm948_vm3, %v4079_v8  ;;  %v11475_v61 = vpop.eup %11474  ;;  %v4041_v46 = vpop.xlane.xlu0 %4040 }
 0xbf2   : > { %10411 = vmatpush3.bf16.msra.mxu0 %v13594_v50  ;;  %10412 = vmatprep.mubr.msk.bf16.mxu0 %vm12004_vm1, %v15912_v59  ;;  %v4069_v5 = vmul.f32 %v11475_v61, %v13530_v33  ;;  %v4515_v33 = vpop.permute.xlu1 %4514  ;;  %11478 = vrcp.f32 %v4041_v46 }
 0xbf3   : > { %v4082_v0 = vpack.c.bf16 %v4072_v31, %v4071_v47  ;;  %10422 = vmatprep.subr.bf16.mxu0 %v15912_v59  ;;  %v4520_v16 = vsel %vm534_vm2, %v4515_v33, 0 }
 0xbf4   : > { %v11477_v38 = vpop.eup %11476 }
 0xbf5   : > { %v4070_v4 = vmul.f32 %v11477_v38, %v13536_v51  ;;  %10419 = vmatmul.mubr.msk.bf16.vlgmr.msra.gmra.mrb[136].mxu1 %vm948_vm3, %v4082_v0  ;;  %v4035_v51 = vpop.xlane.xlu0 %4034 }
 0xbf6   : > { %10429 = vmatpush3.bf16.msra.mxu1 %v13598_v44  ;;  %10430 = vmatprep.mubr.msk.bf16.mxu1 %vm12004_vm1, %v15912_v59 }
 0xbf7   : > { %v4081_v15 = vpack.c.bf16 %v4070_v4, %v4069_v5  ;;  %10440 = vmatprep.subr.bf16.mxu1 %v15912_v59 }
 0xbf9   : > { %10413 = vmatmul.mubr.msk.bf16.vlgmr.msra.gmra.mrb[120].mxu0 %vm948_vm3, %v4081_v15  ;;  %v4464_v44 = vpop.permute.xlu0 %4463 }
 0xbfa   : > { %10423 = vmatpush3.bf16.msra.mxu0 %v13596_v17  ;;  %10424 = vmatprep.mubr.msk.bf16.mxu0 %vm12004_vm1, %v15912_v59  ;;  %v4469_v23 = vsel %vm534_vm2, %v4464_v44, 0 }
 0xbfb   : > { %10434 = vmatprep.subr.bf16.mxu0 %v15912_v59 }
 0xbfc   : > { %v11479_v27 = vpop.eup %11478 }
 0xbfd   : > { %v4462_v24 = vpop.permute.xlu0 %4461  ;;  %v4075_v17 = vmul.f32 %v11479_v27, %v13538_v11 }
 0xc01   : > { %v4513_v25 = vpop.permute.xlu0 %4512 }
 0xc05   : > { %v4564_v53 = vpop.permute.xlu0 %4563 }
 0xc09   : > { %v4615_v8 = vpop.permute.xlu0 %4614 }
 0xc0d   : > { %v4666_v61 = vpop.permute.xlu0 %4665 }
 0xc11   : > { %v4717_v5 = vpop.permute.xlu0 %4716 }
 0xc15   : > { %v4768_v33 = vpop.permute.xlu0 %4767 }
 0xc23   : > { %v4044_v50 = vpop.xlane.xlu1 %4043 }
 0xc24   : > { %11480 = vrcp.f32 %v4044_v50 }
 0xc25   : > { %11482 = vrcp.f32 %v4035_v51 }
 0xc27   : > { %v4038_v54 = vpop.xlane.xlu1 %4037 }
 0xc28   : > { %11484 = vrcp.f32 %v4038_v54 }
 0xc2b   : > { %v4566_v9 = vpop.permute.xlu1 %4565 }
 0xc2c   : > { %v4571_v26 = vsel %vm534_vm2, %v4566_v9, 0 }
 0xc2e   : > { %v11481_v7 = vpop.eup %11480 }
 0xc2f   : > { %v4076_v49 = vmul.f32 %v11481_v7, %v13572_v19  ;;  %v11483_v42 = vpop.eup %11482  ;;  %v4617_v41 = vpop.permute.xlu1 %4616 }
 0xc30   : > { %v4073_v32 = vmul.f32 %v11483_v42, %v13544_v56  ;;  %v4622_v56 = vsel %vm534_vm2, %v4617_v41, 0 }
 0xc31   : > { %v4084_v35 = vpack.c.bf16 %v4076_v49, %v4075_v17 }
 0xc32   : > { %v11485_v10 = vpop.eup %11484 }
 0xc33   : > { %v4074_v2 = vmul.f32 %v11485_v10, %v13576_v55  ;;  %10431 = vmatmul.mubr.msk.bf16.vlgmr.msra.gmra.mrb[140].mxu1 %vm948_vm3, %v4084_v35  ;;  %v4668_v19 = vpop.permute.xlu1 %4667 }
 0xc34   : > { %10441 = vmatpush3.bf16.xpose.msra.mxu1 %v4520_v16  ;;  %10442 = vmatprep.mubr.msk.bf16.mxu1 %vm12004_vm1, %v15912_v59  ;;  %v4673_v0 = vsel %vm534_vm2, %v4668_v19, 0 }
 0xc35   : > { %v4083_v11 = vpack.c.bf16 %v4074_v2, %v4073_v32  ;;  %10452 = vmatprep.subr.bf16.mxu1 %v15912_v59 }
 0xc37   : > { %10425 = vmatmul.mubr.msk.bf16.vlgmr.msra.gmra.mrb[124].mxu0 %vm948_vm3, %v4083_v11  ;;  %v4719_v55 = vpop.permute.xlu1 %4718 }
 0xc38   : > { %10435 = vmatpush3.bf16.xpose.msra.mxu0 %v4469_v23  ;;  %10436 = vmatprep.mubr.msk.bf16.mxu0 %vm12004_vm1, %v15912_v59  ;;  %v4724_v31 = vsel %vm534_vm2, %v4719_v55, 0 }
 0xc39   : > { %10446 = vmatprep.subr.bf16.mxu0 %v15912_v59 }
 0xc3b   : > { %10443 = vmatmul.mubr.msk.bf16.vlgmr.msra.gmra.mrb[144].mxu1 %vm534_vm2, %v4513_v25  ;;  %v4770_v47 = vpop.permute.xlu1 %4769 }
 0xc3c   : > { %10453 = vmatpush3.bf16.xpose.msra.mxu1 %v4622_v56  ;;  %10454 = vmatprep.mubr.msk.bf16.mxu1 %vm12004_vm1, %v15912_v59  ;;  %v4775_v15 = vsel %vm534_vm2, %v4770_v47, 0 }
 0xc3d   : > { %10464 = vmatprep.subr.bf16.mxu1 %v15912_v59 }
 0xc3f   : > { %10437 = vmatmul.mubr.msk.bf16.vlgmr.msra.gmra.mrb[128].mxu0 %vm534_vm2, %v4462_v24  ;;  %v4821_v38 = vpop.permute.xlu1 %4820 }
 0xc40   : > { %10447 = vmatpush3.bf16.xpose.msra.mxu0 %v4571_v26  ;;  %10448 = vmatprep.mubr.msk.bf16.mxu0 %vm12004_vm1, %v15912_v59  ;;  %v4826_v4 = vsel %vm534_vm2, %v4821_v38, 0 }
 0xc41   : > { %10458 = vmatprep.subr.bf16.mxu0 %v15912_v59 }
 0xc43   : > { %10455 = vmatmul.mubr.msk.bf16.vlgmr.msra.gmra.mrb[148].mxu1 %vm534_vm2, %v4615_v8  ;;  %v4819_v46 = vpop.permute.xlu1 %4818 }
 0xc44   : > { %10465 = vmatpush3.bf16.xpose.msra.mxu1 %v4724_v31  ;;  %10466 = vmatprep.mubr.msk.bf16.mxu1 %vm12004_vm1, %v15912_v59 }
 0xc45   : > { %10476 = vmatprep.subr.bf16.mxu1 %v15912_v59 }
 0xc47   : > { %10449 = vmatmul.mubr.msk.bf16.vlgmr.msra.gmra.mrb[132].mxu0 %vm534_vm2, %v4564_v53 }
 0xc48   : > { %10459 = vmatpush3.bf16.xpose.msra.mxu0 %v4673_v0  ;;  %10460 = vmatprep.mubr.msk.bf16.mxu0 %vm12004_vm1, %v15912_v59 }
 0xc49   : > { %10470 = vmatprep.subr.bf16.mxu0 %v15912_v59 }
 0xc4b   : > { %10467 = vmatmul.mubr.msk.bf16.vlgmr.msra.gmra.mrb[152].mxu1 %vm534_vm2, %v4717_v5 }
 0xc4c   : > { %10477 = vmatpush3.bf16.xpose.msra.mxu1 %v4826_v4  ;;  %10478 = vmatprep.mubr.msk.bf16.mxu1 %vm12004_vm1, %v15912_v59 }
 0xc4d   : > { %10488 = vmatprep.subr.bf16.mxu1 %v15912_v59 }
 0xc4f   : > { %10461 = vmatmul.mubr.msk.bf16.vlgmr.msra.gmra.mrb[136].mxu0 %vm534_vm2, %v4666_v61 }
 0xc50   : > { %10471 = vmatpush3.bf16.xpose.msra.mxu0 %v4775_v15  ;;  %10472 = vmatprep.mubr.msk.bf16.mxu0 %vm12004_vm1, %v15912_v59 }
 0xc51   : > { %10482 = vmatprep.subr.bf16.mxu0 %v15912_v59 }
 0xc53   : > { %10479 = vmatmul.mubr.msk.bf16.vlgmr.msra.gmra.mrb[156].mxu1 %vm534_vm2, %v4819_v46 }
 0xc54   : > { %10490 = vmatprep.mubr.msk.bf16.mxu1 %vm12004_vm1, %v15912_v59 }
 0xc57   : > { %10473 = vmatmul.mubr.msk.bf16.vlgmr.msra.gmra.mrb[140].mxu0 %vm534_vm2, %v4768_v33 }
 0xc58   : > { %10484 = vmatprep.mubr.msk.bf16.mxu0 %vm12004_vm1, %v15912_v59 }
 0xcb7   : > { %v13691_v51 = vpop.f32.mrb[128].mxu1 }
 0xcb8   : > { %15937 = vst [vmem:[#allocation70_spill] sm:$0xff] %v13691_v51  ;;  %v10396_v50 = vpop.f32.mrb[129].mxu1 }
 0xcb9   : > { %v13693_v44 = vpop.f32.mrb[130].mxu1 }
 0xcba   : > { %15938 = vst [vmem:[#allocation71_spill] sm:$0xff] %v13693_v44  ;;  %v10397_v9 = vpop.f32.mrb[131].mxu1 }
 0xcbb   : > { %v13697_v27 = vpop.f32.mrb[112].mxu0 }
 0xcbc   : > { %v10390_v24 = vpop.f32.mrb[113].mxu0 }
 0xcbd   : > { %v13699_v7 = vpop.f32.mrb[114].mxu0 }
 0xcbe   : > { %v10391_v49 = vpop.f32.mrb[115].mxu0 }
 0xcbf   : > { %v13703_v42 = vpop.f32.mrb[132].mxu1 }
 0xcc0   : > { %15939 = vst [vmem:[#allocation72_spill] sm:$0xff] %v13703_v42  ;;  %v10408_v41 = vpop.f32.mrb[133].mxu1 }
 0xcc1   : > { %v13705_v35 = vpop.f32.mrb[134].mxu1 }
 0xcc2   : > { %15940 = vst [vmem:[#allocation73_spill] sm:$0xff] %v13705_v35  ;;  %v10409_v25 = vpop.f32.mrb[135].mxu1 }
 0xcc4   : > { %v13709_v32 = vpop.f32.mrb[116].mxu0 }
 0xcc5   : > { %v10402_v16 = vpop.f32.mrb[117].mxu0 }
 0xcc6   : > { %v13711_v2 = vpop.f32.mrb[118].mxu0 }
 0xcc7   : > { %v10403_v19 = vpop.f32.mrb[119].mxu0 }
 0xcc8   : > { %v13715_v23 = vpop.f32.mrb[136].mxu1 }
 0xcc9   : > { %15941 = vst [vmem:[#allocation74_spill] sm:$0xff] %v13715_v23  ;;  %v10420_v53 = vpop.f32.mrb[137].mxu1 }
 0xcca   : > { %v13717_v56 = vpop.f32.mrb[138].mxu1 }
 0xccb   : > { %15942 = vst [vmem:[#allocation75_spill] sm:$0xff] %v13717_v56  ;;  %v10421_v8 = vpop.f32.mrb[139].mxu1 }
 0xccc   : > { %v13721_v26 = vpop.f32.mrb[120].mxu0 }
 0xccd   : > { %15943 = vst [vmem:[#allocation76_spill] sm:$0xff] %v13721_v26  ;;  %v10414_v47 = vpop.f32.mrb[121].mxu0 }
 0xcce   : > { %v13723_v31 = vpop.f32.mrb[122].mxu0 }
 0xccf   : > { %15944 = vst [vmem:[#allocation77_spill] sm:$0xff] %v13723_v31  ;;  %v10415_v0 = vpop.f32.mrb[123].mxu0 }
 0xd06   : > { %v13727_v38 = vpop.f32.mrb[140].mxu1 }
 0xd07   : > { %15945 = vst [vmem:[#allocation78_spill] sm:$0xff] %v13727_v38  ;;  %v10432_v5 = vpop.f32.mrb[141].mxu1 }
 0xd08   : > { %v13729_v4 = vpop.f32.mrb[142].mxu1 }
 0xd09   : > { %15946 = vst [vmem:[#allocation79_spill] sm:$0xff] %v13729_v4  ;;  %v10433_v46 = vpop.f32.mrb[143].mxu1 }
 0xd0a   : > { %v13733_v33 = vpop.f32.mrb[124].mxu0 }
 0xd0b   : > { %15947 = vst [vmem:[#allocation80_spill] sm:$0xff] %v13733_v33  ;;  %v10426_v50 = vpop.f32.mrb[125].mxu0 }
 0xd0c   : > { %v13735_v9 = vpop.f32.mrb[126].mxu0 }
 0xd0d   : > { %15948 = vst [vmem:[#allocation81_spill] sm:$0xff] %v13735_v9  ;;  %v10427_v49 = vpop.f32.mrb[127].mxu0 }
 0xd0e   : > { %v4556_v41 = vpop.f32.mrb[144].mxu1 }
 0xd0f   : > { %v13739_v25 = vmul.f32 0.5, %v4556_v41  ;;  %v10444_v16 = vpop.f32.mrb[145].mxu1 }
 0xd10   : > { %v4559_v19 = vpop.f32.mrb[146].mxu1 }
 0xd11   : > { %v10445_v53 = vpop.f32.mrb[147].mxu1  ;;  %v4891_v8 = vsel %vm948_vm3, %v13739_v25, -inf  ;;  %v13745_v50 = vmul.f32 0.5, %v4559_v19 }
 0xd12   : > { %4892 = vmax.xlane.f32.xlu0 %v4891_v8  ;;  %v4505_v47 = vpop.f32.mrb[128].mxu0 }
 0xd13   : > { %v13743_v0 = vmul.f32 0.5, %v4505_v47  ;;  %v10438_v5 = vpop.f32.mrb[129].mxu0 }
 0xd14   : > { %v4508_v46 = vpop.f32.mrb[130].mxu0 }
 0xd15   : > { %v13747_v15 = vmul.f32 0.5, %v4508_v46  ;;  %v10439_v49 = vpop.f32.mrb[131].mxu0  ;;  %v4885_v41 = vsel %vm948_vm3, %v13743_v0, -inf  ;;  %v4894_v46 = vsel %vm948_vm3, %v13745_v50, -inf }
 0xd16   : > { %v4658_v16 = vpop.f32.mrb[148].mxu1  ;;  %4886 = vmax.xlane.f32.xlu0 %v4885_v41 }
 0xd17   : > { %v10456_v53 = vpop.f32.mrb[149].mxu1  ;;  %v4888_v55 = vsel %vm948_vm3, %v13747_v15, -inf  ;;  %v13753_v47 = vmul.f32 0.5, %v4658_v16 }
 0xd18   : > { %v4661_v8 = vpop.f32.mrb[150].mxu1  ;;  %4889 = vmax.xlane.f32.xlu1 %v4888_v55 }
 0xd19   : > { %v13755_v5 = vmul.f32 0.5, %v4661_v8  ;;  %v10457_v19 = vpop.f32.mrb[151].mxu1  ;;  %v4903_v16 = vsel %vm948_vm3, %v13753_v47, -inf }
 0xd1a   : > { %4895 = vmax.xlane.f32.xlu0 %v4894_v46  ;;  %v4607_v49 = vpop.f32.mrb[132].mxu0 }
 0xd1b   : > { %v10450_v10 = vpop.f32.mrb[133].mxu0  ;;  %v4906_v41 = vsel %vm948_vm3, %v13755_v5, -inf  ;;  %v13761_v24 = vmul.f32 0.5, %v4607_v49 }
 0xd1c   : > { %4907 = vmax.xlane.f32.xlu1 %v4906_v41  ;;  %v4610_v53 = vpop.f32.mrb[134].mxu0 }
 0xd1d   : > { %v13763_v54 = vmul.f32 0.5, %v4610_v53  ;;  %v10451_v55 = vpop.f32.mrb[135].mxu0  ;;  %v4897_v53 = vsel %vm948_vm3, %v13761_v24, -inf }
 0xd1e   : > { %v4760_v8 = vpop.f32.mrb[152].mxu1  ;;  %4904 = vmax.xlane.f32.xlu0 %v4903_v16 }
 0xd1f   : > { %v10468_v19 = vpop.f32.mrb[153].mxu1  ;;  %v4900_v46 = vsel %vm948_vm3, %v13763_v54, -inf  ;;  %v13769_v61 = vmul.f32 0.5, %v4760_v8 }
 0xd20   : > { %v4763_v10 = vpop.f32.mrb[154].mxu1  ;;  %4901 = vmax.xlane.f32.xlu1 %v4900_v46 }
 0xd21   : > { %v13771_v41 = vmul.f32 0.5, %v4763_v10  ;;  %v10469_v49 = vpop.f32.mrb[155].mxu1  ;;  %v4915_v46 = vsel %vm948_vm3, %v13769_v61, -inf }
 0xd22   : > { %4898 = vmax.xlane.f32.xlu0 %v4897_v53  ;;  %v4709_v55 = vpop.f32.mrb[136].mxu0 }
 0xd23   : > { %v10462_v11 = vpop.f32.mrb[137].mxu0  ;;  %v4918_v16 = vsel %vm948_vm3, %v13771_v41, -inf  ;;  %v13777_v17 = vmul.f32 0.5, %v4709_v55 }
 0xd24   : > { %4919 = vmax.xlane.f32.xlu1 %v4918_v16  ;;  %v4712_v19 = vpop.f32.mrb[138].mxu0 }
 0xd25   : > { %v13779_v38 = vmul.f32 0.5, %v4712_v19  ;;  %v10463_v8 = vpop.f32.mrb[139].mxu0  ;;  %v4909_v55 = vsel %vm948_vm3, %v13777_v17, -inf }
 0xd26   : > { %v4862_v10 = vpop.f32.mrb[156].mxu1  ;;  %4916 = vmax.xlane.f32.xlu0 %v4915_v46 }
 0xd27   : > { %v10480_v49 = vpop.f32.mrb[157].mxu1  ;;  %v4912_v53 = vsel %vm948_vm3, %v13779_v38, -inf  ;;  %v13785_v4 = vmul.f32 0.5, %v4862_v10 }
 0xd28   : > { %v4865_v11 = vpop.f32.mrb[158].mxu1  ;;  %4913 = vmax.xlane.f32.xlu1 %v4912_v53 }
 0xd29   : > { %v10481_v16 = vpop.f32.mrb[159].mxu1  ;;  %v4927_v46 = vsel %vm948_vm3, %v13785_v4, -inf }
 0xd2a   : > { %4910 = vmax.xlane.f32.xlu0 %v4909_v55  ;;  %v4811_v19 = vpop.f32.mrb[140].mxu0 }
 0xd2b   : > { %v10474_v8 = vpop.f32.mrb[141].mxu0  ;;  %v13789_v56 = vmul.f32 0.5, %v4811_v19 }
 0xd2c   : > { %v4814_v23 = vpop.f32.mrb[142].mxu0 }
 0xd2d   : > { %v10475_v42 = vpop.f32.mrb[143].mxu0  ;;  %v4921_v49 = vsel %vm948_vm3, %v13789_v56, -inf  ;;  %v13804_v10 = vmul.f32 0.5, %v4814_v23 }
 0xd2e   : > { %4928 = vmax.xlane.f32.xlu0 %v4927_v46  ;;  %v13802_v42 = vmul.f32 0.5, %v4865_v11 }
 0xd2f   : > { %v4924_v16 = vsel %vm948_vm3, %v13804_v10, -inf }
 0xd30   : > { %v4930_v53 = vsel %vm948_vm3, %v13802_v42, -inf }
 0xd32   : > { %4922 = vmax.xlane.f32.xlu0 %v4921_v49 }
 0xd39   : > { %5116 = vrot.lane.b32.xlu1 %v12349_v12, %s12018_s14 }
 0xd3d   : > { %5163 = vrot.lane.b32.xlu1 %v12357_v22, %s12018_s14 }
 0xd41   : > { %5210 = vrot.lane.b32.xlu1 %v12355_v20, %s12018_s14 }
 0xd45   : > { %5304 = vrot.lane.b32.xlu1 %v12361_v28, %s12018_s14 }
 0xd48   : > { %5069 = vrot.lane.b32.xlu0 %v12351_v14, %s12018_s14 }
 0xd4c   : > { %5257 = vrot.lane.b32.xlu0 %v12363_v30, %s12018_s14 }
 0xd50   : > { %5351 = vrot.lane.b32.xlu0 %v12369_v40, %s12018_s14 }
 0xd69   : > { %4931 = vmax.xlane.f32.xlu1 %v4930_v53 }
 0xd6d   : > { %4925 = vmax.xlane.f32.xlu1 %v4924_v16 }
 0xd7e   : > { %5398 = vrot.lane.b32.xlu1 %v12367_v36, %s12018_s14  ;;  %s12031_s14 = smov 16  }
 0xd9f   : > { %v4893_v55 = vpop.xlane.xlu0 %4892 }
 0xda0   : > { %v4935_v19 = vsub.f32 %v13739_v25, %v4893_v55 }
 0xda2   : > { %v4953_v8 = vmul.f32 1.442695, %v4935_v19 }
 0xda3   : > { %v4887_v46 = vpop.xlane.xlu0 %4886 }
 0xda4   : > { %11486 = vpow2.f32 %v4953_v8  ;;  %v4933_v11 = vsub.f32 %v13743_v0, %v4887_v46 }
 0xda5   : > { %v4890_v23 = vpop.xlane.xlu1 %4889 }
 0xda6   : > { %v4949_v49 = vmul.f32 1.442695, %v4933_v11  ;;  %v4934_v35 = vsub.f32 %v13747_v15, %v4890_v23 }
 0xda7   : > { %v4896_v33 = vpop.xlane.xlu0 %4895 }
 0xda8   : > { %11488 = vpow2.f32 %v4949_v49  ;;  %v4936_v53 = vsub.f32 %v13745_v50, %v4896_v33  ;;  %v4951_v16 = vmul.f32 1.442695, %v4934_v35 }
 0xda9   : > { %v4908_v9 = vpop.xlane.xlu1 %4907 }
 0xdaa   : > { %v4955_v39 = vmul.f32 1.442695, %v4936_v53  ;;  %v4940_v60 = vsub.f32 %v13755_v5, %v4908_v9 }
 0xdab   : > { %v4905_v21 = vpop.xlane.xlu0 %4904 }
 0xdac   : > { %11490 = vpow2.f32 %v4955_v39  ;;  %v4939_v25 = vsub.f32 %v13753_v47, %v4905_v21  ;;  %v4963_v0 = vmul.f32 1.442695, %v4940_v60 }
 0xdad   : > { %v4902_v55 = vpop.xlane.xlu1 %4901  ;;  %11492 = vpow2.f32 %v4951_v16 }
 0xdae   : > { %v13817_v19 = vpop.eup %11486  ;;  %v4961_v8 = vmul.f32 1.442695, %v4939_v25  ;;  %v4938_v15 = vsub.f32 %v13763_v54, %v4902_v55 }
 0xdaf   : > { %v4899_v46 = vpop.xlane.xlu0 %4898  ;;  %v4987_v33 = vsel %vm948_vm3, %v13817_v19, 0.0 }
 0xdb0   : > { %11494 = vpow2.f32 %v4961_v8  ;;  %v4937_v35 = vsub.f32 %v13761_v24, %v4899_v46  ;;  %4988 = vadd.xlane.f32.xlu0 %v4987_v33  ;;  %v4959_v50 = vmul.f32 1.442695, %v4938_v15 }
 0xdb1   : > { %v4920_v9 = vpop.xlane.xlu1 %4919  ;;  %11496 = vpow2.f32 %v4963_v0 }
 0xdb2   : > { %v13823_v39 = vpop.eup %11488  ;;  %v4957_v21 = vmul.f32 1.442695, %v4937_v35  ;;  %v4944_v47 = vsub.f32 %v13771_v41, %v4920_v9 }
 0xdb3   : > { %v4917_v60 = vpop.xlane.xlu0 %4916  ;;  %v4981_v54 = vsel %vm948_vm3, %v13823_v39, 0.0 }
 0xdb4   : > { %11498 = vpow2.f32 %v4957_v21  ;;  %v4943_v5 = vsub.f32 %v13769_v61, %v4917_v60  ;;  %4982 = vadd.xlane.f32.xlu0 %v4981_v54  ;;  %v4971_v49 = vmul.f32 1.442695, %v4944_v47 }
 0xdb5   : > { %v4914_v11 = vpop.xlane.xlu1 %4913  ;;  %11500 = vpow2.f32 %v4959_v50 }
 0xdb6   : > { %v13829_v23 = vpop.eup %11490  ;;  %v4969_v24 = vmul.f32 1.442695, %v4943_v5  ;;  %v4942_v53 = vsub.f32 %v13779_v38, %v4914_v11 }
 0xdb7   : > { %v4911_v16 = vpop.xlane.xlu0 %4910  ;;  %v4990_v41 = vsel %vm948_vm3, %v13829_v23, 0.0  ;;  %v13834_v25 = vpop.eup %11492 }
 0xdb8   : > { %11502 = vpow2.f32 %v4969_v24  ;;  %v4941_v55 = vsub.f32 %v13777_v17, %v4911_v16  ;;  %4991 = vadd.xlane.f32.xlu1 %v4990_v41  ;;  %v4967_v15 = vmul.f32 1.442695, %v4942_v53  ;;  %v4984_v33 = vsel %vm948_vm3, %v13834_v25, 0.0 }
 0xdb9   : > { %v5117_v61 = vpop.permute.xlu1 %5116  ;;  %11504 = vpow2.f32 %v4971_v49 }
 0xdba   : > { %v13837_v0 = vpop.eup %11494  ;;  %v4965_v8 = vmul.f32 1.442695, %v4941_v55  ;;  %10489 = vmatpush3.bf16.msra.mxu1 %v5117_v61 }
 0xdbb   : > { %v4929_v46 = vpop.xlane.xlu0 %4928  ;;  %v4999_v38 = vsel %vm948_vm3, %v13837_v0, 0.0  ;;  %10500 = vmatprep.subr.bf16.mxu1 %v15912_v59  ;;  %v13844_v35 = vpop.eup %11496 }
 0xdbc   : > { %11506 = vpow2.f32 %v4965_v8  ;;  %v4947_v17 = vsub.f32 %v13785_v4, %v4929_v46  ;;  %5000 = vadd.xlane.f32.xlu0 %v4999_v38  ;;  %4985 = vadd.xlane.f32.xlu1 %v4984_v33  ;;  %v5002_v60 = vsel %vm948_vm3, %v13844_v35, 0.0 }
 0xdbd   : > { %11508 = vpow2.f32 %v4967_v15 }
 0xdbe   : > { %v13847_v9 = vpop.eup %11498  ;;  %v4977_v21 = vmul.f32 1.442695, %v4947_v17  ;;  %v13885_v17 = vpop.permute.xlu1 %5163 }
 0xdbf   : > { %v4923_v50 = vpop.xlane.xlu0 %4922  ;;  %v4993_v47 = vsel %vm948_vm3, %v13847_v9, 0.0  ;;  %v13854_v5 = vpop.eup %11500 }
 0xdc0   : > { %11510 = vpow2.f32 %v4977_v21  ;;  %v4945_v54 = vsub.f32 %v13789_v56, %v4923_v50  ;;  %4994 = vadd.xlane.f32.xlu0 %v4993_v47  ;;  %5003 = vadd.xlane.f32.xlu1 %v5002_v60  ;;  %v4996_v53 = vsel %vm948_vm3, %v13854_v5, 0.0 }
 0xdc2   : > { %v13856_v4 = vpop.eup %11502  ;;  %v4973_v11 = vmul.f32 1.442695, %v4945_v54  ;;  %v5211_v21 = vpop.permute.xlu1 %5210 }
 0xdc3   : > { %v5070_v24 = vpop.permute.xlu0 %5069  ;;  %v5011_v49 = vsel %vm948_vm3, %v13856_v4, 0.0  ;;  %v13862_v16 = vpop.eup %11504 }
 0xdc4   : > { %11512 = vpow2.f32 %v4973_v11  ;;  %5012 = vadd.xlane.f32.xlu0 %v5011_v49  ;;  %10483 = vmatpush3.bf16.msra.mxu0 %v5070_v24  ;;  %v5014_v55 = vsel %vm948_vm3, %v13862_v16, 0.0 }
 0xdc5   : > { %4997 = vadd.xlane.f32.xlu1 %v4996_v53  ;;  %10494 = vmatprep.subr.bf16.mxu0 %v15912_v59 }
 0xdc6   : > { %v13865_v56 = vpop.eup %11506  ;;  %v13893_v50 = vpop.permute.xlu1 %5304 }
 0xdc7   : > { %v5005_v41 = vsel %vm948_vm3, %v13865_v56, 0.0  ;;  %v13871_v61 = vpop.eup %11508 }
 0xdc8   : > { %5006 = vadd.xlane.f32.xlu0 %v5005_v41  ;;  %v5008_v46 = vsel %vm948_vm3, %v13871_v61, 0.0 }
 0xdc9   : > { %5015 = vadd.xlane.f32.xlu1 %v5014_v55 }
 0xdca   : > { %v13873_v8 = vpop.eup %11510 }
 0xdcb   : > { %v5023_v15 = vsel %vm948_vm3, %v13873_v8, 0.0 }
 0xdcc   : > { %5024 = vadd.xlane.f32.xlu0 %v5023_v15 }
 0xdcd   : > { %5009 = vadd.xlane.f32.xlu1 %v5008_v46 }
 0xdce   : > { %v13879_v38 = vpop.eup %11512 }
 0xdcf   : > { %v5017_v33 = vsel %vm948_vm3, %v13879_v38, 0.0 }
 0xdd0   : > { %5018 = vadd.xlane.f32.xlu0 %v5017_v33 }
 0xdde   : > { %5498 = vrot.lane.b32.xlu1 %v12349_v12, %s12019_s16 }
 0xde6   : > { %5447 = vrot.lane.b32.xlu0 %v12351_v14, %s12019_s16 }
 0xdea   : > { %5445 = vrot.lane.b32.xlu0 %v12351_v14, %s12020_s7 }
 0xdee   : > { %5496 = vrot.lane.b32.xlu0 %v12349_v12, %s12020_s7 }
 0xdf2   : > { %5547 = vrot.lane.b32.xlu0 %v12357_v22, %s12020_s7 }
 0xdf6   : > { %v4932_v47 = vpop.xlane.xlu1 %4931  ;;  %5598 = vrot.lane.b32.xlu0 %v12355_v20, %s12020_s7 }
 0xdf7   : > { %v4948_v60 = vsub.f32 %v13802_v42, %v4932_v47 }
 0xdf9   : > { %v4979_v54 = vmul.f32 1.442695, %v4948_v60 }
 0xdfa   : > { %5649 = vrot.lane.b32.xlu0 %v12363_v30, %s12020_s7  ;;  %v4926_v11 = vpop.xlane.xlu1 %4925 }
 0xdfb   : > { %11514 = vpow2.f32 %v4979_v54  ;;  %v4946_v24 = vsub.f32 %v13804_v10, %v4926_v11  ;;  %v13929_v10 = vpop.permute.xlu0 %5257 }
 0xdfd   : > { %v4975_v49 = vmul.f32 1.442695, %v4946_v24 }
 0xdfe   : > { %5700 = vrot.lane.b32.xlu0 %v12361_v28, %s12020_s7  ;;  %v13933_v33 = vpop.permute.xlu1 %5398 }
 0xdff   : > { %11516 = vpow2.f32 %v4975_v49  ;;  %v13931_v15 = vpop.permute.xlu0 %5351 }
 0xe02   : > { %5751 = vrot.lane.b32.xlu0 %v12369_v40, %s12020_s7 }
 0xe05   : > { %v13907_v53 = vpop.eup %11514 }
 0xe06   : > { %v5026_v42 = vsel %vm948_vm3, %v13907_v53, 0.0 }
 0xe07   : > { %5027 = vadd.xlane.f32.xlu1 %v5026_v42 }
 0xe09   : > { %v13911_v41 = vpop.eup %11516 }
 0xe0a   : > { %v5020_v55 = vsel %vm948_vm3, %v13911_v41, 0.0 }
 0xe0b   : > { %5021 = vadd.xlane.f32.xlu1 %v5020_v55 }
 0xe1c   : > { %5549 = vrot.lane.b32.xlu1 %v12357_v22, %s12019_s16 }
 0xe20   : > { %5600 = vrot.lane.b32.xlu1 %v12355_v20, %s12019_s16 }
 0xe24   : > { %5651 = vrot.lane.b32.xlu1 %v12363_v30, %s12019_s16 }
 0xe28   : > { %5702 = vrot.lane.b32.xlu1 %v12361_v28, %s12019_s16 }
 0xe2c   : > { %5753 = vrot.lane.b32.xlu1 %v12369_v40, %s12019_s16 }
 0xe30   : > { %5804 = vrot.lane.b32.xlu1 %v12367_v36, %s12019_s16  ;;  %s12032_s16 = smov 20  }
 0xe34   : > { %5802 = vrot.lane.b32.xlu1 %v12367_v36, %s12020_s7  ;;  %s12033_s7 = smov 24  }
 0xe3d   : > { %v4989_v46 = vpop.xlane.xlu0 %4988 }
 0xe3e   : > { %11518 = vrcp.f32 %v4989_v46 }
 0xe41   : > { %v4983_v47 = vpop.xlane.xlu0 %4982 }
 0xe45   : > { %v4992_v60 = vpop.xlane.xlu1 %4991 }
 0xe46   : > { %11520 = vrcp.f32 %v4992_v60 }
 0xe47   : > { %11522 = vrcp.f32 %v4983_v47 }
 0xe48   : > { %v11519_v42 = vpop.eup %11518 }
 0xe49   : > { %v5001_v54 = vpop.xlane.xlu0 %5000  ;;  %v4986_v11 = vpop.xlane.xlu1 %4985  ;;  %v5047_v51 = vmul.f32 %v11519_v42, %v13817_v19 }
 0xe4a   : > { %11524 = vrcp.f32 %v4986_v11 }
 0xe4b   : > { %11526 = vrcp.f32 %v5001_v54 }
 0xe4d   : > { %v4995_v24 = vpop.xlane.xlu0 %4994  ;;  %v5004_v49 = vpop.xlane.xlu1 %5003 }
 0xe4e   : > { %11528 = vrcp.f32 %v5004_v49 }
 0xe4f   : > { %11530 = vrcp.f32 %v4995_v24 }
 0xe50   : > { %v11521_v55 = vpop.eup %11520 }
 0xe51   : > { %v5048_v44 = vmul.f32 %v11521_v55, %v13829_v23  ;;  %v5013_v26 = vpop.xlane.xlu0 %5012  ;;  %v11523_v31 = vpop.eup %11522 }
 0xe52   : > { %v4998_v46 = vpop.xlane.xlu1 %4997  ;;  %v5045_v54 = vmul.f32 %v11523_v31, %v13823_v39 }
 0xe53   : > { %11532 = vrcp.f32 %v4998_v46  ;;  %v5062_v60 = vpack.c.bf16 %v5048_v44, %v5047_v51 }
 0xe54   : > { %v11525_v47 = vpop.eup %11524  ;;  %11534 = vrcp.f32 %v5013_v26 }
 0xe55   : > { %10491 = vmatmul.mubr.msk.bf16.vlgmr.msra.gmra.mrb[160].mxu1 %vm948_vm3, %v5062_v60  ;;  %v5046_v11 = vmul.f32 %v11525_v47, %v13834_v25  ;;  %v5007_v49 = vpop.xlane.xlu0 %5006  ;;  %v11527_v19 = vpop.eup %11526 }
 0xe56   : > { %10501 = vmatpush3.bf16.msra.mxu1 %v5211_v21  ;;  %v5016_v45 = vpop.xlane.xlu1 %5015  ;;  %10502 = vmatprep.mubr.msk.bf16.mxu1 %vm12004_vm1, %v15912_v59  ;;  %v5051_v44 = vmul.f32 %v11527_v19, %v13837_v0 }
 0xe57   : > { %11536 = vrcp.f32 %v5016_v45  ;;  %10512 = vmatprep.subr.bf16.mxu1 %v15912_v59  ;;  %v5061_v23 = vpack.c.bf16 %v5046_v11, %v5045_v54 }
 0xe58   : > { %v11529_v51 = vpop.eup %11528  ;;  %11538 = vrcp.f32 %v5007_v49 }
 0xe59   : > { %v5052_v26 = vmul.f32 %v11529_v51, %v13844_v35  ;;  %10485 = vmatmul.mubr.msk.bf16.vlgmr.msra.gmra.mrb[144].mxu0 %vm948_vm3, %v5061_v23  ;;  %v11531_v39 = vpop.eup %11530 }
 0xe5a   : > { %v5010_v31 = vpop.xlane.xlu1 %5009  ;;  %10495 = vmatpush3.bf16.msra.mxu0 %v13885_v17  ;;  %10496 = vmatprep.mubr.msk.bf16.mxu0 %vm12004_vm1, %v15912_v59  ;;  %v5049_v21 = vmul.f32 %v11531_v39, %v13847_v9 }
 0xe5b   : > { %11540 = vrcp.f32 %v5010_v31  ;;  %v5064_v45 = vpack.c.bf16 %v5052_v26, %v5051_v44  ;;  %10506 = vmatprep.subr.bf16.mxu0 %v15912_v59 }
 0xe5d   : > { %v11533_v25 = vpop.eup %11532  ;;  %10503 = vmatmul.mubr.msk.bf16.vlgmr.msra.gmra.mrb[164].mxu1 %vm948_vm3, %v5064_v45 }
 0xe5e   : > { %v5050_v0 = vmul.f32 %v11533_v25, %v13854_v5  ;;  %v11535_v35 = vpop.eup %11534  ;;  %10513 = vmatpush3.bf16.msra.mxu1 %v13893_v50  ;;  %10514 = vmatprep.mubr.msk.bf16.mxu1 %vm12004_vm1, %v15912_v59 }
 0xe5f   : > { %10524 = vmatprep.subr.bf16.mxu1 %v15912_v59  ;;  %v5055_v42 = vmul.f32 %v11535_v35, %v13856_v4 }
 0xe60   : > { %v5063_v17 = vpack.c.bf16 %v5050_v0, %v5049_v21 }
 0xe61   : > { %v11537_v24 = vpop.eup %11536 }
 0xe62   : > { %v5056_v55 = vmul.f32 %v11537_v24, %v13862_v16  ;;  %10497 = vmatmul.mubr.msk.bf16.vlgmr.msra.gmra.mrb[148].mxu0 %vm948_vm3, %v5063_v17  ;;  %v11539_v9 = vpop.eup %11538  ;;  %v5025_v16 = vpop.xlane.xlu0 %5024 }
 0xe63   : > { %10507 = vmatpush3.bf16.msra.mxu0 %v13929_v10  ;;  %10508 = vmatprep.mubr.msk.bf16.mxu0 %vm12004_vm1, %v15912_v59  ;;  %v5053_v46 = vmul.f32 %v11539_v9, %v13865_v56  ;;  %v5499_v56 = vpop.permute.xlu1 %5498  ;;  %11542 = vrcp.f32 %v5025_v16 }
 0xe64   : > { %v5066_v5 = vpack.c.bf16 %v5056_v55, %v5055_v42  ;;  %10518 = vmatprep.subr.bf16.mxu0 %v15912_v59  ;;  %v5504_v25 = vsel %vm534_vm2, %v5499_v56, 0 }
 0xe65   : > { %v11541_v50 = vpop.eup %11540 }
 0xe66   : > { %v5054_v60 = vmul.f32 %v11541_v50, %v13871_v61  ;;  %10515 = vmatmul.mubr.msk.bf16.vlgmr.msra.gmra.mrb[168].mxu1 %vm948_vm3, %v5066_v5  ;;  %v5019_v61 = vpop.xlane.xlu0 %5018 }
 0xe67   : > { %10525 = vmatpush3.bf16.msra.mxu1 %v13933_v33  ;;  %10526 = vmatprep.mubr.msk.bf16.mxu1 %vm12004_vm1, %v15912_v59 }
 0xe68   : > { %v5065_v4 = vpack.c.bf16 %v5054_v60, %v5053_v46  ;;  %10536 = vmatprep.subr.bf16.mxu1 %v15912_v59 }
 0xe6a   : > { %10509 = vmatmul.mubr.msk.bf16.vlgmr.msra.gmra.mrb[152].mxu0 %vm948_vm3, %v5065_v4  ;;  %v5448_v33 = vpop.permute.xlu0 %5447 }
 0xe6b   : > { %10519 = vmatpush3.bf16.msra.mxu0 %v13931_v15  ;;  %10520 = vmatprep.mubr.msk.bf16.mxu0 %vm12004_vm1, %v15912_v59  ;;  %v5453_v0 = vsel %vm534_vm2, %v5448_v33, 0 }
 0xe6c   : > { %10530 = vmatprep.subr.bf16.mxu0 %v15912_v59 }
 0xe6d   : > { %v11543_v11 = vpop.eup %11542 }
 0xe6e   : > { %v5446_v49 = vpop.permute.xlu0 %5445  ;;  %v5059_v15 = vmul.f32 %v11543_v11, %v13873_v8 }
 0xe72   : > { %v5497_v39 = vpop.permute.xlu0 %5496 }
 0xe76   : > { %v5548_v35 = vpop.permute.xlu0 %5547 }
 0xe7a   : > { %v5599_v17 = vpop.permute.xlu0 %5598 }
 0xe7e   : > { %v5650_v9 = vpop.permute.xlu0 %5649 }
 0xe82   : > { %v5701_v46 = vpop.permute.xlu0 %5700 }
 0xe86   : > { %v5752_v56 = vpop.permute.xlu0 %5751 }
 0xe94   : > { %v5028_v10 = vpop.xlane.xlu1 %5027 }
 0xe95   : > { %11544 = vrcp.f32 %v5028_v10 }
 0xe96   : > { %11546 = vrcp.f32 %v5019_v61 }
 0xe98   : > { %v5022_v47 = vpop.xlane.xlu1 %5021 }
 0xe99   : > { %11548 = vrcp.f32 %v5022_v47 }
 0xe9c   : > { %v5550_v54 = vpop.permute.xlu1 %5549 }
 0xe9d   : > { %v5555_v24 = vsel %vm534_vm2, %v5550_v54, 0 }
 0xe9f   : > { %v11545_v19 = vpop.eup %11544 }
 0xea0   : > { %v5060_v23 = vmul.f32 %v11545_v19, %v13907_v53  ;;  %v11547_v51 = vpop.eup %11546  ;;  %v5601_v44 = vpop.permute.xlu1 %5600 }
 0xea1   : > { %v5057_v45 = vmul.f32 %v11547_v51, %v13879_v38  ;;  %v5606_v38 = vsel %vm534_vm2, %v5601_v44, 0 }
 0xea2   : > { %v5068_v26 = vpack.c.bf16 %v5060_v23, %v5059_v15 }
 0xea3   : > { %v11549_v31 = vpop.eup %11548 }
 0xea4   : > { %v5058_v21 = vmul.f32 %v11549_v31, %v13911_v41  ;;  %10527 = vmatmul.mubr.msk.bf16.vlgmr.msra.gmra.mrb[172].mxu1 %vm948_vm3, %v5068_v26  ;;  %v5652_v53 = vpop.permute.xlu1 %5651 }
 0xea5   : > { %10537 = vmatpush3.bf16.xpose.msra.mxu1 %v5504_v25  ;;  %10538 = vmatprep.mubr.msk.bf16.mxu1 %vm12004_vm1, %v15912_v59  ;;  %v5657_v5 = vsel %vm534_vm2, %v5652_v53, 0 }
 0xea6   : > { %v5067_v8 = vpack.c.bf16 %v5058_v21, %v5057_v45  ;;  %10548 = vmatprep.subr.bf16.mxu1 %v15912_v59 }
 0xea8   : > { %10521 = vmatmul.mubr.msk.bf16.vlgmr.msra.gmra.mrb[156].mxu0 %vm948_vm3, %v5067_v8  ;;  %v5703_v41 = vpop.permute.xlu1 %5702 }
 0xea9   : > { %10531 = vmatpush3.bf16.xpose.msra.mxu0 %v5453_v0  ;;  %10532 = vmatprep.mubr.msk.bf16.mxu0 %vm12004_vm1, %v15912_v59  ;;  %v5708_v55 = vsel %vm534_vm2, %v5703_v41, 0 }
 0xeaa   : > { %10542 = vmatprep.subr.bf16.mxu0 %v15912_v59 }
 0xeac   : > { %10539 = vmatmul.mubr.msk.bf16.vlgmr.msra.gmra.mrb[176].mxu1 %vm534_vm2, %v5497_v39  ;;  %v5754_v42 = vpop.permute.xlu1 %5753 }
 0xead   : > { %10549 = vmatpush3.bf16.xpose.msra.mxu1 %v5606_v38  ;;  %10550 = vmatprep.mubr.msk.bf16.mxu1 %vm12004_vm1, %v15912_v59  ;;  %v5759_v4 = vsel %vm534_vm2, %v5754_v42, 0 }
 0xeae   : > { %10560 = vmatprep.subr.bf16.mxu1 %v15912_v59 }
 0xeb0   : > { %10533 = vmatmul.mubr.msk.bf16.vlgmr.msra.gmra.mrb[160].mxu0 %vm534_vm2, %v5446_v49  ;;  %v5805_v50 = vpop.permute.xlu1 %5804 }
 0xeb1   : > { %10543 = vmatpush3.bf16.xpose.msra.mxu0 %v5555_v24  ;;  %10544 = vmatprep.mubr.msk.bf16.mxu0 %vm12004_vm1, %v15912_v59  ;;  %v5810_v60 = vsel %vm534_vm2, %v5805_v50, 0 }
 0xeb2   : > { %10554 = vmatprep.subr.bf16.mxu0 %v15912_v59 }
 0xeb4   : > { %10551 = vmatmul.mubr.msk.bf16.vlgmr.msra.gmra.mrb[180].mxu1 %vm534_vm2, %v5599_v17  ;;  %v5803_v16 = vpop.permute.xlu1 %5802 }
 0xeb5   : > { %10561 = vmatpush3.bf16.xpose.msra.mxu1 %v5708_v55  ;;  %10562 = vmatprep.mubr.msk.bf16.mxu1 %vm12004_vm1, %v15912_v59 }
 0xeb6   : > { %10572 = vmatprep.subr.bf16.mxu1 %v15912_v59 }
 0xeb8   : > { %10545 = vmatmul.mubr.msk.bf16.vlgmr.msra.gmra.mrb[164].mxu0 %vm534_vm2, %v5548_v35 }
 0xeb9   : > { %10555 = vmatpush3.bf16.xpose.msra.mxu0 %v5657_v5  ;;  %10556 = vmatprep.mubr.msk.bf16.mxu0 %vm12004_vm1, %v15912_v59 }
 0xeba   : > { %10566 = vmatprep.subr.bf16.mxu0 %v15912_v59 }
 0xebc   : > { %10563 = vmatmul.mubr.msk.bf16.vlgmr.msra.gmra.mrb[184].mxu1 %vm534_vm2, %v5701_v46 }
 0xebd   : > { %10573 = vmatpush3.bf16.xpose.msra.mxu1 %v5810_v60  ;;  %10574 = vmatprep.mubr.msk.bf16.mxu1 %vm12004_vm1, %v15912_v59 }
 0xebe   : > { %10584 = vmatprep.subr.bf16.mxu1 %v15912_v59 }
 0xec0   : > { %10557 = vmatmul.mubr.msk.bf16.vlgmr.msra.gmra.mrb[168].mxu0 %vm534_vm2, %v5650_v9 }
 0xec1   : > { %10567 = vmatpush3.bf16.xpose.msra.mxu0 %v5759_v4  ;;  %10568 = vmatprep.mubr.msk.bf16.mxu0 %vm12004_vm1, %v15912_v59 }
 0xec2   : > { %10578 = vmatprep.subr.bf16.mxu0 %v15912_v59 }
 0xec4   : > { %10575 = vmatmul.mubr.msk.bf16.vlgmr.msra.gmra.mrb[188].mxu1 %vm534_vm2, %v5803_v16 }
 0xec5   : > { %10586 = vmatprep.mubr.msk.bf16.mxu1 %vm12004_vm1, %v15912_v59 }
 0xec8   : > { %10569 = vmatmul.mubr.msk.bf16.vlgmr.msra.gmra.mrb[172].mxu0 %vm534_vm2, %v5752_v56 }
 0xec9   : > { %10580 = vmatprep.mubr.msk.bf16.mxu0 %vm12004_vm1, %v15912_v59 }
 0xf28   : > { %v14026_v61 = vpop.f32.mrb[160].mxu1 }
 0xf29   : > { %15949 = vst [vmem:[#allocation82_spill] sm:$0xff] %v14026_v61  ;;  %v10492_v10 = vpop.f32.mrb[161].mxu1 }
 0xf2a   : > { %v14028_v33 = vpop.f32.mrb[162].mxu1 }
 0xf2b   : > { %15950 = vst [vmem:[#allocation83_spill] sm:$0xff] %v14028_v33  ;;  %v10493_v54 = vpop.f32.mrb[163].mxu1 }
 0xf2c   : > { %v14032_v11 = vpop.f32.mrb[144].mxu0 }
 0xf2d   : > { %v10486_v49 = vpop.f32.mrb[145].mxu0 }
 0xf2e   : > { %v14034_v19 = vpop.f32.mrb[146].mxu0 }
 0xf2f   : > { %v10487_v23 = vpop.f32.mrb[147].mxu0 }
 0xf30   : > { %v14038_v51 = vpop.f32.mrb[164].mxu1 }
 0xf31   : > { %15951 = vst [vmem:[#allocation84_spill] sm:$0xff] %v14038_v51  ;;  %v10504_v44 = vpop.f32.mrb[165].mxu1 }
 0xf32   : > { %v14040_v26 = vpop.f32.mrb[166].mxu1 }
 0xf33   : > { %15952 = vst [vmem:[#allocation85_spill] sm:$0xff] %v14040_v26  ;;  %v10505_v39 = vpop.f32.mrb[167].mxu1 }
 0xf35   : > { %v14044_v45 = vpop.f32.mrb[148].mxu0 }
 0xf36   : > { %v10498_v25 = vpop.f32.mrb[149].mxu0 }
 0xf37   : > { %v14046_v21 = vpop.f32.mrb[150].mxu0 }
 0xf38   : > { %v10499_v53 = vpop.f32.mrb[151].mxu0 }
 0xf39   : > { %v14050_v0 = vpop.f32.mrb[168].mxu1 }
 0xf3a   : > { %15953 = vst [vmem:[#allocation86_spill] sm:$0xff] %v14050_v0  ;;  %v10516_v35 = vpop.f32.mrb[169].mxu1 }
 0xf3b   : > { %v14052_v38 = vpop.f32.mrb[170].mxu1 }
 0xf3c   : > { %15954 = vst [vmem:[#allocation87_spill] sm:$0xff] %v14052_v38  ;;  %v10517_v17 = vpop.f32.mrb[171].mxu1 }
 0xf3d   : > { %v14056_v24 = vpop.f32.mrb[152].mxu0 }
 0xf3e   : > { %15955 = vst [vmem:[#allocation88_spill] sm:$0xff] %v14056_v24  ;;  %v10510_v42 = vpop.f32.mrb[153].mxu0 }
 0xf3f   : > { %v14058_v55 = vpop.f32.mrb[154].mxu0 }
 0xf40   : > { %15956 = vst [vmem:[#allocation89_spill] sm:$0xff] %v14058_v55  ;;  %v10511_v5 = vpop.f32.mrb[155].mxu0 }
 0xf77   : > { %v14062_v50 = vpop.f32.mrb[172].mxu1 }
 0xf78   : > { %15957 = vst [vmem:[#allocation90_spill] sm:$0xff] %v14062_v50  ;;  %v10528_v46 = vpop.f32.mrb[173].mxu1 }
 0xf79   : > { %v14064_v60 = vpop.f32.mrb[174].mxu1 }
 0xf7a   : > { %15958 = vst [vmem:[#allocation91_spill] sm:$0xff] %v14064_v60  ;;  %v10529_v16 = vpop.f32.mrb[175].mxu1 }
 0xf7b   : > { %v14068_v56 = vpop.f32.mrb[156].mxu0 }
 0xf7c   : > { %15959 = vst [vmem:[#allocation92_spill] sm:$0xff] %v14068_v56  ;;  %v10522_v10 = vpop.f32.mrb[157].mxu0 }
 0xf7d   : > { %v14070_v54 = vpop.f32.mrb[158].mxu0 }
 0xf7e   : > { %15960 = vst [vmem:[#allocation93_spill] sm:$0xff] %v14070_v54  ;;  %v10523_v23 = vpop.f32.mrb[159].mxu0 }
 0xf7f   : > { %v5540_v44 = vpop.f32.mrb[176].mxu1 }
 0xf80   : > { %v14074_v39 = vmul.f32 0.5, %v5540_v44  ;;  %v10540_v25 = vpop.f32.mrb[177].mxu1 }
 0xf81   : > { %v5543_v53 = vpop.f32.mrb[178].mxu1 }
 0xf82   : > { %v10541_v35 = vpop.f32.mrb[179].mxu1  ;;  %v5875_v17 = vsel %vm948_vm3, %v14074_v39, -inf  ;;  %v14080_v10 = vmul.f32 0.5, %v5543_v53 }
 0xf83   : > { %5876 = vmax.xlane.f32.xlu0 %v5875_v17  ;;  %v5489_v42 = vpop.f32.mrb[160].mxu0 }
 0xf84   : > { %v14078_v5 = vmul.f32 0.5, %v5489_v42  ;;  %v10534_v46 = vpop.f32.mrb[161].mxu0 }
 0xf85   : > { %v5492_v16 = vpop.f32.mrb[162].mxu0 }
 0xf86   : > { %v14082_v4 = vmul.f32 0.5, %v5492_v16  ;;  %v10535_v23 = vpop.f32.mrb[163].mxu0  ;;  %v5869_v44 = vsel %vm948_vm3, %v14078_v5, -inf  ;;  %v5878_v16 = vsel %vm948_vm3, %v14080_v10, -inf }
 0xf87   : > { %v5642_v25 = vpop.f32.mrb[180].mxu1  ;;  %5870 = vmax.xlane.f32.xlu0 %v5869_v44 }
 0xf88   : > { %v10552_v35 = vpop.f32.mrb[181].mxu1  ;;  %v5872_v49 = vsel %vm948_vm3, %v14082_v4, -inf  ;;  %v14088_v42 = vmul.f32 0.5, %v5642_v25 }
 0xf89   : > { %v5645_v17 = vpop.f32.mrb[182].mxu1  ;;  %5873 = vmax.xlane.f32.xlu1 %v5872_v49 }
 0xf8a   : > { %v14090_v46 = vmul.f32 0.5, %v5645_v17  ;;  %v10553_v53 = vpop.f32.mrb[183].mxu1  ;;  %v5887_v25 = vsel %vm948_vm3, %v14088_v42, -inf }
 0xf8b   : > { %5879 = vmax.xlane.f32.xlu0 %v5878_v16  ;;  %v5591_v23 = vpop.f32.mrb[164].mxu0 }
 0xf8c   : > { %v10546_v41 = vpop.f32.mrb[165].mxu0  ;;  %v5890_v44 = vsel %vm948_vm3, %v14090_v46, -inf  ;;  %v14096_v31 = vmul.f32 0.5, %v5591_v23 }
 0xf8d   : > { %5891 = vmax.xlane.f32.xlu1 %v5890_v44  ;;  %v5594_v35 = vpop.f32.mrb[166].mxu0 }
 0xf8e   : > { %v14098_v47 = vmul.f32 0.5, %v5594_v35  ;;  %v10547_v49 = vpop.f32.mrb[167].mxu0  ;;  %v5881_v35 = vsel %vm948_vm3, %v14096_v31, -inf }
 0xf8f   : > { %v5744_v17 = vpop.f32.mrb[184].mxu1  ;;  %5888 = vmax.xlane.f32.xlu0 %v5887_v25 }
 0xf90   : > { %v10564_v53 = vpop.f32.mrb[185].mxu1  ;;  %v5884_v16 = vsel %vm948_vm3, %v14098_v47, -inf  ;;  %v14104_v9 = vmul.f32 0.5, %v5744_v17 }
 0xf91   : > { %v5747_v41 = vpop.f32.mrb[186].mxu1  ;;  %5885 = vmax.xlane.f32.xlu1 %v5884_v16 }
 0xf92   : > { %v14106_v44 = vmul.f32 0.5, %v5747_v41  ;;  %v10565_v23 = vpop.f32.mrb[187].mxu1  ;;  %v5899_v16 = vsel %vm948_vm3, %v14104_v9, -inf }
 0xf93   : > { %5882 = vmax.xlane.f32.xlu0 %v5881_v35  ;;  %v5693_v49 = vpop.f32.mrb[168].mxu0 }
 0xf94   : > { %v10558_v8 = vpop.f32.mrb[169].mxu0  ;;  %v5902_v25 = vsel %vm948_vm3, %v14106_v44, -inf  ;;  %v14112_v15 = vmul.f32 0.5, %v5693_v49 }
 0xf95   : > { %5903 = vmax.xlane.f32.xlu1 %v5902_v25  ;;  %v5696_v53 = vpop.f32.mrb[170].mxu0 }
 0xf96   : > { %v14114_v56 = vmul.f32 0.5, %v5696_v53  ;;  %v10559_v17 = vpop.f32.mrb[171].mxu0  ;;  %v5893_v49 = vsel %vm948_vm3, %v14112_v15, -inf }
 0xf97   : > { %v5846_v41 = vpop.f32.mrb[188].mxu1  ;;  %5900 = vmax.xlane.f32.xlu0 %v5899_v16 }
 0xf98   : > { %v10576_v23 = vpop.f32.mrb[189].mxu1  ;;  %v5896_v35 = vsel %vm948_vm3, %v14114_v56, -inf  ;;  %v14120_v54 = vmul.f32 0.5, %v5846_v41 }
 0xf99   : > { %v5849_v8 = vpop.f32.mrb[190].mxu1  ;;  %5897 = vmax.xlane.f32.xlu1 %v5896_v35 }
 0xf9a   : > { %v10577_v25 = vpop.f32.mrb[191].mxu1  ;;  %v5911_v16 = vsel %vm948_vm3, %v14120_v54, -inf }
 0xf9b   : > { %5894 = vmax.xlane.f32.xlu0 %v5893_v49  ;;  %v5795_v53 = vpop.f32.mrb[172].mxu0 }
 0xf9c   : > { %v10570_v17 = vpop.f32.mrb[173].mxu0  ;;  %v14124_v60 = vmul.f32 0.5, %v5795_v53 }
 0xf9d   : > { %v5798_v50 = vpop.f32.mrb[174].mxu0 }
 0xf9e   : > { %v10571_v0 = vpop.f32.mrb[175].mxu0  ;;  %v5905_v23 = vsel %vm948_vm3, %v14124_v60, -inf  ;;  %v14139_v41 = vmul.f32 0.5, %v5798_v50 }
 0xf9f   : > { %5912 = vmax.xlane.f32.xlu0 %v5911_v16  ;;  %v14137_v0 = vmul.f32 0.5, %v5849_v8 }
 0xfa0   : > { %v5908_v25 = vsel %vm948_vm3, %v14139_v41, -inf }
 0xfa1   : > { %v5914_v35 = vsel %vm948_vm3, %v14137_v0, -inf }
 0xfa3   : > { %5906 = vmax.xlane.f32.xlu0 %v5905_v23 }
 0xfaa   : > { %6100 = vrot.lane.b32.xlu1 %v12349_v12, %s12021_s17 }
 0xfae   : > { %6147 = vrot.lane.b32.xlu1 %v12357_v22, %s12021_s17 }
 0xfb2   : > { %6194 = vrot.lane.b32.xlu1 %v12355_v20, %s12021_s17 }
 0xfb6   : > { %6288 = vrot.lane.b32.xlu1 %v12361_v28, %s12021_s17 }
 0xfb9   : > { %6053 = vrot.lane.b32.xlu0 %v12351_v14, %s12021_s17 }
 0xfbd   : > { %6241 = vrot.lane.b32.xlu0 %v12363_v30, %s12021_s17 }
 0xfc1   : > { %6335 = vrot.lane.b32.xlu0 %v12369_v40, %s12021_s17 }
 0xfda   : > { %5915 = vmax.xlane.f32.xlu1 %v5914_v35 }
 0xfde   : > { %5909 = vmax.xlane.f32.xlu1 %v5908_v25 }
 0xfef   : > { %6382 = vrot.lane.b32.xlu1 %v12367_v36, %s12021_s17  ;;  %s12034_s17 = smov 28  }
0x1010   : > { %v5877_v49 = vpop.xlane.xlu0 %5876 }
0x1011   : > { %v5919_v53 = vsub.f32 %v14074_v39, %v5877_v49 }
0x1013   : > { %v5937_v17 = vmul.f32 1.442695, %v5919_v53 }
0x1014   : > { %v5871_v16 = vpop.xlane.xlu0 %5870 }
0x1015   : > { %11550 = vpow2.f32 %v5937_v17  ;;  %v5917_v8 = vsub.f32 %v14078_v5, %v5871_v16 }
0x1016   : > { %v5874_v50 = vpop.xlane.xlu1 %5873 }
0x1017   : > { %v5933_v23 = vmul.f32 1.442695, %v5917_v8  ;;  %v5918_v38 = vsub.f32 %v14082_v4, %v5874_v50 }
0x1018   : > { %v5880_v51 = vpop.xlane.xlu0 %5879 }
0x1019   : > { %11552 = vpow2.f32 %v5933_v23  ;;  %v5920_v35 = vsub.f32 %v14080_v10, %v5880_v51  ;;  %v5935_v25 = vmul.f32 1.442695, %v5918_v38 }
0x101a   : > { %v5892_v26 = vpop.xlane.xlu1 %5891 }
0x101b   : > { %v5939_v61 = vmul.f32 1.442695, %v5920_v35  ;;  %v5924_v33 = vsub.f32 %v14090_v46, %v5892_v26 }
0x101c   : > { %v5889_v24 = vpop.xlane.xlu0 %5888 }
0x101d   : > { %11554 = vpow2.f32 %v5939_v61  ;;  %v5923_v39 = vsub.f32 %v14088_v42, %v5889_v24  ;;  %v5947_v5 = vmul.f32 1.442695, %v5924_v33 }
0x101e   : > { %v5886_v49 = vpop.xlane.xlu1 %5885  ;;  %11556 = vpow2.f32 %v5935_v25 }
0x101f   : > { %v14152_v53 = vpop.eup %11550  ;;  %v5945_v17 = vmul.f32 1.442695, %v5923_v39  ;;  %v5922_v4 = vsub.f32 %v14098_v47, %v5886_v49 }
0x1020   : > { %v5883_v16 = vpop.xlane.xlu0 %5882  ;;  %v5971_v51 = vsel %vm948_vm3, %v14152_v53, 0.0 }
0x1021   : > { %11558 = vpow2.f32 %v5945_v17  ;;  %v5921_v38 = vsub.f32 %v14096_v31, %v5883_v16  ;;  %5972 = vadd.xlane.f32.xlu0 %v5971_v51  ;;  %v5943_v10 = vmul.f32 1.442695, %v5922_v4 }
0x1022   : > { %v5904_v26 = vpop.xlane.xlu1 %5903  ;;  %11560 = vpow2.f32 %v5947_v5 }
0x1023   : > { %v14158_v61 = vpop.eup %11552  ;;  %v5941_v24 = vmul.f32 1.442695, %v5921_v38  ;;  %v5928_v42 = vsub.f32 %v14106_v44, %v5904_v26 }
0x1024   : > { %v5901_v33 = vpop.xlane.xlu0 %5900  ;;  %v5965_v47 = vsel %vm948_vm3, %v14158_v61, 0.0 }
0x1025   : > { %11562 = vpow2.f32 %v5941_v24  ;;  %v5927_v46 = vsub.f32 %v14104_v9, %v5901_v33  ;;  %5966 = vadd.xlane.f32.xlu0 %v5965_v47  ;;  %v5955_v23 = vmul.f32 1.442695, %v5928_v42 }
0x1026   : > { %v5898_v8 = vpop.xlane.xlu1 %5897  ;;  %11564 = vpow2.f32 %v5943_v10 }
0x1027   : > { %v14164_v50 = vpop.eup %11554  ;;  %v5953_v31 = vmul.f32 1.442695, %v5927_v46  ;;  %v5926_v35 = vsub.f32 %v14114_v56, %v5898_v8 }
0x1028   : > { %v5895_v25 = vpop.xlane.xlu0 %5894  ;;  %v5974_v44 = vsel %vm948_vm3, %v14164_v50, 0.0  ;;  %v14169_v39 = vpop.eup %11556 }
0x1029   : > { %11566 = vpow2.f32 %v5953_v31  ;;  %v5925_v49 = vsub.f32 %v14112_v15, %v5895_v25  ;;  %5975 = vadd.xlane.f32.xlu1 %v5974_v44  ;;  %v5951_v4 = vmul.f32 1.442695, %v5926_v35  ;;  %v5968_v51 = vsel %vm948_vm3, %v14169_v39, 0.0 }
0x102a   : > { %v6101_v9 = vpop.permute.xlu1 %6100  ;;  %11568 = vpow2.f32 %v5955_v23 }
0x102b   : > { %v14172_v5 = vpop.eup %11558  ;;  %v5949_v17 = vmul.f32 1.442695, %v5925_v49  ;;  %10585 = vmatpush3.bf16.msra.mxu1 %v6101_v9 }
0x102c   : > { %v5913_v16 = vpop.xlane.xlu0 %5912  ;;  %v5983_v56 = vsel %vm948_vm3, %v14172_v5, 0.0  ;;  %10596 = vmatprep.subr.bf16.mxu1 %v15912_v59  ;;  %v14179_v38 = vpop.eup %11560 }
0x102d   : > { %11570 = vpow2.f32 %v5949_v17  ;;  %v5931_v15 = vsub.f32 %v14120_v54, %v5913_v16  ;;  %5984 = vadd.xlane.f32.xlu0 %v5983_v56  ;;  %5969 = vadd.xlane.f32.xlu1 %v5968_v51  ;;  %v5986_v33 = vsel %vm948_vm3, %v14179_v38, 0.0 }
0x102e   : > { %11572 = vpow2.f32 %v5951_v4 }
0x102f   : > { %v14182_v26 = vpop.eup %11562  ;;  %v5961_v24 = vmul.f32 1.442695, %v5931_v15  ;;  %v14220_v15 = vpop.permute.xlu1 %6147 }
0x1030   : > { %v5907_v10 = vpop.xlane.xlu0 %5906  ;;  %v5977_v42 = vsel %vm948_vm3, %v14182_v26, 0.0  ;;  %v14189_v46 = vpop.eup %11564 }
0x1031   : > { %11574 = vpow2.f32 %v5961_v24  ;;  %v5929_v47 = vsub.f32 %v14124_v60, %v5907_v10  ;;  %5978 = vadd.xlane.f32.xlu0 %v5977_v42  ;;  %5987 = vadd.xlane.f32.xlu1 %v5986_v33  ;;  %v5980_v35 = vsel %vm948_vm3, %v14189_v46, 0.0 }
0x1033   : > { %v14191_v54 = vpop.eup %11566  ;;  %v5957_v8 = vmul.f32 1.442695, %v5929_v47  ;;  %v6195_v24 = vpop.permute.xlu1 %6194 }
0x1034   : > { %v6054_v31 = vpop.permute.xlu0 %6053  ;;  %v5995_v23 = vsel %vm948_vm3, %v14191_v54, 0.0  ;;  %v14197_v25 = vpop.eup %11568 }
0x1035   : > { %11576 = vpow2.f32 %v5957_v8  ;;  %5996 = vadd.xlane.f32.xlu0 %v5995_v23  ;;  %10579 = vmatpush3.bf16.msra.mxu0 %v6054_v31  ;;  %v5998_v49 = vsel %vm948_vm3, %v14197_v25, 0.0 }
0x1036   : > { %5981 = vadd.xlane.f32.xlu1 %v5980_v35  ;;  %10590 = vmatprep.subr.bf16.mxu0 %v15912_v59 }
0x1037   : > { %v14200_v60 = vpop.eup %11570  ;;  %v14228_v10 = vpop.permute.xlu1 %6288 }
0x1038   : > { %v5989_v44 = vsel %vm948_vm3, %v14200_v60, 0.0  ;;  %v14206_v9 = vpop.eup %11572 }
0x1039   : > { %5990 = vadd.xlane.f32.xlu0 %v5989_v44  ;;  %v5992_v16 = vsel %vm948_vm3, %v14206_v9, 0.0 }
0x103a   : > { %5999 = vadd.xlane.f32.xlu1 %v5998_v49 }
0x103b   : > { %v14208_v17 = vpop.eup %11574 }
0x103c   : > { %v6007_v4 = vsel %vm948_vm3, %v14208_v17, 0.0 }
0x103d   : > { %6008 = vadd.xlane.f32.xlu0 %v6007_v4 }
0x103e   : > { %5993 = vadd.xlane.f32.xlu1 %v5992_v16 }
0x103f   : > { %v14214_v56 = vpop.eup %11576 }
0x1040   : > { %v6001_v51 = vsel %vm948_vm3, %v14214_v56, 0.0 }
0x1041   : > { %6002 = vadd.xlane.f32.xlu0 %v6001_v51 }
0x104f   : > { %6482 = vrot.lane.b32.xlu1 %v12349_v12, %s12022_s20 }
0x1057   : > { %6431 = vrot.lane.b32.xlu0 %v12351_v14, %s12022_s20 }
0x105b   : > { %6429 = vrot.lane.b32.xlu0 %v12351_v14, %s12023_s15 }
0x105f   : > { %6480 = vrot.lane.b32.xlu0 %v12349_v12, %s12023_s15 }
0x1063   : > { %6531 = vrot.lane.b32.xlu0 %v12357_v22, %s12023_s15 }
0x1067   : > { %v5916_v42 = vpop.xlane.xlu1 %5915  ;;  %6582 = vrot.lane.b32.xlu0 %v12355_v20, %s12023_s15 }
0x1068   : > { %v5932_v33 = vsub.f32 %v14137_v0, %v5916_v42 }
0x106a   : > { %v5963_v47 = vmul.f32 1.442695, %v5932_v33 }
0x106b   : > { %6633 = vrot.lane.b32.xlu0 %v12363_v30, %s12023_s15  ;;  %v5910_v8 = vpop.xlane.xlu1 %5909 }
0x106c   : > { %11578 = vpow2.f32 %v5963_v47  ;;  %v5930_v31 = vsub.f32 %v14139_v41, %v5910_v8  ;;  %v14264_v41 = vpop.permute.xlu0 %6241 }
0x106e   : > { %v5959_v23 = vmul.f32 1.442695, %v5930_v31 }
0x106f   : > { %6684 = vrot.lane.b32.xlu0 %v12361_v28, %s12023_s15  ;;  %v14268_v51 = vpop.permute.xlu1 %6382 }
0x1070   : > { %11580 = vpow2.f32 %v5959_v23  ;;  %v14266_v4 = vpop.permute.xlu0 %6335 }
0x1073   : > { %6735 = vrot.lane.b32.xlu0 %v12369_v40, %s12023_s15 }
0x1076   : > { %v14242_v35 = vpop.eup %11578 }
0x1077   : > { %v6010_v0 = vsel %vm948_vm3, %v14242_v35, 0.0 }
0x1078   : > { %6011 = vadd.xlane.f32.xlu1 %v6010_v0 }
0x107a   : > { %v14246_v44 = vpop.eup %11580 }
0x107b   : > { %v6004_v49 = vsel %vm948_vm3, %v14246_v44, 0.0 }
0x107c   : > { %6005 = vadd.xlane.f32.xlu1 %v6004_v49 }
0x108d   : > { %6533 = vrot.lane.b32.xlu1 %v12357_v22, %s12022_s20 }
0x1091   : > { %6584 = vrot.lane.b32.xlu1 %v12355_v20, %s12022_s20 }
0x1095   : > { %6635 = vrot.lane.b32.xlu1 %v12363_v30, %s12022_s20 }
0x1099   : > { %6686 = vrot.lane.b32.xlu1 %v12361_v28, %s12022_s20 }
0x109d   : > { %6737 = vrot.lane.b32.xlu1 %v12369_v40, %s12022_s20 }
0x10a1   : > { %6788 = vrot.lane.b32.xlu1 %v12367_v36, %s12022_s20 }
0x10a5   : > { %6786 = vrot.lane.b32.xlu1 %v12367_v36, %s12023_s15 }
0x10ae   : > { %v5973_v16 = vpop.xlane.xlu0 %5972 }
0x10af   : > { %11582 = vrcp.f32 %v5973_v16 }
0x10b2   : > { %v5967_v42 = vpop.xlane.xlu0 %5966 }
0x10b6   : > { %v5976_v33 = vpop.xlane.xlu1 %5975 }
0x10b7   : > { %11584 = vrcp.f32 %v5976_v33 }
0x10b8   : > { %11586 = vrcp.f32 %v5967_v42 }
0x10b9   : > { %v11583_v0 = vpop.eup %11582 }
0x10ba   : > { %v5985_v47 = vpop.xlane.xlu0 %5984  ;;  %v5970_v8 = vpop.xlane.xlu1 %5969  ;;  %v6031_v55 = vmul.f32 %v11583_v0, %v14152_v53 }
0x10bb   : > { %11588 = vrcp.f32 %v5970_v8 }
0x10bc   : > { %11590 = vrcp.f32 %v5985_v47 }
0x10be   : > { %v5979_v31 = vpop.xlane.xlu0 %5978  ;;  %v5988_v23 = vpop.xlane.xlu1 %5987 }
0x10bf   : > { %11592 = vrcp.f32 %v5988_v23 }
0x10c0   : > { %11594 = vrcp.f32 %v5979_v31 }
0x10c1   : > { %v11585_v49 = vpop.eup %11584 }
0x10c2   : > { %v6032_v6 = vmul.f32 %v11585_v49, %v14164_v50  ;;  %v5997_v3 = vpop.xlane.xlu0 %5996  ;;  %v11587_v57 = vpop.eup %11586 }
0x10c3   : > { %v5982_v16 = vpop.xlane.xlu1 %5981  ;;  %v6029_v47 = vmul.f32 %v11587_v57, %v14158_v61 }
0x10c4   : > { %11596 = vrcp.f32 %v5982_v16  ;;  %v6046_v33 = vpack.c.bf16 %v6032_v6, %v6031_v55 }
0x10c5   : > { %v11589_v42 = vpop.eup %11588  ;;  %11598 = vrcp.f32 %v5997_v3 }
0x10c6   : > { %10587 = vmatmul.mubr.msk.bf16.vlgmr.msra.gmra.mrb[192].mxu1 %vm948_vm3, %v6046_v33  ;;  %v6030_v8 = vmul.f32 %v11589_v42, %v14169_v39  ;;  %v5991_v23 = vpop.xlane.xlu0 %5990  ;;  %v11591_v53 = vpop.eup %11590 }
0x10c7   : > { %10597 = vmatpush3.bf16.msra.mxu1 %v6195_v24  ;;  %v6000_v13 = vpop.xlane.xlu1 %5999  ;;  %10598 = vmatprep.mubr.msk.bf16.mxu1 %vm12004_vm1, %v15912_v59  ;;  %v6035_v3 = vmul.f32 %v11591_v53, %v14172_v5 }
0x10c8   : > { %11600 = vrcp.f32 %v6000_v13  ;;  %10608 = vmatprep.subr.bf16.mxu1 %v15912_v59  ;;  %v6045_v50 = vpack.c.bf16 %v6030_v8, %v6029_v47 }
0x10c9   : > { %v11593_v6 = vpop.eup %11592  ;;  %11602 = vrcp.f32 %v5991_v23 }
0x10ca   : > { %v6036_v55 = vmul.f32 %v11593_v6, %v14179_v38  ;;  %10581 = vmatmul.mubr.msk.bf16.vlgmr.msra.gmra.mrb[176].mxu0 %vm948_vm3, %v6045_v50  ;;  %v11595_v61 = vpop.eup %11594 }
0x10cb   : > { %v5994_v57 = vpop.xlane.xlu1 %5993  ;;  %10591 = vmatpush3.bf16.msra.mxu0 %v14220_v15  ;;  %10592 = vmatprep.mubr.msk.bf16.mxu0 %vm12004_vm1, %v15912_v59  ;;  %v6033_v24 = vmul.f32 %v11595_v61, %v14182_v26 }
0x10cc   : > { %11604 = vrcp.f32 %v5994_v57  ;;  %v6048_v13 = vpack.c.bf16 %v6036_v55, %v6035_v3  ;;  %10602 = vmatprep.subr.bf16.mxu0 %v15912_v59 }
0x10ce   : > { %v11597_v39 = vpop.eup %11596  ;;  %10599 = vmatmul.mubr.msk.bf16.vlgmr.msra.gmra.mrb[196].mxu1 %vm948_vm3, %v6048_v13 }
0x10cf   : > { %v6034_v5 = vmul.f32 %v11597_v39, %v14189_v46  ;;  %v11599_v38 = vpop.eup %11598  ;;  %10609 = vmatpush3.bf16.msra.mxu1 %v14228_v10  ;;  %10610 = vmatprep.mubr.msk.bf16.mxu1 %vm12004_vm1, %v15912_v59 }
0x10d0   : > { %10620 = vmatprep.subr.bf16.mxu1 %v15912_v59  ;;  %v6039_v0 = vmul.f32 %v11599_v38, %v14191_v54 }
0x10d1   : > { %v6047_v15 = vpack.c.bf16 %v6034_v5, %v6033_v24 }
0x10d2   : > { %v11601_v31 = vpop.eup %11600 }
0x10d3   : > { %v6040_v49 = vmul.f32 %v11601_v31, %v14197_v25  ;;  %10593 = vmatmul.mubr.msk.bf16.vlgmr.msra.gmra.mrb[180].mxu0 %vm948_vm3, %v6047_v15  ;;  %v11603_v26 = vpop.eup %11602  ;;  %v6009_v25 = vpop.xlane.xlu0 %6008 }
0x10d4   : > { %10603 = vmatpush3.bf16.msra.mxu0 %v14264_v41  ;;  %10604 = vmatprep.mubr.msk.bf16.mxu0 %vm12004_vm1, %v15912_v59  ;;  %v6037_v16 = vmul.f32 %v11603_v26, %v14200_v60  ;;  %v6483_v60 = vpop.permute.xlu1 %6482  ;;  %11606 = vrcp.f32 %v6009_v25 }
0x10d5   : > { %v6050_v46 = vpack.c.bf16 %v6040_v49, %v6039_v0  ;;  %10614 = vmatprep.subr.bf16.mxu0 %v15912_v59  ;;  %v6488_v39 = vsel %vm534_vm2, %v6483_v60, 0 }
0x10d6   : > { %v11605_v10 = vpop.eup %11604 }
0x10d7   : > { %v6038_v33 = vmul.f32 %v11605_v10, %v14206_v9  ;;  %10611 = vmatmul.mubr.msk.bf16.vlgmr.msra.gmra.mrb[200].mxu1 %vm948_vm3, %v6050_v46  ;;  %v6003_v9 = vpop.xlane.xlu0 %6002 }
0x10d8   : > { %10621 = vmatpush3.bf16.msra.mxu1 %v14268_v51  ;;  %10622 = vmatprep.mubr.msk.bf16.mxu1 %vm12004_vm1, %v15912_v59 }
0x10d9   : > { %v6049_v54 = vpack.c.bf16 %v6038_v33, %v6037_v16  ;;  %10632 = vmatprep.subr.bf16.mxu1 %v15912_v59 }
0x10db   : > { %10605 = vmatmul.mubr.msk.bf16.vlgmr.msra.gmra.mrb[184].mxu0 %vm948_vm3, %v6049_v54  ;;  %v6432_v51 = vpop.permute.xlu0 %6431 }
0x10dc   : > { %10615 = vmatpush3.bf16.msra.mxu0 %v14266_v4  ;;  %10616 = vmatprep.mubr.msk.bf16.mxu0 %vm12004_vm1, %v15912_v59  ;;  %v6437_v5 = vsel %vm534_vm2, %v6432_v51, 0 }
0x10dd   : > { %10626 = vmatprep.subr.bf16.mxu0 %v15912_v59 }
0x10de   : > { %v11607_v8 = vpop.eup %11606 }
0x10df   : > { %v6430_v23 = vpop.permute.xlu0 %6429  ;;  %v6043_v4 = vmul.f32 %v11607_v8, %v14208_v17 }
0x10e3   : > { %v6481_v61 = vpop.permute.xlu0 %6480 }
0x10e7   : > { %v6532_v38 = vpop.permute.xlu0 %6531 }
0x10eb   : > { %v6583_v15 = vpop.permute.xlu0 %6582 }
0x10ef   : > { %v6634_v26 = vpop.permute.xlu0 %6633 }
0x10f3   : > { %v6685_v16 = vpop.permute.xlu0 %6684 }
0x10f7   : > { %v6736_v60 = vpop.permute.xlu0 %6735 }
0x1105   : > { %v6012_v41 = vpop.xlane.xlu1 %6011 }
0x1106   : > { %11608 = vrcp.f32 %v6012_v41 }
0x1107   : > { %11610 = vrcp.f32 %v6003_v9 }
0x1109   : > { %v6006_v42 = vpop.xlane.xlu1 %6005 }
0x110a   : > { %11612 = vrcp.f32 %v6006_v42 }
0x110d   : > { %v6534_v47 = vpop.permute.xlu1 %6533 }
0x110e   : > { %v6539_v31 = vsel %vm534_vm2, %v6534_v47, 0 }
0x1110   : > { %v11609_v53 = vpop.eup %11608 }
0x1111   : > { %v6044_v50 = vmul.f32 %v11609_v53, %v14242_v35  ;;  %v11611_v6 = vpop.eup %11610  ;;  %v6585_v3 = vpop.permute.xlu1 %6584 }
0x1112   : > { %v6041_v13 = vmul.f32 %v11611_v6, %v14214_v56  ;;  %v6590_v56 = vsel %vm534_vm2, %v6585_v3, 0 }
0x1113   : > { %v6052_v55 = vpack.c.bf16 %v6044_v50, %v6043_v4 }
0x1114   : > { %v11613_v57 = vpop.eup %11612 }
0x1115   : > { %v6042_v24 = vmul.f32 %v11613_v57, %v14246_v44  ;;  %10623 = vmatmul.mubr.msk.bf16.vlgmr.msra.gmra.mrb[204].mxu1 %vm948_vm3, %v6052_v55  ;;  %v6636_v35 = vpop.permute.xlu1 %6635 }
0x1116   : > { %10633 = vmatpush3.bf16.xpose.msra.mxu1 %v6488_v39  ;;  %10634 = vmatprep.mubr.msk.bf16.mxu1 %vm12004_vm1, %v15912_v59  ;;  %v6641_v46 = vsel %vm534_vm2, %v6636_v35, 0 }
0x1117   : > { %v6051_v17 = vpack.c.bf16 %v6042_v24, %v6041_v13  ;;  %10644 = vmatprep.subr.bf16.mxu1 %v15912_v59 }
0x1119   : > { %10617 = vmatmul.mubr.msk.bf16.vlgmr.msra.gmra.mrb[188].mxu0 %vm948_vm3, %v6051_v17  ;;  %v6687_v44 = vpop.permute.xlu1 %6686 }
0x111a   : > { %10627 = vmatpush3.bf16.xpose.msra.mxu0 %v6437_v5  ;;  %10628 = vmatprep.mubr.msk.bf16.mxu0 %vm12004_vm1, %v15912_v59  ;;  %v6692_v49 = vsel %vm534_vm2, %v6687_v44, 0 }
0x111b   : > { %10638 = vmatprep.subr.bf16.mxu0 %v15912_v59 }
0x111d   : > { %10635 = vmatmul.mubr.msk.bf16.vlgmr.msra.gmra.mrb[208].mxu1 %vm534_vm2, %v6481_v61  ;;  %v6738_v0 = vpop.permute.xlu1 %6737 }
0x111e   : > { %10645 = vmatpush3.bf16.xpose.msra.mxu1 %v6590_v56  ;;  %10646 = vmatprep.mubr.msk.bf16.mxu1 %vm12004_vm1, %v15912_v59  ;;  %v6743_v54 = vsel %vm534_vm2, %v6738_v0, 0 }
0x111f   : > { %10656 = vmatprep.subr.bf16.mxu1 %v15912_v59 }
0x1121   : > { %10629 = vmatmul.mubr.msk.bf16.vlgmr.msra.gmra.mrb[192].mxu0 %vm534_vm2, %v6430_v23  ;;  %v6789_v10 = vpop.permute.xlu1 %6788 }
0x1122   : > { %10639 = vmatpush3.bf16.xpose.msra.mxu0 %v6539_v31  ;;  %10640 = vmatprep.mubr.msk.bf16.mxu0 %vm12004_vm1, %v15912_v59  ;;  %v6794_v33 = vsel %vm534_vm2, %v6789_v10, 0 }
0x1123   : > { %10650 = vmatprep.subr.bf16.mxu0 %v15912_v59 }
0x1125   : > { %10647 = vmatmul.mubr.msk.bf16.vlgmr.msra.gmra.mrb[212].mxu1 %vm534_vm2, %v6583_v15  ;;  %v6787_v25 = vpop.permute.xlu1 %6786 }
0x1126   : > { %10657 = vmatpush3.bf16.xpose.msra.mxu1 %v6692_v49  ;;  %10658 = vmatprep.mubr.msk.bf16.mxu1 %vm12004_vm1, %v15912_v59 }
0x1127   : > { %10668 = vmatprep.subr.bf16.mxu1 %v15912_v59 }
0x1129   : > { %10641 = vmatmul.mubr.msk.bf16.vlgmr.msra.gmra.mrb[196].mxu0 %vm534_vm2, %v6532_v38 }
0x112a   : > { %10651 = vmatpush3.bf16.xpose.msra.mxu0 %v6641_v46  ;;  %10652 = vmatprep.mubr.msk.bf16.mxu0 %vm12004_vm1, %v15912_v59 }
0x112b   : > { %10662 = vmatprep.subr.bf16.mxu0 %v15912_v59 }
0x112d   : > { %10659 = vmatmul.mubr.msk.bf16.vlgmr.msra.gmra.mrb[216].mxu1 %vm534_vm2, %v6685_v16 }
0x112e   : > { %10669 = vmatpush3.bf16.xpose.msra.mxu1 %v6794_v33  ;;  %10670 = vmatprep.mubr.msk.bf16.mxu1 %vm12004_vm1, %v15912_v59 }
0x112f   : > { %10680 = vmatprep.subr.bf16.mxu1 %v15912_v59 }
0x1131   : > { %10653 = vmatmul.mubr.msk.bf16.vlgmr.msra.gmra.mrb[200].mxu0 %vm534_vm2, %v6634_v26 }
0x1132   : > { %10663 = vmatpush3.bf16.xpose.msra.mxu0 %v6743_v54  ;;  %10664 = vmatprep.mubr.msk.bf16.mxu0 %vm12004_vm1, %v15912_v59 }
0x1133   : > { %10674 = vmatprep.subr.bf16.mxu0 %v15912_v59 }
0x1135   : > { %10671 = vmatmul.mubr.msk.bf16.vlgmr.msra.gmra.mrb[220].mxu1 %vm534_vm2, %v6787_v25 }
0x1136   : > { %10682 = vmatprep.mubr.msk.bf16.mxu1 %vm12004_vm1, %v15912_v59 }
0x1139   : > { %10665 = vmatmul.mubr.msk.bf16.vlgmr.msra.gmra.mrb[204].mxu0 %vm534_vm2, %v6736_v60 }
0x113a   : > { %10676 = vmatprep.mubr.msk.bf16.mxu0 %vm12004_vm1, %v15912_v59 }
0x1199   : > { %v14361_v9 = vpop.f32.mrb[192].mxu1 }
0x119a   : > { %15961 = vst [vmem:[#allocation94_spill] sm:$0xff] %v14361_v9  ;;  %v10588_v41 = vpop.f32.mrb[193].mxu1 }
0x119b   : > { %v14363_v51 = vpop.f32.mrb[194].mxu1 }
0x119c   : > { %15962 = vst [vmem:[#allocation95_spill] sm:$0xff] %v14363_v51  ;;  %v10589_v47 = vpop.f32.mrb[195].mxu1 }
0x119d   : > { %v14367_v8 = vpop.f32.mrb[176].mxu0 }
0x119e   : > { %v10582_v23 = vpop.f32.mrb[177].mxu0 }
0x119f   : > { %v14369_v53 = vpop.f32.mrb[178].mxu0 }
0x11a0   : > { %v10583_v50 = vpop.f32.mrb[179].mxu0 }
0x11a1   : > { %v14373_v6 = vpop.f32.mrb[196].mxu1 }
0x11a2   : > { %15963 = vst [vmem:[#allocation96_spill] sm:$0xff] %v14373_v6  ;;  %v10600_v3 = vpop.f32.mrb[197].mxu1 }
0x11a3   : > { %v14375_v55 = vpop.f32.mrb[198].mxu1 }
0x11a4   : > { %15964 = vst [vmem:[#allocation97_spill] sm:$0xff] %v14375_v55  ;;  %v10601_v61 = vpop.f32.mrb[199].mxu1 }
0x11a6   : > { %v14379_v13 = vpop.f32.mrb[180].mxu0 }
0x11a7   : > { %v10594_v39 = vpop.f32.mrb[181].mxu0 }
0x11a8   : > { %v14381_v24 = vpop.f32.mrb[182].mxu0 }
0x11a9   : > { %v10595_v35 = vpop.f32.mrb[183].mxu0 }
0x11aa   : > { %v14385_v5 = vpop.f32.mrb[200].mxu1 }
0x11ab   : > { %15965 = vst [vmem:[#allocation98_spill] sm:$0xff] %v14385_v5  ;;  %v10612_v38 = vpop.f32.mrb[201].mxu1 }
0x11ac   : > { %v14387_v56 = vpop.f32.mrb[202].mxu1 }
0x11ad   : > { %15966 = vst [vmem:[#allocation99_spill] sm:$0xff] %v14387_v56  ;;  %v10613_v15 = vpop.f32.mrb[203].mxu1 }
0x11ae   : > { %v14391_v31 = vpop.f32.mrb[184].mxu0 }
0x11af   : > { %15967 = vst [vmem:[#allocation100_spill] sm:$0xff] %v14391_v31  ;;  %v10606_v0 = vpop.f32.mrb[185].mxu0 }
0x11b0   : > { %v14393_v49 = vpop.f32.mrb[186].mxu0 }
0x11b1   : > { %15968 = vst [vmem:[#allocation101_spill] sm:$0xff] %v14393_v49  ;;  %v10607_v46 = vpop.f32.mrb[187].mxu0 }
0x11e8   : > { %v14397_v10 = vpop.f32.mrb[204].mxu1 }
0x11e9   : > { %15969 = vst [vmem:[#allocation102_spill] sm:$0xff] %v14397_v10  ;;  %v10624_v16 = vpop.f32.mrb[205].mxu1 }
0x11ea   : > { %v14399_v33 = vpop.f32.mrb[206].mxu1 }
0x11eb   : > { %15970 = vst [vmem:[#allocation103_spill] sm:$0xff] %v14399_v33  ;;  %v10625_v25 = vpop.f32.mrb[207].mxu1 }
0x11ec   : > { %v14403_v60 = vpop.f32.mrb[188].mxu0 }
0x11ed   : > { %15971 = vst [vmem:[#allocation104_spill] sm:$0xff] %v14403_v60  ;;  %v10618_v41 = vpop.f32.mrb[189].mxu0 }
0x11ee   : > { %v14405_v47 = vpop.f32.mrb[190].mxu0 }
0x11ef   : > { %15972 = vst [vmem:[#allocation105_spill] sm:$0xff] %v14405_v47  ;;  %v10619_v50 = vpop.f32.mrb[191].mxu0 }
0x11f0   : > { %v6524_v3 = vpop.f32.mrb[208].mxu1 }
0x11f1   : > { %v14409_v61 = vmul.f32 0.5, %v6524_v3  ;;  %v10636_v39 = vpop.f32.mrb[209].mxu1 }
0x11f2   : > { %v6527_v35 = vpop.f32.mrb[210].mxu1 }
0x11f3   : > { %v10637_v38 = vpop.f32.mrb[211].mxu1  ;;  %v6859_v15 = vsel %vm948_vm3, %v14409_v61, -inf  ;;  %v14415_v41 = vmul.f32 0.5, %v6527_v35 }
0x11f4   : > { %6860 = vmax.xlane.f32.xlu0 %v6859_v15  ;;  %v6473_v0 = vpop.f32.mrb[192].mxu0 }
0x11f5   : > { %v14413_v46 = vmul.f32 0.5, %v6473_v0  ;;  %v10630_v16 = vpop.f32.mrb[193].mxu0 }
0x11f6   : > { %v6476_v25 = vpop.f32.mrb[194].mxu0 }
0x11f7   : > { %v14417_v54 = vmul.f32 0.5, %v6476_v25  ;;  %v10631_v50 = vpop.f32.mrb[195].mxu0  ;;  %v6853_v3 = vsel %vm948_vm3, %v14413_v46, -inf  ;;  %v6862_v25 = vsel %vm948_vm3, %v14415_v41, -inf }
0x11f8   : > { %v6626_v39 = vpop.f32.mrb[212].mxu1  ;;  %6854 = vmax.xlane.f32.xlu0 %v6853_v3 }
0x11f9   : > { %v10648_v38 = vpop.f32.mrb[213].mxu1  ;;  %v6856_v23 = vsel %vm948_vm3, %v14417_v54, -inf  ;;  %v14423_v0 = vmul.f32 0.5, %v6626_v39 }
0x11fa   : > { %v6629_v15 = vpop.f32.mrb[214].mxu1  ;;  %6857 = vmax.xlane.f32.xlu1 %v6856_v23 }
0x11fb   : > { %v14425_v16 = vmul.f32 0.5, %v6629_v15  ;;  %v10649_v35 = vpop.f32.mrb[215].mxu1  ;;  %v6871_v39 = vsel %vm948_vm3, %v14423_v0, -inf }
0x11fc   : > { %6863 = vmax.xlane.f32.xlu0 %v6862_v25  ;;  %v6575_v50 = vpop.f32.mrb[196].mxu0 }
0x11fd   : > { %v10642_v44 = vpop.f32.mrb[197].mxu0  ;;  %v6874_v3 = vsel %vm948_vm3, %v14425_v16, -inf  ;;  %v14431_v57 = vmul.f32 0.5, %v6575_v50 }
0x11fe   : > { %6875 = vmax.xlane.f32.xlu1 %v6874_v3  ;;  %v6578_v38 = vpop.f32.mrb[198].mxu0 }
0x11ff   : > { %v14433_v42 = vmul.f32 0.5, %v6578_v38  ;;  %v10643_v23 = vpop.f32.mrb[199].mxu0  ;;  %v6865_v38 = vsel %vm948_vm3, %v14431_v57, -inf }
0x1200   : > { %v6728_v15 = vpop.f32.mrb[216].mxu1  ;;  %6872 = vmax.xlane.f32.xlu0 %v6871_v39 }
0x1201   : > { %v10660_v35 = vpop.f32.mrb[217].mxu1  ;;  %v6868_v25 = vsel %vm948_vm3, %v14433_v42, -inf  ;;  %v14439_v26 = vmul.f32 0.5, %v6728_v15 }
0x1202   : > { %v6731_v44 = vpop.f32.mrb[218].mxu1  ;;  %6869 = vmax.xlane.f32.xlu1 %v6868_v25 }
0x1203   : > { %v14441_v3 = vmul.f32 0.5, %v6731_v44  ;;  %v10661_v50 = vpop.f32.mrb[219].mxu1  ;;  %v6883_v25 = vsel %vm948_vm3, %v14439_v26, -inf }
0x1204   : > { %6866 = vmax.xlane.f32.xlu0 %v6865_v38  ;;  %v6677_v23 = vpop.f32.mrb[200].mxu0 }
0x1205   : > { %v10654_v17 = vpop.f32.mrb[201].mxu0  ;;  %v6886_v39 = vsel %vm948_vm3, %v14441_v3, -inf  ;;  %v14447_v4 = vmul.f32 0.5, %v6677_v23 }
0x1206   : > { %6887 = vmax.xlane.f32.xlu1 %v6886_v39  ;;  %v6680_v35 = vpop.f32.mrb[202].mxu0 }
0x1207   : > { %v14449_v60 = vmul.f32 0.5, %v6680_v35  ;;  %v10655_v15 = vpop.f32.mrb[203].mxu0  ;;  %v6877_v23 = vsel %vm948_vm3, %v14447_v4, -inf }
0x1208   : > { %v6830_v44 = vpop.f32.mrb[220].mxu1  ;;  %6884 = vmax.xlane.f32.xlu0 %v6883_v25 }
0x1209   : > { %v10672_v50 = vpop.f32.mrb[221].mxu1  ;;  %v6880_v38 = vsel %vm948_vm3, %v14449_v60, -inf  ;;  %v14455_v47 = vmul.f32 0.5, %v6830_v44 }
0x120a   : > { %v6833_v17 = vpop.f32.mrb[222].mxu1  ;;  %6881 = vmax.xlane.f32.xlu1 %v6880_v38 }
0x120b   : > { %v10673_v39 = vpop.f32.mrb[223].mxu1  ;;  %v6895_v25 = vsel %vm948_vm3, %v14455_v47, -inf }
0x120c   : > { %6878 = vmax.xlane.f32.xlu0 %v6877_v23  ;;  %v6779_v35 = vpop.f32.mrb[204].mxu0 }
0x120d   : > { %v10666_v15 = vpop.f32.mrb[205].mxu0  ;;  %v14459_v33 = vmul.f32 0.5, %v6779_v35 }
0x120e   : > { %v6782_v10 = vpop.f32.mrb[206].mxu0 }
0x120f   : > { %v10667_v5 = vpop.f32.mrb[207].mxu0  ;;  %v6889_v50 = vsel %vm948_vm3, %v14459_v33, -inf  ;;  %v14474_v44 = vmul.f32 0.5, %v6782_v10 }
0x1210   : > { %6896 = vmax.xlane.f32.xlu0 %v6895_v25  ;;  %v14472_v5 = vmul.f32 0.5, %v6833_v17 }
0x1211   : > { %v6892_v39 = vsel %vm948_vm3, %v14474_v44, -inf }
0x1212   : > { %v6898_v38 = vsel %vm948_vm3, %v14472_v5, -inf }
0x1214   : > { %6890 = vmax.xlane.f32.xlu0 %v6889_v50 }
0x121b   : > { %7084 = vrot.lane.b32.xlu1 %v12349_v12, %s12024_s8 }
0x121f   : > { %7131 = vrot.lane.b32.xlu1 %v12357_v22, %s12024_s8 }
0x1223   : > { %7178 = vrot.lane.b32.xlu1 %v12355_v20, %s12024_s8 }
0x1227   : > { %7272 = vrot.lane.b32.xlu1 %v12361_v28, %s12024_s8 }
0x122a   : > { %7037 = vrot.lane.b32.xlu0 %v12351_v14, %s12024_s8 }
0x122e   : > { %7225 = vrot.lane.b32.xlu0 %v12363_v30, %s12024_s8 }
0x1232   : > { %7319 = vrot.lane.b32.xlu0 %v12369_v40, %s12024_s8 }
0x124b   : > { %6899 = vmax.xlane.f32.xlu1 %v6898_v38 }
0x124f   : > { %6893 = vmax.xlane.f32.xlu1 %v6892_v39 }
0x1260   : > { %7366 = vrot.lane.b32.xlu1 %v12367_v36, %s12024_s8 }
0x1281   : > { %v6861_v23 = vpop.xlane.xlu0 %6860 }
0x1282   : > { %v6903_v35 = vsub.f32 %v14409_v61, %v6861_v23 }
0x1284   : > { %v6921_v15 = vmul.f32 1.442695, %v6903_v35 }
0x1285   : > { %v6855_v25 = vpop.xlane.xlu0 %6854 }
0x1286   : > { %11614 = vpow2.f32 %v6921_v15  ;;  %v6901_v17 = vsub.f32 %v14413_v46, %v6855_v25 }
0x1287   : > { %v6858_v10 = vpop.xlane.xlu1 %6857 }
0x1288   : > { %v6917_v50 = vmul.f32 1.442695, %v6901_v17  ;;  %v6902_v56 = vsub.f32 %v14417_v54, %v6858_v10 }
0x1289   : > { %v6864_v6 = vpop.xlane.xlu0 %6863 }
0x128a   : > { %11616 = vpow2.f32 %v6917_v50  ;;  %v6904_v38 = vsub.f32 %v14415_v41, %v6864_v6  ;;  %v6919_v39 = vmul.f32 1.442695, %v6902_v56 }
0x128b   : > { %v6876_v55 = vpop.xlane.xlu1 %6875 }
0x128c   : > { %v6923_v9 = vmul.f32 1.442695, %v6904_v38  ;;  %v6908_v51 = vsub.f32 %v14425_v16, %v6876_v55 }
0x128d   : > { %v6873_v31 = vpop.xlane.xlu0 %6872 }
0x128e   : > { %11618 = vpow2.f32 %v6923_v9  ;;  %v6907_v61 = vsub.f32 %v14423_v0, %v6873_v31  ;;  %v6931_v46 = vmul.f32 1.442695, %v6908_v51 }
0x128f   : > { %v6870_v23 = vpop.xlane.xlu1 %6869  ;;  %11620 = vpow2.f32 %v6919_v39 }
0x1290   : > { %v14487_v35 = vpop.eup %11614  ;;  %v6929_v15 = vmul.f32 1.442695, %v6907_v61  ;;  %v6906_v54 = vsub.f32 %v14433_v42, %v6870_v23 }
0x1291   : > { %v6867_v25 = vpop.xlane.xlu0 %6866  ;;  %v6955_v6 = vsel %vm948_vm3, %v14487_v35, 0.0 }
0x1292   : > { %11622 = vpow2.f32 %v6929_v15  ;;  %v6905_v56 = vsub.f32 %v14431_v57, %v6867_v25  ;;  %6956 = vadd.xlane.f32.xlu0 %v6955_v6  ;;  %v6927_v41 = vmul.f32 1.442695, %v6906_v54 }
0x1293   : > { %v6888_v55 = vpop.xlane.xlu1 %6887  ;;  %11624 = vpow2.f32 %v6931_v46 }
0x1294   : > { %v14493_v9 = vpop.eup %11616  ;;  %v6925_v31 = vmul.f32 1.442695, %v6905_v56  ;;  %v6912_v0 = vsub.f32 %v14441_v3, %v6888_v55 }
0x1295   : > { %v6885_v51 = vpop.xlane.xlu0 %6884  ;;  %v6949_v42 = vsel %vm948_vm3, %v14493_v9, 0.0 }
0x1296   : > { %11626 = vpow2.f32 %v6925_v31  ;;  %v6911_v16 = vsub.f32 %v14439_v26, %v6885_v51  ;;  %6950 = vadd.xlane.f32.xlu0 %v6949_v42  ;;  %v6939_v50 = vmul.f32 1.442695, %v6912_v0 }
0x1297   : > { %v6882_v17 = vpop.xlane.xlu1 %6881  ;;  %11628 = vpow2.f32 %v6927_v41 }
0x1298   : > { %v14499_v10 = vpop.eup %11618  ;;  %v6937_v57 = vmul.f32 1.442695, %v6911_v16  ;;  %v6910_v38 = vsub.f32 %v14449_v60, %v6882_v17 }
0x1299   : > { %v6879_v39 = vpop.xlane.xlu0 %6878  ;;  %v6958_v3 = vsel %vm948_vm3, %v14499_v10, 0.0  ;;  %v14504_v61 = vpop.eup %11620 }
0x129a   : > { %11630 = vpow2.f32 %v6937_v57  ;;  %v6909_v23 = vsub.f32 %v14447_v4, %v6879_v39  ;;  %6959 = vadd.xlane.f32.xlu1 %v6958_v3  ;;  %v6935_v54 = vmul.f32 1.442695, %v6910_v38  ;;  %v6952_v6 = vsel %vm948_vm3, %v14504_v61, 0.0 }
0x129b   : > { %v7085_v26 = vpop.permute.xlu1 %7084  ;;  %11632 = vpow2.f32 %v6939_v50 }
0x129c   : > { %v14507_v46 = vpop.eup %11622  ;;  %v6933_v15 = vmul.f32 1.442695, %v6909_v23  ;;  %10681 = vmatpush3.bf16.msra.mxu1 %v7085_v26 }
0x129d   : > { %v6897_v25 = vpop.xlane.xlu0 %6896  ;;  %v6967_v60 = vsel %vm948_vm3, %v14507_v46, 0.0  ;;  %10692 = vmatprep.subr.bf16.mxu1 %v15912_v59  ;;  %v14514_v56 = vpop.eup %11624 }
0x129e   : > { %11634 = vpow2.f32 %v6933_v15  ;;  %v6915_v4 = vsub.f32 %v14455_v47, %v6897_v25  ;;  %6968 = vadd.xlane.f32.xlu0 %v6967_v60  ;;  %6953 = vadd.xlane.f32.xlu1 %v6952_v6  ;;  %v6970_v51 = vsel %vm948_vm3, %v14514_v56, 0.0 }
0x129f   : > { %11636 = vpow2.f32 %v6935_v54 }
0x12a0   : > { %v14517_v55 = vpop.eup %11626  ;;  %v6945_v31 = vmul.f32 1.442695, %v6915_v4  ;;  %v14555_v4 = vpop.permute.xlu1 %7131 }
0x12a1   : > { %v6891_v41 = vpop.xlane.xlu0 %6890  ;;  %v6961_v0 = vsel %vm948_vm3, %v14517_v55, 0.0  ;;  %v14524_v16 = vpop.eup %11628 }
0x12a2   : > { %11638 = vpow2.f32 %v6945_v31  ;;  %v6913_v42 = vsub.f32 %v14459_v33, %v6891_v41  ;;  %6962 = vadd.xlane.f32.xlu0 %v6961_v0  ;;  %6971 = vadd.xlane.f32.xlu1 %v6970_v51  ;;  %v6964_v38 = vsel %vm948_vm3, %v14524_v16, 0.0 }
0x12a4   : > { %v14526_v47 = vpop.eup %11630  ;;  %v6941_v17 = vmul.f32 1.442695, %v6913_v42  ;;  %v7179_v31 = vpop.permute.xlu1 %7178 }
0x12a5   : > { %v7038_v57 = vpop.permute.xlu0 %7037  ;;  %v6979_v50 = vsel %vm948_vm3, %v14526_v47, 0.0  ;;  %v14532_v39 = vpop.eup %11632 }
0x12a6   : > { %11640 = vpow2.f32 %v6941_v17  ;;  %6980 = vadd.xlane.f32.xlu0 %v6979_v50  ;;  %10675 = vmatpush3.bf16.msra.mxu0 %v7038_v57  ;;  %v6982_v23 = vsel %vm948_vm3, %v14532_v39, 0.0 }
0x12a7   : > { %6965 = vadd.xlane.f32.xlu1 %v6964_v38  ;;  %10686 = vmatprep.subr.bf16.mxu0 %v15912_v59 }
0x12a8   : > { %v14535_v33 = vpop.eup %11634  ;;  %v14563_v41 = vpop.permute.xlu1 %7272 }
0x12a9   : > { %v6973_v3 = vsel %vm948_vm3, %v14535_v33, 0.0  ;;  %v14541_v26 = vpop.eup %11636 }
0x12aa   : > { %6974 = vadd.xlane.f32.xlu0 %v6973_v3  ;;  %v6976_v25 = vsel %vm948_vm3, %v14541_v26, 0.0 }
0x12ab   : > { %6983 = vadd.xlane.f32.xlu1 %v6982_v23 }
0x12ac   : > { %v14543_v15 = vpop.eup %11638 }
0x12ad   : > { %v6991_v54 = vsel %vm948_vm3, %v14543_v15, 0.0 }
0x12ae   : > { %6992 = vadd.xlane.f32.xlu0 %v6991_v54 }
0x12af   : > { %6977 = vadd.xlane.f32.xlu1 %v6976_v25 }
0x12b0   : > { %v14549_v60 = vpop.eup %11640 }
0x12b1   : > { %v6985_v6 = vsel %vm948_vm3, %v14549_v60, 0.0 }
0x12b2   : > { %6986 = vadd.xlane.f32.xlu0 %v6985_v6 }
0x12c0   : > { %7466 = vrot.lane.b32.xlu1 %v12349_v12, %s12025_s18 }
0x12c8   : > { %7415 = vrot.lane.b32.xlu0 %v12351_v14, %s12025_s18 }
0x12cc   : > { %7413 = vrot.lane.b32.xlu0 %v12351_v14, %s12026_s30 }
0x12d0   : > { %7464 = vrot.lane.b32.xlu0 %v12349_v12, %s12026_s30 }
0x12d4   : > { %7515 = vrot.lane.b32.xlu0 %v12357_v22, %s12026_s30 }
0x12d8   : > { %v6900_v0 = vpop.xlane.xlu1 %6899  ;;  %7566 = vrot.lane.b32.xlu0 %v12355_v20, %s12026_s30 }
0x12d9   : > { %v6916_v51 = vsub.f32 %v14472_v5, %v6900_v0 }
0x12db   : > { %v6947_v42 = vmul.f32 1.442695, %v6916_v51 }
0x12dc   : > { %7617 = vrot.lane.b32.xlu0 %v12363_v30, %s12026_s30  ;;  %v6894_v17 = vpop.xlane.xlu1 %6893 }
0x12dd   : > { %11642 = vpow2.f32 %v6947_v42  ;;  %v6914_v57 = vsub.f32 %v14474_v44, %v6894_v17  ;;  %v14599_v44 = vpop.permute.xlu0 %7225 }
0x12df   : > { %v6943_v50 = vmul.f32 1.442695, %v6914_v57 }
0x12e0   : > { %7668 = vrot.lane.b32.xlu0 %v12361_v28, %s12026_s30  ;;  %v14603_v6 = vpop.permute.xlu1 %7366 }
0x12e1   : > { %11644 = vpow2.f32 %v6943_v50  ;;  %v14601_v54 = vpop.permute.xlu0 %7319 }
0x12e4   : > { %7719 = vrot.lane.b32.xlu0 %v12369_v40, %s12026_s30 }
0x12e7   : > { %v14577_v38 = vpop.eup %11642 }
0x12e8   : > { %v6994_v5 = vsel %vm948_vm3, %v14577_v38, 0.0 }
0x12e9   : > { %6995 = vadd.xlane.f32.xlu1 %v6994_v5 }
0x12eb   : > { %v14581_v3 = vpop.eup %11644 }
0x12ec   : > { %v6988_v23 = vsel %vm948_vm3, %v14581_v3, 0.0 }
0x12ed   : > { %6989 = vadd.xlane.f32.xlu1 %v6988_v23 }
0x12fe   : > { %7517 = vrot.lane.b32.xlu1 %v12357_v22, %s12025_s18 }
0x1302   : > { %7568 = vrot.lane.b32.xlu1 %v12355_v20, %s12025_s18 }
0x1306   : > { %7619 = vrot.lane.b32.xlu1 %v12363_v30, %s12025_s18 }
0x130a   : > { %7670 = vrot.lane.b32.xlu1 %v12361_v28, %s12025_s18 }
0x130e   : > { %7721 = vrot.lane.b32.xlu1 %v12369_v40, %s12025_s18 }
0x1312   : > { %7772 = vrot.lane.b32.xlu1 %v12367_v36, %s12025_s18 }
0x1316   : > { %7770 = vrot.lane.b32.xlu1 %v12367_v36, %s12026_s30  ;;  %s298_s30 = scalar_lea.vmem [#allocation8], %s9594_s10  ;;  %s9480_s10 = scalar_lea.sflag [#allocation4], %s12244_s13 }
0x131f   : > { %v6957_v25 = vpop.xlane.xlu0 %6956 }
0x1320   : > { %11646 = vrcp.f32 %v6957_v25 }
0x1323   : > { %v6951_v0 = vpop.xlane.xlu0 %6950 }
0x1327   : > { %v6960_v51 = vpop.xlane.xlu1 %6959 }
0x1328   : > { %11648 = vrcp.f32 %v6960_v51 }
0x1329   : > { %11650 = vrcp.f32 %v6951_v0 }
0x132a   : > { %v11647_v5 = vpop.eup %11646 }
0x132b   : > { %v6969_v42 = vpop.xlane.xlu0 %6968  ;;  %v6954_v17 = vpop.xlane.xlu1 %6953  ;;  %v7015_v49 = vmul.f32 %v11647_v5, %v14487_v35 }
0x132c   : > { %11652 = vrcp.f32 %v6954_v17 }
0x132d   : > { %11654 = vrcp.f32 %v6969_v42 }
0x132f   : > { %v6963_v57 = vpop.xlane.xlu0 %6962  ;;  %v6972_v50 = vpop.xlane.xlu1 %6971 }
0x1330   : > { %11656 = vrcp.f32 %v6972_v50 }
0x1331   : > { %11658 = vrcp.f32 %v6963_v57 }
0x1332   : > { %v11649_v23 = vpop.eup %11648 }
0x1333   : > { %v7016_v29 = vmul.f32 %v11649_v23, %v14499_v10  ;;  %v6981_v43 = vpop.xlane.xlu0 %6980  ;;  %v11651_v1 = vpop.eup %11650 }
0x1334   : > { %v6966_v25 = vpop.xlane.xlu1 %6965  ;;  %v7013_v42 = vmul.f32 %v11651_v1, %v14493_v9 }
0x1335   : > { %11660 = vrcp.f32 %v6966_v25  ;;  %v7030_v51 = vpack.c.bf16 %v7016_v29, %v7015_v49 }
0x1336   : > { %v11653_v0 = vpop.eup %11652  ;;  %11662 = vrcp.f32 %v6981_v43 }
0x1337   : > { %10683 = vmatmul.mubr.msk.bf16.vlgmr.msra.gmra.mrb[224].mxu1 %vm948_vm3, %v7030_v51  ;;  %v7014_v17 = vmul.f32 %v11653_v0, %v14504_v61  ;;  %v6975_v50 = vpop.xlane.xlu0 %6974  ;;  %v11655_v35 = vpop.eup %11654 }
0x1338   : > { %10693 = vmatpush3.bf16.msra.mxu1 %v7179_v31  ;;  %v6984_v36 = vpop.xlane.xlu1 %6983  ;;  %10694 = vmatprep.mubr.msk.bf16.mxu1 %vm12004_vm1, %v15912_v59  ;;  %v7019_v43 = vmul.f32 %v11655_v35, %v14507_v46 }
0x1339   : > { %11664 = vrcp.f32 %v6984_v36  ;;  %10704 = vmatprep.subr.bf16.mxu1 %v15912_v59  ;;  %v7029_v10 = vpack.c.bf16 %v7014_v17, %v7013_v42 }
0x133a   : > { %v11657_v29 = vpop.eup %11656  ;;  %11666 = vrcp.f32 %v6975_v50 }
0x133b   : > { %v7020_v49 = vmul.f32 %v11657_v29, %v14514_v56  ;;  %10677 = vmatmul.mubr.msk.bf16.vlgmr.msra.gmra.mrb[208].mxu0 %vm948_vm3, %v7029_v10  ;;  %v11659_v9 = vpop.eup %11658 }
0x133c   : > { %v6978_v1 = vpop.xlane.xlu1 %6977  ;;  %10687 = vmatpush3.bf16.msra.mxu0 %v14555_v4  ;;  %10688 = vmatprep.mubr.msk.bf16.mxu0 %vm12004_vm1, %v15912_v59  ;;  %v7017_v31 = vmul.f32 %v11659_v9, %v14517_v55 }
0x133d   : > { %11668 = vrcp.f32 %v6978_v1  ;;  %v7032_v36 = vpack.c.bf16 %v7020_v49, %v7019_v43  ;;  %10698 = vmatprep.subr.bf16.mxu0 %v15912_v59 }
0x133f   : > { %v11661_v61 = vpop.eup %11660  ;;  %10695 = vmatmul.mubr.msk.bf16.vlgmr.msra.gmra.mrb[228].mxu1 %vm948_vm3, %v7032_v36 }
0x1340   : > { %v7018_v46 = vmul.f32 %v11661_v61, %v14524_v16  ;;  %v11663_v56 = vpop.eup %11662  ;;  %10705 = vmatpush3.bf16.msra.mxu1 %v14563_v41  ;;  %10706 = vmatprep.mubr.msk.bf16.mxu1 %vm12004_vm1, %v15912_v59 }
0x1341   : > { %10716 = vmatprep.subr.bf16.mxu1 %v15912_v59  ;;  %v7023_v5 = vmul.f32 %v11663_v56, %v14526_v47 }
0x1342   : > { %v7031_v4 = vpack.c.bf16 %v7018_v46, %v7017_v31 }
0x1343   : > { %v11665_v57 = vpop.eup %11664 }
0x1344   : > { %v7024_v23 = vmul.f32 %v11665_v57, %v14532_v39  ;;  %10689 = vmatmul.mubr.msk.bf16.vlgmr.msra.gmra.mrb[212].mxu0 %vm948_vm3, %v7031_v4  ;;  %v11667_v55 = vpop.eup %11666  ;;  %v6993_v39 = vpop.xlane.xlu0 %6992 }
0x1345   : > { %10699 = vmatpush3.bf16.msra.mxu0 %v14599_v44  ;;  %10700 = vmatprep.mubr.msk.bf16.mxu0 %vm12004_vm1, %v15912_v59  ;;  %v7021_v25 = vmul.f32 %v11667_v55, %v14535_v33  ;;  %v7467_v33 = vpop.permute.xlu1 %7466  ;;  %11670 = vrcp.f32 %v6993_v39 }
0x1346   : > { %v7034_v16 = vpack.c.bf16 %v7024_v23, %v7023_v5  ;;  %10710 = vmatprep.subr.bf16.mxu0 %v15912_v59  ;;  %v7472_v61 = vsel %vm534_vm2, %v7467_v33, 0 }
0x1347   : > { %v11669_v41 = vpop.eup %11668 }
0x1348   : > { %v7022_v51 = vmul.f32 %v11669_v41, %v14541_v26  ;;  %10707 = vmatmul.mubr.msk.bf16.vlgmr.msra.gmra.mrb[232].mxu1 %vm948_vm3, %v7034_v16  ;;  %v6987_v26 = vpop.xlane.xlu0 %6986 }
0x1349   : > { %10717 = vmatpush3.bf16.msra.mxu1 %v14603_v6  ;;  %10718 = vmatprep.mubr.msk.bf16.mxu1 %vm12004_vm1, %v15912_v59 }
0x134a   : > { %v7033_v47 = vpack.c.bf16 %v7022_v51, %v7021_v25  ;;  %10728 = vmatprep.subr.bf16.mxu1 %v15912_v59 }
0x134c   : > { %10701 = vmatmul.mubr.msk.bf16.vlgmr.msra.gmra.mrb[216].mxu0 %vm948_vm3, %v7033_v47  ;;  %v7416_v6 = vpop.permute.xlu0 %7415 }
0x134d   : > { %10711 = vmatpush3.bf16.msra.mxu0 %v14601_v54  ;;  %10712 = vmatprep.mubr.msk.bf16.mxu0 %vm12004_vm1, %v15912_v59  ;;  %v7421_v46 = vsel %vm534_vm2, %v7416_v6, 0 }
0x134e   : > { %10722 = vmatprep.subr.bf16.mxu0 %v15912_v59 }
0x134f   : > { %v11671_v17 = vpop.eup %11670 }
0x1350   : > { %v7414_v50 = vpop.permute.xlu0 %7413  ;;  %v7027_v54 = vmul.f32 %v11671_v17, %v14543_v15 }
0x1354   : > { %v7465_v9 = vpop.permute.xlu0 %7464 }
0x1358   : > { %v7516_v56 = vpop.permute.xlu0 %7515 }
0x135c   : > { %v7567_v4 = vpop.permute.xlu0 %7566 }
0x1360   : > { %v7618_v55 = vpop.permute.xlu0 %7617 }
0x1364   : > { %v7669_v25 = vpop.permute.xlu0 %7668 }
0x1368   : > { %v7720_v33 = vpop.permute.xlu0 %7719 }
0x1376   : > { %v6996_v44 = vpop.xlane.xlu1 %6995 }
0x1377   : > { %11672 = vrcp.f32 %v6996_v44 }
0x1378   : > { %11674 = vrcp.f32 %v6987_v26 }
0x137a   : > { %v6990_v0 = vpop.xlane.xlu1 %6989 }
0x137b   : > { %11676 = vrcp.f32 %v6990_v0 }
0x137e   : > { %v7518_v42 = vpop.permute.xlu1 %7517 }
0x137f   : > { %v7523_v57 = vsel %vm534_vm2, %v7518_v42, 0 }
0x1381   : > { %v11673_v35 = vpop.eup %11672 }
0x1382   : > { %v7028_v10 = vmul.f32 %v11673_v35, %v14577_v38  ;;  %v11675_v29 = vpop.eup %11674  ;;  %v7569_v43 = vpop.permute.xlu1 %7568 }
0x1383   : > { %v7025_v36 = vmul.f32 %v11675_v29, %v14549_v60  ;;  %v7574_v60 = vsel %vm534_vm2, %v7569_v43, 0 }
0x1384   : > { %v7036_v49 = vpack.c.bf16 %v7028_v10, %v7027_v54 }
0x1385   : > { %v11677_v1 = vpop.eup %11676 }
0x1386   : > { %v7026_v31 = vmul.f32 %v11677_v1, %v14581_v3  ;;  %10719 = vmatmul.mubr.msk.bf16.vlgmr.msra.gmra.mrb[236].mxu1 %vm948_vm3, %v7036_v49  ;;  %v7620_v38 = vpop.permute.xlu1 %7619 }
0x1387   : > { %10729 = vmatpush3.bf16.xpose.msra.mxu1 %v7472_v61  ;;  %10730 = vmatprep.mubr.msk.bf16.mxu1 %vm12004_vm1, %v15912_v59  ;;  %v7625_v16 = vsel %vm534_vm2, %v7620_v38, 0 }
0x1388   : > { %v7035_v15 = vpack.c.bf16 %v7026_v31, %v7025_v36  ;;  %10740 = vmatprep.subr.bf16.mxu1 %v15912_v59 }
0x138a   : > { %10713 = vmatmul.mubr.msk.bf16.vlgmr.msra.gmra.mrb[220].mxu0 %vm948_vm3, %v7035_v15  ;;  %v7671_v3 = vpop.permute.xlu1 %7670 }
0x138b   : > { %10723 = vmatpush3.bf16.xpose.msra.mxu0 %v7421_v46  ;;  %10724 = vmatprep.mubr.msk.bf16.mxu0 %vm12004_vm1, %v15912_v59  ;;  %v7676_v23 = vsel %vm534_vm2, %v7671_v3, 0 }
0x138c   : > { %10734 = vmatprep.subr.bf16.mxu0 %v15912_v59 }
0x138e   : > { %10731 = vmatmul.mubr.msk.bf16.vlgmr.msra.gmra.mrb[240].mxu1 %vm534_vm2, %v7465_v9  ;;  %v7722_v5 = vpop.permute.xlu1 %7721 }
0x138f   : > { %10741 = vmatpush3.bf16.xpose.msra.mxu1 %v7574_v60  ;;  %10742 = vmatprep.mubr.msk.bf16.mxu1 %vm12004_vm1, %v15912_v59  ;;  %v7727_v47 = vsel %vm534_vm2, %v7722_v5, 0 }
0x1390   : > { %10752 = vmatprep.subr.bf16.mxu1 %v15912_v59 }
0x1392   : > { %10725 = vmatmul.mubr.msk.bf16.vlgmr.msra.gmra.mrb[224].mxu0 %vm534_vm2, %v7414_v50  ;;  %v7773_v41 = vpop.permute.xlu1 %7772 }
0x1393   : > { %10735 = vmatpush3.bf16.xpose.msra.mxu0 %v7523_v57  ;;  %10736 = vmatprep.mubr.msk.bf16.mxu0 %vm12004_vm1, %v15912_v59  ;;  %v7778_v51 = vsel %vm534_vm2, %v7773_v41, 0 }
0x1394   : > { %10746 = vmatprep.subr.bf16.mxu0 %v15912_v59 }
0x1396   : > { %10743 = vmatmul.mubr.msk.bf16.vlgmr.msra.gmra.mrb[244].mxu1 %vm534_vm2, %v7567_v4  ;;  %v7771_v39 = vpop.permute.xlu1 %7770 }
0x1397   : > { %10753 = vmatpush3.bf16.xpose.msra.mxu1 %v7676_v23  ;;  %10754 = vmatprep.mubr.msk.bf16.mxu1 %vm12004_vm1, %v15912_v59 }
0x1398   : > { %10764 = vmatprep.subr.bf16.mxu1 %v15912_v59 }
0x139a   : > { %10737 = vmatmul.mubr.msk.bf16.vlgmr.msra.gmra.mrb[228].mxu0 %vm534_vm2, %v7516_v56 }
0x139b   : > { %10747 = vmatpush3.bf16.xpose.msra.mxu0 %v7625_v16  ;;  %10748 = vmatprep.mubr.msk.bf16.mxu0 %vm12004_vm1, %v15912_v59 }
0x139c   : > { %10758 = vmatprep.subr.bf16.mxu0 %v15912_v59 }
0x139e   : > { %10755 = vmatmul.mubr.msk.bf16.vlgmr.msra.gmra.mrb[248].mxu1 %vm534_vm2, %v7669_v25 }
0x139f   : > { %10765 = vmatpush3.bf16.xpose.msra.mxu1 %v7778_v51  ;;  %10766 = vmatprep.mubr.msk.bf16.mxu1 %vm12004_vm1, %v15912_v59 }
0x13a0   : > { %10776 = vmatprep.subr.bf16.mxu1 %v15912_v59 }
0x13a2   : > { %10749 = vmatmul.mubr.msk.bf16.vlgmr.msra.gmra.mrb[232].mxu0 %vm534_vm2, %v7618_v55 }
0x13a3   : > { %10759 = vmatpush3.bf16.xpose.msra.mxu0 %v7727_v47  ;;  %10760 = vmatprep.mubr.msk.bf16.mxu0 %vm12004_vm1, %v15912_v59 }
0x13a4   : > { %10770 = vmatprep.subr.bf16.mxu0 %v15912_v59 }
0x13a6   : > { %10767 = vmatmul.mubr.msk.bf16.vlgmr.msra.gmra.mrb[252].mxu1 %vm534_vm2, %v7771_v39 }
0x13a7   : > { %10778 = vmatprep.mubr.msk.bf16.mxu1 %vm12004_vm1, %v15912_v59 }
0x13aa   : > { %10761 = vmatmul.mubr.msk.bf16.vlgmr.msra.gmra.mrb[236].mxu0 %vm534_vm2, %v7720_v33 }
0x13ab   : > { %10772 = vmatprep.mubr.msk.bf16.mxu0 %vm12004_vm1, %v15912_v59 }
0x140a   : > { %v14696_v26 = vpop.f32.mrb[224].mxu1 }
0x140b   : > { %v10684_v44 = vpop.f32.mrb[225].mxu1 }
0x140c   : > { %v14698_v6 = vpop.f32.mrb[226].mxu1 }
0x140d   : > { %v10685_v42 = vpop.f32.mrb[227].mxu1 }
0x140e   : > { %v14702_v17 = vpop.f32.mrb[208].mxu0 }
0x140f   : > { %v10678_v50 = vpop.f32.mrb[209].mxu0 }
0x1410   : > { %v14704_v35 = vpop.f32.mrb[210].mxu0 }
0x1411   : > { %v10679_v10 = vpop.f32.mrb[211].mxu0 }
0x1412   : > { %v14708_v29 = vpop.f32.mrb[228].mxu1 }
0x1413   : > { %v10696_v43 = vpop.f32.mrb[229].mxu1 }
0x1414   : > { %v14710_v49 = vpop.f32.mrb[230].mxu1 }
0x1415   : > { %v10697_v9 = vpop.f32.mrb[231].mxu1 }
0x1417   : > { %v14714_v36 = vpop.f32.mrb[212].mxu0 }
0x1418   : > { %v10690_v61 = vpop.f32.mrb[213].mxu0 }
0x1419   : > { %v14716_v31 = vpop.f32.mrb[214].mxu0 }
0x141a   : > { %v10691_v38 = vpop.f32.mrb[215].mxu0 }
0x141b   : > { %v14720_v46 = vpop.f32.mrb[232].mxu1 }
0x141c   : > { %15973 = vst [vmem:[#allocation106_spill] sm:$0xff] %v14720_v46  ;;  %v10708_v56 = vpop.f32.mrb[233].mxu1 }
0x141d   : > { %v14722_v60 = vpop.f32.mrb[234].mxu1 }
0x141e   : > { %v10709_v4 = vpop.f32.mrb[235].mxu1 }
0x141f   : > { %v14726_v57 = vpop.f32.mrb[216].mxu0 }
0x1420   : > { %v10702_v5 = vpop.f32.mrb[217].mxu0 }
0x1421   : > { %v14728_v23 = vpop.f32.mrb[218].mxu0 }
0x1422   : > { %v10703_v16 = vpop.f32.mrb[219].mxu0 }
0x1459   : > { %v14732_v41 = vpop.f32.mrb[236].mxu1 }
0x145a   : > { %15974 = vst [vmem:[#allocation107_spill] sm:$0xff] %v14732_v41  ;;  %v10720_v25 = vpop.f32.mrb[237].mxu1 }
0x145b   : > { %v14734_v51 = vpop.f32.mrb[238].mxu1 }
0x145c   : > { %15975 = vst [vmem:[#allocation108_spill] sm:$0xff] %v14734_v51  ;;  %v10721_v39 = vpop.f32.mrb[239].mxu1 }
0x145d   : > { %v14738_v33 = vpop.f32.mrb[220].mxu0 }
0x145e   : > { %15976 = vst [vmem:[#allocation109_spill] sm:$0xff] %v14738_v33  ;;  %v10714_v44 = vpop.f32.mrb[221].mxu0 }
0x145f   : > { %v14740_v42 = vpop.f32.mrb[222].mxu0 }
0x1460   : > { %15977 = vst [vmem:[#allocation110_spill] sm:$0xff] %v14740_v42  ;;  %v10715_v10 = vpop.f32.mrb[223].mxu0 }
0x1461   : > { %v7508_v43 = vpop.f32.mrb[240].mxu1 }
0x1462   : > { %v14744_v9 = vmul.f32 0.5, %v7508_v43  ;;  %v10732_v61 = vpop.f32.mrb[241].mxu1 }
0x1463   : > { %v7511_v38 = vpop.f32.mrb[242].mxu1 }
0x1464   : > { %v10733_v56 = vpop.f32.mrb[243].mxu1  ;;  %v7843_v4 = vsel %vm948_vm3, %v14744_v9, -inf  ;;  %v14750_v44 = vmul.f32 0.5, %v7511_v38 }
0x1465   : > { %7844 = vmax.xlane.f32.xlu0 %v7843_v4  ;;  %v7457_v5 = vpop.f32.mrb[224].mxu0 }
0x1466   : > { %v14748_v16 = vmul.f32 0.5, %v7457_v5  ;;  %v10726_v25 = vpop.f32.mrb[225].mxu0 }
0x1467   : > { %v7460_v39 = vpop.f32.mrb[226].mxu0 }
0x1468   : > { %v14752_v47 = vmul.f32 0.5, %v7460_v39  ;;  %v10727_v10 = vpop.f32.mrb[227].mxu0  ;;  %v7837_v43 = vsel %vm948_vm3, %v14748_v16, -inf  ;;  %v7846_v39 = vsel %vm948_vm3, %v14750_v44, -inf }
0x1469   : > { %v7610_v61 = vpop.f32.mrb[244].mxu1  ;;  %7838 = vmax.xlane.f32.xlu0 %v7837_v43 }
0x146a   : > { %v10744_v56 = vpop.f32.mrb[245].mxu1  ;;  %v7840_v50 = vsel %vm948_vm3, %v14752_v47, -inf  ;;  %v14758_v5 = vmul.f32 0.5, %v7610_v61 }
0x146b   : > { %v7613_v4 = vpop.f32.mrb[246].mxu1  ;;  %7841 = vmax.xlane.f32.xlu1 %v7840_v50 }
0x146c   : > { %v14760_v25 = vmul.f32 0.5, %v7613_v4  ;;  %v10745_v38 = vpop.f32.mrb[247].mxu1  ;;  %v7855_v61 = vsel %vm948_vm3, %v14758_v5, -inf }
0x146d   : > { %7847 = vmax.xlane.f32.xlu0 %v7846_v39  ;;  %v7559_v10 = vpop.f32.mrb[228].mxu0 }
0x146e   : > { %v10738_v3 = vpop.f32.mrb[229].mxu0  ;;  %v7858_v43 = vsel %vm948_vm3, %v14760_v25, -inf  ;;  %v14766_v1 = vmul.f32 0.5, %v7559_v10 }
0x146f   : > { %7859 = vmax.xlane.f32.xlu1 %v7858_v43  ;;  %v7562_v56 = vpop.f32.mrb[230].mxu0 }
0x1470   : > { %v14768_v0 = vmul.f32 0.5, %v7562_v56  ;;  %v10739_v50 = vpop.f32.mrb[231].mxu0  ;;  %v7849_v56 = vsel %vm948_vm3, %v14766_v1, -inf }
0x1471   : > { %v7712_v4 = vpop.f32.mrb[248].mxu1  ;;  %7856 = vmax.xlane.f32.xlu0 %v7855_v61 }
0x1472   : > { %v10756_v38 = vpop.f32.mrb[249].mxu1  ;;  %v7852_v39 = vsel %vm948_vm3, %v14768_v0, -inf  ;;  %v14774_v55 = vmul.f32 0.5, %v7712_v4 }
0x1473   : > { %v7715_v3 = vpop.f32.mrb[250].mxu1  ;;  %7853 = vmax.xlane.f32.xlu1 %v7852_v39 }
0x1474   : > { %v14776_v43 = vmul.f32 0.5, %v7715_v3  ;;  %v10757_v10 = vpop.f32.mrb[251].mxu1  ;;  %v7867_v39 = vsel %vm948_vm3, %v14774_v55, -inf }
0x1475   : > { %7850 = vmax.xlane.f32.xlu0 %v7849_v56  ;;  %v7661_v50 = vpop.f32.mrb[232].mxu0 }
0x1476   : > { %v10750_v15 = vpop.f32.mrb[233].mxu0  ;;  %v7870_v61 = vsel %vm948_vm3, %v14776_v43, -inf  ;;  %v14782_v54 = vmul.f32 0.5, %v7661_v50 }
0x1477   : > { %7871 = vmax.xlane.f32.xlu1 %v7870_v61  ;;  %v7664_v38 = vpop.f32.mrb[234].mxu0 }
0x1478   : > { %v14784_v33 = vmul.f32 0.5, %v7664_v38  ;;  %v10751_v4 = vpop.f32.mrb[235].mxu0  ;;  %v7861_v50 = vsel %vm948_vm3, %v14782_v54, -inf }
0x1479   : > { %v7814_v3 = vpop.f32.mrb[252].mxu1  ;;  %7868 = vmax.xlane.f32.xlu0 %v7867_v39 }
0x147a   : > { %v10768_v10 = vpop.f32.mrb[253].mxu1  ;;  %v7864_v56 = vsel %vm948_vm3, %v14784_v33, -inf  ;;  %v14790_v42 = vmul.f32 0.5, %v7814_v3 }
0x147b   : > { %v7817_v15 = vpop.f32.mrb[254].mxu1  ;;  %7865 = vmax.xlane.f32.xlu1 %v7864_v56 }
0x147c   : > { %v10769_v61 = vpop.f32.mrb[255].mxu1  ;;  %v7879_v39 = vsel %vm948_vm3, %v14790_v42, -inf }
0x147d   : > { %7862 = vmax.xlane.f32.xlu0 %v7861_v50  ;;  %v7763_v38 = vpop.f32.mrb[236].mxu0 }
0x147e   : > { %v10762_v4 = vpop.f32.mrb[237].mxu0  ;;  %v14794_v51 = vmul.f32 0.5, %v7763_v38 }
0x147f   : > { %v7766_v41 = vpop.f32.mrb[238].mxu0 }
0x1480   : > { %v10763_v46 = vpop.f32.mrb[239].mxu0  ;;  %v7873_v10 = vsel %vm948_vm3, %v14794_v51, -inf  ;;  %v14812_v3 = vmul.f32 0.5, %v7766_v41 }
0x1481   : > { %7880 = vmax.xlane.f32.xlu0 %v7879_v39  ;;  %v14810_v46 = vmul.f32 0.5, %v7817_v15 }
0x1483   : > { %v7882_v56 = vsel %vm948_vm3, %v14810_v46, -inf }
0x1485   : > { %7874 = vmax.xlane.f32.xlu0 %v7873_v10 }
0x148c   : > { %8068 = vrot.lane.b32.xlu1 %v12349_v12, %s12027_s19  ;;  %v7876_v12 = vsel %vm948_vm3, %v14812_v3, -inf }
0x1490   : > { %8115 = vrot.lane.b32.xlu1 %v12357_v22, %s12027_s19 }
0x1494   : > { %8162 = vrot.lane.b32.xlu1 %v12355_v20, %s12027_s19 }
0x149b   : > { %8021 = vrot.lane.b32.xlu0 %v12351_v14, %s12027_s19 }
0x149f   : > { %8209 = vrot.lane.b32.xlu0 %v12363_v30, %s12027_s19 }
0x14b8   : > { %7883 = vmax.xlane.f32.xlu1 %v7882_v56 }
0x14bc   : > { %7877 = vmax.xlane.f32.xlu1 %v7876_v12 }
0x14cd   : > { %8256 = vrot.lane.b32.xlu1 %v12361_v28, %s12027_s19 }
0x14f2   : > { %v7845_v20 = vpop.xlane.xlu0 %7844 }
0x14f3   : > { %v7887_v14 = vsub.f32 %v14744_v9, %v7845_v20 }
0x14f5   : > { %v7905_v22 = vmul.f32 1.442695, %v7887_v14 }
0x14f6   : > { %v7839_v30 = vpop.xlane.xlu0 %7838 }
0x14f7   : > { %11678 = vpow2.f32 %v7905_v22  ;;  %v7885_v41 = vsub.f32 %v14748_v16, %v7839_v30 }
0x14f8   : > { %v7842_v15 = vpop.xlane.xlu1 %7841 }
0x14f9   : > { %v7901_v61 = vmul.f32 1.442695, %v7885_v41  ;;  %v7886_v50 = vsub.f32 %v14752_v47, %v7842_v15 }
0x14fa   : > { %v7848_v38 = vpop.xlane.xlu0 %7847 }
0x14fb   : > { %11680 = vpow2.f32 %v7901_v61  ;;  %v7888_v4 = vsub.f32 %v14750_v44, %v7848_v38  ;;  %v7903_v10 = vmul.f32 1.442695, %v7886_v50 }
0x14fc   : > { %v7860_v39 = vpop.xlane.xlu1 %7859 }
0x14fd   : > { %v7907_v56 = vmul.f32 1.442695, %v7888_v4  ;;  %v7892_v28 = vsub.f32 %v14760_v25, %v7860_v39 }
0x14fe   : > { %v7857_v12 = vpop.xlane.xlu0 %7856 }
0x14ff   : > { %11682 = vpow2.f32 %v7907_v56  ;;  %v7891_v9 = vsub.f32 %v14758_v5, %v7857_v12  ;;  %v7915_v16 = vmul.f32 1.442695, %v7892_v28 }
0x1500   : > { %v7854_v20 = vpop.xlane.xlu1 %7853  ;;  %11684 = vpow2.f32 %v7903_v10 }
0x1501   : > { %v14826_v14 = vpop.eup %11678  ;;  %v7913_v22 = vmul.f32 1.442695, %v7891_v9  ;;  %v7890_v47 = vsub.f32 %v14768_v0, %v7854_v20 }
0x1502   : > { %v7851_v30 = vpop.xlane.xlu0 %7850  ;;  %v7939_v44 = vsel %vm948_vm3, %v14826_v14, 0.0 }
0x1503   : > { %11686 = vpow2.f32 %v7913_v22  ;;  %v7889_v41 = vsub.f32 %v14766_v1, %v7851_v30  ;;  %7940 = vadd.xlane.f32.xlu0 %v7939_v44  ;;  %v7911_v61 = vmul.f32 1.442695, %v7890_v47 }
0x1504   : > { %v7872_v25 = vpop.xlane.xlu1 %7871  ;;  %11688 = vpow2.f32 %v7915_v16 }
0x1505   : > { %v14832_v15 = vpop.eup %11680  ;;  %v7909_v5 = vmul.f32 1.442695, %v7889_v41  ;;  %v7896_v50 = vsub.f32 %v14776_v43, %v7872_v25 }
0x1506   : > { %v7869_v38 = vpop.xlane.xlu0 %7868  ;;  %v7933_v0 = vsel %vm948_vm3, %v14832_v15, 0.0 }
0x1507   : > { %11690 = vpow2.f32 %v7909_v5  ;;  %v7895_v4 = vsub.f32 %v14774_v55, %v7869_v38  ;;  %7934 = vadd.xlane.f32.xlu0 %v7933_v0  ;;  %v7923_v56 = vmul.f32 1.442695, %v7896_v50 }
0x1508   : > { %v7866_v39 = vpop.xlane.xlu1 %7865  ;;  %11692 = vpow2.f32 %v7911_v61 }
0x1509   : > { %v14838_v10 = vpop.eup %11682  ;;  %v7921_v1 = vmul.f32 1.442695, %v7895_v4  ;;  %v7894_v28 = vsub.f32 %v14784_v33, %v7866_v39 }
0x150a   : > { %v7863_v12 = vpop.xlane.xlu0 %7862  ;;  %v7942_v43 = vsel %vm948_vm3, %v14838_v10, 0.0  ;;  %v14843_v9 = vpop.eup %11684 }
0x150b   : > { %11694 = vpow2.f32 %v7921_v1  ;;  %v7893_v20 = vsub.f32 %v14782_v54, %v7863_v12  ;;  %7943 = vadd.xlane.f32.xlu1 %v7942_v43  ;;  %v7919_v47 = vmul.f32 1.442695, %v7894_v28  ;;  %v7936_v44 = vsel %vm948_vm3, %v14843_v9, 0.0 }
0x150c   : > { %v8069_v55 = vpop.permute.xlu1 %8068  ;;  %11696 = vpow2.f32 %v7923_v56 }
0x150d   : > { %v14846_v16 = vpop.eup %11686  ;;  %v7917_v22 = vmul.f32 1.442695, %v7893_v20  ;;  %10777 = vmatpush3.bf16.msra.mxu1 %v8069_v55 }
0x150e   : > { %v7881_v30 = vpop.xlane.xlu0 %7880  ;;  %v7951_v33 = vsel %vm948_vm3, %v14846_v16, 0.0  ;;  %10788 = vmatprep.subr.bf16.mxu1 %v15912_v59  ;;  %v14853_v41 = vpop.eup %11688 }
0x150f   : > { %11698 = vpow2.f32 %v7917_v22  ;;  %v7899_v54 = vsub.f32 %v14790_v42, %v7881_v30  ;;  %7952 = vadd.xlane.f32.xlu0 %v7951_v33  ;;  %7937 = vadd.xlane.f32.xlu1 %v7936_v44  ;;  %v7954_v38 = vsel %vm948_vm3, %v14853_v41, 0.0 }
0x1510   : > { %11700 = vpow2.f32 %v7919_v47 }
0x1511   : > { %v14856_v25 = vpop.eup %11690  ;;  %v7929_v5 = vmul.f32 1.442695, %v7899_v54  ;;  %v14894_v54 = vpop.permute.xlu1 %8115 }
0x1512   : > { %v7875_v61 = vpop.xlane.xlu0 %7874  ;;  %v7945_v50 = vsel %vm948_vm3, %v14856_v25, 0.0  ;;  %v14863_v4 = vpop.eup %11692 }
0x1513   : > { %11702 = vpow2.f32 %v7929_v5  ;;  %v7897_v0 = vsub.f32 %v14794_v51, %v7875_v61  ;;  %7946 = vadd.xlane.f32.xlu0 %v7945_v50  ;;  %7955 = vadd.xlane.f32.xlu1 %v7954_v38  ;;  %v7948_v28 = vsel %vm948_vm3, %v14863_v4, 0.0  ;;  %v15978_v5 = vpack.i.bf16 %v13029_v52, %v13027_v37 }
0x1514   : > { %v15979_v50 = vpack.i.bf16 %v13364_v48, %v13362_v34  ;;  %v15981_v37 = vpack.i.bf16 %v14034_v19, %v14032_v11  ;;  %v15984_v19 = vpack.i.bf16 %v13041_v58, %v13039_v18  ;;  %v15986_v18 = vpack.i.bf16 %v13711_v2, %v13709_v32  ;;  %v15991_v32 = vld [vmem:[#allocation53_spill] sm:$0xff]  ;;  %v15992_v2 = vld [vmem:[#allocation52_spill] sm:$0xff] }
0x1515   : > { %v14865_v42 = vpop.eup %11694  ;;  %v7925_v39 = vmul.f32 1.442695, %v7897_v0  ;;  %v14900_v61 = vpop.permute.xlu1 %8162  ;;  %v15987_v58 = vpack.i.bf16 %v14046_v21, %v14044_v45  ;;  %v15994_v45 = vld [vmem:[#allocation47_spill] sm:$0xff]  ;;  %v15995_v21 = vld [vmem:[#allocation46_spill] sm:$0xff] }
0x1516   : > { %v8022_v1 = vpop.permute.xlu0 %8021  ;;  %v7963_v56 = vsel %vm948_vm3, %v14865_v42, 0.0  ;;  %v14871_v12 = vpop.eup %11696 }
0x1517   : > { %11704 = vpow2.f32 %v7925_v39  ;;  %7964 = vadd.xlane.f32.xlu0 %v7963_v56  ;;  %10771 = vmatpush3.bf16.msra.mxu0 %v8022_v1  ;;  %v7966_v20 = vsel %vm948_vm3, %v14871_v12, 0.0  ;;  %v15996_v1 = vpack.i.bf16 %v15994_v45, %v15995_v21  ;;  %v16036_v45 = vld [vmem:[#allocation80_spill] sm:$0xff] }
0x1518   : > { %7949 = vadd.xlane.f32.xlu1 %v7948_v28  ;;  %10782 = vmatprep.subr.bf16.mxu0 %v15912_v59 }
0x1519   : > { %v14874_v51 = vpop.eup %11698 }
0x151a   : > { %v7957_v43 = vsel %vm948_vm3, %v14874_v51, 0.0  ;;  %v14880_v55 = vpop.eup %11700 }
0x151b   : > { %7958 = vadd.xlane.f32.xlu0 %v7957_v43  ;;  %v7960_v30 = vsel %vm948_vm3, %v14880_v55, 0.0  ;;  %v16003_v43 = vld [vmem:[#allocation77_spill] sm:$0xff] }
0x151c   : > { %7967 = vadd.xlane.f32.xlu1 %v7966_v20  ;;  %v16004_v20 = vld [vmem:[#allocation76_spill] sm:$0xff] }
0x151d   : > { %v14882_v22 = vpop.eup %11702 }
0x151e   : > { %v7975_v47 = vsel %vm948_vm3, %v14882_v22, 0.0 }
0x151f   : > { %7976 = vadd.xlane.f32.xlu0 %v7975_v47  ;;  %v16005_v47 = vpack.i.bf16 %v16003_v43, %v16004_v20 }
0x1520   : > { %7961 = vadd.xlane.f32.xlu1 %v7960_v30  ;;  %v16006_v30 = vld [vmem:[#allocation71_spill] sm:$0xff] }
0x1521   : > { %v14888_v33 = vpop.eup %11704 }
0x1522   : > { %v7969_v44 = vsel %vm948_vm3, %v14888_v33, 0.0 }
0x1523   : > { %7970 = vadd.xlane.f32.xlu0 %v7969_v44  ;;  %v16007_v44 = vld [vmem:[#allocation70_spill] sm:$0xff] }
0x1539   : > { %8303 = vrot.lane.b32.xlu0 %v12369_v40, %s12027_s19  ;;  %v15980_v40 = vpack.i.bf16 %v13699_v7, %v13697_v27  ;;  %v15982_v27 = vpack.i.bf16 %v14369_v53, %v14367_v8  ;;  %v15983_v7 = vpack.i.bf16 %v14704_v35, %v14702_v17  ;;  %v15985_v53 = vpack.i.bf16 %v13376_v62, %v13374_v63  ;;  %v15990_v62 = vld [vmem:[#allocation29_spill] sm:$0xff] }
0x153a   : > { %v15988_v35 = vpack.i.bf16 %v14381_v24, %v14379_v13  ;;  %v15989_v63 = vpack.i.bf16 %v14716_v31, %v14714_v36  ;;  %v15997_v13 = vld [vmem:[#allocation65_spill] sm:$0xff]  ;;  %v15998_v24 = vld [vmem:[#allocation64_spill] sm:$0xff]  ;;  %v16000_v36 = vld [vmem:[#allocation59_spill] sm:$0xff] }
0x153b   : > { %v15999_v56 = vpack.i.bf16 %v15997_v13, %v15998_v24  ;;  %v16001_v31 = vld [vmem:[#allocation58_spill] sm:$0xff]  ;;  %v16038_v13 = vld [vmem:[#allocation73_spill] sm:$0xff]  ;;  %v16039_v24 = vld [vmem:[#allocation72_spill] sm:$0xff] }
0x153c   : > { %v16002_v28 = vpack.i.bf16 %v16000_v36, %v16001_v31  ;;  %v16041_v31 = vld [vmem:[#allocation85_spill] sm:$0xff] }
0x153d   : > { %10947 = vrot.lane.b32.xlu0 %v15978_v5, %s12028_s12  ;;  %v16008_v5 = vpack.i.bf16 %v16006_v30, %v16007_v44  ;;  %v16045_v30 = vld [vmem:[#allocation96_spill] sm:$0xff] }
0x1541   : > { %10957 = vrot.lane.b32.xlu0 %v15979_v50, %s12029_s27  ;;  %v16009_v50 = vld [vmem:[#allocation89_spill] sm:$0xff] }
0x1545   : > { %v7884_v38 = vpop.xlane.xlu1 %7883  ;;  %10967 = vrot.lane.b32.xlu0 %v15980_v40, %s12030_s29 }
0x1546   : > { %v7900_v0 = vsub.f32 %v14810_v46, %v7884_v38  ;;  %v16010_v38 = vld [vmem:[#allocation88_spill] sm:$0xff] }
0x1547   : > { %v16011_v40 = vpack.i.bf16 %v16009_v50, %v16010_v38  ;;  %v16047_v38 = vpack.i.bf16 %v14710_v49, %v14708_v29 }
0x1548   : > { %v7931_v39 = vmul.f32 1.442695, %v7900_v0  ;;  %v16012_v0 = vld [vmem:[#allocation83_spill] sm:$0xff] }
0x1549   : > { %10977 = vrot.lane.b32.xlu0 %v15981_v37, %s12031_s14  ;;  %v7878_v52 = vpop.xlane.xlu1 %7877 }
0x154a   : > { %11706 = vpow2.f32 %v7931_v39  ;;  %v7898_v34 = vsub.f32 %v14812_v3, %v7878_v52  ;;  %v15993_v3 = vpack.i.bf16 %v15991_v32, %v15992_v2  ;;  %v16013_v39 = vld [vmem:[#allocation82_spill] sm:$0xff]  ;;  %v16015_v52 = vld [vmem:[#allocation101_spill] sm:$0xff]  ;;  %v16030_v2 = vld [vmem:[#allocation68_spill] sm:$0xff] }
0x154b   : > { %v16014_v37 = vpack.i.bf16 %v16012_v0, %v16013_v39  ;;  %v16029_v32 = vld [vmem:[#allocation69_spill] sm:$0xff]  ;;  %v16048_v39 = vld [vmem:[#allocation51_spill] sm:$0xff] }
0x154c   : > { %v7927_v48 = vmul.f32 1.442695, %v7898_v34  ;;  %v16016_v34 = vld [vmem:[#allocation100_spill] sm:$0xff] }
0x154d   : > { %10987 = vrot.lane.b32.xlu0 %v15982_v27, %s12032_s16  ;;  %v16018_v27 = vld [vmem:[#allocation95_spill] sm:$0xff]  ;;  %v8257_v20 = vpop.permute.xlu1 %8256 }
0x154e   : > { %11708 = vpow2.f32 %v7927_v48  ;;  %v16017_v48 = vpack.i.bf16 %v16015_v52, %v16016_v34 }
0x1551   : > { %10997 = vrot.lane.b32.xlu0 %v15983_v7, %s12033_s7  ;;  %v16019_v7 = vld [vmem:[#allocation94_spill] sm:$0xff] }
0x1554   : > { %v14924_v11 = vpop.eup %11706 }
0x1555   : > { %11007 = vrot.lane.b32.xlu0 %v15984_v19, %s12028_s12  ;;  %v7978_v46 = vsel %vm948_vm3, %v14924_v11, 0.0  ;;  %v16020_v19 = vpack.i.bf16 %v16018_v27, %v16019_v7 }
0x1556   : > { %7979 = vadd.xlane.f32.xlu1 %v7978_v46  ;;  %v16021_v46 = vpack.i.bf16 %v14728_v23, %v14726_v57  ;;  %v16031_v57 = vpack.i.bf16 %v16029_v32, %v16030_v2  ;;  %v16032_v23 = vld [vmem:[#allocation61_spill] sm:$0xff] }
0x1558   : > { %v14932_v8 = vpop.eup %11708 }
0x1559   : > { %11017 = vrot.lane.b32.xlu0 %v15985_v53, %s12029_s27  ;;  %v7972_v17 = vsel %vm948_vm3, %v14932_v8, 0.0  ;;  %v16022_v53 = vpack.i.bf16 %v14698_v6, %v14696_v26  ;;  %v16035_v6 = vld [vmem:[#allocation81_spill] sm:$0xff] }
0x155a   : > { %7973 = vadd.xlane.f32.xlu1 %v7972_v17  ;;  %v16023_v17 = vld [vmem:[#allocation57_spill] sm:$0xff]  ;;  %v16037_v21 = vpack.i.bf16 %v16035_v6, %v16036_v45  ;;  %v16058_v6 = vld [vmem:[#allocation86_spill] sm:$0xff] }
0x155d   : > { %11027 = vrot.lane.b32.xlu0 %v15986_v18, %s12030_s29  ;;  %v16024_v18 = vld [vmem:[#allocation56_spill] sm:$0xff] }
0x1561   : > { %11037 = vrot.lane.b32.xlu0 %v15987_v58, %s12031_s14  ;;  %v16025_v58 = vpack.i.bf16 %v16023_v17, %v16024_v18 }
0x1565   : > { %11047 = vrot.lane.b32.xlu0 %v15988_v35, %s12032_s16  ;;  %v16026_v35 = vld [vmem:[#allocation49_spill] sm:$0xff] }
0x1569   : > { %11057 = vrot.lane.b32.xlu0 %v15989_v63, %s12033_s7  ;;  %v16027_v63 = vld [vmem:[#allocation48_spill] sm:$0xff] }
0x156b   : > { %8350 = vrot.lane.b32.xlu1 %v15990_v62, %s12027_s19  ;;  %v16028_v62 = vpack.i.bf16 %v16026_v35, %v16027_v63  ;;  %v16054_v63 = vld [vmem:[#allocation75_spill] sm:$0xff]  ;;  %s9493_s19 = sshll.u32 %s298_s30, 4  ;;  %s15720_s19 = int_to_ptr.vmem [resolvable:$true] %s9493_s19 }
0x156d   : > { %11067 = vrot.lane.b32.xlu0 %v15993_v3, %s12028_s12  ;;  %v16033_v3 = vld [vmem:[#allocation60_spill] sm:$0xff] }
0x156e   : > { %v16034_v26 = vpack.i.bf16 %v16032_v23, %v16033_v3 }
0x156f   : > { %10952 = vrot.lane.b32.xlu1 %v15996_v1, %s12028_s12  ;;  %v15026_v1 = vpop.permute.xlu0 %8209 }
0x1571   : > { %11077 = vrot.lane.b32.xlu0 %v15999_v56, %s12029_s27  ;;  %v16040_v56 = vpack.i.bf16 %v16038_v13, %v16039_v24 }
0x1573   : > { %10962 = vrot.lane.b32.xlu1 %v16002_v28, %s12029_s27  ;;  %v16042_v28 = vld [vmem:[#allocation84_spill] sm:$0xff] }
0x1574   : > { %v16043_v43 = vpack.i.bf16 %v16041_v31, %v16042_v28  ;;  %v16060_v31 = vld [vmem:[#allocation99_spill] sm:$0xff]  ;;  %v16061_v28 = vld [vmem:[#allocation98_spill] sm:$0xff] }
0x1575   : > { %11087 = vrot.lane.b32.xlu0 %v16005_v47, %s12030_s29  ;;  %v16044_v47 = vld [vmem:[#allocation97_spill] sm:$0xff] }
0x1576   : > { %v16046_v44 = vpack.i.bf16 %v16044_v47, %v16045_v30 }
0x1577   : > { %10972 = vrot.lane.b32.xlu1 %v16008_v5, %s12030_s29 }
0x1579   : > { %11097 = vrot.lane.b32.xlu0 %v16011_v40, %s12031_s14 }
0x157b   : > { %10982 = vrot.lane.b32.xlu1 %v16014_v37, %s12031_s14  ;;  %v16049_v37 = vld [vmem:[#allocation50_spill] sm:$0xff] }
0x157c   : > { %v16050_v52 = vpack.i.bf16 %v16048_v39, %v16049_v37  ;;  %v16066_v39 = vld [vmem:[#allocation54_spill] sm:$0xff] }
0x157d   : > { %11107 = vrot.lane.b32.xlu0 %v16017_v48, %s12032_s16 }
0x157f   : > { %10992 = vrot.lane.b32.xlu1 %v16020_v19, %s12032_s16  ;;  %v16051_v19 = vld [vmem:[#allocation63_spill] sm:$0xff] }
0x1581   : > { %11117 = vrot.lane.b32.xlu0 %v16021_v46, %s12033_s7  ;;  %v16052_v46 = vld [vmem:[#allocation62_spill] sm:$0xff] }
0x1582   : > { %v16053_v29 = vpack.i.bf16 %v16051_v19, %v16052_v46  ;;  %v16069_v19 = vld [vmem:[#allocation30_spill] sm:$0xff] }
0x1583   : > { %11002 = vrot.lane.b32.xlu1 %v16022_v53, %s12033_s7 }
0x1585   : > { %11127 = vrot.lane.b32.xlu0 %v16025_v58, %s12028_s12 }
0x1587   : > { %11012 = vrot.lane.b32.xlu1 %v16028_v62, %s12028_s12  ;;  %v16055_v62 = vld [vmem:[#allocation74_spill] sm:$0xff] }
0x1588   : > { %v16056_v32 = vpack.i.bf16 %v16054_v63, %v16055_v62  ;;  %v16073_v63 = vld [vmem:[#allocation79_spill] sm:$0xff]  ;;  %v16074_v62 = vld [vmem:[#allocation78_spill] sm:$0xff] }
0x1589   : > { %11137 = vrot.lane.b32.xlu0 %v16031_v57, %s12029_s27 }
0x158b   : > { %11022 = vrot.lane.b32.xlu1 %v16034_v26, %s12029_s27  ;;  %v16057_v26 = vld [vmem:[#allocation87_spill] sm:$0xff] }
0x158c   : > { %v16059_v45 = vpack.i.bf16 %v16057_v26, %v16058_v6 }
0x158d   : > { %11147 = vrot.lane.b32.xlu0 %v16037_v21, %s12030_s29 }
0x158f   : > { %11032 = vrot.lane.b32.xlu1 %v16040_v56, %s12030_s29 }
0x1590   : > { %v7941_v36 = vpop.xlane.xlu0 %7940 }
0x1591   : > { %11710 = vrcp.f32 %v7941_v36 }
0x1593   : > { %11042 = vrot.lane.b32.xlu1 %v16043_v43, %s12031_s14  ;;  %v16062_v43 = vpack.i.bf16 %v16060_v31, %v16061_v28 }
0x1594   : > { %v7935_v5 = vpop.xlane.xlu0 %7934 }
0x1597   : > { %11052 = vrot.lane.b32.xlu1 %v16046_v44, %s12032_s16  ;;  %v16063_v44 = vld [vmem:[#allocation106_spill] sm:$0xff] }
0x1598   : > { %v7944_v50 = vpop.xlane.xlu1 %7943 }
0x1599   : > { %11712 = vrcp.f32 %v7944_v50 }
0x159a   : > { %11714 = vrcp.f32 %v7935_v5  ;;  %v16064_v5 = vpack.i.bf16 %v14722_v60, %v16063_v44  ;;  %v16065_v60 = vld [vmem:[#allocation55_spill] sm:$0xff] }
0x159b   : > { %11062 = vrot.lane.b32.xlu1 %v16047_v38, %s12033_s7  ;;  %v11711_v27 = vpop.eup %11710  ;;  %v16067_v37 = vpack.i.bf16 %v16065_v60, %v16066_v39 }
0x159c   : > { %v7953_v40 = vpop.xlane.xlu0 %7952  ;;  %v7938_v0 = vpop.xlane.xlu1 %7937  ;;  %v7999_v49 = vmul.f32 %v11711_v27, %v14826_v14 }
0x159d   : > { %11716 = vrcp.f32 %v7938_v0 }
0x159e   : > { %11718 = vrcp.f32 %v7953_v40 }
0x159f   : > { %11072 = vrot.lane.b32.xlu1 %v16050_v52, %s12028_s12 }
0x15a0   : > { %v7947_v34 = vpop.xlane.xlu0 %7946  ;;  %v7956_v48 = vpop.xlane.xlu1 %7955 }
0x15a1   : > { %11720 = vrcp.f32 %v7956_v48 }
0x15a2   : > { %11722 = vrcp.f32 %v7947_v34 }
0x15a3   : > { %v11713_v7 = vpop.eup %11712  ;;  %11082 = vrot.lane.b32.xlu1 %v16053_v29, %s12029_s27  ;;  %v16070_v29 = vld [vmem:[#allocation67_spill] sm:$0xff] }
0x15a4   : > { %v8000_v53 = vmul.f32 %v11713_v7, %v14838_v10  ;;  %v7965_v17 = vpop.xlane.xlu0 %7964  ;;  %v11715_v58 = vpop.eup %11714 }
0x15a5   : > { %v7950_v18 = vpop.xlane.xlu1 %7949  ;;  %v7997_v14 = vmul.f32 %v11715_v58, %v14832_v15 }
0x15a6   : > { %v8014_v35 = vpack.c.bf16 %v8000_v53, %v7999_v49  ;;  %11724 = vrcp.f32 %v7950_v18  ;;  %v16071_v49 = vld [vmem:[#allocation66_spill] sm:$0xff] }
0x15a7   : > { %11092 = vrot.lane.b32.xlu1 %v16056_v32, %s12030_s29  ;;  %v11717_v2 = vpop.eup %11716  ;;  %11726 = vrcp.f32 %v7965_v17  ;;  %v16072_v53 = vpack.i.bf16 %v16070_v29, %v16071_v49  ;;  %v16075_v32 = vpack.i.bf16 %v16073_v63, %v16074_v62 }
0x15a8   : > { %v7959_v57 = vpop.xlane.xlu0 %7958  ;;  %10779 = vmatmul.mubr.msk.bf16.vlgmr.msra.gmra.mrb[0].mxu1 %vm948_vm3, %v8014_v35  ;;  %v7998_v10 = vmul.f32 %v11717_v2, %v14843_v9  ;;  %v11719_v3 = vpop.eup %11718 }
0x15a9   : > { %10789 = vmatpush3.bf16.msra.mxu1 %v14900_v61  ;;  %v7968_v23 = vpop.xlane.xlu1 %7967  ;;  %10790 = vmatprep.mubr.msk.bf16.mxu1 %vm12004_vm1, %v15912_v59  ;;  %v8003_v9 = vmul.f32 %v11719_v3, %v14846_v16 }
0x15aa   : > { %11728 = vrcp.f32 %v7968_v23  ;;  %10800 = vmatprep.subr.bf16.mxu1 %v15912_v59  ;;  %v8013_v21 = vpack.c.bf16 %v7998_v10, %v7997_v14 }
0x15ab   : > { %11102 = vrot.lane.b32.xlu1 %v16059_v45, %s12031_s14  ;;  %v11721_v13 = vpop.eup %11720  ;;  %11730 = vrcp.f32 %v7959_v57 }
0x15ac   : > { %v15069_v15 = vpop.xlane.xlu0 %7976  ;;  %v8004_v61 = vmul.f32 %v11721_v13, %v14853_v41  ;;  %10773 = vmatmul.mubr.msk.bf16.vlgmr.msra.gmra.mrb[240].mxu0 %vm948_vm3, %v8013_v21  ;;  %v11723_v56 = vpop.eup %11722 }
0x15ad   : > { %v7962_v24 = vpop.xlane.xlu1 %7961  ;;  %10783 = vmatpush3.bf16.msra.mxu0 %v14894_v54  ;;  %10784 = vmatprep.mubr.msk.bf16.mxu0 %vm12004_vm1, %v15912_v59  ;;  %v8001_v47 = vmul.f32 %v11723_v56, %v14856_v25 }
0x15ae   : > { %11732 = vrcp.f32 %v7962_v24  ;;  %v8016_v36 = vpack.c.bf16 %v8004_v61, %v8003_v9  ;;  %10794 = vmatprep.subr.bf16.mxu0 %v15912_v59 }
0x15af   : > { %11112 = vrot.lane.b32.xlu1 %v16062_v43, %s12032_s16  ;;  %11734 = vrcp.f32 %v15069_v15 }
0x15b0   : > { %v11725_v16 = vpop.eup %11724  ;;  %v15082_v41 = vpop.xlane.xlu0 %7970  ;;  %10791 = vmatmul.mubr.msk.bf16.vlgmr.msra.gmra.mrb[4].mxu1 %vm948_vm3, %v8016_v36 }
0x15b1   : > { %v8002_v30 = vmul.f32 %v11725_v16, %v14863_v4  ;;  %v11727_v54 = vpop.eup %11726  ;;  %10801 = vmatpush3.bf16.msra.mxu1 %v8257_v20  ;;  %10802 = vmatprep.mubr.msk.bf16.mxu1 %vm12004_vm1, %v15912_v59 }
0x15b2   : > { %10812 = vmatprep.subr.bf16.mxu1 %v15912_v59  ;;  %v8007_v25 = vmul.f32 %v11727_v54, %v14865_v42 }
0x15b3   : > { %11122 = vrot.lane.b32.xlu1 %v16064_v5, %s12033_s7  ;;  %v8015_v50 = vpack.c.bf16 %v8002_v30, %v8001_v47 }
0x15b4   : > { %v11729_v38 = vpop.eup %11728  ;;  %v8304_v40 = vpop.permute.xlu0 %8303 }
0x15b5   : > { %v8008_v4 = vmul.f32 %v11729_v38, %v14871_v12  ;;  %10785 = vmatmul.mubr.msk.bf16.vlgmr.msra.gmra.mrb[244].mxu0 %vm948_vm3, %v8015_v50  ;;  %v11731_v20 = vpop.eup %11730 }
0x15b6   : > { %10795 = vmatpush3.bf16.msra.mxu0 %v15026_v1  ;;  %10796 = vmatprep.mubr.msk.bf16.mxu0 %vm12004_vm1, %v15912_v59  ;;  %v8005_v12 = vmul.f32 %v11731_v20, %v14874_v51  ;;  %v16068_v1 = vld [vmem:[#allocation31_spill] sm:$0xff] }
0x15b7   : > { %v8018_v0 = vpack.c.bf16 %v8008_v4, %v8007_v25  ;;  %11132 = vrot.lane.b32.xlu1 %v16067_v37, %s12028_s12  ;;  %10806 = vmatprep.subr.bf16.mxu0 %v15912_v59  ;;  %s9753_s12 = sshll.u32 %s12093_s25, 9  ;;  %s12035_s25 = smov [#allocation8]  }
0x15b8   : > { %v11733_v52 = vpop.eup %11732  ;;  %v10948_v42 = vpop.permute.xlu0 %10947 }
0x15b9   : > { %v8006_v34 = vmul.f32 %v11733_v52, %v14880_v55  ;;  %v10950_v48 = vunpack.i.h.bf16 %v10948_v42  ;;  %v10949_v27 = vunpack.i.l.bf16 %v10948_v42  ;;  %10803 = vmatmul.mubr.msk.bf16.vlgmr.msra.gmra.mrb[8].mxu1 %vm948_vm3, %v8018_v0  ;;  %v11735_v50 = vpop.eup %11734  ;;  %v16076_v52 = vld [vmem:[#allocation33_spill] sm:$0xff] }
0x15ba   : > { %10814 = vmatprep.mubr.msk.bf16.mxu1 %vm12004_vm1, %v15912_v59  ;;  %v8011_v25 = vmul.f32 %v11735_v50, %v14882_v22 }
0x15bb   : > { %v8846_v7 = vsel %vm534_vm2, %v16068_v1, %v10950_v48  ;;  %v8845_v46 = vsel %vm534_vm2, %v16069_v19, %v10949_v27  ;;  %11142 = vrot.lane.b32.xlu1 %v16072_v53, %s12029_s27  ;;  %v8017_v51 = vpack.c.bf16 %v8006_v34, %v8005_v12  ;;  %v16077_v12 = vld [vmem:[#allocation32_spill] sm:$0xff] }
0x15bc   : > { %v10958_v55 = vpop.permute.xlu0 %10957 }
0x15bd   : > { %v10960_v17 = vunpack.i.h.bf16 %v10958_v55  ;;  %v10959_v18 = vunpack.i.l.bf16 %v10958_v55  ;;  %10797 = vmatmul.mubr.msk.bf16.vlgmr.msra.gmra.mrb[248].mxu0 %vm948_vm3, %v8017_v51 }
0x15be   : > { %10807 = vmatpush3.bf16.msra.mxu0 %v8304_v40  ;;  %10808 = vmatprep.mubr.msk.bf16.mxu0 %vm12004_vm1, %v15912_v59 }
0x15bf   : > { %v8862_v58 = vsel %vm8861_vm4, %v8845_v46, %v10959_v18  ;;  %v8863_v35 = vsel %vm8861_vm4, %v8846_v7, %v10960_v17  ;;  %11152 = vrot.lane.b32.xlu1 %v16075_v32, %s12030_s29 }
0x15c0   : > { %v10968_v2 = vpop.permute.xlu0 %10967 }
0x15c1   : > { %v10970_v57 = vunpack.i.h.bf16 %v10968_v2  ;;  %v10969_v14 = vunpack.i.l.bf16 %v10968_v2 }
0x15c3   : > { %v8879_v10 = vsel %vm8878_vm5, %v8862_v58, %v10969_v14  ;;  %v8880_v23 = vsel %vm8878_vm5, %v8863_v35, %v10970_v57 }
0x15c4   : > { %v10978_v3 = vpop.permute.xlu0 %10977 }
0x15c5   : > { %v10980_v26 = vunpack.i.h.bf16 %v10978_v3  ;;  %v10979_v59 = vunpack.i.l.bf16 %v10978_v3 }
0x15c7   : > { %v8895_v6 = vsel %vm948_vm3, %v8879_v10, %v10979_v59  ;;  %v8896_v45 = vsel %vm948_vm3, %v8880_v23, %v10980_v26  ;;  %v16078_v59 = vld [vmem:[#allocation45_spill] sm:$0xff] }
0x15c8   : > { %v10988_v21 = vpop.permute.xlu0 %10987 }
0x15c9   : > { %v10990_v13 = vunpack.i.h.bf16 %v10988_v21  ;;  %v10989_v9 = vunpack.i.l.bf16 %v10988_v21 }
0x15cb   : > { %v15132_v61 = vsel %vm8911_vm6, %v8895_v6, %v10989_v9  ;;  %v15135_v24 = vsel %vm8911_vm6, %v8896_v45, %v10990_v13  ;;  %v16079_v45 = vld [vmem:[#allocation44_spill] sm:$0xff] }
0x15cc   : > { %v15137_v56 = vpop.permute.xlu0 %10997 }
0x15d0   : > { %v15139_v36 = vpop.permute.xlu0 %11007 }
0x15d4   : > { %v15141_v31 = vpop.permute.xlu0 %11017 }
0x15d8   : > { %v15143_v28 = vpop.permute.xlu0 %11027 }
0x15dc   : > { %v15145_v43 = vpop.permute.xlu0 %11037 }
0x15e0   : > { %v15147_v16 = vpop.permute.xlu0 %11047 }
0x15e3   : > { %v7980_v47 = vpop.xlane.xlu1 %7979 }
0x15e4   : > { %11736 = vrcp.f32 %v7980_v47  ;;  %v15150_v30 = vpop.permute.xlu0 %11057 }
0x15e5   : > { %11738 = vrcp.f32 %v15082_v41 }
0x15e7   : > { %v7974_v54 = vpop.xlane.xlu1 %7973 }
0x15e8   : > { %11740 = vrcp.f32 %v7974_v54  ;;  %v15153_v44 = vpop.permute.xlu0 %11067 }
0x15eb   : > { %v8351_v5 = vpop.permute.xlu1 %8350 }
0x15ec   : > { %v15155_v38 = vpop.permute.xlu0 %11077  ;;  %10813 = vmatpush3.bf16.msra.mxu1 %v8351_v5 }
0x15ee   : > { %v11737_v40 = vpop.eup %11736 }
0x15ef   : > { %v8012_v15 = vmul.f32 %v11737_v40, %v14924_v11  ;;  %v10953_v4 = vpop.permute.xlu1 %10952  ;;  %v11739_v20 = vpop.eup %11738 }
0x15f0   : > { %v10955_v0 = vunpack.i.h.bf16 %v10953_v4  ;;  %v10954_v60 = vunpack.i.l.bf16 %v10953_v4  ;;  %v15159_v39 = vpop.permute.xlu0 %11087  ;;  %v8009_v48 = vmul.f32 %v11739_v20, %v14888_v33 }
0x15f1   : > { %v8020_v41 = vpack.c.bf16 %v8012_v15, %v8011_v25 }
0x15f2   : > { %v11741_v37 = vpop.eup %11740  ;;  %v8848_v42 = vsel %vm534_vm2, %v16076_v52, %v10955_v0  ;;  %v8847_v34 = vsel %vm534_vm2, %v16077_v12, %v10954_v60 }
0x15f3   : > { %v8010_v22 = vmul.f32 %v11741_v37, %v14932_v8  ;;  %10815 = vmatmul.mubr.msk.bf16.vlgmr.msra.gmra.mrb[12].mxu1 %vm948_vm3, %v8020_v41  ;;  %v10963_v11 = vpop.permute.xlu1 %10962 }
0x15f4   : > { %v10965_v27 = vunpack.i.h.bf16 %v10963_v11  ;;  %v10964_v1 = vunpack.i.l.bf16 %v10963_v11  ;;  %v15168_v7 = vpop.permute.xlu0 %11097  ;;  %v16080_v11 = vld [vmem:[#allocation43_spill] sm:$0xff] }
0x15f5   : > { %v8019_v19 = vpack.c.bf16 %v8010_v22, %v8009_v48 }
0x15f6   : > { %v8864_v46 = vsel %vm8861_vm4, %v8847_v34, %v10964_v1  ;;  %v8865_v29 = vsel %vm8861_vm4, %v8848_v42, %v10965_v27  ;;  %v16081_v1 = vld [vmem:[#allocation42_spill] sm:$0xff] }
0x15f7   : > { %10809 = vmatmul.mubr.msk.bf16.vlgmr.msra.gmra.mrb[252].mxu0 %vm948_vm3, %v8019_v19  ;;  %v10973_v49 = vpop.permute.xlu1 %10972 }
0x15f8   : > { %v10975_v53 = vunpack.i.h.bf16 %v10973_v49  ;;  %v10974_v51 = vunpack.i.l.bf16 %v10973_v49  ;;  %v15173_v33 = vpop.permute.xlu0 %11107 }
0x15fa   : > { %v8881_v8 = vsel %vm8878_vm5, %v8864_v46, %v10974_v51  ;;  %v8882_v55 = vsel %vm8878_vm5, %v8865_v29, %v10975_v53 }
0x15fb   : > { %v10983_v17 = vpop.permute.xlu1 %10982 }
0x15fc   : > { %v10985_v18 = vunpack.i.h.bf16 %v10983_v17  ;;  %v10984_v58 = vunpack.i.l.bf16 %v10983_v17  ;;  %v15177_v35 = vpop.permute.xlu0 %11117 }
0x15fe   : > { %v8897_v63 = vsel %vm948_vm3, %v8881_v8, %v10984_v58  ;;  %v8898_v62 = vsel %vm948_vm3, %v8882_v55, %v10985_v18  ;;  %v11228_v8 = vld [vmem:[#allocation7] sm:$0xff]   ;;  %v11229_v55 = vld [vmem:[#allocation7 + $0x8] sm:$0xff]  }
0x15ff   : > { %v10993_v32 = vpop.permute.xlu1 %10992  ;;  %10818 = vmatprep.subr.bf16.mxu0 %v11228_v8 }
0x1600   : > { %v10995_v2 = vunpack.i.h.bf16 %v10993_v32  ;;  %v10994_v57 = vunpack.i.l.bf16 %v10993_v32  ;;  %v11128_v14 = vpop.permute.xlu0 %11127  ;;  %10819 = vmatpush3.bf16.msra.mxu0 %v11228_v8  ;;  %v16089_v8 = vld [vmem:[#allocation102_spill] sm:$0xff] }
0x1601   : > { %v11130_v10 = vunpack.i.h.bf16 %v11128_v14  ;;  %v11129_v23 = vunpack.i.l.bf16 %v11128_v14  ;;  %10820 = vmatprep.subr.bf16.mxu0 %v11229_v55 }
0x1602   : > { %v15182_v3 = vsel %vm8911_vm6, %v8897_v63, %v10994_v57  ;;  %v15185_v26 = vsel %vm8911_vm6, %v8898_v62, %v10995_v2 }
0x1603   : > { %v8858_v6 = vsel %vm534_vm2, %v16078_v59, %v11130_v10  ;;  %v8857_v21 = vsel %vm534_vm2, %v16079_v45, %v11129_v23  ;;  %v15191_v13 = vpop.permute.xlu1 %11002  ;;  %v16082_v59 = vld [vmem:[#allocation91_spill] sm:$0xff] }
0x1604   : > { %v11138_v9 = vpop.permute.xlu0 %11137  ;;  %10821 = vmatpush3.bf16.msra.mxu0 %v11229_v55 }
0x1605   : > { %v11140_v47 = vunpack.i.h.bf16 %v11138_v9  ;;  %v11139_v54 = vunpack.i.l.bf16 %v11138_v9 }
0x1607   : > { %v15194_v5 = vsel %vm8861_vm4, %v8857_v21, %v11139_v54  ;;  %v15197_v50 = vsel %vm8861_vm4, %v8858_v6, %v11140_v47  ;;  %v15199_v40 = vpop.permute.xlu1 %11012  ;;  %v16083_v6 = vld [vmem:[#allocation90_spill] sm:$0xff] }
0x1608   : > { %v16084_v45 = vpack.i.bf16 %v16082_v59, %v16083_v6  ;;  %v16094_v6 = vld [vmem:[#allocation108_spill] sm:$0xff] }
0x160b   : > { %v15201_v25 = vpop.permute.xlu1 %11022 }
0x160f   : > { %v15203_v15 = vpop.permute.xlu1 %11032 }
0x1613   : > { %v15205_v4 = vpop.permute.xlu1 %11042 }
0x1617   : > { %v15207_v20 = vpop.permute.xlu1 %11052 }
0x161b   : > { %v15209_v0 = vpop.permute.xlu1 %11062 }
0x161f   : > { %v15211_v60 = vpop.permute.xlu1 %11072 }
0x1623   : > { %v15213_v41 = vpop.permute.xlu1 %11082 }
0x1627   : > { %v15215_v37 = vpop.permute.xlu1 %11092 }
0x162b   : > { %v15217_v52 = vpop.permute.xlu1 %11102 }
0x162f   : > { %v15219_v42 = vpop.permute.xlu1 %11112 }
0x1633   : > { %v15221_v12 = vpop.permute.xlu1 %11122 }
0x1637   : > { %v11133_v34 = vpop.permute.xlu1 %11132 }
0x1638   : > { %v11135_v48 = vunpack.i.h.bf16 %v11133_v34  ;;  %v11134_v22 = vunpack.i.l.bf16 %v11133_v34 }
0x163a   : > { %v8860_v27 = vsel %vm534_vm2, %v16080_v11, %v11135_v48  ;;  %v8859_v19 = vsel %vm534_vm2, %v16081_v1, %v11134_v22  ;;  %v16085_v48 = vld [vmem:[#allocation93_spill] sm:$0xff]  ;;  %v16086_v22 = vld [vmem:[#allocation92_spill] sm:$0xff] }
0x163b   : > { %v11143_v46 = vpop.permute.xlu1 %11142  ;;  %v16087_v11 = vpack.i.bf16 %v16085_v48, %v16086_v22 }
0x163c   : > { %v11145_v29 = vunpack.i.h.bf16 %v11143_v46  ;;  %v11144_v49 = vunpack.i.l.bf16 %v11143_v46 }
0x163e   : > { %v15228_v53 = vsel %vm8861_vm4, %v8859_v19, %v11144_v49  ;;  %v15231_v51 = vsel %vm8861_vm4, %v8860_v27, %v11145_v29  ;;  %v16088_v49 = vld [vmem:[#allocation103_spill] sm:$0xff] }
0x163f   : > { %v16090_v55 = vpack.i.bf16 %v16088_v49, %v16089_v8  ;;  %v11009_v8 = vunpack.i.l.bf16 %v15139_v36 }
0x167b   : > { %v8108_v17 = vpop.f32.mrb[0].mxu1 }
0x167c   : > { %v10780_v18 = vpop.f32.mrb[1].mxu1 }
0x167d   : > { %v8111_v58 = vpop.f32.mrb[2].mxu1 }
0x167e   : > { %v11156_v63 = vpack.i.bf16 %v8111_v58, %v8108_v17  ;;  %v10781_v62 = vpop.f32.mrb[3].mxu1 }
0x167f   : > { %v8061_v32 = vpop.f32.mrb[240].mxu0 }
0x1680   : > { %11157 = vrot.lane.b32.xlu1 %v11156_v63, %s12034_s17  ;;  %v10774_v2 = vpop.f32.mrb[241].mxu0 }
0x1681   : > { %v8064_v57 = vpop.f32.mrb[242].mxu0  ;;  %v16092_v2 = vld [vmem:[#allocation104_spill] sm:$0xff] }
0x1682   : > { %v11161_v14 = vpack.i.bf16 %v8064_v57, %v8061_v32  ;;  %v10775_v10 = vpop.f32.mrb[243].mxu0  ;;  %v16091_v32 = vld [vmem:[#allocation105_spill] sm:$0xff] }
0x1683   : > { %v8202_v23 = vpop.f32.mrb[4].mxu1  ;;  %v16093_v57 = vpack.i.bf16 %v16091_v32, %v16092_v2  ;;  %v11030_v2 = vunpack.i.h.bf16 %v15143_v28 }
0x1684   : > { %11172 = vrot.lane.b32.xlu1 %v16084_v45, %s12031_s14  ;;  %v10792_v21 = vpop.f32.mrb[5].mxu1  ;;  %11162 = vrot.lane.b32.xlu0 %v11161_v14, %s12034_s17  ;;  %v16095_v45 = vld [vmem:[#allocation107_spill] sm:$0xff] }
0x1685   : > { %v8205_v9 = vpop.f32.mrb[6].mxu1  ;;  %v16096_v21 = vpack.i.bf16 %v16094_v6, %v16095_v45  ;;  %v11049_v6 = vunpack.i.l.bf16 %v15147_v16  ;;  %v11069_v45 = vunpack.i.l.bf16 %v15153_v44 }
0x1686   : > { %v11176_v47 = vpack.i.bf16 %v8205_v9, %v8202_v23  ;;  %v10793_v54 = vpop.f32.mrb[7].mxu1  ;;  %v16097_v9 = vld [vmem:[#allocation110_spill] sm:$0xff] }
0x1688   : > { %v8155_v34 = vpop.f32.mrb[244].mxu0  ;;  %11177 = vrot.lane.b32.xlu1 %v11176_v47, %s12034_s17  ;;  %11167 = vrot.lane.b32.xlu0 %v16087_v11, %s12031_s14  ;;  %v16098_v47 = vld [vmem:[#allocation109_spill] sm:$0xff] }
0x1689   : > { %v10786_v27 = vpop.f32.mrb[245].mxu0  ;;  %v16099_v54 = vpack.i.bf16 %v16097_v9, %v16098_v47  ;;  %v11070_v9 = vunpack.i.h.bf16 %v15153_v44  ;;  %v11079_v47 = vunpack.i.l.bf16 %v15155_v38 }
0x168a   : > { %v8158_v1 = vpop.f32.mrb[246].mxu0 }
0x168b   : > { %v11181_v19 = vpack.i.bf16 %v8158_v1, %v8155_v34  ;;  %v10787_v46 = vpop.f32.mrb[247].mxu0 }
0x168c   : > { %v8296_v29 = vpop.f32.mrb[8].mxu1  ;;  %11192 = vrot.lane.b32.xlu1 %v16090_v55, %s12032_s16  ;;  %v11010_v55 = vunpack.i.h.bf16 %v15139_v36 }
0x168d   : > { %v10804_v17 = vpop.f32.mrb[9].mxu1  ;;  %11182 = vrot.lane.b32.xlu0 %v11181_v19, %s12034_s17 }
0x168e   : > { %v8299_v18 = vpop.f32.mrb[10].mxu1  ;;  %v11019_v17 = vunpack.i.l.bf16 %v15141_v31 }
0x168f   : > { %v11196_v58 = vpack.i.bf16 %v8299_v18, %v8296_v29  ;;  %v10805_v63 = vpop.f32.mrb[11].mxu1  ;;  %v11020_v18 = vunpack.i.h.bf16 %v15141_v31  ;;  %v11039_v31 = vunpack.i.l.bf16 %v15145_v43 }
0x1690   : > { %v8249_v62 = vpop.f32.mrb[248].mxu0  ;;  %v10999_v63 = vunpack.i.l.bf16 %v15137_v56 }
0x1691   : > { %11197 = vrot.lane.b32.xlu1 %v11196_v58, %s12034_s17  ;;  %11187 = vrot.lane.b32.xlu0 %v16093_v57, %s12032_s16  ;;  %v10798_v14 = vpop.f32.mrb[249].mxu0  ;;  %v11000_v58 = vunpack.i.h.bf16 %v15137_v56  ;;  %v11029_v57 = vunpack.i.l.bf16 %v15143_v28  ;;  %v11050_v56 = vunpack.i.h.bf16 %v15147_v16  ;;  %v11059_v28 = vunpack.i.l.bf16 %v15150_v30  ;;  %s15725_s16 = scalar_lea.hbm %s15776_s6, %s9753_s12 }
0x1692   : > { %v8252_v10 = vpop.f32.mrb[250].mxu0  ;;  %v16101_v14 = vld [vmem:[#allocation35_spill] sm:$0xff] }
0x1693   : > { %v11201_v23 = vpack.i.bf16 %v8252_v10, %v8249_v62  ;;  %v10799_v59 = vpop.f32.mrb[251].mxu0  ;;  %v16100_v62 = vld [vmem:[#allocation34_spill] sm:$0xff]  ;;  %v8850_v10 = vsel %vm534_vm2, %v16101_v14, %v11010_v55  ;;  %v11015_v55 = vunpack.i.h.bf16 %v15199_v40  ;;  %v11025_v14 = vunpack.i.h.bf16 %v15201_v25 }
0x1694   : > { %v8849_v32 = vsel %vm534_vm2, %v16100_v62, %v11009_v8  ;;  %v8867_v59 = vsel %vm8861_vm4, %v8850_v10, %v11020_v18  ;;  %v11004_v8 = vunpack.i.l.bf16 %v15191_v13  ;;  %v11099_v10 = vunpack.i.l.bf16 %v15168_v7 }
0x1695   : > { %11212 = vrot.lane.b32.xlu1 %v16096_v21, %s12033_s7  ;;  %11202 = vrot.lane.b32.xlu0 %v11201_v23, %s12034_s17  ;;  %v8866_v36 = vsel %vm8861_vm4, %v8849_v32, %v11019_v17  ;;  %v11040_v23 = vunpack.i.h.bf16 %v15145_v43  ;;  %v11060_v21 = vunpack.i.h.bf16 %v15150_v30  ;;  %v8884_v43 = vsel %vm8878_vm5, %v8867_v59, %v11030_v2  ;;  %v11153_v32 = vpop.permute.xlu1 %11152 }
0x1696   : > { %v15299_v30 = vsel %vm8928_vm7, %v15135_v24, %v11000_v58  ;;  %v11014_v17 = vunpack.i.l.bf16 %v15199_v40  ;;  %v11090_v58 = vunpack.i.h.bf16 %v15159_v39  ;;  %v11089_v2 = vunpack.i.l.bf16 %v15159_v39 }
0x1697   : > { %v11110_v40 = vunpack.i.h.bf16 %v15173_v33 }
0x1699   : > { %11207 = vrot.lane.b32.xlu0 %v16099_v54, %s12033_s7  ;;  %v8883_v54 = vsel %vm8878_vm5, %v8866_v36, %v11029_v57  ;;  %v11100_v57 = vunpack.i.h.bf16 %v15168_v7  ;;  %v11035_v36 = vunpack.i.h.bf16 %v15203_v15  ;;  %s11924_s7 = scalar_lea.vmem %s15720_s19, 512 }
0x169a   : > { %v8899_v16 = vsel %vm948_vm3, %v8883_v54, %v11039_v31  ;;  %v8931_v31 = vsel %vm8928_vm7, %v15182_v3, %v11004_v8  ;;  %v11075_v8 = vunpack.i.h.bf16 %v15211_v60  ;;  %p11925_p11 = scmp.ne.s32.totalorder %s15720_s19, %s11924_s7 }
0x169b   : > { %v8916_v44 = vsel %vm8911_vm6, %v8899_v16, %v11049_v6 }
0x169c   : > { %p11926_p1 = pnand %p11925_p11, %p16139_p0 }
0x169e   : > { %p11927_p3 = pneg %p11926_p1 }
0x16c6   : > { %v8390_v34 = vpop.f32.mrb[12].mxu1 }
0x16c7   : > { %v10816_v48 = vpop.f32.mrb[13].mxu1 }
0x16c8   : > { %v8393_v22 = vpop.f32.mrb[14].mxu1  ;;  %v8900_v48 = vsel %vm948_vm3, %v8884_v43, %v11040_v23  ;;  %v11034_v23 = vunpack.i.l.bf16 %v15203_v15  ;;  %v11044_v15 = vunpack.i.l.bf16 %v15205_v4 }
0x16c9   : > { %v11221_v11 = vpack.i.bf16 %v8393_v22, %v8390_v34  ;;  %v10817_v27 = vpop.f32.mrb[15].mxu1  ;;  %v15292_v34 = vsel %vm8928_vm7, %v15132_v61, %v10999_v63  ;;  %v11080_v22 = vunpack.i.h.bf16 %v15155_v38  ;;  %v15306_v61 = vsel %vm8928_vm7, %v8916_v44, %v11059_v28 }
0x16ca   : > { %v8343_v1 = vpop.f32.mrb[252].mxu0  ;;  %v16102_v27 = vld [vmem:[#allocation38_spill] sm:$0xff] }
0x16cb   : > { %11222 = vrot.lane.b32.xlu1 %v11221_v11, %s12034_s17  ;;  %v10810_v19 = vpop.f32.mrb[253].mxu0  ;;  %v8917_v11 = vsel %vm8911_vm6, %v8900_v48, %v11050_v56  ;;  %v16104_v56 = vld [vmem:[#allocation37_spill] sm:$0xff]  ;;  %v11155_v48 = vunpack.i.h.bf16 %v11153_v32 }
0x16cc   : > { %v8346_v46 = vpop.f32.mrb[254].mxu0  ;;  %v11148_v19 = vpop.permute.xlu0 %11147  ;;  %v8852_v6 = vsel %vm534_vm2, %v16104_v56, %v11015_v55  ;;  %v16106_v56 = vld [vmem:[#allocation41_spill] sm:$0xff] }
0x16cd   : > { %v11216_v29 = vpack.i.bf16 %v8346_v46, %v8343_v1  ;;  %v10811_v49 = vpop.f32.mrb[255].mxu0  ;;  %v8853_v1 = vsel %vm534_vm2, %v16102_v27, %v11069_v45  ;;  %v15309_v46 = vsel %vm8928_vm7, %v8917_v11, %v11060_v21  ;;  %v11150_v63 = vunpack.i.h.bf16 %v11148_v19  ;;  %v16105_v45 = vld [vmem:[#allocation36_spill] sm:$0xff] }
0x16ce   : > { %v15314_v24 = vsel %vm8861_vm4, %v8853_v1, %v11079_v47  ;;  %v11005_v49 = vunpack.i.h.bf16 %v15191_v13  ;;  %v11149_v62 = vunpack.i.l.bf16 %v11148_v19  ;;  %v11024_v13 = vunpack.i.l.bf16 %v15201_v25 }
0x16cf   : > { %11217 = vrot.lane.b32.xlu0 %v11216_v29, %s12034_s17  ;;  %v16103_v29 = vld [vmem:[#allocation39_spill] sm:$0xff]  ;;  %v8851_v25 = vsel %vm534_vm2, %v16105_v45, %v11014_v17  ;;  %v8892_v28 = vsel %vm8878_vm5, %v15197_v50, %v11150_v63  ;;  %v11054_v50 = vunpack.i.l.bf16 %v15207_v20  ;;  %v11055_v1 = vunpack.i.h.bf16 %v15207_v20  ;;  %s11928_s17 = sshll.u32 %s12035_s25, 4  ;;  %s11929_s17 = int_to_ptr.vmem [resolvable:$false] %s11928_s17 }
0x16d0   : > { %v8854_v38 = vsel %vm534_vm2, %v16103_v29, %v11070_v9  ;;  %v8932_v59 = vsel %vm8928_vm7, %v15185_v26, %v11005_v49  ;;  %v8891_v21 = vsel %vm8878_vm5, %v15194_v5, %v11149_v62  ;;  %v8868_v3 = vsel %vm8861_vm4, %v8851_v25, %v11024_v13  ;;  %s11930_s20 = scalar_lea.vmem %s11929_s17, 1024  ;;  %p11931_p7 = scmp.lt.s32.totalorder %s15720_s19, %s11929_s17 }
0x16d1   : > { %v15321_v18 = vsel %vm8861_vm4, %v8854_v38, %v11080_v22  ;;  %v8869_v26 = vsel %vm8861_vm4, %v8852_v6, %v11025_v14  ;;  %v8885_v43 = vsel %vm8878_vm5, %v8868_v3, %v11034_v23  ;;  %v11154_v22 = vunpack.i.l.bf16 %v11153_v32  ;;  %p11932_p9 = scmp.lt.s32.totalorder %s11930_s20, %s11924_s7 }
0x16d2   : > { %v8886_v16 = vsel %vm8878_vm5, %v8869_v26, %v11035_v36  ;;  %v11045_v5 = vunpack.i.h.bf16 %v15205_v4  ;;  %v8901_v27 = vsel %vm948_vm3, %v8885_v43, %v11044_v15  ;;  %v11064_v19 = vunpack.i.l.bf16 %v15209_v0 }
0x16d3   : > { %v11065_v49 = vunpack.i.h.bf16 %v15209_v0  ;;  %v8893_v63 = vsel %vm8878_vm5, %v15228_v53, %v11154_v22  ;;  %v8894_v62 = vsel %vm8878_vm5, %v15231_v51, %v11155_v48  ;;  %v8918_v13 = vsel %vm8911_vm6, %v8901_v27, %v11054_v50  ;;  %v16107_v50 = vld [vmem:[#allocation40_spill] sm:$0xff]  ;;  %p11933_p12 = por %p11932_p9, %p11931_p7 }
0x16d4   : > { %v8902_v20 = vsel %vm948_vm3, %v8886_v16, %v11045_v5  ;;  %v8856_v6 = vsel %vm534_vm2, %v16106_v56, %v11075_v8  ;;  %v11074_v45 = vunpack.i.l.bf16 %v15211_v60  ;;  %v11085_v43 = vunpack.i.h.bf16 %v15213_v41 }
0x16d5   : > { %v8919_v23 = vsel %vm8911_vm6, %v8902_v20, %v11055_v1  ;;  %v11094_v16 = vunpack.i.l.bf16 %v15215_v37  ;;  %v11125_v8 = vunpack.i.h.bf16 %v15221_v12  ;;  %v8887_v56 = vsel %vm8878_vm5, %v15314_v24, %v11089_v2  ;;  %p11934_p2 = pnand %p11933_p12, %p11927_p3 }
0x16f2   : > { %v11158_v9 = vpop.permute.xlu1 %11157 }
0x16f3   : > { %v11160_v47 = vunpack.i.h.bf16 %v11158_v9  ;;  %v11159_v54 = vunpack.i.l.bf16 %v11158_v9 }
0x16f5   : > { %v8948_v44 = vsel %vm8945_vm8, %v8931_v31, %v11159_v54  ;;  %v8949_v11 = vsel %vm8945_vm8, %v8932_v59, %v11160_v47  ;;  %v8935_v31 = vsel %vm8928_vm7, %v8918_v13, %v11064_v19  ;;  %v8936_v59 = vsel %vm8928_vm7, %v8919_v23, %v11065_v49 }
0x16f6   : > { %v8963_v29 = vpack.c.bf16 %v8949_v11, %v8948_v44  ;;  %v11173_v38 = vpop.permute.xlu1 %11172  ;;  %v11163_v17 = vpop.permute.xlu0 %11162  ;;  %v11105_v44 = vunpack.i.h.bf16 %v15217_v52  ;;  %v11115_v19 = vunpack.i.h.bf16 %v15219_v42 }
0x16f7   : > { %v11175_v55 = vunpack.i.h.bf16 %v11173_v38  ;;  %v11174_v4 = vunpack.i.l.bf16 %v11173_v38  ;;  %v11165_v32 = vunpack.i.h.bf16 %v11163_v17  ;;  %v11164_v14 = vunpack.i.l.bf16 %v11163_v17 }
0x16f9   : > { %v15365_v36 = vsel %vm948_vm3, %v8893_v63, %v11174_v4  ;;  %v15368_v0 = vsel %vm948_vm3, %v8894_v62, %v11175_v55  ;;  %v8947_v53 = vsel %vm8945_vm8, %v15299_v30, %v11165_v32  ;;  %v8946_v51 = vsel %vm8945_vm8, %v15292_v34, %v11164_v14 }
0x16fa   : > { %v8962_v25 = vpack.c.bf16 %v8947_v53, %v8946_v51  ;;  %v11178_v15 = vpop.permute.xlu1 %11177  ;;  %v11168_v9 = vpop.permute.xlu0 %11167  ;;  %v11084_v30 = vunpack.i.l.bf16 %v15213_v41  ;;  %v11095_v34 = vunpack.i.h.bf16 %v15215_v37  ;;  %v8855_v41 = vsel %vm534_vm2, %v16107_v50, %v11074_v45 }
0x16fb   : > { %v11180_v3 = vunpack.i.h.bf16 %v11178_v15  ;;  %v11179_v26 = vunpack.i.l.bf16 %v11178_v15  ;;  %v11170_v47 = vunpack.i.h.bf16 %v11168_v9  ;;  %v11169_v54 = vunpack.i.l.bf16 %v11168_v9 }
0x16fc   : > { %10822 = vmatprep.mubr.msk.bf16.mxu0 %vm401_vm0, %v8962_v25  ;;  %v11104_v37 = vunpack.i.l.bf16 %v15217_v52  ;;  %v11124_v55 = vunpack.i.l.bf16 %v15221_v12  ;;  %v11109_v63 = vunpack.i.l.bf16 %v15173_v33  ;;  %v11119_v51 = vunpack.i.l.bf16 %v15177_v35 }
0x16fd   : > { %v8952_v48 = vsel %vm8945_vm8, %v8935_v31, %v11179_v26  ;;  %v8953_v60 = vsel %vm8945_vm8, %v8936_v59, %v11180_v3  ;;  %v15388_v22 = vsel %vm948_vm3, %v8892_v28, %v11170_v47  ;;  %v15391_v5 = vsel %vm948_vm3, %v8891_v21, %v11169_v54  ;;  %10823 = vmatmul.mubr.msk.bf16.vlgmr.msra.gmra.mrb[0].mxu0 %vm401_vm0, %v8963_v29 }
0x16fe   : > { %v8965_v11 = vpack.c.bf16 %v8953_v60, %v8952_v48  ;;  %v11193_v27 = vpop.permute.xlu1 %11192  ;;  %v11114_v28 = vunpack.i.l.bf16 %v15219_v42  ;;  %v8872_v21 = vsel %vm8861_vm4, %v8855_v41, %v11084_v30  ;;  %v8873_v29 = vsel %vm8861_vm4, %v8856_v6, %v11085_v43 }
0x16ff   : > { %v11183_v1 = vpop.permute.xlu0 %11182  ;;  %v8889_v4 = vsel %vm8878_vm5, %v8872_v21, %v11094_v16  ;;  %v8890_v52 = vsel %vm8878_vm5, %v8873_v29, %v11095_v34  ;;  %v8888_v6 = vsel %vm8878_vm5, %v15321_v18, %v11090_v58  ;;  %v8903_v25 = vsel %vm948_vm3, %v8887_v56, %v11099_v10  ;;  %v16111_v56 = vld [vmem:[#allocation14_spill] sm:$0xff] }
0x1700   : > { %v11185_v38 = vunpack.i.h.bf16 %v11183_v1  ;;  %v11184_v49 = vunpack.i.l.bf16 %v11183_v1  ;;  %v8905_v62 = vsel %vm948_vm3, %v8889_v4, %v11104_v37  ;;  %v8906_v32 = vsel %vm948_vm3, %v8890_v52, %v11105_v44 }
0x1701   : > { %v8922_v12 = vsel %vm8911_vm6, %v8905_v62, %v11114_v28  ;;  %v8923_v23 = vsel %vm8911_vm6, %v8906_v32, %v11115_v19  ;;  %v8904_v15 = vsel %vm948_vm3, %v8888_v6, %v11100_v57  ;;  %v8920_v39 = vsel %vm8911_vm6, %v8903_v25, %v11109_v63 }
0x1702   : > { %v8951_v17 = vsel %vm8945_vm8, %v15309_v46, %v11185_v38  ;;  %v8950_v42 = vsel %vm8945_vm8, %v15306_v61, %v11184_v49  ;;  %v11120_v46 = vunpack.i.h.bf16 %v15177_v35  ;;  %v8939_v61 = vsel %vm8928_vm7, %v8922_v12, %v11124_v55 }
0x1703   : > { %v8964_v14 = vpack.c.bf16 %v8951_v17, %v8950_v42  ;;  %v11198_v20 = vpop.permute.xlu1 %11197  ;;  %v11188_v13 = vpop.permute.xlu0 %11187  ;;  %v8940_v59 = vsel %vm8928_vm7, %v8923_v23, %v11125_v8  ;;  %v8921_v18 = vsel %vm8911_vm6, %v8904_v15, %v11110_v40  ;;  %v8937_v3 = vsel %vm8928_vm7, %v8920_v39, %v11119_v51  ;;  %v16109_v23 = vld [vmem:[#allocation13_spill] sm:$0xff]  ;;  %v16110_v51 = vld [vmem:[#allocation16_spill] sm:$0xff] }
0x1704   : > { %v11200_v31 = vunpack.i.h.bf16 %v11198_v20  ;;  %v11199_v53 = vunpack.i.l.bf16 %v11198_v20  ;;  %v8938_v26 = vsel %vm8928_vm7, %v8921_v18, %v11120_v46  ;;  %v11195_v54 = vunpack.i.h.bf16 %v11193_v27 }
0x1705   : > { %10826 = vmatprep.mubr.msk.bf16.mxu0 %vm401_vm0, %v8964_v14  ;;  %v11194_v33 = vunpack.i.l.bf16 %v11193_v27  ;;  %v11190_v60 = vunpack.i.h.bf16 %v11188_v13  ;;  %v11189_v50 = vunpack.i.l.bf16 %v11188_v13  ;;  %v16108_v14 = vld [vmem:[#allocation15_spill] sm:$0xff] }
0x1706   : > { %v8956_v45 = vsel %vm8945_vm8, %v8939_v61, %v11199_v53  ;;  %v8957_v35 = vsel %vm8945_vm8, %v8940_v59, %v11200_v31  ;;  %10827 = vmatmul.mubr.msk.bf16.gmra.mrb[4].mxu0 %vm401_vm0, %v8965_v11  ;;  %v8927_v16 = vsel %vm8911_vm6, %v15368_v0, %v11195_v54 }
0x1707   : > { %v8967_v24 = vpack.c.bf16 %v8957_v35, %v8956_v45  ;;  %v11203_v2 = vpop.permute.xlu0 %11202  ;;  %v11213_v57 = vpop.permute.xlu1 %11212  ;;  %v8926_v34 = vsel %vm8911_vm6, %v15365_v36, %v11194_v33  ;;  %v8925_v0 = vsel %vm8911_vm6, %v15388_v22, %v11190_v60  ;;  %v8924_v49 = vsel %vm8911_vm6, %v15391_v5, %v11189_v50  ;;  %v15468_v22 = vld [vmem:[%s15773_s3] ss:$0 sm:$0xff] }
0x1708   : > { %v11205_v58 = vunpack.i.h.bf16 %v11203_v2  ;;  %v11204_v9 = vunpack.i.l.bf16 %v11203_v2  ;;  %v11215_v43 = vunpack.i.h.bf16 %v11213_v57  ;;  %v11214_v40 = vunpack.i.l.bf16 %v11213_v57 }
0x170a   : > { %v8955_v10 = vsel %vm8945_vm8, %v8938_v26, %v11205_v58  ;;  %v8954_v7 = vsel %vm8945_vm8, %v8937_v3, %v11204_v9  ;;  %v8943_v37 = vsel %vm8928_vm7, %v8926_v34, %v11214_v40  ;;  %v8944_v11 = vsel %vm8928_vm7, %v8927_v16, %v11215_v43  ;;  %v16113_v40 = vld [vmem:[#allocation17_spill] sm:$0xff] }
0x170b   : > { %v8966_v47 = vpack.c.bf16 %v8955_v10, %v8954_v7  ;;  %v11208_v30 = vpop.permute.xlu0 %11207 }
0x170c   : > { %v11210_v1 = vunpack.i.h.bf16 %v11208_v30  ;;  %v11209_v27 = vunpack.i.l.bf16 %v11208_v30 }
0x170d   : > { %10830 = vmatprep.mubr.msk.bf16.mxu0 %vm401_vm0, %v8966_v47  ;;  %v16112_v47 = vld [vmem:[#allocation19_spill] sm:$0xff] }
0x170e   : > { %10831 = vmatmul.mubr.msk.bf16.gmra.mrb[8].mxu0 %vm401_vm0, %v8967_v24  ;;  %v8942_v8 = vsel %vm8928_vm7, %v8925_v0, %v11210_v1  ;;  %v8941_v55 = vsel %vm8928_vm7, %v8924_v49, %v11209_v27 }
0x173d   : > { %v11223_v48 = vpop.permute.xlu1 %11222 }
0x173e   : > { %v11225_v41 = vunpack.i.h.bf16 %v11223_v48  ;;  %v11224_v44 = vunpack.i.l.bf16 %v11223_v48  ;;  %v16114_v48 = vld [vmem:[#allocation20_spill] sm:$0xff] }
0x1740   : > { %v8960_v19 = vsel %vm8945_vm8, %v8943_v37, %v11224_v44  ;;  %v8961_v28 = vsel %vm8945_vm8, %v8944_v11, %v11225_v41  ;;  %v16115_v41 = vld [vmem:[#allocation18_spill] sm:$0xff] }
0x1741   : > { %v8969_v38 = vpack.c.bf16 %v8961_v28, %v8960_v19  ;;  %v11218_v36 = vpop.permute.xlu0 %11217 }
0x1742   : > { %v11220_v21 = vunpack.i.h.bf16 %v11218_v36  ;;  %v11219_v29 = vunpack.i.l.bf16 %v11218_v36 }
0x1744   : > { %v8959_v4 = vsel %vm8945_vm8, %v8942_v8, %v11220_v21  ;;  %v8958_v52 = vsel %vm8945_vm8, %v8941_v55, %v11219_v29 }
0x1745   : > { %v8968_v17 = vpack.c.bf16 %v8959_v4, %v8958_v52 }
0x1747   : > { %10834 = vmatprep.mubr.msk.bf16.mxu0 %vm401_vm0, %v8968_v17  ;;  %v16116_v17 = vld [vmem:[#allocation23_spill] sm:$0xff] }
0x1748   : > { %10835 = vmatmul.mubr.msk.bf16.gmra.mrb[12].mxu0 %vm401_vm0, %v8969_v38 }
0x17d0   : > { %v10824_v5 = vpop.f32.mrb[0].mxu0 }
0x17d1   : > { %v9060_v42 = vadd.f32 %v10824_v5, %v15468_v22  ;;  %v9051_v63 = vpop.f32.mrb[1].mxu0 }
0x17d2   : > { %v9052_v62 = vadd.f32 %v15468_v22, %v9051_v63  ;;  %v10825_v32 = vpop.f32.mrb[2].mxu0 }
0x17d3   : > { %v15473_v20 = vadd.f32 %v9060_v42, %v16108_v14  ;;  %v9063_v13 = vadd.f32 %v10825_v32, %v15468_v22  ;;  %v9054_v12 = vpop.f32.mrb[3].mxu0 }
0x17d4   : > { %v15477_v31 = vadd.f32 %v9052_v62, %v16109_v23  ;;  %v9055_v53 = vadd.f32 %v15468_v22, %v9054_v12 }
0x17d5   : > { %v9148_v46 = vand.u32 2147483647, %v15473_v20  ;;  %v15482_v61 = vadd.f32 %v9063_v13, %v16110_v51  ;;  %v9132_v51 = vmax.f32 %v15473_v20, 0.0 }
0x17d6   : > { %v9146_v59 = vand.u32 2147483647, %v15477_v31  ;;  %v15486_v6 = vadd.f32 %v9055_v53, %v16111_v56 }
0x17d7   : > { %v9164_v45 = vsub.f32 0.0, %v9148_v46  ;;  %v9149_v35 = vand.u32 2147483647, %v15482_v61 }
0x17d8   : > { %v9162_v25 = vsub.f32 0.0, %v9146_v59  ;;  %v9147_v15 = vand.u32 2147483647, %v15486_v6 }
0x17d9   : > { %v10828_v24 = vpop.f32.mrb[4].mxu0  ;;  %v9182_v2 = vmul.f32 1.442695, %v9164_v45  ;;  %v9165_v39 = vsub.f32 0.0, %v9149_v35 }
0x17da   : > { %v9076_v18 = vadd.f32 %v10828_v24, %v15468_v22  ;;  %v9067_v58 = vpop.f32.mrb[5].mxu0  ;;  %v9178_v9 = vmul.f32 1.442695, %v9162_v25  ;;  %v9163_v3 = vsub.f32 0.0, %v9147_v15 }
0x17db   : > { %v9068_v26 = vadd.f32 %v15468_v22, %v9067_v58  ;;  %v10829_v10 = vpop.f32.mrb[6].mxu0  ;;  %11742 = vpow2.f32 %v9182_v2  ;;  %v9184_v7 = vmul.f32 1.442695, %v9165_v39  ;;  %v9130_v2 = vmax.f32 %v15477_v31, 0.0 }
0x17dc   : > { %v15493_v57 = vadd.f32 %v9076_v18, %v16112_v47  ;;  %v9079_v54 = vadd.f32 %v10829_v10, %v15468_v22  ;;  %v9070_v33 = vpop.f32.mrb[7].mxu0  ;;  %11744 = vpow2.f32 %v9178_v9  ;;  %v9180_v43 = vmul.f32 1.442695, %v9163_v3  ;;  %v16117_v10 = vld [vmem:[#allocation21_spill] sm:$0xff] }
0x17dd   : > { %v15497_v30 = vadd.f32 %v9068_v26, %v16113_v40  ;;  %v9071_v34 = vadd.f32 %v15468_v22, %v9070_v33  ;;  %11746 = vpow2.f32 %v9184_v7  ;;  %v9133_v9 = vmax.f32 %v15482_v61, 0.0 }
0x17de   : > { %v9152_v16 = vand.u32 2147483647, %v15493_v57  ;;  %v15502_v60 = vadd.f32 %v9079_v54, %v16114_v48  ;;  %11748 = vpow2.f32 %v9180_v43  ;;  %v9131_v3 = vmax.f32 %v15486_v6, 0.0  ;;  %v16118_v43 = vld [vmem:[#allocation24_spill] sm:$0xff]  ;;  %v16125_v48 = vld [vmem:[#allocation22_spill] sm:$0xff] }
0x17df   : > { %v9150_v50 = vand.u32 2147483647, %v15497_v30  ;;  %v15506_v44 = vadd.f32 %v9071_v34, %v16115_v41 }
0x17e0   : > { %v9168_v37 = vsub.f32 0.0, %v9152_v16  ;;  %v9153_v11 = vand.u32 2147483647, %v15502_v60 }
0x17e1   : > { %v9166_v1 = vsub.f32 0.0, %v9150_v50  ;;  %v9151_v27 = vand.u32 2147483647, %v15506_v44  ;;  %v10832_v19 = vpop.f32.mrb[8].mxu0 }
0x17e2   : > { %v9190_v28 = vmul.f32 1.442695, %v9168_v37  ;;  %v9169_v38 = vsub.f32 0.0, %v9153_v11  ;;  %v9092_v36 = vadd.f32 %v10832_v19, %v15468_v22  ;;  %v9083_v0 = vpop.f32.mrb[9].mxu0 }
0x17e3   : > { %v9186_v49 = vmul.f32 1.442695, %v9166_v1  ;;  %v9167_v21 = vsub.f32 0.0, %v9151_v27  ;;  %v10833_v29 = vpop.f32.mrb[10].mxu0  ;;  %v9084_v46 = vadd.f32 %v15468_v22, %v9083_v0 }
0x17e4   : > { %11750 = vpow2.f32 %v9190_v28  ;;  %v9192_v8 = vmul.f32 1.442695, %v9169_v38  ;;  %v9086_v55 = vpop.f32.mrb[11].mxu0  ;;  %v15512_v5 = vadd.f32 %v9092_v36, %v16116_v17  ;;  %v9095_v56 = vadd.f32 %v10833_v29, %v15468_v22 }
0x17e5   : > { %11752 = vpow2.f32 %v9186_v49  ;;  %v9188_v4 = vmul.f32 1.442695, %v9167_v21  ;;  %v11743_v52 = vpop.eup %11742  ;;  %v15535_v7 = vadd.f32 %v9084_v46, %v16117_v10  ;;  %v9087_v34 = vadd.f32 %v15468_v22, %v9086_v55 }
0x17e6   : > { %11754 = vpow2.f32 %v9192_v8  ;;  %v11745_v42 = vpop.eup %11744  ;;  %v9228_v63 = vadd.f32 1.0, %v11743_v52  ;;  %v9231_v12 = vmul.f32 -0.5, %v11743_v52  ;;  %v9156_v23 = vand.u32 2147483647, %v15512_v5 }
0x17e7   : > { %11756 = vpow2.f32 %v9188_v4  ;;  %v15514_v62 = vpop.eup %11746  ;;  %v9210_v32 = vadd.f32 1.0, %v11745_v42  ;;  %v9213_v59 = vmul.f32 -0.5, %v11745_v42  ;;  %v9234_v45 = vand.u32 2147483647, %v11743_v52 }
0x17e8   : > { %v15516_v14 = vpop.eup %11748  ;;  %11758 = vlog2.f32 %v9228_v63  ;;  %v9237_v13 = vadd.f32 1.0, %v15514_v62  ;;  %v9216_v35 = vand.u32 2147483647, %v11745_v42  ;;  %v9240_v25 = vmul.f32 -0.5, %v15514_v62 }
0x17e9   : > { %11760 = vlog2.f32 %v9210_v32  ;;  %v9219_v53 = vadd.f32 1.0, %v15516_v14  ;;  %v9232_v24 = vadd.f32 1.0, %v9231_v12  ;;  %v9222_v39 = vmul.f32 -0.5, %v15516_v14 }
0x17ea   : > { %11762 = vlog2.f32 %v9237_v13  ;;  %v9172_v18 = vsub.f32 0.0, %v9156_v23  ;;  %v9214_v54 = vadd.f32 1.0, %v9213_v59  ;;  %v15541_v40 = vadd.f32 %v9095_v56, %v16118_v43 }
0x17eb   : > { %11764 = vlog2.f32 %v9219_v53  ;;  %vm15546_vm9 = vcmp.lt.f32.partialorder %v9234_v45, 0.0004427343  ;;  %vm15550_vm10 = vcmp.lt.f32.partialorder %v9216_v35, 0.0004427343  ;;  %v9241_v41 = vadd.f32 1.0, %v9240_v25 }
0x17ec   : > { %v9233_v37 = vmul.f32 %v11743_v52, %v9232_v24  ;;  %v9223_v11 = vadd.f32 1.0, %v9222_v39  ;;  %v9198_v1 = vmul.f32 1.442695, %v9172_v18  ;;  %v9154_v36 = vand.u32 2147483647, %v15535_v7 }
0x17ed   : > { %v9215_v21 = vmul.f32 %v11745_v42, %v9214_v54  ;;  %v9243_v29 = vand.u32 2147483647, %v15514_v62  ;;  %v9225_v8 = vand.u32 2147483647, %v15516_v14  ;;  %v9242_v52 = vmul.f32 %v15514_v62, %v9241_v41 }
0x17ee   : > { %v15525_v15 = vpop.eup %11750  ;;  %v9224_v13 = vmul.f32 %v15516_v14, %v9223_v11  ;;  %v9170_v53 = vsub.f32 0.0, %v9154_v36  ;;  %v9157_v10 = vand.u32 2147483647, %v15541_v40  ;;  %v15582_v50 = vadd.f32 %v9087_v34, %v16125_v48 }
0x17ef   : > { %v15529_v58 = vpop.eup %11752  ;;  %v9264_v26 = vadd.f32 1.0, %v15525_v15  ;;  %v9267_v17 = vmul.f32 -0.5, %v15525_v15  ;;  %vm15568_vm11 = vcmp.lt.f32.partialorder %v9243_v29, 0.0004427343  ;;  %vm9226_vm12 = vcmp.lt.f32.partialorder %v9225_v8, 0.0004427343 }
0x17f0   : > { %v15537_v47 = vpop.eup %11754  ;;  %v9246_v33 = vadd.f32 1.0, %v15529_v58  ;;  %v9249_v19 = vmul.f32 -0.5, %v15529_v58  ;;  %v9252_v14 = vand.u32 2147483647, %v15529_v58  ;;  %v9194_v24 = vmul.f32 1.442695, %v9170_v53 }
0x17f1   : > { %v15544_v16 = vpop.eup %11756  ;;  %11766 = vlog2.f32 %v9264_v26  ;;  %v9273_v28 = vadd.f32 1.0, %v15537_v47  ;;  %v9268_v18 = vadd.f32 1.0, %v9267_v17  ;;  %v9173_v11 = vsub.f32 0.0, %v9157_v10 }
0x17f2   : > { %11768 = vlog2.f32 %v9246_v33  ;;  %v11759_v27 = vpop.eup %11758  ;;  %v9255_v38 = vadd.f32 1.0, %v15544_v16  ;;  %v9250_v23 = vadd.f32 1.0, %v9249_v19  ;;  %v9258_v56 = vmul.f32 -0.5, %v15544_v16 }
0x17f3   : > { %v11761_v0 = vpop.eup %11760  ;;  %v9230_v49 = vmul.f32 0.6931472, %v11759_v27  ;;  %v9261_v43 = vand.u32 2147483647, %v15544_v16  ;;  %vm9253_vm13 = vcmp.lt.f32.partialorder %v9252_v14, 0.0004427343 }
0x17f4   : > { %v11763_v55 = vpop.eup %11762  ;;  %v9212_v4 = vmul.f32 0.6931472, %v11761_v0  ;;  %11770 = vlog2.f32 %v9255_v38  ;;  %v9251_v26 = vmul.f32 %v15529_v58, %v9250_v23  ;;  %v9259_v33 = vadd.f32 1.0, %v9258_v56 }
0x17f5   : > { %v9236_v63 = vsel %vm15546_vm9, %v9233_v37, %v9230_v49  ;;  %v9239_v32 = vmul.f32 0.6931472, %v11763_v55  ;;  %11772 = vpow2.f32 %v9198_v1  ;;  %v11765_v12 = vpop.eup %11764  ;;  %v9270_v58 = vand.u32 2147483647, %v15525_v15 }
0x17f6   : > { %v9218_v42 = vsel %vm15550_vm10, %v9215_v21, %v9212_v4  ;;  %11774 = vlog2.f32 %v9273_v28  ;;  %v9356_v46 = vadd.f32 %v9236_v63, %v9132_v51  ;;  %v9221_v62 = vmul.f32 0.6931472, %v11765_v12  ;;  %v9402_v51 = vld [vmem:[%s15775_s5] sm:$0x3] }
0x17f7   : > { %v9354_v59 = vadd.f32 %v9218_v42, %v9130_v2  ;;  %v9245_v35 = vsel %vm15568_vm11, %v9242_v52, %v9239_v32  ;;  %v9134_v38 = vmax.f32 %v15497_v30, 0.0  ;;  %v9276_v36 = vmul.f32 -0.5, %v15537_v47 }
0x17f8   : > { %v9227_v25 = vsel %vm9226_vm12, %v9224_v13, %v9221_v62  ;;  %v9357_v41 = vadd.f32 %v9245_v35, %v9133_v9  ;;  %v9260_v49 = vmul.f32 %v15544_v16, %v9259_v33  ;;  %v9200_v21 = vmul.f32 1.442695, %v9173_v11 }
0x17f9   : > { %11776 = vtanh.f32 %v9354_v59  ;;  %v9355_v2 = vadd.f32 %v9227_v25, %v9131_v3  ;;  %v16126_v3 = vld [vmem:[#allocation12_spill] sm:$0xff]  ;;  %v9155_v29 = vand.u32 2147483647, %v15582_v50  ;;  %v9269_v55 = vmul.f32 %v15525_v15, %v9268_v18 }
0x17fa   : > { %11778 = vtanh.f32 %v9356_v46  ;;  %v16127_v1 = vsub.s32 0, %v16126_v3  ;;  %vm9262_vm14 = vcmp.lt.f32.partialorder %v9261_v43, 0.0004427343  ;;  %vm15598_vm15 = vcmp.lt.f32.partialorder %v9270_v58, 0.0004427343 }
0x17fb   : > { %v11767_v39 = vpop.eup %11766  ;;  %11780 = vtanh.f32 %v9355_v2  ;;  %v9135_v17 = vmax.f32 %v15506_v44, 0.0  ;;  %v9171_v32 = vsub.f32 0.0, %v9155_v29  ;;  %v9136_v13 = vmax.f32 %v15493_v57, 0.0 }
0x17fc   : > { %v11769_v54 = vpop.eup %11768  ;;  %v15588_v27 = vrot.slane %v9402_v51, %v16127_v1  ;;  %11782 = vpow2.f32 %v9194_v24  ;;  %v9266_v28 = vmul.f32 0.6931472, %v11767_v39  ;;  %v9277_v12 = vadd.f32 1.0, %v9276_v36 }
0x17fd   : > { %v9248_v37 = vmul.f32 0.6931472, %v11769_v54  ;;  %11784 = vtanh.f32 %v9357_v41  ;;  %v9279_v15 = vand.u32 2147483647, %v15537_v47  ;;  %v9196_v46 = vmul.f32 1.442695, %v9171_v32 }
0x17fe   : > { %v11771_v19 = vpop.eup %11770  ;;  %v9272_v16 = vsel %vm15598_vm15, %v9269_v55, %v9266_v28  ;;  %11786 = vpow2.f32 %v9200_v21  ;;  %v16130_v14 = vsub.s32 1, %v16126_v3  ;;  %v9278_v39 = vmul.f32 %v15537_v47, %v9277_v12 }
0x17ff   : > { %v9254_v34 = vsel %vm9253_vm13, %v9251_v26, %v9248_v37  ;;  %v15593_v0 = vpop.eup %11772  ;;  %v9257_v9 = vmul.f32 0.6931472, %v11771_v19  ;;  %v9360_v45 = vadd.f32 %v9272_v16, %v9136_v13  ;;  %vm9280_vm0 = vcmp.lt.f32.partialorder %v9279_v15, 0.0004427343 }
0x1800   : > { %v11775_v8 = vpop.eup %11774  ;;  %v9358_v4 = vadd.f32 %v9254_v34, %v9134_v38  ;;  %v9300_v42 = vadd.f32 1.0, %v15593_v0  ;;  %v15611_v35 = vrot.slane %v9402_v51, %v16130_v14  ;;  %v9303_v48 = vmul.f32 -0.5, %v15593_v0 }
0x1801   : > { %v9263_v63 = vsel %vm9262_vm14, %v9260_v49, %v9257_v9  ;;  %v9275_v62 = vmul.f32 0.6931472, %v11775_v8  ;;  %v9306_v21 = vand.u32 2147483647, %v15593_v0  ;;  %v9138_v15 = vmax.f32 %v15535_v7, 0.0 }
0x1802   : > { %v9359_v53 = vadd.f32 %v9263_v63, %v9135_v17  ;;  %11788 = vtanh.f32 %v9358_v4  ;;  %v9304_v28 = vadd.f32 1.0, %v9303_v48 }
0x1803   : > { %v11777_v23 = vpop.eup %11776  ;;  %11790 = vpow2.f32 %v9196_v46  ;;  %v9281_v26 = vsel %vm9280_vm0, %v9278_v39, %v9275_v62  ;;  %vm15641_vm1 = vcmp.lt.f32.partialorder %v9306_v21, 0.0004427343 }
0x1804   : > { %v9386_v59 = vmul.f32 %v11777_v23, %v15477_v31  ;;  %v11779_v56 = vpop.eup %11778  ;;  %11792 = vlog2.f32 %v9300_v42  ;;  %v9137_v31 = vmax.f32 %v15502_v60, 0.0  ;;  %v9305_v63 = vmul.f32 %v15593_v0, %v9304_v28 }
0x1805   : > { %v11781_v25 = vpop.eup %11780  ;;  %11794 = vtanh.f32 %v9359_v53  ;;  %v9388_v54 = vmul.f32 %v11779_v56, %v15473_v20  ;;  %v9140_v42 = vmax.f32 %v15512_v5, 0.0 }
0x1806   : > { %v9407_v24 = vmul.f32 %v15588_v27, %v9386_v59  ;;  %v11783_v2 = vpop.eup %11782  ;;  %v9387_v18 = vmul.f32 %v11781_v25, %v15486_v6  ;;  %11796 = vtanh.f32 %v9360_v45  ;;  %v9361_v47 = vadd.f32 %v9281_v26, %v9137_v31 }
0x1807   : > { %v9282_v10 = vadd.f32 1.0, %v11783_v2  ;;  %v11785_v43 = vpop.eup %11784  ;;  %v9409_v41 = vmul.f32 %v15588_v27, %v9388_v54  ;;  %v9285_v11 = vmul.f32 -0.5, %v11783_v2  ;;  %v9288_v29 = vand.u32 2147483647, %v11783_v2 }
0x1808   : > { %v9408_v51 = vmul.f32 %v15588_v27, %v9387_v18  ;;  %v9427_v33 = vadd.f32 %v15611_v35, %v9407_v24  ;;  %v15621_v6 = vpop.eup %11786  ;;  %v9389_v37 = vmul.f32 %v11785_v43, %v15482_v61  ;;  %v9141_v25 = vmax.f32 %v15541_v40, 0.0 }
0x1809   : > { %11798 = vlog2.f32 %v9282_v10  ;;  %v9309_v1 = vadd.f32 1.0, %v15621_v6  ;;  %v9286_v9 = vadd.f32 1.0, %v9285_v11  ;;  %v9429_v49 = vadd.f32 %v15611_v35, %v9409_v41 }
0x180a   : > { %9443 = vxpose.xlu0.b32.start [1/16] (narrow) %v9427_v33, 32  ;;  %v9428_v20 = vadd.f32 %v15611_v35, %v9408_v51  ;;  %11800 = vtanh.f32 %v9361_v47  ;;  %v9410_v36 = vmul.f32 %v15588_v27, %v9389_v37  ;;  %v9312_v4 = vmul.f32 -0.5, %v15621_v6 }
0x180b   : > { %11802 = vlog2.f32 %v9309_v1  ;;  %v9287_v16 = vmul.f32 %v11783_v2, %v9286_v9  ;;  %vm9289_vm2 = vcmp.lt.f32.partialorder %v9288_v29, 0.0004427343  ;;  %v9315_v56 = vand.u32 2147483647, %v15621_v6 }
0x180c   : > { %v11789_v3 = vpop.eup %11788  ;;  %v9430_v12 = vadd.f32 %v15611_v35, %v9410_v36  ;;  %v9313_v46 = vadd.f32 1.0, %v9312_v4 }
0x180d   : > { %v15627_v58 = vpop.eup %11790  ;;  %v9390_v61 = vmul.f32 %v11789_v3, %v15497_v30  ;;  %vm15658_vm3 = vcmp.lt.f32.partialorder %v9315_v56, 0.0004427343  ;;  %v16135_v3 = vld [vmem:[#allocation27_spill] sm:$0xff] }
0x180e   : > { %9444 = vxpose.xlu0.b32.cont [2/16] (narrow) %v9428_v20, 32  ;;  %v11793_v19 = vpop.eup %11792  ;;  %v9291_v38 = vadd.f32 1.0, %v15627_v58  ;;  %v9294_v32 = vmul.f32 -0.5, %v15627_v58  ;;  %v9297_v18 = vand.u32 2147483647, %v15627_v58  ;;  %v9314_v54 = vmul.f32 %v15621_v6, %v9313_v46 }
0x180f   : > { %v11795_v34 = vpop.eup %11794  ;;  %v9302_v55 = vmul.f32 0.6931472, %v11793_v19  ;;  %v9411_v30 = vmul.f32 %v15588_v27, %v9390_v61 }
0x1810   : > { %11804 = vlog2.f32 %v9291_v38  ;;  %v11797_v8 = vpop.eup %11796  ;;  %v9391_v17 = vmul.f32 %v11795_v34, %v15506_v44  ;;  %v9295_v45 = vadd.f32 1.0, %v9294_v32  ;;  %vm9298_vm4 = vcmp.lt.f32.partialorder %v9297_v18, 0.0004427343  ;;  %v16136_v34 = vld [vmem:[#allocation25_spill] sm:$0xff] }
0x1811   : > { %v9392_v44 = vmul.f32 %v11797_v8, %v15493_v57  ;;  %v9308_v0 = vsel %vm15641_vm1, %v9305_v63, %v9302_v55  ;;  %v9431_v24 = vadd.f32 %v15611_v35, %v9411_v30  ;;  %v9139_v57 = vmax.f32 %v15582_v50, 0.0 }
0x1812   : > { %9445 = vxpose.xlu0.b32.cont [3/16] (narrow) %v9429_v49, 32  ;;  %v9412_v59 = vmul.f32 %v15588_v27, %v9391_v17  ;;  %v9364_v2 = vadd.f32 %v9308_v0, %v9140_v42  ;;  %v9296_v48 = vmul.f32 %v15627_v58, %v9295_v45  ;;  %v16137_v49 = vld [vmem:[#allocation28_spill] sm:$0xff] }
0x1813   : > { %v11799_v52 = vpop.eup %11798  ;;  %v9413_v26 = vmul.f32 %v15588_v27, %v9392_v44 }
0x1814   : > { %v9284_v13 = vmul.f32 0.6931472, %v11799_v52  ;;  %v11801_v14 = vpop.eup %11800  ;;  %v9432_v11 = vadd.f32 %v15611_v35, %v9412_v59  ;;  %v16138_v52 = vld [vmem:[#allocation26_spill] sm:$0xff] }
0x1815   : > { %v11803_v39 = vpop.eup %11802  ;;  %v9393_v38 = vmul.f32 %v11801_v14, %v15502_v60  ;;  %v9433_v32 = vadd.f32 %v15611_v35, %v9413_v26 }
0x1816   : > { %v9290_v53 = vsel %vm9289_vm2, %v9287_v16, %v9284_v13  ;;  %9446 = vxpose.xlu0.b32.cont [4/16] (narrow) %v9430_v12, 32  ;;  %v9311_v10 = vmul.f32 0.6931472, %v11803_v39 }
0x1817   : > { %v9362_v62 = vadd.f32 %v9290_v53, %v9138_v15 }
0x1818   : > { %v9317_v20 = vsel %vm15658_vm3, %v9314_v54, %v9311_v10 }
0x1819   : > { %11806 = vtanh.f32 %v9362_v62  ;;  %v9365_v29 = vadd.f32 %v9317_v20, %v9141_v25 }
0x181a   : > { %9447 = vxpose.xlu0.b32.cont [5/16] (narrow) %v9431_v24, 32  ;;  %v11805_v43 = vpop.eup %11804  ;;  %11808 = vtanh.f32 %v9364_v2 }
0x181b   : > { %v10836_v31 = vpop.f32.mrb[12].mxu0  ;;  %v9293_v6 = vmul.f32 0.6931472, %v11805_v43 }
0x181c   : > { %v9108_v51 = vadd.f32 %v10836_v31, %v15468_v22  ;;  %v9099_v33 = vpop.f32.mrb[13].mxu0 }
0x181d   : > { %v9100_v41 = vadd.f32 %v15468_v22, %v9099_v33  ;;  %v10837_v37 = vpop.f32.mrb[14].mxu0  ;;  %v9299_v61 = vsel %vm9298_vm4, %v9296_v48, %v9293_v6 }
0x181e   : > { %v15668_v1 = vadd.f32 %v9108_v51, %v16135_v3  ;;  %v9111_v19 = vadd.f32 %v10837_v37, %v15468_v22  ;;  %v9102_v28 = vpop.f32.mrb[15].mxu0  ;;  %9448 = vxpose.xlu0.b32.cont [6/16] (narrow) %v9432_v11, 32  ;;  %v9363_v8 = vadd.f32 %v9299_v61, %v9139_v57 }
0x181f   : > { %v15673_v58 = vadd.f32 %v9100_v41, %v16136_v34  ;;  %v9103_v36 = vadd.f32 %v15468_v22, %v9102_v28  ;;  %v9414_v22 = vmul.f32 %v15588_v27, %v9393_v38 }
0x1820   : > { %v9160_v9 = vand.u32 2147483647, %v15668_v1  ;;  %v15678_v21 = vadd.f32 %v9111_v19, %v16137_v49  ;;  %11810 = vtanh.f32 %v9363_v8  ;;  %v9144_v34 = vmax.f32 %v15668_v1, 0.0 }
0x1821   : > { %v9158_v55 = vand.u32 2147483647, %v15673_v58  ;;  %v15683_v17 = vadd.f32 %v9103_v36, %v16138_v52  ;;  %11812 = vtanh.f32 %v9365_v29  ;;  %v9434_v0 = vadd.f32 %v15611_v35, %v9414_v22 }
0x1822   : > { %v9176_v4 = vsub.f32 0.0, %v9160_v9  ;;  %v9161_v60 = vand.u32 2147483647, %v15678_v21  ;;  %9449 = vxpose.xlu0.b32.cont [7/16] (narrow) %v9433_v32, 32 }
0x1823   : > { %v9174_v63 = vsub.f32 0.0, %v9158_v55  ;;  %v9159_v16 = vand.u32 2147483647, %v15683_v17  ;;  %v11807_v12 = vpop.eup %11806 }
0x1824   : > { %v9206_v30 = vmul.f32 1.442695, %v9176_v4  ;;  %v9177_v13 = vsub.f32 0.0, %v9161_v60  ;;  %v9394_v23 = vmul.f32 %v11807_v12, %v15535_v7  ;;  %v11809_v59 = vpop.eup %11808  ;;  %v9142_v60 = vmax.f32 %v15673_v58, 0.0 }
0x1825   : > { %v9202_v42 = vmul.f32 1.442695, %v9174_v63  ;;  %v9175_v44 = vsub.f32 0.0, %v9159_v16  ;;  %v9396_v45 = vmul.f32 %v11809_v59, %v15512_v5 }
0x1826   : > { %11814 = vpow2.f32 %v9206_v30  ;;  %v9208_v15 = vmul.f32 1.442695, %v9177_v13  ;;  %v9415_v53 = vmul.f32 %v15588_v27, %v9394_v23  ;;  %9450 = vxpose.xlu0.b32.cont [8/16] (narrow) %v9434_v0, 32  ;;  %v9143_v23 = vmax.f32 %v15683_v17, 0.0 }
0x1827   : > { %11816 = vpow2.f32 %v9202_v42  ;;  %v9204_v46 = vmul.f32 1.442695, %v9175_v44  ;;  %v9417_v18 = vmul.f32 %v15588_v27, %v9396_v45 }
0x1828   : > { %11818 = vpow2.f32 %v9208_v15  ;;  %v9435_v62 = vadd.f32 %v15611_v35, %v9415_v53  ;;  %v9145_v15 = vmax.f32 %v15678_v21, 0.0 }
0x1829   : > { %11820 = vpow2.f32 %v9204_v46  ;;  %v9437_v43 = vadd.f32 %v15611_v35, %v9417_v18 }
0x182a   : > { %v11811_v56 = vpop.eup %11810  ;;  %9451 = vxpose.xlu0.b32.cont [9/16] (narrow) %v9435_v62, 32 }
0x182b   : > { %v9395_v7 = vmul.f32 %v11811_v56, %v15582_v50  ;;  %v11813_v14 = vpop.eup %11812 }
0x182c   : > { %v9397_v31 = vmul.f32 %v11813_v14, %v15541_v40 }
0x182d   : > { %v9416_v24 = vmul.f32 %v15588_v27, %v9395_v7 }
0x182e   : > { %v9418_v50 = vmul.f32 %v15588_v27, %v9397_v31 }
0x182f   : > { %v9436_v10 = vadd.f32 %v15611_v35, %v9416_v24 }
0x1830   : > { %v11815_v25 = vpop.eup %11814  ;;  %v9438_v37 = vadd.f32 %v15611_v35, %v9418_v50 }
0x1831   : > { %v11817_v39 = vpop.eup %11816  ;;  %v9336_v2 = vadd.f32 1.0, %v11815_v25  ;;  %9452 = vxpose.xlu0.b32.cont [10/16] (narrow) %v9436_v10, 32  ;;  %v9339_v33 = vmul.f32 -0.5, %v11815_v25  ;;  %v9342_v11 = vand.u32 2147483647, %v11815_v25 }
0x1832   : > { %v11819_v57 = vpop.eup %11818  ;;  %v9318_v26 = vadd.f32 1.0, %v11817_v39  ;;  %v9321_v47 = vmul.f32 -0.5, %v11817_v39  ;;  %v9324_v6 = vand.u32 2147483647, %v11817_v39 }
0x1833   : > { %11822 = vlog2.f32 %v9336_v2  ;;  %v9345_v54 = vadd.f32 1.0, %v11819_v57  ;;  %v11821_v51 = vpop.eup %11820  ;;  %v9348_v48 = vmul.f32 -0.5, %v11819_v57  ;;  %v9340_v40 = vadd.f32 1.0, %v9339_v33 }
0x1834   : > { %11824 = vlog2.f32 %v9318_v26  ;;  %v9327_v5 = vadd.f32 1.0, %v11821_v51  ;;  %v9330_v41 = vmul.f32 -0.5, %v11821_v51  ;;  %v9322_v20 = vadd.f32 1.0, %v9321_v47 }
0x1835   : > { %11826 = vlog2.f32 %v9345_v54  ;;  %9453 = vxpose.xlu0.b32.cont [11/16] (narrow) %v9437_v43, 32  ;;  %v9349_v19 = vadd.f32 1.0, %v9348_v48  ;;  %v9351_v28 = vand.u32 2147483647, %v11819_v57  ;;  %v9341_v61 = vmul.f32 %v11815_v25, %v9340_v40 }
0x1836   : > { %11828 = vlog2.f32 %v9327_v5  ;;  %v9331_v9 = vadd.f32 1.0, %v9330_v41  ;;  %vm9343_vm5 = vcmp.lt.f32.partialorder %v9342_v11, 0.0004427343  ;;  %v9323_v8 = vmul.f32 %v11817_v39, %v9322_v20 }
0x1837   : > { %v9333_v55 = vand.u32 2147483647, %v11821_v51  ;;  %vm9325_vm6 = vcmp.lt.f32.partialorder %v9324_v6, 0.0004427343  ;;  %v9350_v32 = vmul.f32 %v11819_v57, %v9349_v19  ;;  %vm9352_vm7 = vcmp.lt.f32.partialorder %v9351_v28, 0.0004427343 }
0x1838   : > { %v9332_v12 = vmul.f32 %v11821_v51, %v9331_v9 }
0x1839   : > { %9454 = vxpose.xlu0.b32.cont [12/16] (narrow) %v9438_v37, 32  ;;  %vm9334_vm8 = vcmp.lt.f32.partialorder %v9333_v55, 0.0004427343 }
0x183d   : > { %v11823_v3 = vpop.eup %11822 }
0x183e   : > { %v11825_v38 = vpop.eup %11824  ;;  %v9338_v36 = vmul.f32 0.6931472, %v11823_v3 }
0x183f   : > { %v11827_v49 = vpop.eup %11826  ;;  %v9320_v29 = vmul.f32 0.6931472, %v11825_v38 }
0x1840   : > { %v9344_v4 = vsel %vm9343_vm5, %v9341_v61, %v9338_v36  ;;  %v9347_v52 = vmul.f32 0.6931472, %v11827_v49  ;;  %v11829_v22 = vpop.eup %11828 }
0x1841   : > { %v9326_v63 = vsel %vm9325_vm6, %v9323_v8, %v9320_v29  ;;  %v9368_v30 = vadd.f32 %v9344_v4, %v9144_v34  ;;  %v9329_v16 = vmul.f32 0.6931472, %v11829_v22 }
0x1842   : > { %v9366_v13 = vadd.f32 %v9326_v63, %v9142_v60  ;;  %v9353_v42 = vsel %vm9352_vm7, %v9350_v32, %v9347_v52 }
0x1843   : > { %v9335_v44 = vsel %vm9334_vm8, %v9332_v12, %v9329_v16  ;;  %v9369_v53 = vadd.f32 %v9353_v42, %v9145_v15 }
0x1844   : > { %11830 = vtanh.f32 %v9366_v13  ;;  %v9367_v0 = vadd.f32 %v9335_v44, %v9143_v23 }
0x1845   : > { %11832 = vtanh.f32 %v9368_v30 }
0x1846   : > { %11834 = vtanh.f32 %v9367_v0 }
0x1847   : > { %11836 = vtanh.f32 %v9369_v53 }
0x184e   : > { %v11831_v46 = vpop.eup %11830 }
0x184f   : > { %v9398_v59 = vmul.f32 %v11831_v46, %v15673_v58  ;;  %v11833_v62 = vpop.eup %11832 }
0x1850   : > { %v11835_v56 = vpop.eup %11834  ;;  %v9400_v14 = vmul.f32 %v11833_v62, %v15668_v1 }
0x1851   : > { %v9419_v45 = vmul.f32 %v15588_v27, %v9398_v59  ;;  %v9399_v7 = vmul.f32 %v11835_v56, %v15683_v17  ;;  %v11837_v24 = vpop.eup %11836 }
0x1852   : > { %v9421_v2 = vmul.f32 %v15588_v27, %v9400_v14  ;;  %v9401_v58 = vmul.f32 %v11837_v24, %v15678_v21 }
0x1853   : > { %v9439_v25 = vadd.f32 %v15611_v35, %v9419_v45  ;;  %v9420_v39 = vmul.f32 %v15588_v27, %v9399_v7 }
0x1854   : > { %v9422_v18 = vmul.f32 %v15588_v27, %v9401_v58  ;;  %v9441_v17 = vadd.f32 %v15611_v35, %v9421_v2 }
0x1855   : > { %9455 = vxpose.xlu0.b32.cont [13/16] (narrow) %v9439_v25, 32  ;;  %v9440_v57 = vadd.f32 %v15611_v35, %v9420_v39 }
0x1856   : > { %v9442_v1 = vadd.f32 %v15611_v35, %v9422_v18 }
0x1859   : > { %9456 = vxpose.xlu0.b32.cont [14/16] (narrow) %v9440_v57, 32 }
0x185d   : > { %9457 = vxpose.xlu0.b32.cont [15/16] (narrow) %v9441_v17, 32 }
0x1861   : > { %9458 = vxpose.xlu0.b32.end [16/16] (narrow) %v9442_v1, 32 }
0x18a5   : > { %v9459_v31 = vpop.trf.xlu0 }
0x18a6   : > { %9475 = vst [vmem:[%s298_s30] sm:$0xff] %v9459_v31 }
0x18a9   : > { %v9460_v26 = vpop.trf.xlu0 }
0x18aa   : > { %9476 = vst [vmem:[%s298_s30 + $0x8] sm:$0xff] %v9460_v26 }
0x18ad   : > { %v9461_v21 = vpop.trf.xlu0 }
0x18ae   : > { %9477 = vst [vmem:[%s298_s30 + $0x10] sm:$0xff] %v9461_v21 }
0x18b1   : > { %v9462_v27 = vpop.trf.xlu0 }
0x18b2   : > { %9478 = vst [vmem:[%s298_s30 + $0x18] sm:$0xff] %v9462_v27 }
0x18b3   : > { %11937 = shalt.err (!%p11934_p2)
}
0x18b4   : > { %s11938_s15 = scalar_lea.hbm %s15725_s16, 512  ;;  %s11942_s30 = scalar_lea.hbm %s15776_s6, 1024 }
0x18b5   : > { %p11939_p13 = scmp.ne.s32.totalorder %s15725_s16, %s11938_s15  ;;  %p11943_p4 = scmp.lt.u32.totalorder %s15725_s16, %s15776_s6 }
0x18b6   : > { %p11944_p5 = scmp.lt.u32.totalorder %s11942_s30, %s11938_s15  ;;  %p11946_p11 = scmp.lt.u32.totalorder %s11938_s15, %s15725_s16 }
0x18b7   : > { %p11940_p6 = pnand %p11939_p13, %p16139_p0 }
0x18b8   : > { %p11945_p8 = por %p11944_p5, %p11943_p4 }
0x18b9   : > { %p11941_p10 = pneg %p11940_p6 }
0x18ba   : > { %p11947_p1 = por %p11946_p11, %p11945_p8 }
0x18bc   : > { %p11948_p3 = pnand %p11947_p1, %p11941_p10 }
0x18be   : > { %11951 = shalt.err (!%p11948_p3)
}
0x18bf   : > { %s12036_s14 = smov 128  }
0x18c0   : > { %10852 = dma.vmem_to_hbm [thread:$0]  (%p16139_p0), %s15720_s19, 512, %s15725_s16, %s9480_s10, %s12036_s14, %s12036_s14, %s12029_s27  }
0x18c1 PF: > { %s9508_s7 = sand.u32 1, %s11982_s21   ;;  %p16140_p7 = scmp.ne.s32.totalorder %s15869_s28, 0 }
0x18c2   : > { %p16141_p9 = scmp.ge.s32.totalorder %s11994_s24, 2  ;;  %s9509_s25 = scalar_lea.sflag [#allocation4], %s9508_s7 }
0x18c4   : > { %p10866_p12 = pnand %p16141_p9, %p16140_p7 }
0x18c6   : > { %11977 = dma.done.wait (!%p10866_p12), %s9509_s25, 512  }
0x18c7   : > { %11979 = vsyncadd (!%p10866_p12), %s9509_s25, 4294966784  ;;  %p20_p2 = scmp.ge.s32.totalorder %s12182_s26, 4   ;;  %s16142_s21 = smov %s11986_s22 }
0x18c8   : > { %s16143_s22 = smov %s11990_s23  ;;  %s16144_s23 = smov %s12198_s11 }
0x18c9   : > { %s16145_s24 = smov %s12182_s26  ;;  %22 = sbr.rel (!%p20_p2) target bundleno = 6 (0x6), region = 97 }
0x18d0   :  { %9514 = vsyncpa [#allocation3], 1 }
0x18d1   :  { %9516 = vsyncpa [#allocation3 + $0x1], 1 }
0x18d2   :  { %9517 = vsyncpa [#allocation6], 1 }
0x18d3   :  { %9518 = vsyncpa [#allocation4], 1 }
0x18d4   :  { %9520 = vsyncpa [#allocation4 + $0x1], 1 }

</bundles_post_ra>
